<compile_context>
chip_gen: v7x
topology: tpu7x:2x2x1
jax: 0.10.0
libtpu: 0.0.40
codegen_flags: <defaults>
</compile_context>

<pallas_src>
import functools

import jax
import jax.numpy as jnp
from jax import lax
from jax.experimental import pallas as pl
from jax.experimental.pallas import tpu as pltpu

COEFF = 12.0
BOTTLENECK_WIDTH = 128
EPS = 1e-5


def _round_up(x, m):
    return (x + m - 1) // m * m


def _in_rows(y, g, b):
    """InstanceNorm over rows (per image, per channel), two-pass, affine, f32."""
    mean = jnp.mean(y, axis=0, keepdims=True)
    c = y - mean
    var = jnp.mean(c * c, axis=0, keepdims=True)
    return c * lax.rsqrt(var + EPS) * g + b


# ----------------------------------------------------------------------------
# Kernel A: row-tiled  (x @ w) * scale + shift  [+ residual] [+ ReLU]
#           (the 1x1 convs with folded BatchNorm; final residual add / ReLU fused in)
# ----------------------------------------------------------------------------
def _matmul_affine_kernel(*refs, relu, has_res):
    if has_res:
        x_ref, w_ref, s_ref, b_ref, r_ref, o_ref = refs
    else:
        x_ref, w_ref, s_ref, b_ref, o_ref = refs
        r_ref = None
    y = jnp.dot(x_ref[...], w_ref[...], preferred_element_type=jnp.float32)
    y = y * s_ref[...] + b_ref[...]
    if r_ref is not None:
        y = y + r_ref[...].astype(jnp.float32)
    if relu:
        y = jnp.maximum(y, 0.0)
    o_ref[...] = y.astype(o_ref.dtype)


def matmul_affine(x2d, w2d, scale, shift, *, relu=False, residual=None,
                  out_dtype=jnp.float32, tm=512):
    M, K = x2d.shape
    Kw, Cout = w2d.shape
    assert Kw == K
    TM = min(tm, _round_up(M, 8))
    args = [x2d, w2d,
            scale.reshape(1, Cout).astype(jnp.float32),
            shift.reshape(1, Cout).astype(jnp.float32)]
    in_specs = [
        pl.BlockSpec((TM, K), lambda i: (i, 0)),
        pl.BlockSpec((K, Cout), lambda i: (0, 0)),
        pl.BlockSpec((1, Cout), lambda i: (0, 0)),
        pl.BlockSpec((1, Cout), lambda i: (0, 0)),
    ]
    if residual is not None:
        assert residual.shape == (M, Cout)
        args.append(residual)
        in_specs.append(pl.BlockSpec((TM, Cout), lambda i: (i, 0)))
    return pl.pallas_call(
        functools.partial(_matmul_affine_kernel, relu=relu,
                          has_res=residual is not None),
        out_shape=jax.ShapeDtypeStruct((M, Cout), out_dtype),
        grid=(pl.cdiv(M, TM),),
        in_specs=in_specs,
        out_specs=pl.BlockSpec((TM, Cout), lambda i: (i, 0)),
        compiler_params=pltpu.CompilerParams(dimension_semantics=("parallel",)),
    )(*args)


# ----------------------------------------------------------------------------
# Kernel B: fused BottleneckShared, one image per grid step:
#           conv1x1 -> IN -> ReLU -> conv3x3 (taps packed along K, one matmul) -> IN -> ReLU
# ----------------------------------------------------------------------------
def _shared_kernel(x_ref, w1_ref, g1_ref, b1_ref, w9_ref, g2_ref, b2_ref,
                   o_ref, pad_ref, pack_ref, *, H, W):
    rp = w1_ref.shape[1]
    Wp = pad_ref.shape[1]

    h = jnp.dot(x_ref[0], w1_ref[...], preferred_element_type=jnp.float32)
    h = jnp.maximum(_in_rows(h, g1_ref[...], b1_ref[...]), 0.0)

    # zero only the border strips the 3x3 taps read (never the whole scratch)
    pad_ref[0:1, :, :] = jnp.zeros((1, Wp, rp), pad_ref.dtype)
    pad_ref[H + 1:H + 2, :, :] = jnp.zeros((1, Wp, rp), pad_ref.dtype)
    pad_ref[:, 0:1, :] = jnp.zeros((H + 2, 1, rp), pad_ref.dtype)
    pad_ref[:, W + 1:W + 2, :] = jnp.zeros((H + 2, 1, rp), pad_ref.dtype)
    pad_ref[1:H + 1, 1:W + 1, :] = h.reshape(H, W, rp).astype(pad_ref.dtype)

    # pack the 9 shifted taps along K, single K = 9*rp MXU pass
    for k in range(9):
        dy, dx = k // 3, k % 3
        pack_ref[:, k * rp:(k + 1) * rp] = (
            pad_ref[dy:dy + H, dx:dx + W, :].reshape(H * W, rp))
    acc = jnp.dot(pack_ref[...], w9_ref[...], preferred_element_type=jnp.float32)

    y = jnp.maximum(_in_rows(acc, g2_ref[...], b2_ref[...]), 0.0)
    o_ref[0] = y.astype(o_ref.dtype)


def bottleneck_shared(x3d, w1, g1, b1, w9flat, g2, b2, *, H, W):
    N, HW, Cin = x3d.shape
    rp = w1.shape[1]
    Wpad = _round_up(W + 2, 8)
    return pl.pallas_call(
        functools.partial(_shared_kernel, H=H, W=W),
        out_shape=jax.ShapeDtypeStruct((N, HW, rp), jnp.bfloat16),
        grid=(N,),
        in_specs=[
            pl.BlockSpec((1, HW, Cin), lambda n: (n, 0, 0)),
            pl.BlockSpec((Cin, rp), lambda n: (0, 0)),
            pl.BlockSpec((1, rp), lambda n: (0, 0)),
            pl.BlockSpec((1, rp), lambda n: (0, 0)),
            pl.BlockSpec((9 * rp, rp), lambda n: (0, 0)),
            pl.BlockSpec((1, rp), lambda n: (0, 0)),
            pl.BlockSpec((1, rp), lambda n: (0, 0)),
        ],
        out_specs=pl.BlockSpec((1, HW, rp), lambda n: (n, 0, 0)),
        scratch_shapes=[pltpu.VMEM((H + 2, Wpad, rp), jnp.bfloat16),
                        pltpu.VMEM((HW, 9 * rp), jnp.bfloat16)],
        compiler_params=pltpu.CompilerParams(dimension_semantics=("parallel",)),
    )(x3d, w1,
      g1.reshape(1, rp).astype(jnp.float32), b1.reshape(1, rp).astype(jnp.float32),
      w9flat,
      g2.reshape(1, rp).astype(jnp.float32), b2.reshape(1, rp).astype(jnp.float32))


# ----------------------------------------------------------------------------
# Kernel C: fused conv1/bn1/relu + BOTH LIP branches, one image per grid step:
#           out1 = relu(bn1(conv1(x)))
#           logits = IN([lip1_conv | dlip_conv](shared)); w = exp(SoftGate(logits))
#           lip2d(out1, .) and lip2d(x, .) with the 3x3 / stride-2 box-sum ratio fully in-kernel.
# ----------------------------------------------------------------------------
def _lip_fused_kernel(sh_ref, x_ref, wc_ref, gc_ref, bc_ref,
                      w1_ref, s1_ref, b1_ref,
                      po_ref, px_ref, pad_a, pad_b, pad_w, *, H, W, Cp, Cx):
    Hh, Wh = H // 2, W // 2

    # conv1 -> bn1 -> relu  (the `out` that feeds lip1), fused here to skip an HBM round trip
    out1 = jnp.dot(x_ref[0], w1_ref[...], preferred_element_type=jnp.float32)
    out1 = jnp.maximum(out1 * s1_ref[...] + b1_ref[...], 0.0)          # (H*W, Cp)

    # joint logits for both LIP branches: IN -> SoftGate -> exp
    logits = jnp.dot(sh_ref[0], wc_ref[...], preferred_element_type=jnp.float32)
    y = _in_rows(logits, gc_ref[...], bc_ref[...])
    sig = pl.reciprocal(1.0 + jnp.exp(-y), approx=True)                # EUP sigmoid
    wgt = jnp.exp(COEFF * sig)                                         # (H*W, Cp+Cx), >= 1

    xb = x_ref[0].astype(jnp.float32)                                  # (H*W, Cx)

    def fill(pref, interior, C):
        Wp = pref.shape[1]
        # stride-2/pad-1 pooling only ever reads padded row 0 and padded col 0 as zeros
        pref[0:1, :, :] = jnp.zeros((1, Wp, C), pref.dtype)
        pref[:, 0:1, :] = jnp.zeros((H + 2, 1, C), pref.dtype)
        pref[1:H + 1, 1:W + 1, :] = interior.reshape(H, W, C).astype(pref.dtype)

    fill(pad_a, out1 * wgt[:, :Cp], Cp)
    fill(pad_b, xb * wgt[:, Cp:], Cx)
    fill(pad_w, wgt, Cp + Cx)

    def box_stride2(pref):
        # horizontal pass: cols {2j, 2j+1, 2j+2} via sublane-strided reads
        c0 = pref[:, pl.ds(0, Wh, stride=2), :]
        c1 = pref[:, pl.ds(1, Wh, stride=2), :]
        c2 = pref[:, pl.ds(2, Wh, stride=2), :]
        hs = c0 + c1 + c2                                              # (H+2, Wh, C) f32
        # vertical pass: even/odd split of the (major) row axis, rows {2i, 2i+1, 2i+2}
        hr = hs.reshape((H + 2) // 2, 2, Wh, hs.shape[-1])
        ev, od = hr[:, 0], hr[:, 1]
        return ev[:Hh] + od[:Hh] + ev[1:Hh + 1]                        # (Hh, Wh, C)

    num_a = box_stride2(pad_a)
    num_b = box_stride2(pad_b)
    inv = pl.reciprocal(box_stride2(pad_w), approx=True)               # den >= 4 (weights >= 1)
    po_ref[0] = (num_a * inv[:, :, :Cp]).astype(po_ref.dtype)
    px_ref[0] = (num_b * inv[:, :, Cp:]).astype(px_ref.dtype)


def lip_pool_both(shared3d, x3d, w_cat, g_cat, b_cat, w1, s1, b1, *, H, W, Cp, Cx):
    N, HW, Cin = x3d.shape
    rp = shared3d.shape[-1]
    Ccat = Cp + Cx
    Hh, Wh = H // 2, W // 2
    Wpad = _round_up(W + 2, 8)
    return pl.pallas_call(
        functools.partial(_lip_fused_kernel, H=H, W=W, Cp=Cp, Cx=Cx),
        out_shape=(jax.ShapeDtypeStruct((N, Hh, Wh, Cp), jnp.bfloat16),
                   jax.ShapeDtypeStruct((N, Hh, Wh, Cx), jnp.bfloat16)),
        grid=(N,),
        in_specs=[
            pl.BlockSpec((1, HW, rp), lambda n: (n, 0, 0)),
            pl.BlockSpec((1, HW, Cin), lambda n: (n, 0, 0)),
            pl.BlockSpec((rp, Ccat), lambda n: (0, 0)),
            pl.BlockSpec((1, Ccat), lambda n: (0, 0)),
            pl.BlockSpec((1, Ccat), lambda n: (0, 0)),
            pl.BlockSpec((Cin, Cp), lambda n: (0, 0)),
            pl.BlockSpec((1, Cp), lambda n: (0, 0)),
            pl.BlockSpec((1, Cp), lambda n: (0, 0)),
        ],
        out_specs=(pl.BlockSpec((1, Hh, Wh, Cp), lambda n: (n, 0, 0, 0)),
                   pl.BlockSpec((1, Hh, Wh, Cx), lambda n: (n, 0, 0, 0))),
        scratch_shapes=[
            pltpu.VMEM((H + 2, Wpad, Cp), jnp.float32),
            pltpu.VMEM((H + 2, Wpad, Cx), jnp.float32),
            pltpu.VMEM((H + 2, Wpad, Ccat), jnp.float32),
        ],
        compiler_params=pltpu.CompilerParams(dimension_semantics=("parallel",)),
    )(shared3d, x3d, w_cat,
      g_cat.reshape(1, Ccat).astype(jnp.float32),
      b_cat.reshape(1, Ccat).astype(jnp.float32),
      w1,
      s1.reshape(1, Cp).astype(jnp.float32), b1.reshape(1, Cp).astype(jnp.float32))


# ----------------------------------------------------------------------------
# Plain-JAX glue: weight reshaping, BN folding, lane padding.
# ----------------------------------------------------------------------------
def conv1x1_w(w):  # (Cout, Cin, 1, 1) -> (Cin, Cout)
    return jnp.transpose(w[:, :, 0, 0], (1, 0))


def conv3x3_w9(w):  # (Cout, Cin, 3, 3) -> (9*Cin, Cout), tap order k = ky*3 + kx
    Cout, Cin = w.shape[0], w.shape[1]
    return jnp.transpose(w, (2, 3, 1, 0)).reshape(9 * Cin, Cout)


def fold_bn(bn):   # eval-mode BatchNorm2d -> per-channel (scale, shift)
    g, b, m, v = bn
    scale = g * lax.rsqrt(v + EPS)
    shift = b - m * scale
    return scale, shift


def _pad_cols(a, to):
    return a if a.shape[1] == to else jnp.pad(a, ((0, 0), (0, to - a.shape[1])))


def _pad_rows(a, to):
    return a if a.shape[0] == to else jnp.pad(a, ((0, to - a.shape[0]), (0, 0)))


def _pad_vec(v, to):
    return v if v.shape[0] == to else jnp.pad(v, (0, to - v.shape[0]))


# ----------------------------------------------------------------------------
# Bottleneck (stride=2) forward
# ----------------------------------------------------------------------------
def bottleneck_forward(x_nchw, p):
    x_bf = jnp.transpose(x_nchw, (0, 2, 3, 1)).astype(jnp.bfloat16)    # NCHW -> NHWC bf16
    N, H, W, Cx = x_bf.shape
    assert H % 2 == 0 and W % 2 == 0, "stride-2 LIP pooling assumes even H and W"
    Hh, Wh = H // 2, W // 2
    rp = BOTTLENECK_WIDTH
    Cp = p["conv1"].shape[0]                                           # planes
    exp4 = p["conv3"].shape[0]                                         # 4 * planes
    x3d = x_bf.reshape(N, H * W, Cx)

    # shared = BottleneckShared(x)
    shared = bottleneck_shared(
        x3d,
        conv1x1_w(p["sh_conv1"]).astype(jnp.bfloat16),
        p["sh_in1_g"], p["sh_in1_b"],
        conv3x3_w9(p["sh_conv2"]).astype(jnp.bfloat16),
        p["sh_in2_g"], p["sh_in2_b"], H=H, W=W)                        # (N, H*W, rp) bf16

    # conv1/bn1/relu + both LIP branches + full stride-2 pooling, one kernel
    s1, b1 = fold_bn(p["bn1"])
    w_cat = jnp.concatenate([conv1x1_w(p["lip1_conv"]),
                             conv1x1_w(p["dlip_conv"])], axis=1).astype(jnp.bfloat16)
    g_cat = jnp.concatenate([p["lip1_in_g"], p["dlip_in_g"]])
    b_cat = jnp.concatenate([p["lip1_in_b"], p["dlip_in_b"]])
    pool_out, pool_x = lip_pool_both(
        shared, x3d, w_cat, g_cat, b_cat,
        conv1x1_w(p["conv1"]).astype(jnp.bfloat16), s1, b1,
        H=H, W=W, Cp=Cp, Cx=Cx)                                        # (N,Hh,Wh,Cp), (N,Hh,Wh,Cx)

    M = N * Hh * Wh
    Pp = _round_up(Cp, 128)                                            # lane-dense intermediate
    Ep = _round_up(exp4, 128)                                          # lane-dense output width

    # conv2[1]; bn2; relu  (Cout padded to a multiple of 128; padded cols stay zero)
    s2, b2 = fold_bn(p["bn2"])
    out2 = matmul_affine(pool_out.reshape(M, Cp),
                         _pad_cols(conv1x1_w(p["conv2b"]), Pp).astype(jnp.bfloat16),
                         _pad_vec(s2, Pp), _pad_vec(b2, Pp),
                         relu=True, out_dtype=jnp.bfloat16)            # (M, Pp) bf16

    # downsample tail: conv1x1(inplanes, 4*planes) + BN on the LIP-pooled x (bf16 residual)
    sd, bd = fold_bn(p["ds_bn"])
    residual = matmul_affine(pool_x.reshape(M, Cx),
                             _pad_cols(conv1x1_w(p["ds_conv"]), Ep).astype(jnp.bfloat16),
                             _pad_vec(sd, Ep), _pad_vec(bd, Ep),
                             relu=False, out_dtype=jnp.bfloat16)       # (M, Ep) bf16

    # conv3; bn3; += residual; relu (all fused); K padded to Pp, Cout padded to Ep
    s3, b3 = fold_bn(p["bn3"])
    w3 = _pad_cols(_pad_rows(conv1x1_w(p["conv3"]), Pp), Ep).astype(jnp.bfloat16)
    y2d = matmul_affine(out2, w3, _pad_vec(s3, Ep), _pad_vec(b3, Ep),
                        relu=True, residual=residual, out_dtype=jnp.float32)
    if Ep != exp4:
        y2d = y2d[:, :exp4]

    y = y2d.reshape(N, Hh, Wh, exp4)
    return jnp.transpose(y, (0, 3, 1, 2))                              # NHWC -> NCHW


# ----------------------------------------------------------------------------
# Deterministic parameter construction (shapes from the module's __init__).
# ----------------------------------------------------------------------------
def init_params(key, inplanes, planes):
    rp = BOTTLENECK_WIDTH
    expansion = 4
    keys = iter(jax.random.split(key, 64))

    def w(shape):
        return 0.1 * jax.random.normal(next(keys), shape, jnp.float32)

    def gamma(c):
        return 1.0 + 0.1 * jax.random.normal(next(keys), (c,), jnp.float32)

    def beta(c):
        return 0.05 * jax.random.normal(next(keys), (c,), jnp.float32)

    def bn(c):  # (gamma, beta, running_mean, running_var)
        return (gamma(c), beta(c),
                0.1 * jax.random.normal(next(keys), (c,), jnp.float32),
                1.0 + 0.2 * jax.random.uniform(next(keys), (c,), jnp.float32))

    p = {}
    # BottleneckShared(inplanes)
    p["sh_conv1"] = w((rp, inplanes, 1, 1))
    p["sh_in1_g"], p["sh_in1_b"] = gamma(rp), beta(rp)
    p["sh_conv2"] = w((rp, rp, 3, 3))
    p["sh_in2_g"], p["sh_in2_b"] = gamma(rp), beta(rp)
    # conv1 / bn1
    p["conv1"] = w((planes, inplanes, 1, 1))
    p["bn1"] = bn(planes)
    # conv2[0] = BottleneckLIP(planes).postprocessing
    p["lip1_conv"] = w((planes, rp, 1, 1))
    p["lip1_in_g"], p["lip1_in_b"] = gamma(planes), beta(planes)
    # conv2[1]
    p["conv2b"] = w((planes, planes, 1, 1))
    p["bn2"] = bn(planes)
    # conv3 / bn3
    p["conv3"] = w((planes * expansion, planes, 1, 1))
    p["bn3"] = bn(planes * expansion)
    # downsample = Sequential(BottleneckLIP(inplanes), conv1x1(inplanes, 4*planes), BN)
    p["dlip_conv"] = w((inplanes, rp, 1, 1))
    p["dlip_in_g"], p["dlip_in_b"] = gamma(inplanes), beta(inplanes)
    p["ds_conv"] = w((planes * expansion, inplanes, 1, 1))
    p["ds_bn"] = bn(planes * expansion)
    return p


if __name__ == "__main__":
    key = jax.random.PRNGKey(0)
    kx, kp = jax.random.split(key)

    N, inplanes, H, W = 2, 16, 16, 16
    planes = 8

    x = jax.random.normal(kx, (N, inplanes, H, W), jnp.float32)        # PyTorch-style NCHW
    params = init_params(kp, inplanes, planes)

    fwd = jax.jit(bottleneck_forward)
    out = jax.block_until_ready(fwd(x, params))

    assert out.shape == (N, planes * 4, H // 2, W // 2), out.shape
    assert bool(jnp.all(jnp.isfinite(out)))
    print("KERNEL_OK")
</pallas_src>

<mosaic_0001>
module attributes {stable_mosaic.version = 11 : i64} {
  func.func @_shared_kernel(%arg0: i32, %arg1: memref<1x256x16xbf16, #tpu.memory_space<vmem>>, %arg2: memref<16x128xbf16, #tpu.memory_space<vmem>>, %arg3: memref<1x128xf32, #tpu.memory_space<vmem>>, %arg4: memref<1x128xf32, #tpu.memory_space<vmem>>, %arg5: memref<1152x128xbf16, #tpu.memory_space<vmem>>, %arg6: memref<1x128xf32, #tpu.memory_space<vmem>>, %arg7: memref<1x128xf32, #tpu.memory_space<vmem>>, %arg8: memref<1x256x128xbf16, #tpu.memory_space<vmem>>, %arg9: memref<18x24x128xbf16, #tpu.memory_space<vmem>>, %arg10: memref<256x1152xbf16, #tpu.memory_space<vmem>>) attributes {dimension_semantics = [#tpu.dimension_semantics<parallel>], iteration_bounds = array<i64: 2>, scalar_prefetch = 0 : i64, scratch_operands = 2 : i64, tpu.core_type = #tpu.core_type<tc>, window_params = [{transform_indices = @transform_0, window_bounds = array<i64: 1, 256, 16>}, {pipeline_mode = #tpu.pipeline_mode<synchronous>, transform_indices = @transform_1, window_bounds = array<i64: 16, 128>}, {pipeline_mode = #tpu.pipeline_mode<synchronous>, transform_indices = @transform_2, window_bounds = array<i64: 1, 128>}, {pipeline_mode = #tpu.pipeline_mode<synchronous>, transform_indices = @transform_3, window_bounds = array<i64: 1, 128>}, {pipeline_mode = #tpu.pipeline_mode<synchronous>, transform_indices = @transform_4, window_bounds = array<i64: 1152, 128>}, {pipeline_mode = #tpu.pipeline_mode<synchronous>, transform_indices = @transform_5, window_bounds = array<i64: 1, 128>}, {pipeline_mode = #tpu.pipeline_mode<synchronous>, transform_indices = @transform_6, window_bounds = array<i64: 1, 128>}, {transform_indices = @transform_7, window_bounds = array<i64: 1, 256, 128>}]} {
    %c0 = arith.constant 0 : index
    %c0_0 = arith.constant 0 : index
    %c0_1 = arith.constant 0 : index
    %0 = vector.load %arg1[%c0, %c0_0, %c0_1] : memref<1x256x16xbf16, #tpu.memory_space<vmem>>, vector<1x256x16xbf16>
    %1 = vector.shape_cast %0 : vector<1x256x16xbf16> to vector<256x16xbf16>
    %c0_2 = arith.constant 0 : index
    %c0_3 = arith.constant 0 : index
    %2 = vector.load %arg2[%c0_2, %c0_3] : memref<16x128xbf16, #tpu.memory_space<vmem>>, vector<16x128xbf16>
    %cst = arith.constant dense<0.000000e+00> : vector<256x128xf32>
    %3 = tpu.matmul %1, %2, %cst {dimension_numbers = #tpu.dot_dimension_numbers<[1], [0], [0], [1], [0, 0, 1, 1], [], []>} : vector<256x16xbf16>, vector<16x128xbf16>, vector<256x128xf32> -> vector<256x128xf32>
    %c0_4 = arith.constant 0 : index
    %c0_5 = arith.constant 0 : index
    %4 = vector.load %arg3[%c0_4, %c0_5] : memref<1x128xf32, #tpu.memory_space<vmem>>, vector<1x128xf32>
    %c0_6 = arith.constant 0 : index
    %c0_7 = arith.constant 0 : index
    %5 = vector.load %arg4[%c0_6, %c0_7] : memref<1x128xf32, #tpu.memory_space<vmem>>, vector<1x128xf32>
    %cst_8 = arith.constant dense<0.000000e+00> : vector<128xf32>
    %6 = vector.multi_reduction <add>, %3, %cst_8 [0] : vector<256x128xf32> to vector<128xf32>
    %7 = vector.shape_cast %6 : vector<128xf32> to vector<1x128xf32>
    %cst_9 = arith.constant 2.560000e+02 : f32
    %8 = vector.broadcast %cst_9 : f32 to vector<1x128xf32>
    %9 = arith.divf %7, %8 : vector<1x128xf32>
    %10 = vector.broadcast %9 : vector<1x128xf32> to vector<256x128xf32>
    %11 = arith.subf %3, %10 : vector<256x128xf32>
    %12 = arith.mulf %11, %11 : vector<256x128xf32>
    %cst_10 = arith.constant dense<0.000000e+00> : vector<128xf32>
    %13 = vector.multi_reduction <add>, %12, %cst_10 [0] : vector<256x128xf32> to vector<128xf32>
    %14 = vector.shape_cast %13 : vector<128xf32> to vector<1x128xf32>
    %cst_11 = arith.constant 2.560000e+02 : f32
    %15 = vector.broadcast %cst_11 : f32 to vector<1x128xf32>
    %16 = arith.divf %14, %15 : vector<1x128xf32>
    %cst_12 = arith.constant 9.99999974E-6 : f32
    %17 = vector.broadcast %cst_12 : f32 to vector<1x128xf32>
    %18 = arith.addf %16, %17 : vector<1x128xf32>
    %19 = math.rsqrt %18 : vector<1x128xf32>
    %20 = vector.broadcast %19 : vector<1x128xf32> to vector<256x128xf32>
    %21 = arith.mulf %11, %20 : vector<256x128xf32>
    %22 = vector.broadcast %4 : vector<1x128xf32> to vector<256x128xf32>
    %23 = arith.mulf %21, %22 : vector<256x128xf32>
    %24 = vector.broadcast %5 : vector<1x128xf32> to vector<256x128xf32>
    %25 = arith.addf %23, %24 : vector<256x128xf32>
    %cst_13 = arith.constant 0.000000e+00 : f32
    %26 = vector.broadcast %cst_13 : f32 to vector<256x128xf32>
    %27 = arith.maximumf %25, %26 : vector<256x128xf32>
    %cst_14 = arith.constant 0.000000e+00 : bf16
    %28 = vector.broadcast %cst_14 : bf16 to vector<1x24x128xbf16>
    %c0_15 = arith.constant 0 : index
    %c0_16 = arith.constant 0 : index
    %c0_17 = arith.constant 0 : index
    %29 = vector.load %arg9[%c0_15, %c0_16, %c0_17] : memref<18x24x128xbf16, #tpu.memory_space<vmem>>, vector<1x24x128xbf16>
    tpu.vector_store %arg9[%c0_15, %c0_16, %c0_17], %28 {strides = array<i32>} : memref<18x24x128xbf16, #tpu.memory_space<vmem>>, vector<1x24x128xbf16>,
    %cst_18 = arith.constant 0.000000e+00 : bf16
    %30 = vector.broadcast %cst_18 : bf16 to vector<1x24x128xbf16>
    %c17 = arith.constant 17 : index
    %c0_19 = arith.constant 0 : index
    %c0_20 = arith.constant 0 : index
    %31 = vector.load %arg9[%c17, %c0_19, %c0_20] : memref<18x24x128xbf16, #tpu.memory_space<vmem>>, vector<1x24x128xbf16>
    tpu.vector_store %arg9[%c17, %c0_19, %c0_20], %30 {strides = array<i32>} : memref<18x24x128xbf16, #tpu.memory_space<vmem>>, vector<1x24x128xbf16>,
    %cst_21 = arith.constant 0.000000e+00 : bf16
    %32 = vector.broadcast %cst_21 : bf16 to vector<18x1x128xbf16>
    %c0_22 = arith.constant 0 : index
    %c0_23 = arith.constant 0 : index
    %c0_24 = arith.constant 0 : index
    %33 = vector.load %arg9[%c0_22, %c0_23, %c0_24] : memref<18x24x128xbf16, #tpu.memory_space<vmem>>, vector<18x1x128xbf16>
    tpu.vector_store %arg9[%c0_22, %c0_23, %c0_24], %32 {strides = array<i32>} : memref<18x24x128xbf16, #tpu.memory_space<vmem>>, vector<18x1x128xbf16>,
    %cst_25 = arith.constant 0.000000e+00 : bf16
    %34 = vector.broadcast %cst_25 : bf16 to vector<18x1x128xbf16>
    %c0_26 = arith.constant 0 : index
    %c17_27 = arith.constant 17 : index
    %c0_28 = arith.constant 0 : index
    %35 = vector.load %arg9[%c0_26, %c17_27, %c0_28] : memref<18x24x128xbf16, #tpu.memory_space<vmem>>, vector<18x1x128xbf16>
    tpu.vector_store %arg9[%c0_26, %c17_27, %c0_28], %34 {strides = array<i32>} : memref<18x24x128xbf16, #tpu.memory_space<vmem>>, vector<18x1x128xbf16>,
    %36 = vector.shape_cast %27 : vector<256x128xf32> to vector<16x16x128xf32>
    %37 = arith.truncf %36 : vector<16x16x128xf32> to vector<16x16x128xbf16>
    %c1 = arith.constant 1 : index
    %c1_29 = arith.constant 1 : index
    %c0_30 = arith.constant 0 : index
    %38 = vector.load %arg9[%c1, %c1_29, %c0_30] : memref<18x24x128xbf16, #tpu.memory_space<vmem>>, vector<16x16x128xbf16>
    tpu.vector_store %arg9[%c1, %c1_29, %c0_30], %37 {strides = array<i32>} : memref<18x24x128xbf16, #tpu.memory_space<vmem>>, vector<16x16x128xbf16>,
    %c0_31 = arith.constant 0 : index
    %c0_32 = arith.constant 0 : index
    %c0_33 = arith.constant 0 : index
    %39 = vector.load %arg9[%c0_31, %c0_32, %c0_33] : memref<18x24x128xbf16, #tpu.memory_space<vmem>>, vector<16x16x128xbf16>
    %40 = vector.shape_cast %39 : vector<16x16x128xbf16> to vector<256x128xbf16>
    %c0_34 = arith.constant 0 : index
    %c0_35 = arith.constant 0 : index
    %41 = vector.load %arg10[%c0_34, %c0_35] : memref<256x1152xbf16, #tpu.memory_space<vmem>>, vector<256x128xbf16>
    tpu.vector_store %arg10[%c0_34, %c0_35], %40 {strides = array<i32>} : memref<256x1152xbf16, #tpu.memory_space<vmem>>, vector<256x128xbf16>,
    %c0_36 = arith.constant 0 : index
    %c1_37 = arith.constant 1 : index
    %c0_38 = arith.constant 0 : index
    %42 = vector.load %arg9[%c0_36, %c1_37, %c0_38] : memref<18x24x128xbf16, #tpu.memory_space<vmem>>, vector<16x16x128xbf16>
    %43 = vector.shape_cast %42 : vector<16x16x128xbf16> to vector<256x128xbf16>
    %c0_39 = arith.constant 0 : index
    %c128 = arith.constant 128 : index
    %44 = vector.load %arg10[%c0_39, %c128] : memref<256x1152xbf16, #tpu.memory_space<vmem>>, vector<256x128xbf16>
    tpu.vector_store %arg10[%c0_39, %c128], %43 {strides = array<i32>} : memref<256x1152xbf16, #tpu.memory_space<vmem>>, vector<256x128xbf16>,
    %c0_40 = arith.constant 0 : index
    %c2 = arith.constant 2 : index
    %c0_41 = arith.constant 0 : index
    %45 = vector.load %arg9[%c0_40, %c2, %c0_41] : memref<18x24x128xbf16, #tpu.memory_space<vmem>>, vector<16x16x128xbf16>
    %46 = vector.shape_cast %45 : vector<16x16x128xbf16> to vector<256x128xbf16>
    %c0_42 = arith.constant 0 : index
    %c256 = arith.constant 256 : index
    %47 = vector.load %arg10[%c0_42, %c256] : memref<256x1152xbf16, #tpu.memory_space<vmem>>, vector<256x128xbf16>
    tpu.vector_store %arg10[%c0_42, %c256], %46 {strides = array<i32>} : memref<256x1152xbf16, #tpu.memory_space<vmem>>, vector<256x128xbf16>,
    %c1_43 = arith.constant 1 : index
    %c0_44 = arith.constant 0 : index
    %c0_45 = arith.constant 0 : index
    %48 = vector.load %arg9[%c1_43, %c0_44, %c0_45] : memref<18x24x128xbf16, #tpu.memory_space<vmem>>, vector<16x16x128xbf16>
    %49 = vector.shape_cast %48 : vector<16x16x128xbf16> to vector<256x128xbf16>
    %c0_46 = arith.constant 0 : index
    %c384 = arith.constant 384 : index
    %50 = vector.load %arg10[%c0_46, %c384] : memref<256x1152xbf16, #tpu.memory_space<vmem>>, vector<256x128xbf16>
    tpu.vector_store %arg10[%c0_46, %c384], %49 {strides = array<i32>} : memref<256x1152xbf16, #tpu.memory_space<vmem>>, vector<256x128xbf16>,
    %c1_47 = arith.constant 1 : index
    %c1_48 = arith.constant 1 : index
    %c0_49 = arith.constant 0 : index
    %51 = vector.load %arg9[%c1_47, %c1_48, %c0_49] : memref<18x24x128xbf16, #tpu.memory_space<vmem>>, vector<16x16x128xbf16>
    %52 = vector.shape_cast %51 : vector<16x16x128xbf16> to vector<256x128xbf16>
    %c0_50 = arith.constant 0 : index
    %c512 = arith.constant 512 : index
    %53 = vector.load %arg10[%c0_50, %c512] : memref<256x1152xbf16, #tpu.memory_space<vmem>>, vector<256x128xbf16>
    tpu.vector_store %arg10[%c0_50, %c512], %52 {strides = array<i32>} : memref<256x1152xbf16, #tpu.memory_space<vmem>>, vector<256x128xbf16>,
    %c1_51 = arith.constant 1 : index
    %c2_52 = arith.constant 2 : index
    %c0_53 = arith.constant 0 : index
    %54 = vector.load %arg9[%c1_51, %c2_52, %c0_53] : memref<18x24x128xbf16, #tpu.memory_space<vmem>>, vector<16x16x128xbf16>
    %55 = vector.shape_cast %54 : vector<16x16x128xbf16> to vector<256x128xbf16>
    %c0_54 = arith.constant 0 : index
    %c640 = arith.constant 640 : index
    %56 = vector.load %arg10[%c0_54, %c640] : memref<256x1152xbf16, #tpu.memory_space<vmem>>, vector<256x128xbf16>
    tpu.vector_store %arg10[%c0_54, %c640], %55 {strides = array<i32>} : memref<256x1152xbf16, #tpu.memory_space<vmem>>, vector<256x128xbf16>,
    %c2_55 = arith.constant 2 : index
    %c0_56 = arith.constant 0 : index
    %c0_57 = arith.constant 0 : index
    %57 = vector.load %arg9[%c2_55, %c0_56, %c0_57] : memref<18x24x128xbf16, #tpu.memory_space<vmem>>, vector<16x16x128xbf16>
    %58 = vector.shape_cast %57 : vector<16x16x128xbf16> to vector<256x128xbf16>
    %c0_58 = arith.constant 0 : index
    %c768 = arith.constant 768 : index
    %59 = vector.load %arg10[%c0_58, %c768] : memref<256x1152xbf16, #tpu.memory_space<vmem>>, vector<256x128xbf16>
    tpu.vector_store %arg10[%c0_58, %c768], %58 {strides = array<i32>} : memref<256x1152xbf16, #tpu.memory_space<vmem>>, vector<256x128xbf16>,
    %c2_59 = arith.constant 2 : index
    %c1_60 = arith.constant 1 : index
    %c0_61 = arith.constant 0 : index
    %60 = vector.load %arg9[%c2_59, %c1_60, %c0_61] : memref<18x24x128xbf16, #tpu.memory_space<vmem>>, vector<16x16x128xbf16>
    %61 = vector.shape_cast %60 : vector<16x16x128xbf16> to vector<256x128xbf16>
    %c0_62 = arith.constant 0 : index
    %c896 = arith.constant 896 : index
    %62 = vector.load %arg10[%c0_62, %c896] : memref<256x1152xbf16, #tpu.memory_space<vmem>>, vector<256x128xbf16>
    tpu.vector_store %arg10[%c0_62, %c896], %61 {strides = array<i32>} : memref<256x1152xbf16, #tpu.memory_space<vmem>>, vector<256x128xbf16>,
    %c2_63 = arith.constant 2 : index
    %c2_64 = arith.constant 2 : index
    %c0_65 = arith.constant 0 : index
    %63 = vector.load %arg9[%c2_63, %c2_64, %c0_65] : memref<18x24x128xbf16, #tpu.memory_space<vmem>>, vector<16x16x128xbf16>
    %64 = vector.shape_cast %63 : vector<16x16x128xbf16> to vector<256x128xbf16>
    %c0_66 = arith.constant 0 : index
    %c1024 = arith.constant 1024 : index
    %65 = vector.load %arg10[%c0_66, %c1024] : memref<256x1152xbf16, #tpu.memory_space<vmem>>, vector<256x128xbf16>
    tpu.vector_store %arg10[%c0_66, %c1024], %64 {strides = array<i32>} : memref<256x1152xbf16, #tpu.memory_space<vmem>>, vector<256x128xbf16>,
    %c0_67 = arith.constant 0 : index
    %c0_68 = arith.constant 0 : index
    %66 = vector.load %arg10[%c0_67, %c0_68] : memref<256x1152xbf16, #tpu.memory_space<vmem>>, vector<256x1152xbf16>
    %c0_69 = arith.constant 0 : index
    %c0_70 = arith.constant 0 : index
    %67 = vector.load %arg5[%c0_69, %c0_70] : memref<1152x128xbf16, #tpu.memory_space<vmem>>, vector<1152x128xbf16>
    %cst_71 = arith.constant dense<0.000000e+00> : vector<256x128xf32>
    %68 = tpu.matmul %66, %67, %cst_71 {dimension_numbers = #tpu.dot_dimension_numbers<[1], [0], [0], [1], [0, 0, 1, 1], [], []>} : vector<256x1152xbf16>, vector<1152x128xbf16>, vector<256x128xf32> -> vector<256x128xf32>
    %c0_72 = arith.constant 0 : index
    %c0_73 = arith.constant 0 : index
    %69 = vector.load %arg6[%c0_72, %c0_73] : memref<1x128xf32, #tpu.memory_space<vmem>>, vector<1x128xf32>
    %c0_74 = arith.constant 0 : index
    %c0_75 = arith.constant 0 : index
    %70 = vector.load %arg7[%c0_74, %c0_75] : memref<1x128xf32, #tpu.memory_space<vmem>>, vector<1x128xf32>
    %cst_76 = arith.constant dense<0.000000e+00> : vector<128xf32>
    %71 = vector.multi_reduction <add>, %68, %cst_76 [0] : vector<256x128xf32> to vector<128xf32>
    %72 = vector.shape_cast %71 : vector<128xf32> to vector<1x128xf32>
    %cst_77 = arith.constant 2.560000e+02 : f32
    %73 = vector.broadcast %cst_77 : f32 to vector<1x128xf32>
    %74 = arith.divf %72, %73 : vector<1x128xf32>
    %75 = vector.broadcast %74 : vector<1x128xf32> to vector<256x128xf32>
    %76 = arith.subf %68, %75 : vector<256x128xf32>
    %77 = arith.mulf %76, %76 : vector<256x128xf32>
    %cst_78 = arith.constant dense<0.000000e+00> : vector<128xf32>
    %78 = vector.multi_reduction <add>, %77, %cst_78 [0] : vector<256x128xf32> to vector<128xf32>
    %79 = vector.shape_cast %78 : vector<128xf32> to vector<1x128xf32>
    %cst_79 = arith.constant 2.560000e+02 : f32
    %80 = vector.broadcast %cst_79 : f32 to vector<1x128xf32>
    %81 = arith.divf %79, %80 : vector<1x128xf32>
    %cst_80 = arith.constant 9.99999974E-6 : f32
    %82 = vector.broadcast %cst_80 : f32 to vector<1x128xf32>
    %83 = arith.addf %81, %82 : vector<1x128xf32>
    %84 = math.rsqrt %83 : vector<1x128xf32>
    %85 = vector.broadcast %84 : vector<1x128xf32> to vector<256x128xf32>
    %86 = arith.mulf %76, %85 : vector<256x128xf32>
    %87 = vector.broadcast %69 : vector<1x128xf32> to vector<256x128xf32>
    %88 = arith.mulf %86, %87 : vector<256x128xf32>
    %89 = vector.broadcast %70 : vector<1x128xf32> to vector<256x128xf32>
    %90 = arith.addf %88, %89 : vector<256x128xf32>
    %cst_81 = arith.constant 0.000000e+00 : f32
    %91 = vector.broadcast %cst_81 : f32 to vector<256x128xf32>
    %92 = arith.maximumf %90, %91 : vector<256x128xf32>
    %93 = arith.truncf %92 : vector<256x128xf32> to vector<256x128xbf16>
    %c0_82 = arith.constant 0 : index
    %c0_83 = arith.constant 0 : index
    %c0_84 = arith.constant 0 : index
    %94 = vector.load %arg8[%c0_82, %c0_83, %c0_84] : memref<1x256x128xbf16, #tpu.memory_space<vmem>>, vector<1x256x128xbf16>
    %95 = vector.shape_cast %94 : vector<1x256x128xbf16> to vector<256x128xbf16>
    %96 = vector.shape_cast %93 : vector<256x128xbf16> to vector<1x256x128xbf16>
    tpu.vector_store %arg8[%c0_82, %c0_83, %c0_84], %96 {strides = array<i32>} : memref<1x256x128xbf16, #tpu.memory_space<vmem>>, vector<1x256x128xbf16>,
    return
  }
  func.func @transform_0(%arg0: i32) -> (i32, i32, i32) {
    %c0_i32 = arith.constant 0 : i32
    %c0_i32_0 = arith.constant 0 : i32
    %c0_i32_1 = arith.constant 0 : i32
    return %arg0, %c0_i32, %c0_i32_0 : i32, i32, i32
  }
  func.func @transform_1(%arg0: i32) -> (i32, i32) {
    %c0_i32 = arith.constant 0 : i32
    %c0_i32_0 = arith.constant 0 : i32
    %c0_i32_1 = arith.constant 0 : i32
    return %c0_i32, %c0_i32_0 : i32, i32
  }
  func.func @transform_2(%arg0: i32) -> (i32, i32) {
    %c0_i32 = arith.constant 0 : i32
    %c0_i32_0 = arith.constant 0 : i32
    %c0_i32_1 = arith.constant 0 : i32
    return %c0_i32, %c0_i32_0 : i32, i32
  }
  func.func @transform_3(%arg0: i32) -> (i32, i32) {
    %c0_i32 = arith.constant 0 : i32
    %c0_i32_0 = arith.constant 0 : i32
    %c0_i32_1 = arith.constant 0 : i32
    return %c0_i32, %c0_i32_0 : i32, i32
  }
  func.func @transform_4(%arg0: i32) -> (i32, i32) {
    %c0_i32 = arith.constant 0 : i32
    %c0_i32_0 = arith.constant 0 : i32
    %c0_i32_1 = arith.constant 0 : i32
    return %c0_i32, %c0_i32_0 : i32, i32
  }
  func.func @transform_5(%arg0: i32) -> (i32, i32) {
    %c0_i32 = arith.constant 0 : i32
    %c0_i32_0 = arith.constant 0 : i32
    %c0_i32_1 = arith.constant 0 : i32
    return %c0_i32, %c0_i32_0 : i32, i32
  }
  func.func @transform_6(%arg0: i32) -> (i32, i32) {
    %c0_i32 = arith.constant 0 : i32
    %c0_i32_0 = arith.constant 0 : i32
    %c0_i32_1 = arith.constant 0 : i32
    return %c0_i32, %c0_i32_0 : i32, i32
  }
  func.func @transform_7(%arg0: i32) -> (i32, i32, i32) {
    %c0_i32 = arith.constant 0 : i32
    %c0_i32_0 = arith.constant 0 : i32
    %c0_i32_1 = arith.constant 0 : i32
    return %arg0, %c0_i32, %c0_i32_0 : i32, i32, i32
  }
}

module attributes {stable_mosaic.version = 11 : i64} {
  func.func @_lip_fused_kernel(%arg0: i32, %arg1: memref<1x256x128xbf16, #tpu.memory_space<vmem>>, %arg2: memref<1x256x16xbf16, #tpu.memory_space<vmem>>, %arg3: memref<128x24xbf16, #tpu.memory_space<vmem>>, %arg4: memref<1x24xf32, #tpu.memory_space<vmem>>, %arg5: memref<1x24xf32, #tpu.memory_space<vmem>>, %arg6: memref<16x8xbf16, #tpu.memory_space<vmem>>, %arg7: memref<1x8xf32, #tpu.memory_space<vmem>>, %arg8: memref<1x8xf32, #tpu.memory_space<vmem>>, %arg9: memref<1x8x8x8xbf16, #tpu.memory_space<vmem>>, %arg10: memref<1x8x8x16xbf16, #tpu.memory_space<vmem>>, %arg11: memref<18x24x8xf32, #tpu.memory_space<vmem>>, %arg12: memref<18x24x16xf32, #tpu.memory_space<vmem>>, %arg13: memref<18x24x24xf32, #tpu.memory_space<vmem>>) attributes {dimension_semantics = [#tpu.dimension_semantics<parallel>], iteration_bounds = array<i64: 2>, scalar_prefetch = 0 : i64, scratch_operands = 3 : i64, tpu.core_type = #tpu.core_type<tc>, window_params = [{transform_indices = @transform_0, window_bounds = array<i64: 1, 256, 128>}, {transform_indices = @transform_1, window_bounds = array<i64: 1, 256, 16>}, {pipeline_mode = #tpu.pipeline_mode<synchronous>, transform_indices = @transform_2, window_bounds = array<i64: 128, 24>}, {pipeline_mode = #tpu.pipeline_mode<synchronous>, transform_indices = @transform_3, window_bounds = array<i64: 1, 24>}, {pipeline_mode = #tpu.pipeline_mode<synchronous>, transform_indices = @transform_4, window_bounds = array<i64: 1, 24>}, {pipeline_mode = #tpu.pipeline_mode<synchronous>, transform_indices = @transform_5, window_bounds = array<i64: 16, 8>}, {pipeline_mode = #tpu.pipeline_mode<synchronous>, transform_indices = @transform_6, window_bounds = array<i64: 1, 8>}, {pipeline_mode = #tpu.pipeline_mode<synchronous>, transform_indices = @transform_7, window_bounds = array<i64: 1, 8>}, {transform_indices = @transform_8, window_bounds = array<i64: 1, 8, 8, 8>}, {transform_indices = @transform_9, window_bounds = array<i64: 1, 8, 8, 16>}]} {
    %c0 = arith.constant 0 : index
    %c0_0 = arith.constant 0 : index
    %c0_1 = arith.constant 0 : index
    %0 = vector.load %arg2[%c0, %c0_0, %c0_1] : memref<1x256x16xbf16, #tpu.memory_space<vmem>>, vector<1x256x16xbf16>
    %1 = vector.shape_cast %0 : vector<1x256x16xbf16> to vector<256x16xbf16>
    %c0_2 = arith.constant 0 : index
    %c0_3 = arith.constant 0 : index
    %2 = vector.load %arg6[%c0_2, %c0_3] : memref<16x8xbf16, #tpu.memory_space<vmem>>, vector<16x8xbf16>
    %cst = arith.constant dense<0.000000e+00> : vector<256x8xf32>
    %3 = tpu.matmul %1, %2, %cst {dimension_numbers = #tpu.dot_dimension_numbers<[1], [0], [0], [1], [0, 0, 1, 1], [], []>} : vector<256x16xbf16>, vector<16x8xbf16>, vector<256x8xf32> -> vector<256x8xf32>
    %c0_4 = arith.constant 0 : index
    %c0_5 = arith.constant 0 : index
    %4 = vector.load %arg7[%c0_4, %c0_5] : memref<1x8xf32, #tpu.memory_space<vmem>>, vector<1x8xf32>
    %5 = vector.broadcast %4 : vector<1x8xf32> to vector<256x8xf32>
    %6 = arith.mulf %3, %5 : vector<256x8xf32>
    %c0_6 = arith.constant 0 : index
    %c0_7 = arith.constant 0 : index
    %7 = vector.load %arg8[%c0_6, %c0_7] : memref<1x8xf32, #tpu.memory_space<vmem>>, vector<1x8xf32>
    %8 = vector.broadcast %7 : vector<1x8xf32> to vector<256x8xf32>
    %9 = arith.addf %6, %8 : vector<256x8xf32>
    %cst_8 = arith.constant 0.000000e+00 : f32
    %10 = vector.broadcast %cst_8 : f32 to vector<256x8xf32>
    %11 = arith.maximumf %9, %10 : vector<256x8xf32>
    %c0_9 = arith.constant 0 : index
    %c0_10 = arith.constant 0 : index
    %c0_11 = arith.constant 0 : index
    %12 = vector.load %arg1[%c0_9, %c0_10, %c0_11] : memref<1x256x128xbf16, #tpu.memory_space<vmem>>, vector<1x256x128xbf16>
    %13 = vector.shape_cast %12 : vector<1x256x128xbf16> to vector<256x128xbf16>
    %c0_12 = arith.constant 0 : index
    %c0_13 = arith.constant 0 : index
    %14 = vector.load %arg3[%c0_12, %c0_13] : memref<128x24xbf16, #tpu.memory_space<vmem>>, vector<128x24xbf16>
    %cst_14 = arith.constant dense<0.000000e+00> : vector<256x24xf32>
    %15 = tpu.matmul %13, %14, %cst_14 {dimension_numbers = #tpu.dot_dimension_numbers<[1], [0], [0], [1], [0, 0, 1, 1], [], []>} : vector<256x128xbf16>, vector<128x24xbf16>, vector<256x24xf32> -> vector<256x24xf32>
    %c0_15 = arith.constant 0 : index
    %c0_16 = arith.constant 0 : index
    %16 = vector.load %arg4[%c0_15, %c0_16] : memref<1x24xf32, #tpu.memory_space<vmem>>, vector<1x24xf32>
    %c0_17 = arith.constant 0 : index
    %c0_18 = arith.constant 0 : index
    %17 = vector.load %arg5[%c0_17, %c0_18] : memref<1x24xf32, #tpu.memory_space<vmem>>, vector<1x24xf32>
    %cst_19 = arith.constant dense<0.000000e+00> : vector<24xf32>
    %18 = vector.multi_reduction <add>, %15, %cst_19 [0] : vector<256x24xf32> to vector<24xf32>
    %19 = vector.shape_cast %18 : vector<24xf32> to vector<1x24xf32>
    %cst_20 = arith.constant 2.560000e+02 : f32
    %20 = vector.broadcast %cst_20 : f32 to vector<1x24xf32>
    %21 = arith.divf %19, %20 : vector<1x24xf32>
    %22 = vector.broadcast %21 : vector<1x24xf32> to vector<256x24xf32>
    %23 = arith.subf %15, %22 : vector<256x24xf32>
    %24 = arith.mulf %23, %23 : vector<256x24xf32>
    %cst_21 = arith.constant dense<0.000000e+00> : vector<24xf32>
    %25 = vector.multi_reduction <add>, %24, %cst_21 [0] : vector<256x24xf32> to vector<24xf32>
    %26 = vector.shape_cast %25 : vector<24xf32> to vector<1x24xf32>
    %cst_22 = arith.constant 2.560000e+02 : f32
    %27 = vector.broadcast %cst_22 : f32 to vector<1x24xf32>
    %28 = arith.divf %26, %27 : vector<1x24xf32>
    %cst_23 = arith.constant 9.99999974E-6 : f32
    %29 = vector.broadcast %cst_23 : f32 to vector<1x24xf32>
    %30 = arith.addf %28, %29 : vector<1x24xf32>
    %31 = math.rsqrt %30 : vector<1x24xf32>
    %32 = vector.broadcast %31 : vector<1x24xf32> to vector<256x24xf32>
    %33 = arith.mulf %23, %32 : vector<256x24xf32>
    %34 = vector.broadcast %16 : vector<1x24xf32> to vector<256x24xf32>
    %35 = arith.mulf %33, %34 : vector<256x24xf32>
    %36 = vector.broadcast %17 : vector<1x24xf32> to vector<256x24xf32>
    %37 = arith.addf %35, %36 : vector<256x24xf32>
    %cst_24 = arith.constant 0.000000e+00 : f32
    %38 = vector.broadcast %cst_24 : f32 to vector<256x24xf32>
    %39 = arith.subf %38, %37 : vector<256x24xf32>
    %40 = math.exp %39 : vector<256x24xf32>
    %cst_25 = arith.constant 1.000000e+00 : f32
    %41 = vector.broadcast %cst_25 : f32 to vector<256x24xf32>
    %42 = arith.addf %41, %40 : vector<256x24xf32>
    %43 = tpu.reciprocal %42 {approx = true} : vector<256x24xf32> -> vector<256x24xf32>
    %cst_26 = arith.constant 1.200000e+01 : f32
    %44 = vector.broadcast %cst_26 : f32 to vector<256x24xf32>
    %45 = arith.mulf %44, %43 : vector<256x24xf32>
    %46 = math.exp %45 : vector<256x24xf32>
    %c0_27 = arith.constant 0 : index
    %c0_28 = arith.constant 0 : index
    %c0_29 = arith.constant 0 : index
    %47 = vector.load %arg2[%c0_27, %c0_28, %c0_29] : memref<1x256x16xbf16, #tpu.memory_space<vmem>>, vector<1x256x16xbf16>
    %48 = vector.shape_cast %47 : vector<1x256x16xbf16> to vector<256x16xbf16>
    %49 = arith.extf %48 : vector<256x16xbf16> to vector<256x16xf32>
    %50 = vector.extract_strided_slice %46 {offsets = [0, 0], sizes = [256, 8], strides = [1, 1]} : vector<256x24xf32> to vector<256x8xf32>
    %51 = arith.mulf %11, %50 : vector<256x8xf32>
    %cst_30 = arith.constant 0.000000e+00 : f32
    %52 = vector.broadcast %cst_30 : f32 to vector<1x24x8xf32>
    %c0_31 = arith.constant 0 : index
    %c0_32 = arith.constant 0 : index
    %c0_33 = arith.constant 0 : index
    %53 = vector.load %arg11[%c0_31, %c0_32, %c0_33] : memref<18x24x8xf32, #tpu.memory_space<vmem>>, vector<1x24x8xf32>
    tpu.vector_store %arg11[%c0_31, %c0_32, %c0_33], %52 {strides = array<i32>} : memref<18x24x8xf32, #tpu.memory_space<vmem>>, vector<1x24x8xf32>,
    %cst_34 = arith.constant 0.000000e+00 : f32
    %54 = vector.broadcast %cst_34 : f32 to vector<18x1x8xf32>
    %c0_35 = arith.constant 0 : index
    %c0_36 = arith.constant 0 : index
    %c0_37 = arith.constant 0 : index
    %55 = vector.load %arg11[%c0_35, %c0_36, %c0_37] : memref<18x24x8xf32, #tpu.memory_space<vmem>>, vector<18x1x8xf32>
    tpu.vector_store %arg11[%c0_35, %c0_36, %c0_37], %54 {strides = array<i32>} : memref<18x24x8xf32, #tpu.memory_space<vmem>>, vector<18x1x8xf32>,
    %56 = vector.shape_cast %51 : vector<256x8xf32> to vector<16x16x8xf32>
    %c1 = arith.constant 1 : index
    %c1_38 = arith.constant 1 : index
    %c0_39 = arith.constant 0 : index
    %57 = vector.load %arg11[%c1, %c1_38, %c0_39] : memref<18x24x8xf32, #tpu.memory_space<vmem>>, vector<16x16x8xf32>
    tpu.vector_store %arg11[%c1, %c1_38, %c0_39], %56 {strides = array<i32>} : memref<18x24x8xf32, #tpu.memory_space<vmem>>, vector<16x16x8xf32>,
    %58 = vector.extract_strided_slice %46 {offsets = [0, 8], sizes = [256, 16], strides = [1, 1]} : vector<256x24xf32> to vector<256x16xf32>
    %59 = arith.mulf %49, %58 : vector<256x16xf32>
    %cst_40 = arith.constant 0.000000e+00 : f32
    %60 = vector.broadcast %cst_40 : f32 to vector<1x24x16xf32>
    %c0_41 = arith.constant 0 : index
    %c0_42 = arith.constant 0 : index
    %c0_43 = arith.constant 0 : index
    %61 = vector.load %arg12[%c0_41, %c0_42, %c0_43] : memref<18x24x16xf32, #tpu.memory_space<vmem>>, vector<1x24x16xf32>
    tpu.vector_store %arg12[%c0_41, %c0_42, %c0_43], %60 {strides = array<i32>} : memref<18x24x16xf32, #tpu.memory_space<vmem>>, vector<1x24x16xf32>,
    %cst_44 = arith.constant 0.000000e+00 : f32
    %62 = vector.broadcast %cst_44 : f32 to vector<18x1x16xf32>
    %c0_45 = arith.constant 0 : index
    %c0_46 = arith.constant 0 : index
    %c0_47 = arith.constant 0 : index
    %63 = vector.load %arg12[%c0_45, %c0_46, %c0_47] : memref<18x24x16xf32, #tpu.memory_space<vmem>>, vector<18x1x16xf32>
    tpu.vector_store %arg12[%c0_45, %c0_46, %c0_47], %62 {strides = array<i32>} : memref<18x24x16xf32, #tpu.memory_space<vmem>>, vector<18x1x16xf32>,
    %64 = vector.shape_cast %59 : vector<256x16xf32> to vector<16x16x16xf32>
    %c1_48 = arith.constant 1 : index
    %c1_49 = arith.constant 1 : index
    %c0_50 = arith.constant 0 : index
    %65 = vector.load %arg12[%c1_48, %c1_49, %c0_50] : memref<18x24x16xf32, #tpu.memory_space<vmem>>, vector<16x16x16xf32>
    tpu.vector_store %arg12[%c1_48, %c1_49, %c0_50], %64 {strides = array<i32>} : memref<18x24x16xf32, #tpu.memory_space<vmem>>, vector<16x16x16xf32>,
    %cst_51 = arith.constant 0.000000e+00 : f32
    %66 = vector.broadcast %cst_51 : f32 to vector<1x24x24xf32>
    %c0_52 = arith.constant 0 : index
    %c0_53 = arith.constant 0 : index
    %c0_54 = arith.constant 0 : index
    %67 = vector.load %arg13[%c0_52, %c0_53, %c0_54] : memref<18x24x24xf32, #tpu.memory_space<vmem>>, vector<1x24x24xf32>
    tpu.vector_store %arg13[%c0_52, %c0_53, %c0_54], %66 {strides = array<i32>} : memref<18x24x24xf32, #tpu.memory_space<vmem>>, vector<1x24x24xf32>,
    %cst_55 = arith.constant 0.000000e+00 : f32
    %68 = vector.broadcast %cst_55 : f32 to vector<18x1x24xf32>
    %c0_56 = arith.constant 0 : index
    %c0_57 = arith.constant 0 : index
    %c0_58 = arith.constant 0 : index
    %69 = vector.load %arg13[%c0_56, %c0_57, %c0_58] : memref<18x24x24xf32, #tpu.memory_space<vmem>>, vector<18x1x24xf32>
    tpu.vector_store %arg13[%c0_56, %c0_57, %c0_58], %68 {strides = array<i32>} : memref<18x24x24xf32, #tpu.memory_space<vmem>>, vector<18x1x24xf32>,
    %70 = vector.shape_cast %46 : vector<256x24xf32> to vector<16x16x24xf32>
    %c1_59 = arith.constant 1 : index
    %c1_60 = arith.constant 1 : index
    %c0_61 = arith.constant 0 : index
    %71 = vector.load %arg13[%c1_59, %c1_60, %c0_61] : memref<18x24x24xf32, #tpu.memory_space<vmem>>, vector<16x16x24xf32>
    tpu.vector_store %arg13[%c1_59, %c1_60, %c0_61], %70 {strides = array<i32>} : memref<18x24x24xf32, #tpu.memory_space<vmem>>, vector<16x16x24xf32>,
    %c0_62 = arith.constant 0 : index
    %c0_63 = arith.constant 0 : index
    %c0_64 = arith.constant 0 : index
    %72 = tpu.strided_load %arg11[%c0_62, %c0_63, %c0_64] {strides = array<i32: 1, 2, 1>} : memref<18x24x8xf32, #tpu.memory_space<vmem>>, vector<18x8x8xf32>
    %c0_65 = arith.constant 0 : index
    %c1_66 = arith.constant 1 : index
    %c0_67 = arith.constant 0 : index
    %73 = tpu.strided_load %arg11[%c0_65, %c1_66, %c0_67] {strides = array<i32: 1, 2, 1>} : memref<18x24x8xf32, #tpu.memory_space<vmem>>, vector<18x8x8xf32>
    %c0_68 = arith.constant 0 : index
    %c2 = arith.constant 2 : index
    %c0_69 = arith.constant 0 : index
    %74 = tpu.strided_load %arg11[%c0_68, %c2, %c0_69] {strides = array<i32: 1, 2, 1>} : memref<18x24x8xf32, #tpu.memory_space<vmem>>, vector<18x8x8xf32>
    %75 = arith.addf %72, %73 : vector<18x8x8xf32>
    %76 = arith.addf %75, %74 : vector<18x8x8xf32>
    %77 = vector.shape_cast %76 : vector<18x8x8xf32> to vector<9x2x8x8xf32>
    %78 = vector.extract_strided_slice %77 {offsets = [0, 0, 0, 0], sizes = [9, 1, 8, 8], strides = [1, 1, 1, 1]} : vector<9x2x8x8xf32> to vector<9x1x8x8xf32>
    %79 = vector.shape_cast %78 : vector<9x1x8x8xf32> to vector<9x8x8xf32>
    %80 = vector.extract_strided_slice %77 {offsets = [0, 1, 0, 0], sizes = [9, 1, 8, 8], strides = [1, 1, 1, 1]} : vector<9x2x8x8xf32> to vector<9x1x8x8xf32>
    %81 = vector.shape_cast %80 : vector<9x1x8x8xf32> to vector<9x8x8xf32>
    %82 = vector.extract_strided_slice %79 {offsets = [0, 0, 0], sizes = [8, 8, 8], strides = [1, 1, 1]} : vector<9x8x8xf32> to vector<8x8x8xf32>
    %83 = vector.extract_strided_slice %81 {offsets = [0, 0, 0], sizes = [8, 8, 8], strides = [1, 1, 1]} : vector<9x8x8xf32> to vector<8x8x8xf32>
    %84 = arith.addf %82, %83 : vector<8x8x8xf32>
    %85 = vector.extract_strided_slice %79 {offsets = [1, 0, 0], sizes = [8, 8, 8], strides = [1, 1, 1]} : vector<9x8x8xf32> to vector<8x8x8xf32>
    %86 = arith.addf %84, %85 : vector<8x8x8xf32>
    %c0_70 = arith.constant 0 : index
    %c0_71 = arith.constant 0 : index
    %c0_72 = arith.constant 0 : index
    %87 = tpu.strided_load %arg12[%c0_70, %c0_71, %c0_72] {strides = array<i32: 1, 2, 1>} : memref<18x24x16xf32, #tpu.memory_space<vmem>>, vector<18x8x16xf32>
    %c0_73 = arith.constant 0 : index
    %c1_74 = arith.constant 1 : index
    %c0_75 = arith.constant 0 : index
    %88 = tpu.strided_load %arg12[%c0_73, %c1_74, %c0_75] {strides = array<i32: 1, 2, 1>} : memref<18x24x16xf32, #tpu.memory_space<vmem>>, vector<18x8x16xf32>
    %c0_76 = arith.constant 0 : index
    %c2_77 = arith.constant 2 : index
    %c0_78 = arith.constant 0 : index
    %89 = tpu.strided_load %arg12[%c0_76, %c2_77, %c0_78] {strides = array<i32: 1, 2, 1>} : memref<18x24x16xf32, #tpu.memory_space<vmem>>, vector<18x8x16xf32>
    %90 = arith.addf %87, %88 : vector<18x8x16xf32>
    %91 = arith.addf %90, %89 : vector<18x8x16xf32>
    %92 = vector.shape_cast %91 : vector<18x8x16xf32> to vector<9x2x8x16xf32>
    %93 = vector.extract_strided_slice %92 {offsets = [0, 0, 0, 0], sizes = [9, 1, 8, 16], strides = [1, 1, 1, 1]} : vector<9x2x8x16xf32> to vector<9x1x8x16xf32>
    %94 = vector.shape_cast %93 : vector<9x1x8x16xf32> to vector<9x8x16xf32>
    %95 = vector.extract_strided_slice %92 {offsets = [0, 1, 0, 0], sizes = [9, 1, 8, 16], strides = [1, 1, 1, 1]} : vector<9x2x8x16xf32> to vector<9x1x8x16xf32>
    %96 = vector.shape_cast %95 : vector<9x1x8x16xf32> to vector<9x8x16xf32>
    %97 = vector.extract_strided_slice %94 {offsets = [0, 0, 0], sizes = [8, 8, 16], strides = [1, 1, 1]} : vector<9x8x16xf32> to vector<8x8x16xf32>
    %98 = vector.extract_strided_slice %96 {offsets = [0, 0, 0], sizes = [8, 8, 16], strides = [1, 1, 1]} : vector<9x8x16xf32> to vector<8x8x16xf32>
    %99 = arith.addf %97, %98 : vector<8x8x16xf32>
    %100 = vector.extract_strided_slice %94 {offsets = [1, 0, 0], sizes = [8, 8, 16], strides = [1, 1, 1]} : vector<9x8x16xf32> to vector<8x8x16xf32>
    %101 = arith.addf %99, %100 : vector<8x8x16xf32>
    %c0_79 = arith.constant 0 : index
    %c0_80 = arith.constant 0 : index
    %c0_81 = arith.constant 0 : index
    %102 = tpu.strided_load %arg13[%c0_79, %c0_80, %c0_81] {strides = array<i32: 1, 2, 1>} : memref<18x24x24xf32, #tpu.memory_space<vmem>>, vector<18x8x24xf32>
    %c0_82 = arith.constant 0 : index
    %c1_83 = arith.constant 1 : index
    %c0_84 = arith.constant 0 : index
    %103 = tpu.strided_load %arg13[%c0_82, %c1_83, %c0_84] {strides = array<i32: 1, 2, 1>} : memref<18x24x24xf32, #tpu.memory_space<vmem>>, vector<18x8x24xf32>
    %c0_85 = arith.constant 0 : index
    %c2_86 = arith.constant 2 : index
    %c0_87 = arith.constant 0 : index
    %104 = tpu.strided_load %arg13[%c0_85, %c2_86, %c0_87] {strides = array<i32: 1, 2, 1>} : memref<18x24x24xf32, #tpu.memory_space<vmem>>, vector<18x8x24xf32>
    %105 = arith.addf %102, %103 : vector<18x8x24xf32>
    %106 = arith.addf %105, %104 : vector<18x8x24xf32>
    %107 = vector.shape_cast %106 : vector<18x8x24xf32> to vector<9x2x8x24xf32>
    %108 = vector.extract_strided_slice %107 {offsets = [0, 0, 0, 0], sizes = [9, 1, 8, 24], strides = [1, 1, 1, 1]} : vector<9x2x8x24xf32> to vector<9x1x8x24xf32>
    %109 = vector.shape_cast %108 : vector<9x1x8x24xf32> to vector<9x8x24xf32>
    %110 = vector.extract_strided_slice %107 {offsets = [0, 1, 0, 0], sizes = [9, 1, 8, 24], strides = [1, 1, 1, 1]} : vector<9x2x8x24xf32> to vector<9x1x8x24xf32>
    %111 = vector.shape_cast %110 : vector<9x1x8x24xf32> to vector<9x8x24xf32>
    %112 = vector.extract_strided_slice %109 {offsets = [0, 0, 0], sizes = [8, 8, 24], strides = [1, 1, 1]} : vector<9x8x24xf32> to vector<8x8x24xf32>
    %113 = vector.extract_strided_slice %111 {offsets = [0, 0, 0], sizes = [8, 8, 24], strides = [1, 1, 1]} : vector<9x8x24xf32> to vector<8x8x24xf32>
    %114 = arith.addf %112, %113 : vector<8x8x24xf32>
    %115 = vector.extract_strided_slice %109 {offsets = [1, 0, 0], sizes = [8, 8, 24], strides = [1, 1, 1]} : vector<9x8x24xf32> to vector<8x8x24xf32>
    %116 = arith.addf %114, %115 : vector<8x8x24xf32>
    %117 = tpu.reciprocal %116 {approx = true} : vector<8x8x24xf32> -> vector<8x8x24xf32>
    %118 = vector.extract_strided_slice %117 {offsets = [0, 0, 0], sizes = [8, 8, 8], strides = [1, 1, 1]} : vector<8x8x24xf32> to vector<8x8x8xf32>
    %119 = arith.mulf %86, %118 : vector<8x8x8xf32>
    %120 = arith.truncf %119 : vector<8x8x8xf32> to vector<8x8x8xbf16>
    %c0_88 = arith.constant 0 : index
    %c0_89 = arith.constant 0 : index
    %c0_90 = arith.constant 0 : index
    %c0_91 = arith.constant 0 : index
    %121 = vector.load %arg9[%c0_88, %c0_89, %c0_90, %c0_91] : memref<1x8x8x8xbf16, #tpu.memory_space<vmem>>, vector<1x8x8x8xbf16>
    %122 = vector.shape_cast %121 : vector<1x8x8x8xbf16> to vector<8x8x8xbf16>
    %123 = vector.shape_cast %120 : vector<8x8x8xbf16> to vector<1x8x8x8xbf16>
    tpu.vector_store %arg9[%c0_88, %c0_89, %c0_90, %c0_91], %123 {strides = array<i32>} : memref<1x8x8x8xbf16, #tpu.memory_space<vmem>>, vector<1x8x8x8xbf16>,
    %124 = vector.extract_strided_slice %117 {offsets = [0, 0, 8], sizes = [8, 8, 16], strides = [1, 1, 1]} : vector<8x8x24xf32> to vector<8x8x16xf32>
    %125 = arith.mulf %101, %124 : vector<8x8x16xf32>
    %126 = arith.truncf %125 : vector<8x8x16xf32> to vector<8x8x16xbf16>
    %c0_92 = arith.constant 0 : index
    %c0_93 = arith.constant 0 : index
    %c0_94 = arith.constant 0 : index
    %c0_95 = arith.constant 0 : index
    %127 = vector.load %arg10[%c0_92, %c0_93, %c0_94, %c0_95] : memref<1x8x8x16xbf16, #tpu.memory_space<vmem>>, vector<1x8x8x16xbf16>
    %128 = vector.shape_cast %127 : vector<1x8x8x16xbf16> to vector<8x8x16xbf16>
    %129 = vector.shape_cast %126 : vector<8x8x16xbf16> to vector<1x8x8x16xbf16>
    tpu.vector_store %arg10[%c0_92, %c0_93, %c0_94, %c0_95], %129 {strides = array<i32>} : memref<1x8x8x16xbf16, #tpu.memory_space<vmem>>, vector<1x8x8x16xbf16>,
    return
  }
  func.func @transform_0(%arg0: i32) -> (i32, i32, i32) {
    %c0_i32 = arith.constant 0 : i32
    %c0_i32_0 = arith.constant 0 : i32
    %c0_i32_1 = arith.constant 0 : i32
    return %arg0, %c0_i32, %c0_i32_0 : i32, i32, i32
  }
  func.func @transform_1(%arg0: i32) -> (i32, i32, i32) {
    %c0_i32 = arith.constant 0 : i32
    %c0_i32_0 = arith.constant 0 : i32
    %c0_i32_1 = arith.constant 0 : i32
    return %arg0, %c0_i32, %c0_i32_0 : i32, i32, i32
  }
  func.func @transform_2(%arg0: i32) -> (i32, i32) {
    %c0_i32 = arith.constant 0 : i32
    %c0_i32_0 = arith.constant 0 : i32
    %c0_i32_1 = arith.constant 0 : i32
    return %c0_i32, %c0_i32_0 : i32, i32
  }
  func.func @transform_3(%arg0: i32) -> (i32, i32) {
    %c0_i32 = arith.constant 0 : i32
    %c0_i32_0 = arith.constant 0 : i32
    %c0_i32_1 = arith.constant 0 : i32
    return %c0_i32, %c0_i32_0 : i32, i32
  }
  func.func @transform_4(%arg0: i32) -> (i32, i32) {
    %c0_i32 = arith.constant 0 : i32
    %c0_i32_0 = arith.constant 0 : i32
    %c0_i32_1 = arith.constant 0 : i32
    return %c0_i32, %c0_i32_0 : i32, i32
  }
  func.func @transform_5(%arg0: i32) -> (i32, i32) {
    %c0_i32 = arith.constant 0 : i32
    %c0_i32_0 = arith.constant 0 : i32
    %c0_i32_1 = arith.constant 0 : i32
    return %c0_i32, %c0_i32_0 : i32, i32
  }
  func.func @transform_6(%arg0: i32) -> (i32, i32) {
    %c0_i32 = arith.constant 0 : i32
    %c0_i32_0 = arith.constant 0 : i32
    %c0_i32_1 = arith.constant 0 : i32
    return %c0_i32, %c0_i32_0 : i32, i32
  }
  func.func @transform_7(%arg0: i32) -> (i32, i32) {
    %c0_i32 = arith.constant 0 : i32
    %c0_i32_0 = arith.constant 0 : i32
    %c0_i32_1 = arith.constant 0 : i32
    return %c0_i32, %c0_i32_0 : i32, i32
  }
  func.func @transform_8(%arg0: i32) -> (i32, i32, i32, i32) {
    %c0_i32 = arith.constant 0 : i32
    %c0_i32_0 = arith.constant 0 : i32
    %c0_i32_1 = arith.constant 0 : i32
    %c0_i32_2 = arith.constant 0 : i32
    return %arg0, %c0_i32, %c0_i32_0, %c0_i32_1 : i32, i32, i32, i32
  }
  func.func @transform_9(%arg0: i32) -> (i32, i32, i32, i32) {
    %c0_i32 = arith.constant 0 : i32
    %c0_i32_0 = arith.constant 0 : i32
    %c0_i32_1 = arith.constant 0 : i32
    %c0_i32_2 = arith.constant 0 : i32
    return %arg0, %c0_i32, %c0_i32_0, %c0_i32_1 : i32, i32, i32, i32
  }
}

module attributes {stable_mosaic.version = 11 : i64} {
  func.func @_matmul_affine_kernel(%arg0: i32, %arg1: memref<128x16xbf16, #tpu.memory_space<vmem>>, %arg2: memref<16x128xbf16, #tpu.memory_space<vmem>>, %arg3: memref<1x128xf32, #tpu.memory_space<vmem>>, %arg4: memref<1x128xf32, #tpu.memory_space<vmem>>, %arg5: memref<128x128xbf16, #tpu.memory_space<vmem>>) attributes {dimension_semantics = [#tpu.dimension_semantics<parallel>], iteration_bounds = array<i64: 1>, scalar_prefetch = 0 : i64, scratch_operands = 0 : i64, tpu.core_type = #tpu.core_type<tc>, window_params = [{transform_indices = @transform_0, window_bounds = array<i64: 128, 16>}, {pipeline_mode = #tpu.pipeline_mode<synchronous>, transform_indices = @transform_1, window_bounds = array<i64: 16, 128>}, {pipeline_mode = #tpu.pipeline_mode<synchronous>, transform_indices = @transform_2, window_bounds = array<i64: 1, 128>}, {pipeline_mode = #tpu.pipeline_mode<synchronous>, transform_indices = @transform_3, window_bounds = array<i64: 1, 128>}, {transform_indices = @transform_4, window_bounds = array<i64: 128, 128>}]} {
    %c0 = arith.constant 0 : index
    %c0_0 = arith.constant 0 : index
    %0 = vector.load %arg1[%c0, %c0_0] : memref<128x16xbf16, #tpu.memory_space<vmem>>, vector<128x16xbf16>
    %c0_1 = arith.constant 0 : index
    %c0_2 = arith.constant 0 : index
    %1 = vector.load %arg2[%c0_1, %c0_2] : memref<16x128xbf16, #tpu.memory_space<vmem>>, vector<16x128xbf16>
    %cst = arith.constant dense<0.000000e+00> : vector<128x128xf32>
    %2 = tpu.matmul %0, %1, %cst {dimension_numbers = #tpu.dot_dimension_numbers<[1], [0], [0], [1], [0, 0, 1, 1], [], []>} : vector<128x16xbf16>, vector<16x128xbf16>, vector<128x128xf32> -> vector<128x128xf32>
    %c0_3 = arith.constant 0 : index
    %c0_4 = arith.constant 0 : index
    %3 = vector.load %arg3[%c0_3, %c0_4] : memref<1x128xf32, #tpu.memory_space<vmem>>, vector<1x128xf32>
    %4 = vector.broadcast %3 : vector<1x128xf32> to vector<128x128xf32>
    %5 = arith.mulf %2, %4 : vector<128x128xf32>
    %c0_5 = arith.constant 0 : index
    %c0_6 = arith.constant 0 : index
    %6 = vector.load %arg4[%c0_5, %c0_6] : memref<1x128xf32, #tpu.memory_space<vmem>>, vector<1x128xf32>
    %7 = vector.broadcast %6 : vector<1x128xf32> to vector<128x128xf32>
    %8 = arith.addf %5, %7 : vector<128x128xf32>
    %9 = arith.truncf %8 : vector<128x128xf32> to vector<128x128xbf16>
    %c0_7 = arith.constant 0 : index
    %c0_8 = arith.constant 0 : index
    %10 = vector.load %arg5[%c0_7, %c0_8] : memref<128x128xbf16, #tpu.memory_space<vmem>>, vector<128x128xbf16>
    tpu.vector_store %arg5[%c0_7, %c0_8], %9 {strides = array<i32>} : memref<128x128xbf16, #tpu.memory_space<vmem>>, vector<128x128xbf16>,
    return
  }
  func.func @transform_0(%arg0: i32) -> (i32, i32) {
    %c0_i32 = arith.constant 0 : i32
    %c0_i32_0 = arith.constant 0 : i32
    return %arg0, %c0_i32 : i32, i32
  }
  func.func @transform_1(%arg0: i32) -> (i32, i32) {
    %c0_i32 = arith.constant 0 : i32
    %c0_i32_0 = arith.constant 0 : i32
    %c0_i32_1 = arith.constant 0 : i32
    return %c0_i32, %c0_i32_0 : i32, i32
  }
  func.func @transform_2(%arg0: i32) -> (i32, i32) {
    %c0_i32 = arith.constant 0 : i32
    %c0_i32_0 = arith.constant 0 : i32
    %c0_i32_1 = arith.constant 0 : i32
    return %c0_i32, %c0_i32_0 : i32, i32
  }
  func.func @transform_3(%arg0: i32) -> (i32, i32) {
    %c0_i32 = arith.constant 0 : i32
    %c0_i32_0 = arith.constant 0 : i32
    %c0_i32_1 = arith.constant 0 : i32
    return %c0_i32, %c0_i32_0 : i32, i32
  }
  func.func @transform_4(%arg0: i32) -> (i32, i32) {
    %c0_i32 = arith.constant 0 : i32
    %c0_i32_0 = arith.constant 0 : i32
    return %arg0, %c0_i32 : i32, i32
  }
}

module attributes {stable_mosaic.version = 11 : i64} {
  func.func @_matmul_affine_kernel(%arg0: i32, %arg1: memref<128x8xbf16, #tpu.memory_space<vmem>>, %arg2: memref<8x128xbf16, #tpu.memory_space<vmem>>, %arg3: memref<1x128xf32, #tpu.memory_space<vmem>>, %arg4: memref<1x128xf32, #tpu.memory_space<vmem>>, %arg5: memref<128x128xbf16, #tpu.memory_space<vmem>>) attributes {dimension_semantics = [#tpu.dimension_semantics<parallel>], iteration_bounds = array<i64: 1>, scalar_prefetch = 0 : i64, scratch_operands = 0 : i64, tpu.core_type = #tpu.core_type<tc>, window_params = [{transform_indices = @transform_0, window_bounds = array<i64: 128, 8>}, {pipeline_mode = #tpu.pipeline_mode<synchronous>, transform_indices = @transform_1, window_bounds = array<i64: 8, 128>}, {pipeline_mode = #tpu.pipeline_mode<synchronous>, transform_indices = @transform_2, window_bounds = array<i64: 1, 128>}, {pipeline_mode = #tpu.pipeline_mode<synchronous>, transform_indices = @transform_3, window_bounds = array<i64: 1, 128>}, {transform_indices = @transform_4, window_bounds = array<i64: 128, 128>}]} {
    %c0 = arith.constant 0 : index
    %c0_0 = arith.constant 0 : index
    %0 = vector.load %arg1[%c0, %c0_0] : memref<128x8xbf16, #tpu.memory_space<vmem>>, vector<128x8xbf16>
    %c0_1 = arith.constant 0 : index
    %c0_2 = arith.constant 0 : index
    %1 = vector.load %arg2[%c0_1, %c0_2] : memref<8x128xbf16, #tpu.memory_space<vmem>>, vector<8x128xbf16>
    %cst = arith.constant dense<0.000000e+00> : vector<128x128xf32>
    %2 = tpu.matmul %0, %1, %cst {dimension_numbers = #tpu.dot_dimension_numbers<[1], [0], [0], [1], [0, 0, 1, 1], [], []>} : vector<128x8xbf16>, vector<8x128xbf16>, vector<128x128xf32> -> vector<128x128xf32>
    %c0_3 = arith.constant 0 : index
    %c0_4 = arith.constant 0 : index
    %3 = vector.load %arg3[%c0_3, %c0_4] : memref<1x128xf32, #tpu.memory_space<vmem>>, vector<1x128xf32>
    %4 = vector.broadcast %3 : vector<1x128xf32> to vector<128x128xf32>
    %5 = arith.mulf %2, %4 : vector<128x128xf32>
    %c0_5 = arith.constant 0 : index
    %c0_6 = arith.constant 0 : index
    %6 = vector.load %arg4[%c0_5, %c0_6] : memref<1x128xf32, #tpu.memory_space<vmem>>, vector<1x128xf32>
    %7 = vector.broadcast %6 : vector<1x128xf32> to vector<128x128xf32>
    %8 = arith.addf %5, %7 : vector<128x128xf32>
    %cst_7 = arith.constant 0.000000e+00 : f32
    %9 = vector.broadcast %cst_7 : f32 to vector<128x128xf32>
    %10 = arith.maximumf %8, %9 : vector<128x128xf32>
    %11 = arith.truncf %10 : vector<128x128xf32> to vector<128x128xbf16>
    %c0_8 = arith.constant 0 : index
    %c0_9 = arith.constant 0 : index
    %12 = vector.load %arg5[%c0_8, %c0_9] : memref<128x128xbf16, #tpu.memory_space<vmem>>, vector<128x128xbf16>
    tpu.vector_store %arg5[%c0_8, %c0_9], %11 {strides = array<i32>} : memref<128x128xbf16, #tpu.memory_space<vmem>>, vector<128x128xbf16>,
    return
  }
  func.func @transform_0(%arg0: i32) -> (i32, i32) {
    %c0_i32 = arith.constant 0 : i32
    %c0_i32_0 = arith.constant 0 : i32
    return %arg0, %c0_i32 : i32, i32
  }
  func.func @transform_1(%arg0: i32) -> (i32, i32) {
    %c0_i32 = arith.constant 0 : i32
    %c0_i32_0 = arith.constant 0 : i32
    %c0_i32_1 = arith.constant 0 : i32
    return %c0_i32, %c0_i32_0 : i32, i32
  }
  func.func @transform_2(%arg0: i32) -> (i32, i32) {
    %c0_i32 = arith.constant 0 : i32
    %c0_i32_0 = arith.constant 0 : i32
    %c0_i32_1 = arith.constant 0 : i32
    return %c0_i32, %c0_i32_0 : i32, i32
  }
  func.func @transform_3(%arg0: i32) -> (i32, i32) {
    %c0_i32 = arith.constant 0 : i32
    %c0_i32_0 = arith.constant 0 : i32
    %c0_i32_1 = arith.constant 0 : i32
    return %c0_i32, %c0_i32_0 : i32, i32
  }
  func.func @transform_4(%arg0: i32) -> (i32, i32) {
    %c0_i32 = arith.constant 0 : i32
    %c0_i32_0 = arith.constant 0 : i32
    return %arg0, %c0_i32 : i32, i32
  }
}

module attributes {stable_mosaic.version = 11 : i64} {
  func.func @_matmul_affine_kernel(%arg0: i32, %arg1: memref<128x128xbf16, #tpu.memory_space<vmem>>, %arg2: memref<128x128xbf16, #tpu.memory_space<vmem>>, %arg3: memref<1x128xf32, #tpu.memory_space<vmem>>, %arg4: memref<1x128xf32, #tpu.memory_space<vmem>>, %arg5: memref<128x128xbf16, #tpu.memory_space<vmem>>, %arg6: memref<128x128xf32, #tpu.memory_space<vmem>>) attributes {dimension_semantics = [#tpu.dimension_semantics<parallel>], iteration_bounds = array<i64: 1>, scalar_prefetch = 0 : i64, scratch_operands = 0 : i64, tpu.core_type = #tpu.core_type<tc>, window_params = [{transform_indices = @transform_0, window_bounds = array<i64: 128, 128>}, {pipeline_mode = #tpu.pipeline_mode<synchronous>, transform_indices = @transform_1, window_bounds = array<i64: 128, 128>}, {pipeline_mode = #tpu.pipeline_mode<synchronous>, transform_indices = @transform_2, window_bounds = array<i64: 1, 128>}, {pipeline_mode = #tpu.pipeline_mode<synchronous>, transform_indices = @transform_3, window_bounds = array<i64: 1, 128>}, {transform_indices = @transform_4, window_bounds = array<i64: 128, 128>}, {transform_indices = @transform_5, window_bounds = array<i64: 128, 128>}]} {
    %c0 = arith.constant 0 : index
    %c0_0 = arith.constant 0 : index
    %0 = vector.load %arg1[%c0, %c0_0] : memref<128x128xbf16, #tpu.memory_space<vmem>>, vector<128x128xbf16>
    %c0_1 = arith.constant 0 : index
    %c0_2 = arith.constant 0 : index
    %1 = vector.load %arg2[%c0_1, %c0_2] : memref<128x128xbf16, #tpu.memory_space<vmem>>, vector<128x128xbf16>
    %cst = arith.constant dense<0.000000e+00> : vector<128x128xf32>
    %2 = tpu.matmul %0, %1, %cst {dimension_numbers = #tpu.dot_dimension_numbers<[1], [0], [0], [1], [0, 0, 1, 1], [], []>} : vector<128x128xbf16>, vector<128x128xbf16>, vector<128x128xf32> -> vector<128x128xf32>
    %c0_3 = arith.constant 0 : index
    %c0_4 = arith.constant 0 : index
    %3 = vector.load %arg3[%c0_3, %c0_4] : memref<1x128xf32, #tpu.memory_space<vmem>>, vector<1x128xf32>
    %4 = vector.broadcast %3 : vector<1x128xf32> to vector<128x128xf32>
    %5 = arith.mulf %2, %4 : vector<128x128xf32>
    %c0_5 = arith.constant 0 : index
    %c0_6 = arith.constant 0 : index
    %6 = vector.load %arg4[%c0_5, %c0_6] : memref<1x128xf32, #tpu.memory_space<vmem>>, vector<1x128xf32>
    %7 = vector.broadcast %6 : vector<1x128xf32> to vector<128x128xf32>
    %8 = arith.addf %5, %7 : vector<128x128xf32>
    %c0_7 = arith.constant 0 : index
    %c0_8 = arith.constant 0 : index
    %9 = vector.load %arg5[%c0_7, %c0_8] : memref<128x128xbf16, #tpu.memory_space<vmem>>, vector<128x128xbf16>
    %10 = arith.extf %9 : vector<128x128xbf16> to vector<128x128xf32>
    %11 = arith.addf %8, %10 : vector<128x128xf32>
    %cst_9 = arith.constant 0.000000e+00 : f32
    %12 = vector.broadcast %cst_9 : f32 to vector<128x128xf32>
    %13 = arith.maximumf %11, %12 : vector<128x128xf32>
    %c0_10 = arith.constant 0 : index
    %c0_11 = arith.constant 0 : index
    %14 = vector.load %arg6[%c0_10, %c0_11] : memref<128x128xf32, #tpu.memory_space<vmem>>, vector<128x128xf32>
    tpu.vector_store %arg6[%c0_10, %c0_11], %13 {strides = array<i32>} : memref<128x128xf32, #tpu.memory_space<vmem>>, vector<128x128xf32>,
    return
  }
  func.func @transform_0(%arg0: i32) -> (i32, i32) {
    %c0_i32 = arith.constant 0 : i32
    %c0_i32_0 = arith.constant 0 : i32
    return %arg0, %c0_i32 : i32, i32
  }
  func.func @transform_1(%arg0: i32) -> (i32, i32) {
    %c0_i32 = arith.constant 0 : i32
    %c0_i32_0 = arith.constant 0 : i32
    %c0_i32_1 = arith.constant 0 : i32
    return %c0_i32, %c0_i32_0 : i32, i32
  }
  func.func @transform_2(%arg0: i32) -> (i32, i32) {
    %c0_i32 = arith.constant 0 : i32
    %c0_i32_0 = arith.constant 0 : i32
    %c0_i32_1 = arith.constant 0 : i32
    return %c0_i32, %c0_i32_0 : i32, i32
  }
  func.func @transform_3(%arg0: i32) -> (i32, i32) {
    %c0_i32 = arith.constant 0 : i32
    %c0_i32_0 = arith.constant 0 : i32
    %c0_i32_1 = arith.constant 0 : i32
    return %c0_i32, %c0_i32_0 : i32, i32
  }
  func.func @transform_4(%arg0: i32) -> (i32, i32) {
    %c0_i32 = arith.constant 0 : i32
    %c0_i32_0 = arith.constant 0 : i32
    return %arg0, %c0_i32 : i32, i32
  }
  func.func @transform_5(%arg0: i32) -> (i32, i32) {
    %c0_i32 = arith.constant 0 : i32
    %c0_i32_0 = arith.constant 0 : i32
    return %arg0, %c0_i32 : i32, i32
  }
}

</mosaic_0001>

<bundles_post_ra>
// kernel: bottleneck_forward.8
= control target key start
LH: loop header
LB: loop body
LE: loop exit
PB: predicated region body
PF: predicated region fallthrough
CT: control target
= control target key end

     0   :  { %vm82_vm0 = vcmask 130048   ;;  %s560_s1 = inlined_call_operand.vmem [shape: bf16[16,128], index: 1, kind: input, shape index: {}]   ;;  %s561_s0 = inlined_call_operand.vmem [shape: bf16[128,16], index: 0, kind: input, shape index: {}]   ;;  %s562_s2 = inlined_call_operand.vmem [shape: f32[1,128], index: 2, kind: input, shape index: {}]   ;;  %s563_s3 = inlined_call_operand.vmem [shape: f32[1,128], index: 3, kind: input, shape index: {}]   ;;  %s564_s4 = inlined_call_operand.vmem [shape: bf16[128,128], index: 4, kind: output, shape index: {}]  }
   0x1   :  { %v461_v0 = vld [vmem:[%s560_s1] sm:$0xff]   ;;  %v464_v3 = vld [vmem:[%s561_s0 + $0x8] sm:$0xff]   ;;  %v466_v5 = vld [vmem:[%s561_s0 + $0x10] sm:$0xff]  }
   0x2   :  { %v462_v1 = vld [vmem:[%s561_s0] sm:$0xff]   ;;  %441 = vmatprep.subr.bf16.mxu0 %v461_v0  ;;  %459 = vmatprep.subr.bf16.mxu1 %v461_v0  ;;  %v465_v4 = vld [vmem:[%s561_s0 + $0x28] sm:$0xff]   ;;  %v467_v6 = vld [vmem:[%s561_s0 + $0x30] sm:$0xff]  }
   0x3   :  { %v463_v2 = vld [vmem:[%s561_s0 + $0x20] sm:$0xff]   ;;  %442 = vmatpush3.bf16.msra.mxu0 %v461_v0  ;;  %460 = vmatpush3.bf16.msra.mxu1 %v461_v0  ;;  %v468_v7 = vld [vmem:[%s561_s0 + $0x18] sm:$0xff]  }
   0x4   :  { %443 = vmatprep.mubr.msk.bf16.mxu0 %vm82_vm0, %v462_v1  ;;  %451 = vmatprep.mubr.msk.bf16.mxu1 %vm82_vm0, %v463_v2  ;;  %v469_v8 = vld [vmem:[%s561_s0 + $0x38] sm:$0xff]   ;;  %v351_v9 = vld [vmem:[%s562_s2] ss:$0 sm:$0xff] }
   0x5   :  { %v352_v16 = vld [vmem:[%s563_s3] ss:$0 sm:$0xff] }
   0x6   :  { %444 = vmatmul.mubr.msk.bf16.vlgmr.msra.gmra.mrb[0].mxu0 %vm82_vm0, %v464_v3  ;;  %452 = vmatmul.mubr.msk.bf16.vlgmr.msra.gmra.mrb[0].mxu1 %vm82_vm0, %v465_v4 }
   0x7   :  { %447 = vmatprep.mubr.msk.bf16.mxu0 %vm82_vm0, %v466_v5  ;;  %455 = vmatprep.mubr.msk.bf16.mxu1 %vm82_vm0, %v467_v6 }
   0xe   :  { %448 = vmatmul.mubr.msk.bf16.gmra.mrb[4].mxu0 %vm82_vm0, %v468_v7  ;;  %456 = vmatmul.mubr.msk.bf16.gmra.mrb[4].mxu1 %vm82_vm0, %v469_v8 }
  0xd9   :  { %v445_v10 = vpop.f32.mrb[0].mxu0  ;;  %v453_v11 = vpop.f32.mrb[0].mxu1 }
  0xda   :  { %v213_v12 = vmul.f32 %v445_v10, %v351_v9  ;;  %v221_v13 = vmul.f32 %v453_v11, %v351_v9  ;;  %v141_v14 = vpop.f32.mrb[1].mxu0  ;;  %v173_v15 = vpop.f32.mrb[1].mxu1 }
  0xdb   :  { %v211_v17 = vmul.f32 %v351_v9, %v141_v14  ;;  %v219_v18 = vmul.f32 %v351_v9, %v173_v15  ;;  %v446_v19 = vpop.f32.mrb[2].mxu0  ;;  %v454_v20 = vpop.f32.mrb[2].mxu1 }
  0xdc   :  { %v214_v21 = vmul.f32 %v446_v19, %v351_v9  ;;  %v222_v22 = vmul.f32 %v454_v20, %v351_v9  ;;  %v144_v23 = vpop.f32.mrb[3].mxu0  ;;  %v176_v24 = vpop.f32.mrb[3].mxu1  ;;  %v236_v27 = vadd.f32 %v352_v16, %v213_v12  ;;  %v244_v28 = vadd.f32 %v352_v16, %v221_v13 }
  0xdd   :  { %v212_v25 = vmul.f32 %v351_v9, %v144_v23  ;;  %v220_v26 = vmul.f32 %v351_v9, %v176_v24  ;;  %v234_v31 = vadd.f32 %v352_v16, %v211_v17  ;;  %v242_v32 = vadd.f32 %v352_v16, %v219_v18 }
  0xde   :  { %v237_v29 = vadd.f32 %v352_v16, %v214_v21  ;;  %v245_v30 = vadd.f32 %v352_v16, %v222_v22 }
  0xdf   :  { %v235_v33 = vadd.f32 %v352_v16, %v212_v25  ;;  %v243_v34 = vadd.f32 %v352_v16, %v220_v26 }
  0xe0   :  { %v393_v35 = vpack.c.bf16 %v237_v29, %v236_v27  ;;  %v413_v36 = vpack.c.bf16 %v245_v30, %v244_v28 }
  0xe1   :  { %v388_v37 = vpack.c.bf16 %v235_v33, %v234_v31  ;;  %v408_v38 = vpack.c.bf16 %v243_v34, %v242_v32  ;;  %v449_v39 = vpop.f32.mrb[4].mxu0  ;;  %v457_v40 = vpop.f32.mrb[4].mxu1 }
  0xe2   :  { %425 = vst [vmem:[%s564_s4 + $0x8] sm:$0xff] %v393_v35   ;;  %429 = vst [vmem:[%s564_s4 + $0x28] sm:$0xff] %v413_v36   ;;  %v217_v41 = vmul.f32 %v449_v39, %v351_v9  ;;  %v225_v42 = vmul.f32 %v457_v40, %v351_v9  ;;  %v157_v43 = vpop.f32.mrb[5].mxu0  ;;  %v189_v44 = vpop.f32.mrb[5].mxu1 }
  0xe3   :  { %389 = vst [vmem:[%s564_s4] sm:$0xff] %v388_v37   ;;  %428 = vst [vmem:[%s564_s4 + $0x20] sm:$0xff] %v408_v38   ;;  %v215_v45 = vmul.f32 %v351_v9, %v157_v43  ;;  %v223_v46 = vmul.f32 %v351_v9, %v189_v44  ;;  %v450_v47 = vpop.f32.mrb[6].mxu0  ;;  %v458_v48 = vpop.f32.mrb[6].mxu1 }
  0xe4   :  { %v218_v49 = vmul.f32 %v450_v47, %v351_v9  ;;  %v226_v50 = vmul.f32 %v458_v48, %v351_v9  ;;  %v160_v51 = vpop.f32.mrb[7].mxu0  ;;  %v192_v52 = vpop.f32.mrb[7].mxu1  ;;  %v240_v55 = vadd.f32 %v352_v16, %v217_v41  ;;  %v248_v56 = vadd.f32 %v352_v16, %v225_v42 }
  0xe5   :  { %v216_v53 = vmul.f32 %v351_v9, %v160_v51  ;;  %v224_v54 = vmul.f32 %v351_v9, %v192_v52  ;;  %v238_v59 = vadd.f32 %v352_v16, %v215_v45  ;;  %v246_v60 = vadd.f32 %v352_v16, %v223_v46 }
  0xe6   :  { %v241_v57 = vadd.f32 %v352_v16, %v218_v49  ;;  %v249_v58 = vadd.f32 %v352_v16, %v226_v50 }
  0xe7   :  { %v239_v61 = vadd.f32 %v352_v16, %v216_v53  ;;  %v247_v62 = vadd.f32 %v352_v16, %v224_v54 }
  0xe8   :  { %v403_v63 = vpack.c.bf16 %v241_v57, %v240_v55  ;;  %v423_v0 = vpack.c.bf16 %v249_v58, %v248_v56 }
  0xe9   :  { %v398_v1 = vpack.c.bf16 %v239_v61, %v238_v59  ;;  %v418_v2 = vpack.c.bf16 %v247_v62, %v246_v60 }
  0xea   :  { %427 = vst [vmem:[%s564_s4 + $0x18] sm:$0xff] %v403_v63   ;;  %431 = vst [vmem:[%s564_s4 + $0x38] sm:$0xff] %v423_v0  }
  0xeb   :  { %426 = vst [vmem:[%s564_s4 + $0x10] sm:$0xff] %v398_v1   ;;  %430 = vst [vmem:[%s564_s4 + $0x30] sm:$0xff] %v418_v2  }

// kernel: bottleneck_forward.7
= control target key start
LH: loop header
LB: loop body
LE: loop exit
PB: predicated region body
PF: predicated region fallthrough
CT: control target
= control target key end

     0   :  { %vm100_vm0 = vcmask 1043456   ;;  %vm75_vm1 = vcmask 64512   ;;  %s609_s1 = inlined_call_operand.vmem [shape: bf16[8,128], index: 1, kind: input, shape index: {}]   ;;  %s610_s0 = inlined_call_operand.vmem [shape: bf16[128,8], index: 0, kind: input, shape index: {}]   ;;  %s611_s2 = inlined_call_operand.vmem [shape: f32[1,128], index: 2, kind: input, shape index: {}]   ;;  %s612_s3 = inlined_call_operand.vmem [shape: f32[1,128], index: 3, kind: input, shape index: {}]   ;;  %s613_s4 = inlined_call_operand.vmem [shape: bf16[128,128], index: 4, kind: output, shape index: {}]  }
   0x1   :  { %v34_v0 = vld [vmem:[%s609_s1] sm:$0xf]  ;;  %v477_v4 = vld [vmem:[%s610_s0 + $0x8] sm:$0xff]   ;;  %v479_v6 = vld [vmem:[%s610_s0 + $0x10] sm:$0xff]  }
   0x2   :  { %473 = vmatprep.subr.msk.bf16.mxu0 %vm100_vm0, %v34_v0  ;;  %474 = vmatprep.subr.msk.bf16.mxu1 %vm100_vm0, %v34_v0  ;;  %v102_v1 = vsel %vm100_vm0, %v34_v0, 0  ;;  %v475_v2 = vld [vmem:[%s610_s0] sm:$0xff]   ;;  %v478_v5 = vld [vmem:[%s610_s0 + $0x28] sm:$0xff]   ;;  %v480_v7 = vld [vmem:[%s610_s0 + $0x30] sm:$0xff]  }
   0x3   :  { %454 = vmatpush3.bf16.msra.mxu0 %v102_v1  ;;  %472 = vmatpush3.bf16.msra.mxu1 %v102_v1  ;;  %v476_v3 = vld [vmem:[%s610_s0 + $0x20] sm:$0xff]   ;;  %v481_v8 = vld [vmem:[%s610_s0 + $0x18] sm:$0xff]  }
   0x4   :  { %455 = vmatprep.mubr.msk.bf16.mxu0 %vm75_vm1, %v475_v2  ;;  %463 = vmatprep.mubr.msk.bf16.mxu1 %vm75_vm1, %v476_v3  ;;  %v482_v9 = vld [vmem:[%s610_s0 + $0x38] sm:$0xff]   ;;  %v546_v10 = vld [vmem:[%s611_s2] ss:$0 sm:$0xff] }
   0x5   :  { %v551_v12 = vld [vmem:[%s612_s3] ss:$0 sm:$0xff] }
   0x6   :  { %456 = vmatmul.mubr.msk.bf16.vlgmr.msra.gmra.mrb[0].mxu0 %vm75_vm1, %v477_v4  ;;  %464 = vmatmul.mubr.msk.bf16.vlgmr.msra.gmra.mrb[0].mxu1 %vm75_vm1, %v478_v5 }
   0x7   :  { %459 = vmatprep.mubr.msk.bf16.mxu0 %vm75_vm1, %v479_v6  ;;  %467 = vmatprep.mubr.msk.bf16.mxu1 %vm75_vm1, %v480_v7 }
   0xe   :  { %460 = vmatmul.mubr.msk.bf16.gmra.mrb[4].mxu0 %vm75_vm1, %v481_v8  ;;  %468 = vmatmul.mubr.msk.bf16.gmra.mrb[4].mxu1 %vm75_vm1, %v482_v9 }
  0xd9   :  { %v457_v11 = vpop.f32.mrb[0].mxu0  ;;  %v465_v14 = vpop.f32.mrb[0].mxu1 }
  0xda   :  { %v210_v13 = vmul.f32 %v457_v11, %v546_v10  ;;  %v138_v15 = vpop.f32.mrb[1].mxu0  ;;  %v218_v16 = vmul.f32 %v465_v14, %v546_v10  ;;  %v170_v18 = vpop.f32.mrb[1].mxu1 }
  0xdb   :  { %v208_v17 = vmul.f32 %v546_v10, %v138_v15  ;;  %v458_v19 = vpop.f32.mrb[2].mxu0  ;;  %v216_v21 = vmul.f32 %v546_v10, %v170_v18  ;;  %v466_v23 = vpop.f32.mrb[2].mxu1 }
  0xdc   :  { %v233_v20 = vadd.f32 %v551_v12, %v210_v13  ;;  %v211_v22 = vmul.f32 %v458_v19, %v546_v10  ;;  %v141_v24 = vpop.f32.mrb[3].mxu0  ;;  %v241_v25 = vadd.f32 %v551_v12, %v218_v16  ;;  %v219_v27 = vmul.f32 %v466_v23, %v546_v10  ;;  %v173_v29 = vpop.f32.mrb[3].mxu1 }
  0xdd   :  { %v231_v26 = vadd.f32 %v551_v12, %v208_v17  ;;  %v209_v28 = vmul.f32 %v546_v10, %v141_v24  ;;  %v239_v30 = vadd.f32 %v551_v12, %v216_v21  ;;  %v217_v32 = vmul.f32 %v546_v10, %v173_v29 }
  0xde   :  { %v234_v31 = vadd.f32 %v551_v12, %v211_v22  ;;  %v242_v33 = vadd.f32 %v551_v12, %v219_v27  ;;  %v249_v35 = vmax.f32 %v233_v20, 0.0  ;;  %v257_v38 = vmax.f32 %v241_v25, 0.0 }
  0xdf   :  { %v232_v34 = vadd.f32 %v551_v12, %v209_v28  ;;  %v240_v37 = vadd.f32 %v551_v12, %v217_v32  ;;  %v247_v39 = vmax.f32 %v231_v26, 0.0  ;;  %v255_v43 = vmax.f32 %v239_v30, 0.0 }
  0xe0   :  { %v250_v36 = vmax.f32 %v234_v31, 0.0  ;;  %v258_v40 = vmax.f32 %v242_v33, 0.0 }
  0xe1   :  { %v248_v41 = vmax.f32 %v232_v34, 0.0  ;;  %v461_v42 = vpop.f32.mrb[4].mxu0  ;;  %v256_v45 = vmax.f32 %v240_v37, 0.0  ;;  %v469_v47 = vpop.f32.mrb[4].mxu1 }
  0xe2   :  { %v405_v44 = vpack.c.bf16 %v250_v36, %v249_v35  ;;  %v214_v46 = vmul.f32 %v461_v42, %v546_v10  ;;  %v154_v48 = vpop.f32.mrb[5].mxu0  ;;  %v425_v49 = vpack.c.bf16 %v258_v40, %v257_v38  ;;  %v222_v51 = vmul.f32 %v469_v47, %v546_v10  ;;  %v186_v53 = vpop.f32.mrb[5].mxu1 }
  0xe3   :  { %v400_v50 = vpack.c.bf16 %v248_v41, %v247_v39  ;;  %v212_v52 = vmul.f32 %v546_v10, %v154_v48  ;;  %v462_v54 = vpop.f32.mrb[6].mxu0  ;;  %v420_v55 = vpack.c.bf16 %v256_v45, %v255_v43  ;;  %v220_v57 = vmul.f32 %v546_v10, %v186_v53  ;;  %v470_v59 = vpop.f32.mrb[6].mxu1 }
  0xe4   :  { %437 = vst [vmem:[%s613_s4 + $0x8] sm:$0xff] %v405_v44   ;;  %v237_v56 = vadd.f32 %v551_v12, %v214_v46  ;;  %v215_v58 = vmul.f32 %v462_v54, %v546_v10  ;;  %v157_v60 = vpop.f32.mrb[7].mxu0  ;;  %441 = vst [vmem:[%s613_s4 + $0x28] sm:$0xff] %v425_v49   ;;  %v245_v61 = vadd.f32 %v551_v12, %v222_v51  ;;  %v189_v1 = vpop.f32.mrb[7].mxu1 }
  0xe5   :  { %401 = vst [vmem:[%s613_s4] sm:$0xff] %v400_v50   ;;  %v235_v62 = vadd.f32 %v551_v12, %v212_v52  ;;  %v223_v63 = vmul.f32 %v470_v59, %v546_v10  ;;  %v213_v0 = vmul.f32 %v546_v10, %v157_v60  ;;  %440 = vst [vmem:[%s613_s4 + $0x20] sm:$0xff] %v420_v55  }
  0xe6   :  { %v243_v2 = vadd.f32 %v551_v12, %v220_v57  ;;  %v238_v3 = vadd.f32 %v551_v12, %v215_v58  ;;  %v221_v4 = vmul.f32 %v546_v10, %v189_v1  ;;  %v253_v7 = vmax.f32 %v237_v56, 0.0 }
  0xe7   :  { %v246_v5 = vadd.f32 %v551_v12, %v223_v63  ;;  %v236_v6 = vadd.f32 %v551_v12, %v213_v0  ;;  %v261_v11 = vmax.f32 %v245_v61, 0.0  ;;  %v251_v13 = vmax.f32 %v235_v62, 0.0 }
  0xe8   :  { %v254_v8 = vmax.f32 %v238_v3, 0.0  ;;  %v244_v9 = vadd.f32 %v551_v12, %v221_v4  ;;  %v259_v16 = vmax.f32 %v243_v2, 0.0 }
  0xe9   :  { %v262_v14 = vmax.f32 %v246_v5, 0.0  ;;  %v252_v15 = vmax.f32 %v236_v6, 0.0 }
  0xea   :  { %v415_v17 = vpack.c.bf16 %v254_v8, %v253_v7  ;;  %v260_v18 = vmax.f32 %v244_v9, 0.0 }
  0xeb   :  { %v435_v19 = vpack.c.bf16 %v262_v14, %v261_v11  ;;  %v410_v20 = vpack.c.bf16 %v252_v15, %v251_v13 }
  0xec   :  { %439 = vst [vmem:[%s613_s4 + $0x18] sm:$0xff] %v415_v17   ;;  %v430_v10 = vpack.c.bf16 %v260_v18, %v259_v16 }
  0xed   :  { %443 = vst [vmem:[%s613_s4 + $0x38] sm:$0xff] %v435_v19   ;;  %438 = vst [vmem:[%s613_s4 + $0x10] sm:$0xff] %v410_v20  }
  0xee   :  { %442 = vst [vmem:[%s613_s4 + $0x30] sm:$0xff] %v430_v10  }

// kernel: bottleneck_forward.6
= control target key start
LH: loop header
LB: loop body
LE: loop exit
PB: predicated region body
PF: predicated region fallthrough
CT: control target
= control target key end

     0   :  { %s3341_s30 = smov 0   ;;  %s4777_s0 = inlined_call_operand.vmem [shape: bf16[2,256,128], index: 0, kind: input, shape index: {}]   ;;  %s4778_s1 = inlined_call_operand.vmem [shape: bf16[2,256,16], index: 1, kind: input, shape index: {}]   ;;  %s4779_s2 = inlined_call_operand.vmem [shape: bf16[128,24], index: 2, kind: input, shape index: {}]   ;;  %s4780_s3 = inlined_call_operand.vmem [shape: f32[1,24], index: 3, kind: input, shape index: {}]   ;;  %s4781_s4 = inlined_call_operand.vmem [shape: f32[1,24], index: 4, kind: input, shape index: {}]   ;;  %s4782_s5 = inlined_call_operand.vmem [shape: bf16[16,8], index: 5, kind: input, shape index: {}]   ;;  %s4783_s6 = inlined_call_operand.vmem [shape: f32[1,8], index: 6, kind: input, shape index: {}]   ;;  %s4784_s7 = inlined_call_operand.vmem [shape: f32[1,8], index: 7, kind: input, shape index: {}]   ;;  %s4785_s8 = inlined_call_operand.vmem [shape: bf16[2,8,8,8], index: 8, kind: output, shape index: {0}]   ;;  %s4786_s9 = inlined_call_operand.vmem [shape: bf16[2,8,8,16], index: 9, kind: output, shape index: {1}]  }
   0x1 LB: > { %s2767_s10 = sadd.s32 4294967295, %s3287_s30   ;;  %p2771_p0 = scmp.ge.s32.totalorder %s3287_s30, 1  ;;  %s3287_s30 = sphi %s3341_s30, %s20_s30  }
   0x2   : > { %p300_p1 = scmp.lt.s32.totalorder %s3287_s30, 3 }
   0x4   : > { %p301_p2 = pnand %p2771_p0, %p300_p1 }
   0x6   : > { %304 = sbr.rel (%p301_p2) target bundleno = 778 (0x30a), region = 52 }
   0xd   : > { %v2996_v0 = vld [vmem:[%s4782_s5] sm:$0xff]   ;;  %p346_p3 = scmp.lt.s32.totalorder %s2767_s10, 1  ;;  %v3001_v2 = vld [vmem:[%s4779_s2 + $0x8] sm:$0xff]   ;;  %vm487_vm0 = vcmask 130048   ;;  %v3004_v6 = vld [vmem:[%s4779_s2 + $0x10] sm:$0xff]   ;;  %vm1162_vm1 = vcmask 195584  }
   0xe   : > { %v2998_v1 = vld [vmem:[%s4779_s2] sm:$0xff]   ;;  %2888 = vmatprep.subr.bf16.mxu0 %v2996_v0  ;;  %v3007_v7 = vld [vmem:[%s4779_s2 + $0x18] sm:$0xff]   ;;  %v3013_v13 = vld [vmem:[%s4779_s2 + $0x28] sm:$0xff]   ;;  %vm1798_vm2 = vcmask 64512   ;;  %vm1802_vm3 = vcmask 57344   ;;  %vm2072_vm4 = vcmask 188416  }
   0xf   : > { %s4878_s10 = smov (!%p346_p3, %s2767_s10), 1  ;;  %2889 = vmatpush3.bf16.msra.mxu0 %v2996_v0  ;;  %2970 = vmatprep.subr.bf16.mxu1 %v2998_v1  ;;  %v3010_v10 = vld [vmem:[%s4779_s2 + $0x20] sm:$0xff]   ;;  %v3016_v15 = vld [vmem:[%s4779_s2 + $0x30] sm:$0xff]   ;;  %v3019_v17 = vld [vmem:[%s4779_s2 + $0x38] sm:$0xff]   ;;  %s3290_s11 = smov 120   ;;  %vm2601_vm5 = vcmask 60416  }
  0x10   : > { %s2843_s17 = sshll.u32 %s4878_s10, 7  ;;  %2922 = vmatprep.subr.bf16.mxu0 %v2998_v1  ;;  %2978 = vmatpush3.bf16.msra.mxu1 %v2998_v1  ;;  %v3448_v45 = vld [vmem:[%s4783_s6] ss:$0 sm:$0xff]  ;;  %s2845_s12 = sshll.u32 %s4878_s10, 5  ;;  %vm2017_vm6 = vcmask 122880   ;;  %vm2658_vm7 = vcmask 125952  }
  0x11   : > { %s3364_s20 = scalar_lea.vmem %s4778_s1, %s2843_s17  ;;  %2971 = vmatprep.subr.bf16.mxu1 %v3001_v2  ;;  %s3383_s27 = scalar_lea.vmem %s4777_s0, %s2843_s17  ;;  %v3456_v49 = vld [vmem:[%s4784_s7] ss:$0 sm:$0xff] }
  0x12   : > { %v367_v3 = vld [vmem:[%s3364_s20] sm:$0xff]   ;;  %v369_v4 = vld [vmem:[%s3364_s20 + $0x8] sm:$0xff]   ;;  %v371_v5 = vld [vmem:[%s3364_s20 + $0x10] sm:$0xff]   ;;  %s4599_s15 = scalar_lea.vmem %s4785_s8, %s2845_s12  ;;  %s4756_s17 = scalar_lea.vmem %s4786_s9, %s2845_s12 }
  0x13   : > { %2890 = vmatprep.mubr.msk.bf16.mxu0 %vm487_vm0, %v367_v3  ;;  %v373_v8 = vld [vmem:[%s3364_s20 + $0x18] sm:$0xff]   ;;  %v375_v9 = vld [vmem:[%s3364_s20 + $0x20] sm:$0xff]   ;;  %v3023_v11 = vld [vmem:[%s3383_s27 + $0x10] sm:$0xff]  }
  0x14   : > { %2979 = vmatpush3.bf16.msra.mxu1 %v3001_v2  ;;  %2891 = vmatmul.mubr.msk.bf16.vlgmr.msra.gmra.mrb[0].mxu0 %vm487_vm0, %v369_v4  ;;  %v377_v12 = vld [vmem:[%s3364_s20 + $0x28] sm:$0xff]   ;;  %v379_v14 = vld [vmem:[%s3364_s20 + $0x30] sm:$0xff]   ;;  %v381_v16 = vld [vmem:[%s3364_s20 + $0x38] sm:$0xff]  }
  0x15   : > { %2972 = vmatprep.subr.bf16.mxu1 %v3004_v6  ;;  %2923 = vmatpush3.bf16.msra.mxu0 %v2998_v1  ;;  %v383_v18 = vld [vmem:[%s3364_s20 + $0x40] sm:$0xff]   ;;  %v3024_v19 = vld [vmem:[%s3383_s27 + $0x18] sm:$0xff]   ;;  %v385_v21 = vld [vmem:[%s3364_s20 + $0x48] sm:$0xff]  }
  0x16   : > { %2894 = vmatprep.mubr.msk.bf16.mxu0 %vm487_vm0, %v371_v5  ;;  %2924 = vmatprep.subr.bf16.mxu0 %v3001_v2  ;;  %v3025_v20 = vld [vmem:[%s3383_s27 + $0x20] sm:$0xff]   ;;  %v387_v22 = vld [vmem:[%s3364_s20 + $0x50] sm:$0xff]   ;;  %v3026_v23 = vld [vmem:[%s3383_s27 + $0x28] sm:$0xff]  }
  0x17   : > { %2942 = vmatprep.mubr.bf16.mxu1 %v3023_v11  ;;  %v3027_v24 = vld [vmem:[%s3383_s27 + $0x30] sm:$0xff]   ;;  %v389_v25 = vld [vmem:[%s3364_s20 + $0x58] sm:$0xff]   ;;  %v391_v26 = vld [vmem:[%s3364_s20 + $0x60] sm:$0xff]  }
  0x18   : > { %2980 = vmatpush3.bf16.msra.mxu1 %v3004_v6  ;;  %v3028_v27 = vld [vmem:[%s3383_s27 + $0x38] sm:$0xff]   ;;  %v3029_v28 = vld [vmem:[%s3383_s27 + $0x40] sm:$0xff]   ;;  %v393_v29 = vld [vmem:[%s3364_s20 + $0x68] sm:$0xff]  }
  0x19   : > { %2973 = vmatprep.subr.bf16.mxu1 %v3007_v7  ;;  %2925 = vmatpush3.bf16.msra.mxu0 %v3001_v2  ;;  %v395_v30 = vld [vmem:[%s3364_s20 + $0x70] sm:$0xff]   ;;  %v3030_v31 = vld [vmem:[%s3383_s27 + $0x48] sm:$0xff]   ;;  %v397_v33 = vld [vmem:[%s3364_s20 + $0x78] sm:$0xff]  }
  0x1a   : > { %2926 = vmatprep.subr.bf16.mxu0 %v3004_v6  ;;  %v3031_v32 = vld [vmem:[%s3383_s27 + $0x50] sm:$0xff]   ;;  %v3021_v34 = vld [vmem:[%s3383_s27] sm:$0xff]   ;;  %v3032_v35 = vld [vmem:[%s3383_s27 + $0x58] sm:$0xff]  }
  0x1b   : > { %v3033_v36 = vld [vmem:[%s3383_s27 + $0x60] sm:$0xff]   ;;  %v3022_v37 = vld [vmem:[%s3383_s27 + $0x8] sm:$0xff]   ;;  %v3035_v39 = vld [vmem:[%s3383_s27 + $0x70] sm:$0xff]  }
  0x1c   : > { %2981 = vmatpush3.bf16.msra.mxu1 %v3007_v7  ;;  %2895 = vmatmul.mubr.msk.bf16.gmra.mrb[4].mxu0 %vm487_vm0, %v373_v8  ;;  %v3034_v38 = vld [vmem:[%s3383_s27 + $0x68] sm:$0xff]   ;;  %v3036_v40 = vld [vmem:[%s3383_s27 + $0x78] sm:$0xff]  }
  0x1d   : > { %2974 = vmatprep.subr.bf16.mxu1 %v3010_v10  ;;  %2898 = vmatprep.mubr.msk.bf16.mxu0 %vm487_vm0, %v375_v9 }
  0x1e   : > { %2927 = vmatpush3.bf16.msra.mxu0 %v3004_v6 }
  0x1f   : > { %2928 = vmatprep.subr.bf16.mxu0 %v3007_v7 }
  0x20   : > { %2982 = vmatpush3.bf16.msra.mxu1 %v3010_v10 }
  0x21   : > { %2975 = vmatprep.subr.bf16.mxu1 %v3013_v13 }
  0x22   : > { %2929 = vmatpush3.bf16.msra.mxu0 %v3007_v7 }
  0x23   : > { %2930 = vmatprep.subr.bf16.mxu0 %v3010_v10 }
  0x24   : > { %2983 = vmatpush3.bf16.msra.mxu1 %v3013_v13  ;;  %2899 = vmatmul.mubr.msk.bf16.gmra.mrb[8].mxu0 %vm487_vm0, %v377_v12 }
  0x25   : > { %2976 = vmatprep.subr.bf16.mxu1 %v3016_v15  ;;  %2902 = vmatprep.mubr.msk.bf16.mxu0 %vm487_vm0, %v379_v14 }
  0x26   : > { %2931 = vmatpush3.bf16.msra.mxu0 %v3010_v10 }
  0x27   : > { %2932 = vmatprep.subr.bf16.mxu0 %v3013_v13 }
  0x28   : > { %2984 = vmatpush3.bf16.msra.mxu1 %v3016_v15 }
  0x29   : > { %2977 = vmatprep.subr.bf16.mxu1 %v3019_v17 }
  0x2a   : > { %2933 = vmatpush3.bf16.msra.mxu0 %v3013_v13 }
  0x2b   : > { %2934 = vmatprep.subr.bf16.mxu0 %v3016_v15 }
  0x2c   : > { %2985 = vmatpush3.bf16.msra.mxu1 %v3019_v17  ;;  %2903 = vmatmul.mubr.msk.bf16.gmra.mrb[12].mxu0 %vm487_vm0, %v381_v16 }
  0x2d   : > { %2906 = vmatprep.mubr.msk.bf16.mxu0 %vm487_vm0, %v383_v18 }
  0x2e   : > { %2935 = vmatpush3.bf16.msra.mxu0 %v3016_v15 }
  0x2f   : > { %2936 = vmatprep.subr.bf16.mxu0 %v3019_v17  ;;  %2943 = vmatmul.mubr.bf16.vlgmr.msra.gmra.mrb[0].mxu1 %v3024_v19 }
  0x30   : > { %2946 = vmatprep.mubr.bf16.mxu1 %v3025_v20 }
  0x32   : > { %2937 = vmatpush3.bf16.msra.mxu0 %v3019_v17 }
  0x34   : > { %2907 = vmatmul.mubr.msk.bf16.gmra.mrb[16].mxu0 %vm487_vm0, %v385_v21 }
  0x35   : > { %2910 = vmatprep.mubr.msk.bf16.mxu0 %vm487_vm0, %v387_v22 }
  0x37   : > { %2947 = vmatmul.mubr.bf16.gmra.mrb[4].mxu1 %v3026_v23 }
  0x38   : > { %2950 = vmatprep.mubr.bf16.mxu1 %v3027_v24 }
  0x3c   : > { %2911 = vmatmul.mubr.msk.bf16.gmra.mrb[20].mxu0 %vm487_vm0, %v389_v25 }
  0x3d   : > { %2914 = vmatprep.mubr.msk.bf16.mxu0 %vm487_vm0, %v391_v26 }
  0x3f   : > { %2951 = vmatmul.mubr.bf16.gmra.mrb[8].mxu1 %v3028_v27 }
  0x40   : > { %2954 = vmatprep.mubr.bf16.mxu1 %v3029_v28 }
  0x44   : > { %2915 = vmatmul.mubr.msk.bf16.gmra.mrb[24].mxu0 %vm487_vm0, %v393_v29 }
  0x45   : > { %2918 = vmatprep.mubr.msk.bf16.mxu0 %vm487_vm0, %v395_v30 }
  0x47   : > { %2955 = vmatmul.mubr.bf16.gmra.mrb[12].mxu1 %v3030_v31 }
  0x48   : > { %2958 = vmatprep.mubr.bf16.mxu1 %v3031_v32 }
  0x4c   : > { %2919 = vmatmul.mubr.msk.bf16.gmra.mrb[28].mxu0 %vm487_vm0, %v397_v33 }
  0x4d   : > { %2938 = vmatprep.mubr.bf16.mxu0 %v3021_v34 }
  0x4f   : > { %2959 = vmatmul.mubr.bf16.gmra.mrb[16].mxu1 %v3032_v35 }
  0x50   : > { %2962 = vmatprep.mubr.bf16.mxu1 %v3033_v36 }
  0x54   : > { %2939 = vmatmul.mubr.bf16.vlgmr.msra.gmra.mrb[32].mxu0 %v3022_v37 }
  0x57   : > { %2963 = vmatmul.mubr.bf16.gmra.mrb[20].mxu1 %v3034_v38 }
  0x58   : > { %2966 = vmatprep.mubr.bf16.mxu1 %v3035_v39 }
  0x5f   : > { %2967 = vmatmul.mubr.bf16.gmra.mrb[24].mxu1 %v3036_v40 }
  0xe7   : > { %v3437_v41 = vpop.f32.mrb[0].mxu0 }
  0xe8   : > { %v3439_v42 = vpop.f32.mrb[1].mxu0 }
  0xe9   : > { %v3441_v43 = vpop.f32.mrb[2].mxu0 }
  0xea   : > { %v3443_v44 = vpop.f32.mrb[3].mxu0 }
  0xef   : > { %v2896_v46 = vpop.f32.mrb[4].mxu0 }
  0xf0   : > { %v710_v47 = vmul.f32 %v2896_v46, %v3448_v45  ;;  %v3451_v48 = vpop.f32.mrb[5].mxu0 }
  0xf1   : > { %v3458_v50 = vpop.f32.mrb[6].mxu0 }
  0xf2   : > { %v3461_v51 = vadd.f32 %v3456_v49, %v710_v47  ;;  %v3463_v52 = vpop.f32.mrb[7].mxu0 }
  0xf7   : > { %v2900_v53 = vpop.f32.mrb[8].mxu0 }
  0xf8   : > { %v714_v54 = vmul.f32 %v2900_v53, %v3448_v45  ;;  %v602_v55 = vpop.f32.mrb[9].mxu0 }
  0xf9   : > { %v712_v56 = vmul.f32 %v3448_v45, %v602_v55  ;;  %v2901_v57 = vpop.f32.mrb[10].mxu0 }
  0xfa   : > { %v3468_v58 = vadd.f32 %v3456_v49, %v714_v54  ;;  %v715_v59 = vmul.f32 %v2901_v57, %v3448_v45  ;;  %v605_v60 = vpop.f32.mrb[11].mxu0 }
  0xfb   : > { %v3472_v61 = vadd.f32 %v3456_v49, %v712_v56  ;;  %v713_v62 = vmul.f32 %v3448_v45, %v605_v60 }
  0xfc   : > { %v3476_v63 = vadd.f32 %v3456_v49, %v715_v59 }
  0xfd   : > { %v3479_v0 = vadd.f32 %v3456_v49, %v713_v62 }
  0xfe   : > { %4810 = vst [vmem:[#allocation5_spill] sm:$0xff] %v3476_v63 }
  0xff   : > { %4811 = vst [vmem:[#allocation6_spill] sm:$0xff] %v3479_v0  ;;  %v2904_v1 = vpop.f32.mrb[12].mxu0 }
 0x100   : > { %v718_v2 = vmul.f32 %v2904_v1, %v3448_v45  ;;  %v618_v3 = vpop.f32.mrb[13].mxu0 }
 0x101   : > { %v716_v4 = vmul.f32 %v3448_v45, %v618_v3  ;;  %v2905_v5 = vpop.f32.mrb[14].mxu0 }
 0x102   : > { %v3483_v6 = vpop.f32.mrb[0].mxu1  ;;  %v3486_v7 = vadd.f32 %v3456_v49, %v718_v2  ;;  %v719_v8 = vmul.f32 %v2905_v5, %v3448_v45  ;;  %v621_v9 = vpop.f32.mrb[15].mxu0 }
 0x103   : > { %v3489_v10 = vpop.f32.mrb[1].mxu1  ;;  %v3492_v11 = vadd.f32 %v3456_v49, %v716_v4  ;;  %v717_v12 = vmul.f32 %v3448_v45, %v621_v9 }
 0x104   : > { %4812 = vst [vmem:[#allocation7_spill] sm:$0xff] %v3486_v7  ;;  %v3495_v13 = vpop.f32.mrb[2].mxu1  ;;  %v3498_v14 = vadd.f32 %v3456_v49, %v719_v8 }
 0x105   : > { %4813 = vst [vmem:[#allocation8_spill] sm:$0xff] %v3492_v11  ;;  %v3500_v15 = vpop.f32.mrb[3].mxu1  ;;  %v3503_v16 = vadd.f32 %v3456_v49, %v717_v12 }
 0x106   : > { %4814 = vst [vmem:[#allocation9_spill] sm:$0xff] %v3498_v14 }
 0x107   : > { %4815 = vst [vmem:[#allocation10_spill] sm:$0xff] %v3503_v16  ;;  %v2908_v17 = vpop.f32.mrb[16].mxu0 }
 0x108   : > { %v722_v18 = vmul.f32 %v2908_v17, %v3448_v45  ;;  %v634_v19 = vpop.f32.mrb[17].mxu0 }
 0x109   : > { %v720_v20 = vmul.f32 %v3448_v45, %v634_v19  ;;  %v2909_v21 = vpop.f32.mrb[18].mxu0 }
 0x10a   : > { %v3507_v22 = vpop.f32.mrb[4].mxu1  ;;  %v3510_v23 = vadd.f32 %v3456_v49, %v722_v18  ;;  %v723_v24 = vmul.f32 %v2909_v21, %v3448_v45  ;;  %v637_v25 = vpop.f32.mrb[19].mxu0 }
 0x10b   : > { %v3513_v26 = vpop.f32.mrb[5].mxu1  ;;  %v3516_v27 = vadd.f32 %v3456_v49, %v720_v20  ;;  %v721_v28 = vmul.f32 %v3448_v45, %v637_v25 }
 0x10c   : > { %4816 = vst [vmem:[#allocation11_spill] sm:$0xff] %v3510_v23  ;;  %v3519_v29 = vpop.f32.mrb[6].mxu1  ;;  %v3522_v30 = vadd.f32 %v3456_v49, %v723_v24 }
 0x10d   : > { %4817 = vst [vmem:[#allocation12_spill] sm:$0xff] %v3516_v27  ;;  %v3524_v31 = vpop.f32.mrb[7].mxu1  ;;  %v3527_v32 = vadd.f32 %v3456_v49, %v721_v28  ;;  %v1184_v27 = vsel %vm1162_vm1, %v3519_v29, 0.0 }
 0x10e   : > { %4818 = vst [vmem:[#allocation13_spill] sm:$0xff] %v3522_v30 }
 0x10f   : > { %4819 = vst [vmem:[#allocation14_spill] sm:$0xff] %v3527_v32  ;;  %v2912_v33 = vpop.f32.mrb[20].mxu0  ;;  %v1180_v32 = vsel %vm1162_vm1, %v3524_v31, 0.0 }
 0x110   : > { %v726_v34 = vmul.f32 %v2912_v33, %v3448_v45  ;;  %v650_v35 = vpop.f32.mrb[21].mxu0 }
 0x111   : > { %v724_v36 = vmul.f32 %v3448_v45, %v650_v35  ;;  %v2913_v37 = vpop.f32.mrb[22].mxu0 }
 0x112   : > { %v3531_v38 = vpop.f32.mrb[8].mxu1  ;;  %v3534_v39 = vadd.f32 %v3456_v49, %v726_v34  ;;  %v727_v40 = vmul.f32 %v2913_v37, %v3448_v45  ;;  %v653_v46 = vpop.f32.mrb[23].mxu0 }
 0x113   : > { %v3537_v47 = vpop.f32.mrb[9].mxu1  ;;  %v3540_v53 = vadd.f32 %v3456_v49, %v724_v36  ;;  %v725_v54 = vmul.f32 %v3448_v45, %v653_v46 }
 0x114   : > { %4820 = vst [vmem:[#allocation15_spill] sm:$0xff] %v3534_v39  ;;  %v3543_v55 = vpop.f32.mrb[10].mxu1  ;;  %v3546_v56 = vadd.f32 %v3456_v49, %v727_v40 }
 0x115   : > { %4821 = vst [vmem:[#allocation16_spill] sm:$0xff] %v3540_v53  ;;  %v3548_v57 = vpop.f32.mrb[11].mxu1  ;;  %v3551_v59 = vadd.f32 %v3456_v49, %v725_v54 }
 0x116   : > { %4822 = vst [vmem:[#allocation17_spill] sm:$0xff] %v3546_v56 }
 0x117   : > { %4823 = vst [vmem:[#allocation18_spill] sm:$0xff] %v3551_v59  ;;  %v2916_v60 = vpop.f32.mrb[24].mxu0 }
 0x118   : > { %v730_v62 = vmul.f32 %v2916_v60, %v3448_v45  ;;  %v666_v1 = vpop.f32.mrb[25].mxu0 }
 0x119   : > { %v728_v2 = vmul.f32 %v3448_v45, %v666_v1  ;;  %v2917_v3 = vpop.f32.mrb[26].mxu0 }
 0x11a   : > { %v3555_v4 = vpop.f32.mrb[12].mxu1  ;;  %v3558_v5 = vadd.f32 %v3456_v49, %v730_v62  ;;  %v731_v8 = vmul.f32 %v2917_v3, %v3448_v45  ;;  %v669_v9 = vpop.f32.mrb[27].mxu0 }
 0x11b   : > { %v3561_v12 = vpop.f32.mrb[13].mxu1  ;;  %v3564_v17 = vadd.f32 %v3456_v49, %v728_v2  ;;  %v729_v18 = vmul.f32 %v3448_v45, %v669_v9 }
 0x11c   : > { %4824 = vst [vmem:[#allocation19_spill] sm:$0xff] %v3558_v5  ;;  %v3567_v19 = vpop.f32.mrb[14].mxu1  ;;  %v3570_v20 = vadd.f32 %v3456_v49, %v731_v8 }
 0x11d   : > { %4825 = vst [vmem:[#allocation20_spill] sm:$0xff] %v3564_v17  ;;  %v3572_v21 = vpop.f32.mrb[15].mxu1  ;;  %v3575_v24 = vadd.f32 %v3456_v49, %v729_v18 }
 0x11e   : > { %4826 = vst [vmem:[#allocation21_spill] sm:$0xff] %v3570_v20  ;;  %v1170_v20 = vsel %vm1162_vm1, %v3489_v10, 0.0 }
 0x11f   : > { %4827 = vst [vmem:[#allocation22_spill] sm:$0xff] %v3575_v24  ;;  %v2920_v25 = vpop.f32.mrb[28].mxu0 }
 0x120   : > { %v734_v28 = vmul.f32 %v2920_v25, %v3448_v45  ;;  %v682_v33 = vpop.f32.mrb[29].mxu0 }
 0x121   : > { %v732_v34 = vmul.f32 %v3448_v45, %v682_v33  ;;  %v2921_v35 = vpop.f32.mrb[30].mxu0 }
 0x122   : > { %v3579_v36 = vpop.f32.mrb[16].mxu1  ;;  %v3582_v37 = vadd.f32 %v3456_v49, %v734_v28  ;;  %v735_v40 = vmul.f32 %v2921_v35, %v3448_v45  ;;  %v3585_v46 = vpop.f32.mrb[31].mxu0 }
 0x123   : > { %v3587_v54 = vpop.f32.mrb[17].mxu1  ;;  %v3590_v60 = vadd.f32 %v3456_v49, %v732_v34 }
 0x124   : > { %4828 = vst [vmem:[#allocation23_spill] sm:$0xff] %v3582_v37  ;;  %v3592_v62 = vpop.f32.mrb[18].mxu1  ;;  %v3595_v1 = vadd.f32 %v3456_v49, %v735_v40 }
 0x125   : > { %4829 = vst [vmem:[#allocation24_spill] sm:$0xff] %v3590_v60  ;;  %v3597_v2 = vpop.f32.mrb[19].mxu1 }
 0x126   : > { %4830 = vst [vmem:[#allocation25_spill] sm:$0xff] %v3595_v1 }
 0x127   : > { %v3599_v3 = vpop.f32.mrb[32].mxu0 }
 0x128   : > { %v3601_v8 = vpop.f32.mrb[33].mxu0  ;;  %v1166_v60 = vsel %vm1162_vm1, %v3599_v3, 0.0 }
 0x129   : > { %v3603_v9 = vpop.f32.mrb[34].mxu0  ;;  %v1163_v33 = vsel %vm1162_vm1, %v3601_v8, 0.0 }
 0x12a   : > { %v3605_v18 = vpop.f32.mrb[20].mxu1  ;;  %v3607_v25 = vpop.f32.mrb[35].mxu0  ;;  %v1168_v24 = vsel %vm1162_vm1, %v3603_v9, 0.0 }
 0x12b   : > { %v3609_v28 = vpop.f32.mrb[21].mxu1  ;;  %v1164_v34 = vsel %vm1162_vm1, %v3607_v25, 0.0 }
 0x12c   : > { %v3615_v35 = vpop.f32.mrb[22].mxu1  ;;  %v1165_v40 = vadd.f32 %v1164_v34, %v1163_v33  ;;  %v1172_v33 = vsel %vm1162_vm1, %v3500_v15, 0.0 }
 0x12d   : > { %v3617_v1 = vpop.f32.mrb[23].mxu1 }
 0x12e   : > { %v1167_v37 = vadd.f32 %v1166_v60, %v1165_v40  ;;  %v1174_v60 = vsel %vm1162_vm1, %v3483_v6, 0.0 }
 0x130   : > { %v1169_v17 = vadd.f32 %v1168_v24, %v1167_v37  ;;  %v1176_v24 = vsel %vm1162_vm1, %v3495_v13, 0.0 }
 0x132   : > { %v3625_v5 = vpop.f32.mrb[24].mxu1  ;;  %v1171_v59 = vadd.f32 %v1170_v20, %v1169_v17  ;;  %v1178_v17 = vsel %vm1162_vm1, %v3513_v26, 0.0 }
 0x133   : > { %v3627_v56 = vpop.f32.mrb[25].mxu1 }
 0x134   : > { %v3631_v34 = vpop.f32.mrb[26].mxu1  ;;  %v1173_v53 = vadd.f32 %v1172_v33, %v1171_v59  ;;  %v1182_v59 = vsel %vm1162_vm1, %v3507_v22, 0.0 }
 0x135   : > { %v3633_v39 = vpop.f32.mrb[27].mxu1 }
 0x136   : > { %v1175_v40 = vadd.f32 %v1174_v60, %v1173_v53  ;;  %v1186_v53 = vsel %vm1162_vm1, %v3537_v47, 0.0 }
 0x138   : > { %v1177_v20 = vadd.f32 %v1176_v24, %v1175_v40  ;;  %v1188_v40 = vsel %vm1162_vm1, %v3548_v57, 0.0 }
 0x13a   : > { %v1179_v37 = vadd.f32 %v1178_v17, %v1177_v20  ;;  %v1190_v17 = vsel %vm1162_vm1, %v3531_v38, 0.0  ;;  %v1192_v20 = vsel %vm1162_vm1, %v3543_v55, 0.0 }
 0x13c   : > { %v1181_v30 = vadd.f32 %v1180_v32, %v1179_v37 }
 0x13e   : > { %v1183_v33 = vadd.f32 %v1182_v59, %v1181_v30  ;;  %v1194_v30 = vsel %vm1162_vm1, %v3561_v12, 0.0 }
 0x140   : > { %v1185_v60 = vadd.f32 %v1184_v27, %v1183_v33  ;;  %v1196_v27 = vsel %vm1162_vm1, %v3572_v21, 0.0 }
 0x142   : > { %v1187_v23 = vadd.f32 %v1186_v53, %v1185_v60  ;;  %v1198_v53 = vsel %vm1162_vm1, %v3555_v4, 0.0  ;;  %v1200_v60 = vsel %vm1162_vm1, %v3567_v19, 0.0 }
 0x144   : > { %v1189_v24 = vadd.f32 %v1188_v40, %v1187_v23  ;;  %v1202_v40 = vsel %vm1162_vm1, %v3587_v54, 0.0 }
 0x146   : > { %v1191_v32 = vadd.f32 %v1190_v17, %v1189_v24 }
 0x148   : > { %v1193_v37 = vadd.f32 %v1192_v20, %v1191_v32  ;;  %v1204_v32 = vsel %vm1162_vm1, %v3597_v2, 0.0 }
 0x14a   : > { %v1195_v59 = vadd.f32 %v1194_v30, %v1193_v37  ;;  %v1206_v30 = vsel %vm1162_vm1, %v3579_v36, 0.0 }
 0x14c   : > { %v1197_v33 = vadd.f32 %v1196_v27, %v1195_v59  ;;  %v1208_v59 = vsel %vm1162_vm1, %v3592_v62, 0.0  ;;  %v1210_v27 = vsel %vm1162_vm1, %v3609_v28, 0.0 }
 0x14e   : > { %v1199_v23 = vadd.f32 %v1198_v53, %v1197_v33 }
 0x150   : > { %v1201_v24 = vadd.f32 %v1200_v60, %v1199_v23  ;;  %v1212_v23 = vsel %vm1162_vm1, %v3617_v1, 0.0 }
 0x152   : > { %v1203_v17 = vadd.f32 %v1202_v40, %v1201_v24  ;;  %v1214_v40 = vsel %vm1162_vm1, %v3605_v18, 0.0 }
 0x154   : > { %v1205_v20 = vadd.f32 %v1204_v32, %v1203_v17  ;;  %v1216_v17 = vsel %vm1162_vm1, %v3615_v35, 0.0  ;;  %v1218_v32 = vsel %vm1162_vm1, %v3627_v56, 0.0 }
 0x156   : > { %v1207_v37 = vadd.f32 %v1206_v30, %v1205_v20 }
 0x158   : > { %v1209_v33 = vadd.f32 %v1208_v59, %v1207_v37  ;;  %v1220_v37 = vsel %vm1162_vm1, %v3633_v39, 0.0 }
 0x15a   : > { %v1211_v53 = vadd.f32 %v1210_v27, %v1209_v33  ;;  %v1222_v27 = vsel %vm1162_vm1, %v3625_v5, 0.0 }
 0x15c   : > { %v1213_v60 = vadd.f32 %v1212_v23, %v1211_v53  ;;  %v1224_v53 = vsel %vm1162_vm1, %v3631_v34, 0.0 }
 0x15e   : > { %v1215_v24 = vadd.f32 %v1214_v40, %v1213_v60 }
 0x160   : > { %v1217_v20 = vadd.f32 %v1216_v17, %v1215_v24 }
 0x162   : > { %v1219_v30 = vadd.f32 %v1218_v32, %v1217_v20 }
 0x164   : > { %v1221_v59 = vadd.f32 %v1220_v37, %v1219_v30 }
 0x166   : > { %v1223_v33 = vadd.f32 %v1222_v27, %v1221_v59 }
 0x168   : > { %v1225_v23 = vadd.f32 %v1224_v53, %v1223_v33 }
 0x16a   : > { %v1226_v60 = vrot.slane %v1225_v23, 4 }
 0x16c   : > { %v1227_v40 = vadd.f32 %v1226_v60, %v1225_v23 }
 0x16e   : > { %v1228_v16 = vrot.slane %v1227_v40, 2 }
 0x170   : > { %v1229_v14 = vadd.f32 %v1228_v16, %v1227_v40 }
 0x172   : > { %v1230_v11 = vrot.slane %v1229_v14, 1 }
 0x174   : > { %v1231_v7 = vadd.f32 %v1230_v11, %v1229_v14 }
 0x176   : > { %v1233_v24 = vmul.f32 0.00390625, %v1231_v7 }
 0x178   : > { %v3688_v17 = vsub.f32 %v3601_v8, %v1233_v24  ;;  %v3691_v32 = vsub.f32 %v3607_v25, %v1233_v24  ;;  %v3694_v20 = vsub.f32 %v3599_v3, %v1233_v24  ;;  %v3697_v30 = vsub.f32 %v3603_v9, %v1233_v24 }
 0x179   : > { %v3700_v37 = vsub.f32 %v3489_v10, %v1233_v24  ;;  %v3703_v16 = vsub.f32 %v3500_v15, %v1233_v24  ;;  %v3706_v7 = vsub.f32 %v3483_v6, %v1233_v24  ;;  %v3709_v11 = vsub.f32 %v3495_v13, %v1233_v24 }
 0x17a   : > { %v3712_v14 = vsub.f32 %v3513_v26, %v1233_v24  ;;  %v3715_v3 = vsub.f32 %v3524_v31, %v1233_v24  ;;  %v3718_v8 = vsub.f32 %v3507_v22, %v1233_v24  ;;  %v3721_v10 = vsub.f32 %v3519_v29, %v1233_v24 }
 0x17b   : > { %v3724_v15 = vsub.f32 %v3537_v47, %v1233_v24  ;;  %v3727_v6 = vsub.f32 %v3548_v57, %v1233_v24  ;;  %v3730_v13 = vsub.f32 %v3531_v38, %v1233_v24  ;;  %v3733_v26 = vsub.f32 %v3543_v55, %v1233_v24 }
 0x17c   : > { %v3736_v31 = vsub.f32 %v3561_v12, %v1233_v24  ;;  %v3739_v22 = vsub.f32 %v3572_v21, %v1233_v24  ;;  %v3742_v29 = vsub.f32 %v3555_v4, %v1233_v24  ;;  %v3745_v47 = vsub.f32 %v3567_v19, %v1233_v24 }
 0x17d   : > { %v3748_v57 = vsub.f32 %v3587_v54, %v1233_v24  ;;  %v3751_v38 = vsub.f32 %v3597_v2, %v1233_v24  ;;  %v3754_v55 = vsub.f32 %v3579_v36, %v1233_v24  ;;  %v3757_v12 = vsub.f32 %v3592_v62, %v1233_v24 }
 0x17e   : > { %v3760_v21 = vsub.f32 %v3609_v28, %v1233_v24  ;;  %v3763_v4 = vsub.f32 %v3617_v1, %v1233_v24  ;;  %v3766_v19 = vsub.f32 %v3605_v18, %v1233_v24  ;;  %v3769_v54 = vsub.f32 %v3615_v35, %v1233_v24 }
 0x17f   : > { %v3772_v2 = vsub.f32 %v3627_v56, %v1233_v24  ;;  %v3775_v36 = vsub.f32 %v3633_v39, %v1233_v24  ;;  %v3778_v62 = vsub.f32 %v3625_v5, %v1233_v24  ;;  %v3781_v9 = vsub.f32 %v3631_v34, %v1233_v24 }
 0x180   : > { %v1266_v1 = vmul.f32 %v3688_v17, %v3688_v17  ;;  %v1267_v18 = vmul.f32 %v3691_v32, %v3691_v32  ;;  %v1268_v25 = vmul.f32 %v3694_v20, %v3694_v20  ;;  %v1269_v56 = vmul.f32 %v3697_v30, %v3697_v30 }
 0x181   : > { %v1270_v35 = vmul.f32 %v3700_v37, %v3700_v37  ;;  %v1271_v27 = vmul.f32 %v3703_v16, %v3703_v16  ;;  %v1272_v23 = vmul.f32 %v3706_v7, %v3706_v7  ;;  %v1273_v24 = vmul.f32 %v3709_v11, %v3709_v11 }
 0x182   : > { %v1298_v39 = vsel %vm1162_vm1, %v1266_v1, 0.0  ;;  %v1299_v5 = vsel %vm1162_vm1, %v1267_v18, 0.0  ;;  %v1301_v34 = vsel %vm1162_vm1, %v1268_v25, 0.0  ;;  %v1303_v33 = vsel %vm1162_vm1, %v1269_v56, 0.0 }
 0x183   : > { %v1300_v28 = vadd.f32 %v1299_v5, %v1298_v39  ;;  %v1305_v60 = vsel %vm1162_vm1, %v1270_v35, 0.0  ;;  %v1307_v1 = vsel %vm1162_vm1, %v1271_v27, 0.0  ;;  %v1274_v25 = vmul.f32 %v3712_v14, %v3712_v14 }
 0x184   : > { %v1309_v39 = vsel %vm1162_vm1, %v1272_v23, 0.0  ;;  %v1275_v56 = vmul.f32 %v3715_v3, %v3715_v3  ;;  %v1276_v35 = vmul.f32 %v3718_v8, %v3718_v8  ;;  %v1277_v27 = vmul.f32 %v3721_v10, %v3721_v10 }
 0x185   : > { %v1302_v59 = vadd.f32 %v1301_v34, %v1300_v28  ;;  %v1311_v28 = vsel %vm1162_vm1, %v1273_v24, 0.0  ;;  %v1278_v23 = vmul.f32 %v3724_v15, %v3724_v15  ;;  %v1279_v24 = vmul.f32 %v3727_v6, %v3727_v6 }
 0x187   : > { %v1304_v53 = vadd.f32 %v1303_v33, %v1302_v59  ;;  %v1313_v59 = vsel %vm1162_vm1, %v1274_v25, 0.0  ;;  %v1280_v25 = vmul.f32 %v3730_v13, %v3730_v13 }
 0x189   : > { %v1306_v40 = vadd.f32 %v1305_v60, %v1304_v53  ;;  %v1315_v53 = vsel %vm1162_vm1, %v1275_v56, 0.0  ;;  %v1281_v56 = vmul.f32 %v3733_v26, %v3733_v26 }
 0x18b   : > { %v1308_v18 = vadd.f32 %v1307_v1, %v1306_v40  ;;  %v1317_v40 = vsel %vm1162_vm1, %v1276_v35, 0.0  ;;  %v1282_v35 = vmul.f32 %v3736_v31, %v3736_v31 }
 0x18d   : > { %v1310_v5 = vadd.f32 %v1309_v39, %v1308_v18  ;;  %v1319_v18 = vsel %vm1162_vm1, %v1277_v27, 0.0  ;;  %v1283_v27 = vmul.f32 %v3739_v22, %v3739_v22 }
 0x18f   : > { %v1312_v34 = vadd.f32 %v1311_v28, %v1310_v5  ;;  %v1321_v5 = vsel %vm1162_vm1, %v1278_v23, 0.0  ;;  %v1284_v23 = vmul.f32 %v3742_v29, %v3742_v29 }
 0x191   : > { %v1314_v33 = vadd.f32 %v1313_v59, %v1312_v34  ;;  %v1323_v34 = vsel %vm1162_vm1, %v1279_v24, 0.0  ;;  %v1285_v24 = vmul.f32 %v3745_v47, %v3745_v47 }
 0x193   : > { %v1316_v60 = vadd.f32 %v1315_v53, %v1314_v33  ;;  %v1325_v33 = vsel %vm1162_vm1, %v1280_v25, 0.0  ;;  %v1286_v25 = vmul.f32 %v3748_v57, %v3748_v57 }
 0x195   : > { %v1318_v1 = vadd.f32 %v1317_v40, %v1316_v60  ;;  %v1327_v60 = vsel %vm1162_vm1, %v1281_v56, 0.0  ;;  %v1287_v56 = vmul.f32 %v3751_v38, %v3751_v38 }
 0x197   : > { %v1320_v39 = vadd.f32 %v1319_v18, %v1318_v1  ;;  %v1329_v1 = vsel %vm1162_vm1, %v1282_v35, 0.0  ;;  %v1288_v35 = vmul.f32 %v3754_v55, %v3754_v55 }
 0x199   : > { %v1322_v28 = vadd.f32 %v1321_v5, %v1320_v39  ;;  %v1331_v39 = vsel %vm1162_vm1, %v1283_v27, 0.0  ;;  %v1289_v27 = vmul.f32 %v3757_v12, %v3757_v12 }
 0x19b   : > { %v1324_v59 = vadd.f32 %v1323_v34, %v1322_v28  ;;  %v1333_v28 = vsel %vm1162_vm1, %v1284_v23, 0.0  ;;  %v1290_v23 = vmul.f32 %v3760_v21, %v3760_v21 }
 0x19d   : > { %v1326_v53 = vadd.f32 %v1325_v33, %v1324_v59  ;;  %v1335_v59 = vsel %vm1162_vm1, %v1285_v24, 0.0  ;;  %v1291_v24 = vmul.f32 %v3763_v4, %v3763_v4 }
 0x19f   : > { %v1328_v40 = vadd.f32 %v1327_v60, %v1326_v53  ;;  %v1337_v53 = vsel %vm1162_vm1, %v1286_v25, 0.0  ;;  %v1292_v25 = vmul.f32 %v3766_v19, %v3766_v19 }
 0x1a1   : > { %v1330_v18 = vadd.f32 %v1329_v1, %v1328_v40  ;;  %v1339_v40 = vsel %vm1162_vm1, %v1287_v56, 0.0  ;;  %v1293_v56 = vmul.f32 %v3769_v54, %v3769_v54 }
 0x1a3   : > { %v1332_v5 = vadd.f32 %v1331_v39, %v1330_v18  ;;  %v1341_v18 = vsel %vm1162_vm1, %v1288_v35, 0.0  ;;  %v1294_v35 = vmul.f32 %v3772_v2, %v3772_v2 }
 0x1a5   : > { %v1334_v34 = vadd.f32 %v1333_v28, %v1332_v5  ;;  %v1343_v5 = vsel %vm1162_vm1, %v1289_v27, 0.0  ;;  %v1295_v27 = vmul.f32 %v3775_v36, %v3775_v36 }
 0x1a7   : > { %v1336_v33 = vadd.f32 %v1335_v59, %v1334_v34  ;;  %v1345_v34 = vsel %vm1162_vm1, %v1290_v23, 0.0  ;;  %v1296_v23 = vmul.f32 %v3778_v62, %v3778_v62 }
 0x1a9   : > { %v1338_v60 = vadd.f32 %v1337_v53, %v1336_v33  ;;  %v1347_v33 = vsel %vm1162_vm1, %v1291_v24, 0.0  ;;  %v1297_v24 = vmul.f32 %v3781_v9, %v3781_v9 }
 0x1ab   : > { %v1340_v1 = vadd.f32 %v1339_v40, %v1338_v60  ;;  %v1349_v60 = vsel %vm1162_vm1, %v1292_v25, 0.0  ;;  %v1357_v25 = vsel %vm1162_vm1, %v1296_v23, 0.0 }
 0x1ad   : > { %v1342_v39 = vadd.f32 %v1341_v18, %v1340_v1  ;;  %v1351_v1 = vsel %vm1162_vm1, %v1293_v56, 0.0 }
 0x1af   : > { %v1344_v28 = vadd.f32 %v1343_v5, %v1342_v39  ;;  %v1353_v39 = vsel %vm1162_vm1, %v1294_v35, 0.0 }
 0x1b1   : > { %v1346_v59 = vadd.f32 %v1345_v34, %v1344_v28  ;;  %v1355_v28 = vsel %vm1162_vm1, %v1295_v27, 0.0  ;;  %v3884_v27 = vld [vmem:[%s4780_s3] ss:$0 sm:$0xff] }
 0x1b3   : > { %v1348_v53 = vadd.f32 %v1347_v33, %v1346_v59  ;;  %v1359_v33 = vsel %vm1162_vm1, %v1297_v24, 0.0 }
 0x1b5   : > { %v1350_v40 = vadd.f32 %v1349_v60, %v1348_v53 }
 0x1b7   : > { %v1352_v18 = vadd.f32 %v1351_v1, %v1350_v40 }
 0x1b9   : > { %v1354_v5 = vadd.f32 %v1353_v39, %v1352_v18 }
 0x1bb   : > { %v1356_v34 = vadd.f32 %v1355_v28, %v1354_v5  ;;  %v3891_v5 = vld [vmem:[%s4781_s4] ss:$0 sm:$0xff] }
 0x1bd   : > { %v1358_v59 = vadd.f32 %v1357_v25, %v1356_v34 }
 0x1bf   : > { %v1360_v53 = vadd.f32 %v1359_v33, %v1358_v59 }
 0x1c1   : > { %v1361_v56 = vrot.slane %v1360_v53, 4 }
 0x1c3   : > { %v1362_v60 = vadd.f32 %v1361_v56, %v1360_v53 }
 0x1c5   : > { %v1363_v40 = vrot.slane %v1362_v60, 2 }
 0x1c7   : > { %v1364_v1 = vadd.f32 %v1363_v40, %v1362_v60 }
 0x1c9   : > { %v1365_v0 = vrot.slane %v1364_v1, 1 }
 0x1cb   : > { %v1366_v63 = vadd.f32 %v1365_v0, %v1364_v1 }
 0x1cd   : > { %v1367_v35 = vmul.f32 0.00390625, %v1366_v63 }
 0x1cf   : > { %v1368_v18 = vadd.f32 1e-05, %v1367_v35 }
 0x1d1   : > { %3053 = vrsqrt.f32 %v1368_v18 }
 0x1db   : > { %v3879_v39 = vpop.eup %3053 }
 0x1dc   : > { %v1399_v23 = vmul.f32 %v3879_v39, %v3775_v36  ;;  %v1370_v63 = vmul.f32 %v3879_v39, %v3688_v17  ;;  %v3897_v0 = vmul.f32 %v3879_v39, %v3691_v32  ;;  %v1372_v28 = vmul.f32 %v3879_v39, %v3694_v20 }
 0x1dd   : > { %v1373_v36 = vmul.f32 %v3879_v39, %v3697_v30  ;;  %v3906_v34 = vmul.f32 %v3879_v39, %v3700_v37  ;;  %v3910_v25 = vmul.f32 %v3879_v39, %v3703_v16  ;;  %v1376_v17 = vmul.f32 %v3879_v39, %v3706_v7 }
 0x1de   : > { %v1437_v24 = vmul.f32 %v3884_v27, %v1399_v23  ;;  %v1378_v32 = vmul.f32 %v3879_v39, %v3712_v14  ;;  %v1379_v20 = vmul.f32 %v3879_v39, %v3715_v3  ;;  %v1380_v30 = vmul.f32 %v3879_v39, %v3718_v8 }
 0x1df   : > { %v1381_v37 = vmul.f32 %v3879_v39, %v3721_v10  ;;  %v1382_v16 = vmul.f32 %v3879_v39, %v3724_v15  ;;  %v1383_v7 = vmul.f32 %v3879_v39, %v3727_v6  ;;  %v1384_v14 = vmul.f32 %v3879_v39, %v3730_v13 }
 0x1e0   : > { %v1475_v59 = vadd.f32 %v3891_v5, %v1437_v24  ;;  %v1385_v3 = vmul.f32 %v3879_v39, %v3733_v26  ;;  %v1386_v33 = vmul.f32 %v3879_v39, %v3736_v31  ;;  %v1387_v8 = vmul.f32 %v3879_v39, %v3739_v22 }
 0x1e1   : > { %v1388_v10 = vmul.f32 %v3879_v39, %v3742_v29  ;;  %v1389_v15 = vmul.f32 %v3879_v39, %v3745_v47  ;;  %v1390_v6 = vmul.f32 %v3879_v39, %v3748_v57  ;;  %v1391_v13 = vmul.f32 %v3879_v39, %v3751_v38 }
 0x1e2   : > { %v1507_v53 = vsub.f32 0.0, %v1475_v59  ;;  %v1392_v26 = vmul.f32 %v3879_v39, %v3754_v55  ;;  %v1393_v31 = vmul.f32 %v3879_v39, %v3757_v12  ;;  %v1394_v22 = vmul.f32 %v3879_v39, %v3760_v21 }
 0x1e3   : > { %v1395_v29 = vmul.f32 %v3879_v39, %v3763_v4  ;;  %v1396_v47 = vmul.f32 %v3879_v39, %v3766_v19  ;;  %v1397_v57 = vmul.f32 %v3879_v39, %v3769_v54  ;;  %v1398_v38 = vmul.f32 %v3879_v39, %v3772_v2 }
 0x1e4   : > { %v1568_v56 = vmul.f32 1.442695, %v1507_v53  ;;  %v1400_v55 = vmul.f32 %v3879_v39, %v3778_v62  ;;  %v1410_v12 = vmul.f32 %v3884_v27, %v1372_v28  ;;  %v1401_v21 = vmul.f32 %v3879_v39, %v3781_v9 }
 0x1e5   : > { %v1408_v4 = vmul.f32 %v3884_v27, %v1370_v63  ;;  %v1414_v60 = vmul.f32 %v3884_v27, %v1376_v17  ;;  %v1411_v54 = vmul.f32 %v3884_v27, %v1373_v36  ;;  %v1416_v40 = vmul.f32 %v3884_v27, %v1378_v32 }
 0x1e6   : > { %3055 = vpow2.f32 %v1568_v56  ;;  %v1448_v19 = vadd.f32 %v3891_v5, %v1410_v12  ;;  %v1417_v2 = vmul.f32 %v3884_v27, %v1379_v20  ;;  %v1418_v62 = vmul.f32 %v3884_v27, %v1380_v30 }
 0x1e7   : > { %v1419_v1 = vmul.f32 %v3884_v27, %v1381_v37  ;;  %v1420_v35 = vmul.f32 %v3884_v27, %v1382_v16  ;;  %v1421_v9 = vmul.f32 %v3884_v27, %v1383_v7  ;;  %v1422_v23 = vmul.f32 %v3884_v27, %v1384_v14 }
 0x1e8   : > { %v1480_v18 = vsub.f32 0.0, %v1448_v19  ;;  %v1423_v63 = vmul.f32 %v3884_v27, %v1385_v3  ;;  %v1424_v24 = vmul.f32 %v3884_v27, %v1386_v33  ;;  %v1425_v28 = vmul.f32 %v3884_v27, %v1387_v8 }
 0x1e9   : > { %v1426_v36 = vmul.f32 %v3884_v27, %v1388_v10  ;;  %v1427_v17 = vmul.f32 %v3884_v27, %v1389_v15  ;;  %v1428_v32 = vmul.f32 %v3884_v27, %v1390_v6  ;;  %v1429_v59 = vmul.f32 %v3884_v27, %v1391_v13 }
 0x1ea   : > { %v1514_v20 = vmul.f32 1.442695, %v1480_v18  ;;  %v1430_v30 = vmul.f32 %v3884_v27, %v1392_v26  ;;  %v1431_v37 = vmul.f32 %v3884_v27, %v1393_v31  ;;  %v1432_v16 = vmul.f32 %v3884_v27, %v1394_v22 }
 0x1eb   : > { %v1433_v7 = vmul.f32 %v3884_v27, %v1395_v29  ;;  %v1434_v14 = vmul.f32 %v3884_v27, %v1396_v47  ;;  %v1435_v3 = vmul.f32 %v3884_v27, %v1397_v57  ;;  %v1436_v33 = vmul.f32 %v3884_v27, %v1398_v38 }
 0x1ec   : > { %3057 = vpow2.f32 %v1514_v20  ;;  %v1438_v53 = vmul.f32 %v3884_v27, %v1400_v55  ;;  %v1439_v8 = vmul.f32 %v3884_v27, %v1401_v21  ;;  %v1377_v10 = vmul.f32 %v3879_v39, %v3709_v11 }
 0x1ed   : > { %v1409_v15 = vmul.f32 %v3884_v27, %v3897_v0  ;;  %v1412_v6 = vmul.f32 %v3884_v27, %v3906_v34  ;;  %v1446_v13 = vadd.f32 %v3891_v5, %v1408_v4  ;;  %v1413_v26 = vmul.f32 %v3884_v27, %v3910_v25 }
 0x1ee   : > { %v1449_v31 = vadd.f32 %v3891_v5, %v1411_v54  ;;  %v1452_v56 = vadd.f32 %v3891_v5, %v1414_v60  ;;  %v4001_v22 = vadd.f32 %v3891_v5, %v1416_v40  ;;  %v4004_v39 = vadd.f32 %v3891_v5, %v1417_v2 }
 0x1ef   : > { %v1478_v11 = vsub.f32 0.0, %v1446_v13  ;;  %v4007_v0 = vadd.f32 %v3891_v5, %v1418_v62  ;;  %v4010_v34 = vadd.f32 %v3891_v5, %v1419_v1  ;;  %v4013_v25 = vadd.f32 %v3891_v5, %v1420_v35 }
 0x1f0   : > { %v3056_v29 = vpop.eup %3055  ;;  %v4016_v57 = vadd.f32 %v3891_v5, %v1421_v9  ;;  %v4019_v38 = vadd.f32 %v3891_v5, %v1422_v23  ;;  %v4022_v12 = vadd.f32 %v3891_v5, %v1423_v63  ;;  %v4025_v21 = vadd.f32 %v3891_v5, %v1424_v24 }
 0x1f1   : > { %v1603_v47 = vadd.f32 1.0, %v3056_v29  ;;  %v1510_v55 = vmul.f32 1.442695, %v1478_v11  ;;  %v4028_v4 = vadd.f32 %v3891_v5, %v1425_v28  ;;  %v4031_v60 = vadd.f32 %v3891_v5, %v1426_v36 }
 0x1f2   : > { %v4034_v19 = vadd.f32 %v3891_v5, %v1427_v17  ;;  %v4037_v54 = vadd.f32 %v3891_v5, %v1428_v32  ;;  %v4040_v40 = vadd.f32 %v3891_v5, %v1429_v59  ;;  %v4043_v2 = vadd.f32 %v3891_v5, %v1430_v30 }
 0x1f3   : > { %3059 = vrcp.f32 %v1603_v47  ;;  %v4046_v62 = vadd.f32 %v3891_v5, %v1431_v37  ;;  %v4049_v1 = vadd.f32 %v3891_v5, %v1432_v16  ;;  %v4052_v35 = vadd.f32 %v3891_v5, %v1433_v7 }
 0x1f4   : > { %3061 = vpow2.f32 %v1510_v55  ;;  %v4055_v9 = vadd.f32 %v3891_v5, %v1434_v14  ;;  %v4058_v18 = vadd.f32 %v3891_v5, %v1435_v3  ;;  %v4061_v23 = vadd.f32 %v3891_v5, %v1436_v33 }
 0x1f5   : > { %v4064_v63 = vadd.f32 %v3891_v5, %v1438_v53  ;;  %v4067_v24 = vadd.f32 %v3891_v5, %v1439_v8  ;;  %v1481_v28 = vsub.f32 0.0, %v1449_v31  ;;  %v1415_v17 = vmul.f32 %v3884_v27, %v1377_v10 }
 0x1f6   : > { %v3058_v36 = vpop.eup %3057  ;;  %v1447_v32 = vadd.f32 %v3891_v5, %v1409_v15  ;;  %v1451_v59 = vadd.f32 %v3891_v5, %v1413_v26  ;;  %v1450_v37 = vadd.f32 %v3891_v5, %v1412_v6  ;;  %v1484_v13 = vsub.f32 0.0, %v1452_v56 }
 0x1f7   : > { %v1576_v20 = vadd.f32 1.0, %v3058_v36  ;;  %v1516_v30 = vmul.f32 1.442695, %v1481_v28  ;;  %v1453_v16 = vadd.f32 %v3891_v5, %v1415_v17  ;;  %v733_v6 = vmul.f32 %v3448_v45, %v3585_v46 }
 0x1f8   : > { %v1479_v7 = vsub.f32 0.0, %v1447_v32  ;;  %v1483_v14 = vsub.f32 0.0, %v1451_v59  ;;  %v1482_v33 = vsub.f32 0.0, %v1450_v37  ;;  %v1486_v5 = vsub.f32 0.0, %v4001_v22 }
 0x1f9   : > { %3063 = vrcp.f32 %v1576_v20  ;;  %v1485_v10 = vsub.f32 0.0, %v1453_v16  ;;  %v1522_v11 = vmul.f32 1.442695, %v1484_v13  ;;  %v1487_v47 = vsub.f32 0.0, %v4004_v39 }
 0x1fa   : > { %3065 = vpow2.f32 %v1516_v30  ;;  %v1512_v15 = vmul.f32 1.442695, %v1479_v7  ;;  %v1520_v29 = vmul.f32 1.442695, %v1483_v14  ;;  %v1518_v26 = vmul.f32 1.442695, %v1482_v33 }
 0x1fb   : > { %v1524_v55 = vmul.f32 1.442695, %v1485_v10  ;;  %v1488_v56 = vsub.f32 0.0, %v4007_v0  ;;  %v1489_v32 = vsub.f32 0.0, %v4010_v34  ;;  %v1490_v20 = vsub.f32 0.0, %v4013_v25 }
 0x1fc   : > { %v4082_v46 = vadd.f32 %v3456_v49, %v733_v6  ;;  %v1526_v59 = vmul.f32 1.442695, %v1486_v5  ;;  %v1491_v30 = vsub.f32 0.0, %v4016_v57  ;;  %v1528_v37 = vmul.f32 1.442695, %v1487_v47 }
 0x1fd   : > { %v3060_v3 = vpop.eup %3059  ;;  %v1530_v0 = vmul.f32 1.442695, %v1488_v56  ;;  %v706_v34 = vmul.f32 %v3437_v41, %v3448_v45  ;;  %v4087_v25 = vmul.f32 1.442695, %v1489_v32  ;;  %v4089_v16 = vmul.f32 1.442695, %v1490_v20 }
 0x1fe   : > { %v3062_v53 = vpop.eup %3061  ;;  %v1667_v8 = vmul.f32 12.0, %v3060_v3  ;;  %v804_v7 = vmax.f32 %v4082_v46, 0.0  ;;  %v1492_v57 = vsub.f32 0.0, %v4019_v38  ;;  %v4093_v14 = vmul.f32 1.442695, %v1491_v30 }
 0x1ff   : > { %v1574_v27 = vadd.f32 1.0, %v3062_v53  ;;  %v4808_v3 = vmov 0.0   ;;  %v1493_v33 = vsub.f32 0.0, %v4022_v12  ;;  %v1494_v12 = vsub.f32 0.0, %v4025_v21  ;;  %v4202_v6 = vld [vmem:[%s4783_s6] ss:$0 sm:$0xff] }
 0x200   : > { %v1728_v31 = vmul.f32 1.442695, %v1667_v8  ;;  %1805 = vst.msk [vmem:[#allocation2 + $0x30] sm:$0x1] %vm1802_vm3, %v4808_v3  ;;  %1806 = vst.msk [vmem:[#allocation2 + $0x48] sm:$0x1] %vm1802_vm3, %v4808_v3  ;;  %v704_v5 = vmul.f32 %v4202_v6, %v3439_v42 }
 0x201   : > { %3067 = vrcp.f32 %v1574_v27  ;;  %1807 = vst.msk [vmem:[#allocation2 + $0x60] sm:$0x1] %vm1802_vm3, %v4808_v3  ;;  %1804 = vst.msk [vmem:[#allocation2 + $0x18] sm:$0x1] %vm1802_vm3, %v4808_v3  ;;  %v4187_v8 = vld [vmem:[%s4784_s7] ss:$0 sm:$0xff] }
 0x202   : > { %3069 = vpow2.f32 %v1728_v31  ;;  %2075 = vst.msk [vmem:[#allocation4 + $0x30] sm:$0x1] %vm2072_vm4, %v4808_v3  ;;  %2076 = vst.msk [vmem:[#allocation4 + $0x48] sm:$0x1] %vm2072_vm4, %v4808_v3  ;;  %v745_v13 = vadd.f32 %v4187_v8, %v706_v34  ;;  %v1495_v31 = vsub.f32 0.0, %v4028_v4  ;;  %v1496_v47 = vsub.f32 0.0, %v4031_v60 }
 0x203   : > { %3071 = vpow2.f32 %v1512_v15  ;;  %v3064_v28 = vpop.eup %3063  ;;  %2077 = vst.msk [vmem:[#allocation4 + $0x60] sm:$0x1] %vm2072_vm4, %v4808_v3  ;;  %2074 = vst.msk [vmem:[#allocation4 + $0x18] sm:$0x1] %vm2072_vm4, %v4808_v3  ;;  %v1538_v21 = vmul.f32 1.442695, %v1492_v57  ;;  %v743_v46 = vadd.f32 %v4187_v8, %v704_v5 }
 0x204   : > { %3073 = vpow2.f32 %v1520_v29  ;;  %v3066_v36 = vpop.eup %3065  ;;  %v1640_v17 = vmul.f32 12.0, %v3064_v28  ;;  %1799 = vst.msk [vmem:[#allocation2] sm:$0xff] %vm1798_vm2, %v4808_v3  ;;  %1800 = vst.msk [vmem:[#allocation2 + $0x8] sm:$0xff] %vm1798_vm2, %v4808_v3  ;;  %v1497_v56 = vsub.f32 0.0, %v4034_v19  ;;  %v1542_v42 = vmul.f32 1.442695, %v1494_v12 }
 0x205   : > { %3075 = vpow2.f32 %v1518_v26  ;;  %v1577_v22 = vadd.f32 1.0, %v3066_v36  ;;  %1801 = vst.msk [vmem:[#allocation2 + $0x10] sm:$0xff] %vm1798_vm2, %v4808_v3  ;;  %v1498_v38 = vsub.f32 0.0, %v4037_v54  ;;  %v1544_v32 = vmul.f32 1.442695, %v1495_v31 }
 0x206   : > { %3077 = vpow2.f32 %v1522_v11  ;;  %v1674_v39 = vmul.f32 1.442695, %v1640_v17  ;;  %1808 = vst.msk [vmem:[#allocation2 + $0x78] sm:$0x1] %vm1802_vm3, %v4808_v3  ;;  %1809 = vst.msk [vmem:[#allocation2 + $0x90] sm:$0x1] %vm1802_vm3, %v4808_v3 }
 0x207   : > { %3079 = vpow2.f32 %v1524_v55  ;;  %1810 = vst.msk [vmem:[#allocation2 + $0xa8] sm:$0x1] %vm1802_vm3, %v4808_v3  ;;  %1811 = vst.msk [vmem:[#allocation2 + $0xc0] sm:$0x1] %vm1802_vm3, %v4808_v3  ;;  %v1540_v55 = vmul.f32 1.442695, %v1493_v33 }
 0x208   : > { %3081 = vrcp.f32 %v1577_v22  ;;  %1812 = vst.msk [vmem:[#allocation2 + $0xd8] sm:$0x1] %vm1802_vm3, %v4808_v3  ;;  %1813 = vst.msk [vmem:[#allocation2 + $0xf0] sm:$0x1] %vm1802_vm3, %v4808_v3  ;;  %v777_v17 = vmax.f32 %v745_v13, 0.0  ;;  %v775_v33 = vmax.f32 %v743_v46, 0.0 }
 0x209   : > { %3083 = vpow2.f32 %v1674_v39  ;;  %1814 = vst.msk [vmem:[#allocation2 + $0x108] sm:$0x1] %vm1802_vm3, %v4808_v3  ;;  %1815 = vst.msk [vmem:[#allocation2 + $0x120] sm:$0x1] %vm1802_vm3, %v4808_v3  ;;  %v1500_v39 = vsub.f32 0.0, %v4043_v2  ;;  %v1503_v2 = vsub.f32 0.0, %v4052_v35 }
 0x20a   : > { %3085 = vpow2.f32 %v1526_v59  ;;  %1816 = vst.msk [vmem:[#allocation2 + $0x138] sm:$0x1] %vm1802_vm3, %v4808_v3  ;;  %1817 = vst.msk [vmem:[#allocation2 + $0x150] sm:$0x1] %vm1802_vm3, %v4808_v3  ;;  %v1499_v59 = vsub.f32 0.0, %v4040_v40  ;;  %v1504_v13 = vsub.f32 0.0, %v4055_v9 }
 0x20b   : > { %v3068_v49 = vpop.eup %3067  ;;  %3087 = vpow2.f32 %v1528_v37  ;;  %1818 = vst.msk [vmem:[#allocation2 + $0x168] sm:$0x1] %vm1802_vm3, %v4808_v3  ;;  %1819 = vst.msk [vmem:[#allocation2 + $0x180] sm:$0x1] %vm1802_vm3, %v4808_v3  ;;  %v1546_v54 = vmul.f32 1.442695, %v1496_v47 }
 0x20c   : > { %2014 = vst.msk [vmem:[#allocation3] sm:$0xff] %vm487_vm0, %v4808_v3  ;;  %2015 = vst.msk [vmem:[#allocation3 + $0x8] sm:$0xff] %vm487_vm0, %v4808_v3  ;;  %v4177_v41 = vpop.eup %3069  ;;  %v1638_v45 = vmul.f32 12.0, %v3068_v49  ;;  %3089 = vpow2.f32 %v1530_v0  ;;  %v1501_v0 = vsub.f32 0.0, %v4046_v62  ;;  %v1548_v34 = vmul.f32 1.442695, %v1497_v56 }
 0x20d   : > { %2016 = vst.msk [vmem:[#allocation3 + $0x10] sm:$0xff] %vm487_vm0, %v4808_v3  ;;  %v3072_v53 = vpop.eup %3071  ;;  %v1795_v27 = vmul.f32 %v4177_v41, %v804_v7  ;;  %3091 = vpow2.f32 %v4087_v25  ;;  %v1502_v25 = vsub.f32 0.0, %v4049_v1  ;;  %v1552_v7 = vmul.f32 1.442695, %v1499_v59 }
 0x20e   : > { %2069 = vst.msk [vmem:[#allocation4] sm:$0xff] %vm1162_vm1, %v4808_v3  ;;  %2070 = vst.msk [vmem:[#allocation4 + $0x8] sm:$0xff] %vm1162_vm1, %v4808_v3  ;;  %v3074_v10 = vpop.eup %3073  ;;  %v1670_v15 = vmul.f32 1.442695, %v1638_v45  ;;  %v1575_v29 = vadd.f32 1.0, %v3072_v53  ;;  %3093 = vpow2.f32 %v4089_v16  ;;  %v707_v62 = vmul.f32 %v4202_v6, %v3441_v43 }
 0x20f   : > { %2071 = vst.msk [vmem:[#allocation4 + $0x10] sm:$0xff] %vm1162_vm1, %v4808_v3  ;;  %2121 = vst.msk [vmem:[#allocation4 + $0x171] sm:$0xff] %vm1162_vm1, %v4177_v41  ;;  %v4197_v26 = vpop.eup %3075  ;;  %v1579_v11 = vadd.f32 1.0, %v3074_v10  ;;  %3095 = vpow2.f32 %v4093_v14  ;;  %v1550_v16 = vmul.f32 1.442695, %v1498_v38  ;;  %v1505_v43 = vsub.f32 0.0, %v4058_v18 }
 0x210   : > { %2078 = vst.msk [vmem:[#allocation4 + $0x78] sm:$0x1] %vm2072_vm4, %v4808_v3  ;;  %2079 = vst.msk [vmem:[#allocation4 + $0x90] sm:$0x1] %vm2072_vm4, %v4808_v3  ;;  %v4210_v4 = vpop.eup %3077  ;;  %3097 = vpow2.f32 %v1670_v15  ;;  %v1554_v14 = vmul.f32 1.442695, %v1500_v39  ;;  %v746_v31 = vadd.f32 %v4187_v8, %v707_v62  ;;  %v708_v62 = vmul.f32 %v4202_v6, %v3451_v48 }
 0x211   : > { %2080 = vst.msk [vmem:[#allocation4 + $0xa8] sm:$0x1] %vm2072_vm4, %v4808_v3  ;;  %2081 = vst.msk [vmem:[#allocation4 + $0xc0] sm:$0x1] %vm2072_vm4, %v4808_v3  ;;  %v4213_v28 = vpop.eup %3079  ;;  %3099 = vrcp.f32 %v1575_v29  ;;  %v1556_v53 = vmul.f32 1.442695, %v1501_v0 }
 0x212   : > { %2082 = vst.msk [vmem:[#allocation4 + $0xd8] sm:$0x1] %vm2072_vm4, %v4808_v3  ;;  %2083 = vst.msk [vmem:[#allocation4 + $0xf0] sm:$0x1] %vm2072_vm4, %v4808_v3  ;;  %v3082_v36 = vpop.eup %3081  ;;  %3101 = vrcp.f32 %v1579_v11  ;;  %v1560_v10 = vmul.f32 1.442695, %v1503_v2 }
 0x213   : > { %2084 = vst.msk [vmem:[#allocation4 + $0x108] sm:$0x1] %vm2072_vm4, %v4808_v3  ;;  %2085 = vst.msk [vmem:[#allocation4 + $0x120] sm:$0x1] %vm2072_vm4, %v4808_v3  ;;  %v3084_v20 = vpop.eup %3083  ;;  %v1641_v22 = vmul.f32 12.0, %v3082_v36  ;;  %3103 = vpow2.f32 %v1538_v21  ;;  %v1506_v29 = vsub.f32 0.0, %v4061_v23 }
 0x214   : > { %2086 = vst.msk [vmem:[#allocation4 + $0x138] sm:$0x1] %vm2072_vm4, %v4808_v3  ;;  %2087 = vst.msk [vmem:[#allocation4 + $0x150] sm:$0x1] %vm2072_vm4, %v4808_v3  ;;  %v4219_v60 = vpop.eup %3085  ;;  %1890 = vrot.lane.b32.xlu1 %v3084_v20, %s3290_s11  ;;  %v1768_v19 = vmul.f32 %v3084_v20, %v777_v17  ;;  %3105 = vpow2.f32 %v1540_v55  ;;  %v1508_v21 = vsub.f32 0.0, %v4064_v63  ;;  %v1509_v18 = vsub.f32 0.0, %v4067_v24 }
 0x215   : > { %2088 = vst.msk [vmem:[#allocation4 + $0x168] sm:$0x1] %vm2072_vm4, %v4808_v3  ;;  %2089 = vst.msk [vmem:[#allocation4 + $0x180] sm:$0x1] %vm2072_vm4, %v4808_v3  ;;  %v4224_v30 = vpop.eup %3087  ;;  %v1676_v37 = vmul.f32 1.442695, %v1641_v22  ;;  %3107 = vpow2.f32 %v1542_v42  ;;  %v709_v22 = vmul.f32 %v4202_v6, %v3463_v52 }
 0x216   : > { %1803 = vst.msk [vmem:[#allocation2] sm:$0x1] %vm1802_vm3, %v4808_v3  ;;  %v4227_v40 = vpop.eup %3089  ;;  %3109 = vpow2.f32 %v1544_v32  ;;  %v1562_v56 = vmul.f32 1.442695, %v1504_v13  ;;  %v1564_v23 = vmul.f32 1.442695, %v1505_v43 }
 0x217   : > { %2073 = vst.msk [vmem:[#allocation4] sm:$0x1] %vm2072_vm4, %v4808_v3  ;;  %v4231_v49 = vpop.eup %3091  ;;  %3111 = vpow2.f32 %v1676_v37  ;;  %v778_v38 = vmax.f32 %v746_v31, 0.0  ;;  %v1566_v63 = vmul.f32 1.442695, %v1506_v29  ;;  %v1581_v37 = vadd.f32 1.0, %v4213_v28 }
 0x218   : > { %1851 = vst.msk [vmem:[#allocation2 + $0x171] sm:$0xff] %vm1798_vm2, %v1795_v27  ;;  %1824 = vst.msk [vmem:[#allocation2 + $0x31] sm:$0xff] %vm1798_vm2, %v1768_v19  ;;  %v4234_v57 = vpop.eup %3093  ;;  %3113 = vpow2.f32 %v1546_v54  ;;  %v1558_v27 = vmul.f32 1.442695, %v1502_v25  ;;  %v1570_v46 = vmul.f32 1.442695, %v1508_v21 }
 0x219   : > { %2094 = vst.msk [vmem:[#allocation4 + $0x31] sm:$0xff] %vm1162_vm1, %v3084_v20  ;;  %v4238_v45 = vpop.eup %3095  ;;  %3115 = vpow2.f32 %v1548_v34  ;;  %v705_v20 = vmul.f32 %v4202_v6, %v3443_v44  ;;  %v1572_v19 = vmul.f32 1.442695, %v1509_v18  ;;  %v1578_v54 = vadd.f32 1.0, %v4197_v26 }
 0x21a   : > { %v3098_v1 = vpop.eup %3097  ;;  %3117 = vpow2.f32 %v1550_v16  ;;  %v1580_v34 = vadd.f32 1.0, %v4210_v4  ;;  %v748_v16 = vadd.f32 %v4187_v8, %v709_v22  ;;  %v1582_v26 = vadd.f32 1.0, %v4219_v60  ;;  %v4834_v22 = vld [vmem:[#allocation8_spill] sm:$0xff] }
 0x21b   : > { %v3100_v12 = vpop.eup %3099  ;;  %1886 = vrot.lane.b32.xlu0 %v3098_v1, %s3290_s11  ;;  %v1766_v35 = vmul.f32 %v3098_v1, %v775_v33  ;;  %2092 = vst.msk [vmem:[#allocation4 + $0x19] sm:$0xff] %vm1162_vm1, %v3098_v1  ;;  %3119 = vpow2.f32 %v1552_v7  ;;  %v744_v0 = vadd.f32 %v4187_v8, %v705_v20  ;;  %v1583_v7 = vadd.f32 1.0, %v4224_v30 }
 0x21c   : > { %v3102_v15 = vpop.eup %3101  ;;  %v1639_v5 = vmul.f32 12.0, %v3100_v12  ;;  %3121 = vpow2.f32 %v1554_v14  ;;  %v1584_v14 = vadd.f32 1.0, %v4227_v40  ;;  %v1585_v60 = vadd.f32 1.0, %v4231_v49 }
 0x21d   : > { %v4246_v9 = vpop.eup %3103  ;;  %1822 = vst.msk [vmem:[#allocation2 + $0x19] sm:$0xff] %vm1798_vm2, %v1766_v35  ;;  %v1643_v11 = vmul.f32 12.0, %v3102_v15  ;;  %3123 = vpow2.f32 %v1556_v53  ;;  %v776_v33 = vmax.f32 %v744_v0, 0.0  ;;  %v711_v53 = vmul.f32 %v4202_v6, %v3458_v50  ;;  %v2460_v0 = vld [vmem:[#allocation4 + $0x1] ss:$2 sm:$0xff] }
 0x21e   : > { %v4250_v47 = vpop.eup %3105  ;;  %v1672_v55 = vmul.f32 1.442695, %v1639_v5  ;;  %3125 = vpow2.f32 %v1558_v27  ;;  %v780_v13 = vmax.f32 %v748_v16, 0.0  ;;  %v1586_v30 = vadd.f32 1.0, %v4234_v57 }
 0x21f   : > { %v4253_v42 = vpop.eup %3107  ;;  %v1680_v36 = vmul.f32 1.442695, %v1643_v11  ;;  %3127 = vpow2.f32 %v1560_v10  ;;  %v1587_v40 = vadd.f32 1.0, %v4238_v45  ;;  %v4300_v50 = vadd.f32 %v4187_v8, %v708_v62  ;;  %v2158_v62 = vld [vmem:[#allocation2 + $0x1] ss:$2 sm:$0xff] }
 0x220   : > { %v4255_v17 = vpop.eup %3109  ;;  %3129 = vpow2.f32 %v1672_v55  ;;  %v1588_v49 = vadd.f32 1.0, %v4246_v9  ;;  %v4308_v35 = vadd.f32 %v4187_v8, %v711_v53  ;;  %v1589_v45 = vadd.f32 1.0, %v4250_v47 }
 0x221   : > { %v3112_v32 = vpop.eup %3111  ;;  %3131 = vpow2.f32 %v1680_v36  ;;  %v1590_v10 = vadd.f32 1.0, %v4253_v42  ;;  %v1591_v31 = vadd.f32 1.0, %v4255_v17  ;;  %v779_v5 = vmax.f32 %v4300_v50, 0.0  ;;  %v4831_v42 = vld [vmem:[#allocation5_spill] sm:$0xff] }
 0x222   : > { %v4259_v24 = vpop.eup %3113  ;;  %1892 = vrot.lane.b32.xlu1 %v3112_v32, %s3290_s11  ;;  %v1769_v59 = vmul.f32 %v3112_v32, %v778_v38  ;;  %2095 = vst.msk [vmem:[#allocation4 + $0x39] sm:$0xff] %vm1162_vm1, %v3112_v32  ;;  %3133 = vpow2.f32 %v1562_v56  ;;  %v782_v11 = vmax.f32 %v4308_v35, 0.0  ;;  %v4832_v38 = vld [vmem:[#allocation6_spill] sm:$0xff]  ;;  %v4833_v32 = vld [vmem:[#allocation7_spill] sm:$0xff] }
 0x223   : > { %v4265_v39 = vpop.eup %3115  ;;  %3135 = vpow2.f32 %v1564_v23  ;;  %v1592_v9 = vadd.f32 1.0, %v4259_v24  ;;  %v2494_v50 = vld [vmem:[#allocation4 + $0x2] ss:$2 sm:$0xff] }
 0x224   : > { %v4268_v44 = vpop.eup %3117  ;;  %1825 = vst.msk [vmem:[#allocation2 + $0x39] sm:$0xff] %vm1798_vm2, %v1769_v59  ;;  %3137 = vpow2.f32 %v1566_v63  ;;  %v1593_v18 = vadd.f32 1.0, %v4265_v39 }
 0x225   : > { %v4272_v52 = vpop.eup %3119  ;;  %3139 = vpow2.f32 %v1570_v46  ;;  %v1594_v39 = vadd.f32 1.0, %v4268_v44  ;;  %v4839_v44 = vld [vmem:[#allocation13_spill] sm:$0xff] }
 0x226   : > { %v4276_v25 = vpop.eup %3121  ;;  %3141 = vpow2.f32 %v1572_v19 }
 0x227   : > { %v4280_v2 = vpop.eup %3123  ;;  %3143 = vrcp.f32 %v1578_v54  ;;  %v1596_v53 = vadd.f32 1.0, %v4276_v25  ;;  %v4843_v25 = vld [vmem:[#allocation17_spill] sm:$0xff] }
 0x228   : > { %v4283_v28 = vpop.eup %3125  ;;  %3145 = vrcp.f32 %v1581_v37  ;;  %v4835_v37 = vld [vmem:[#allocation9_spill] sm:$0xff] }
 0x229   : > { %v4288_v4 = vpop.eup %3127  ;;  %3147 = vrcp.f32 %v1580_v34  ;;  %v1595_v34 = vadd.f32 1.0, %v4272_v52  ;;  %v4840_v52 = vld [vmem:[#allocation14_spill] sm:$0xff] }
 0x22a   : > { %v3130_v1 = vpop.eup %3129  ;;  %3149 = vrcp.f32 %v1582_v26 }
 0x22b   : > { %v3132_v27 = vpop.eup %3131  ;;  %1888 = vrot.lane.b32.xlu0 %v3130_v1, %s3290_s11  ;;  %v1767_v48 = vmul.f32 %v3130_v1, %v776_v33  ;;  %2093 = vst.msk [vmem:[#allocation4 + $0x21] sm:$0xff] %vm1162_vm1, %v3130_v1  ;;  %3151 = vrcp.f32 %v1583_v7  ;;  %v4836_v7 = vld [vmem:[#allocation10_spill] sm:$0xff]  ;;  %v4838_v1 = vld [vmem:[#allocation12_spill] sm:$0xff] }
 0x22c   : > { %v4297_v12 = vpop.eup %3133  ;;  %1896 = vrot.lane.b32.xlu1 %v3132_v27, %s3290_s11  ;;  %v1771_v6 = vmul.f32 %v3132_v27, %v780_v13  ;;  %2097 = vst.msk [vmem:[#allocation4 + $0x51] sm:$0xff] %vm1162_vm1, %v3132_v27  ;;  %3153 = vrcp.f32 %v1584_v14  ;;  %v4837_v14 = vld [vmem:[#allocation11_spill] sm:$0xff]  ;;  %v1597_v27 = vadd.f32 1.0, %v4280_v2  ;;  %v4850_v33 = vld [vmem:[#allocation24_spill] sm:$0xff] }
 0x22d   : > { %v4305_v57 = vpop.eup %3135  ;;  %1823 = vst.msk [vmem:[#allocation2 + $0x21] sm:$0xff] %vm1798_vm2, %v1767_v48  ;;  %3155 = vrcp.f32 %v1585_v60 }
 0x22e   : > { %v4312_v43 = vpop.eup %3137  ;;  %1827 = vst.msk [vmem:[#allocation2 + $0x51] sm:$0xff] %vm1798_vm2, %v1771_v6  ;;  %3157 = vrcp.f32 %v1586_v30  ;;  %v4841_v6 = vld [vmem:[#allocation15_spill] sm:$0xff] }
 0x22f   : > { %v4316_v15 = vpop.eup %3139  ;;  %3159 = vrcp.f32 %v1587_v40  ;;  %v4848_v40 = vld [vmem:[#allocation22_spill] sm:$0xff] }
 0x230   : > { %v4319_v29 = vpop.eup %3141  ;;  %3161 = vrcp.f32 %v1588_v49  ;;  %v4846_v49 = vld [vmem:[#allocation20_spill] sm:$0xff] }
 0x231   : > { %v3144_v21 = vpop.eup %3143  ;;  %3163 = vrcp.f32 %v1589_v45  ;;  %v1598_v45 = vadd.f32 1.0, %v4283_v28  ;;  %v4849_v28 = vld [vmem:[#allocation23_spill] sm:$0xff] }
 0x232   : > { %v3146_v55 = vpop.eup %3145  ;;  %v1642_v36 = vmul.f32 12.0, %v3144_v21  ;;  %3165 = vrcp.f32 %v1590_v10  ;;  %v4847_v21 = vld [vmem:[#allocation21_spill] sm:$0xff] }
 0x233   : > { %v3148_v17 = vpop.eup %3147  ;;  %v1645_v46 = vmul.f32 12.0, %v3146_v55  ;;  %3167 = vrcp.f32 %v1591_v31  ;;  %v4842_v31 = vld [vmem:[#allocation16_spill] sm:$0xff] }
 0x234   : > { %v3150_v24 = vpop.eup %3149  ;;  %v1678_v19 = vmul.f32 1.442695, %v1642_v36  ;;  %3169 = vrcp.f32 %v1592_v9  ;;  %v4844_v36 = vld [vmem:[#allocation18_spill] sm:$0xff]  ;;  %v1644_v9 = vmul.f32 12.0, %v3148_v17 }
 0x235   : > { %v3152_v54 = vpop.eup %3151  ;;  %v1684_v16 = vmul.f32 1.442695, %v1645_v46  ;;  %3171 = vrcp.f32 %v1593_v18  ;;  %v1599_v18 = vadd.f32 1.0, %v4288_v4  ;;  %v4845_v46 = vld [vmem:[#allocation19_spill] sm:$0xff]  ;;  %v1602_v4 = vadd.f32 1.0, %v4312_v43 }
 0x236   : > { %v3154_v26 = vpop.eup %3153  ;;  %3173 = vpow2.f32 %v1678_v19  ;;  %v1682_v43 = vmul.f32 1.442695, %v1644_v9  ;;  %v2426_v19 = vld [vmem:[#allocation4] ss:$2 sm:$0xff]  ;;  %v2430_v9 = vld [vmem:[#allocation4 + $0x30] ss:$2 sm:$0xff] }
 0x237   : > { %v3156_v60 = vpop.eup %3155  ;;  %3175 = vpow2.f32 %v1684_v16  ;;  %v1600_v16 = vadd.f32 1.0, %v4297_v12  ;;  %v1604_v12 = vadd.f32 1.0, %v4316_v15  ;;  %v1648_v17 = vmul.f32 12.0, %v3154_v26  ;;  %v4851_v15 = vld [vmem:[#allocation25_spill] sm:$0xff] }
 0x238   : > { %v3158_v48 = vpop.eup %3157  ;;  %3177 = vrcp.f32 %v1594_v39  ;;  %v1601_v39 = vadd.f32 1.0, %v4305_v57  ;;  %v1605_v57 = vadd.f32 1.0, %v4319_v29 }
 0x239   : > { %v3160_v10 = vpop.eup %3159  ;;  %3179 = vrcp.f32 %v1595_v34  ;;  %v1647_v34 = vmul.f32 12.0, %v3152_v54  ;;  %v1649_v54 = vmul.f32 12.0, %v3156_v60 }
 0x23a   : > { %v3162_v55 = vpop.eup %3161  ;;  %3181 = vrcp.f32 %v1596_v53  ;;  %v1646_v53 = vmul.f32 12.0, %v3150_v24  ;;  %v1650_v24 = vmul.f32 12.0, %v3158_v48  ;;  %v1651_v26 = vmul.f32 12.0, %v3160_v10 }
 0x23b   : > { %v3164_v3 = vpop.eup %3163  ;;  %3183 = vrcp.f32 %v1597_v27  ;;  %v1688_v23 = vmul.f32 1.442695, %v1647_v34  ;;  %v2464_v34 = vld [vmem:[#allocation4 + $0x31] ss:$2 sm:$0xff]  ;;  %v1692_v10 = vmul.f32 1.442695, %v1649_v54 }
 0x23c   : > { %v3166_v30 = vpop.eup %3165  ;;  %3185 = vrcp.f32 %v1598_v45  ;;  %v2124_v45 = vld [vmem:[#allocation2] ss:$2 sm:$0xff]  ;;  %v1686_v60 = vmul.f32 1.442695, %v1646_v53  ;;  %v2527_v53 = vadd.f32 %v2460_v0, %v2426_v19  ;;  %v1694_v35 = vmul.f32 1.442695, %v1650_v24 }
 0x23d   : > { %v3168_v2 = vpop.eup %3167  ;;  %3187 = vrcp.f32 %v1599_v18  ;;  %v1654_v20 = vmul.f32 12.0, %v3166_v30  ;;  %v2529_v56 = vadd.f32 %v2464_v34, %v2430_v9  ;;  %v2498_v30 = vld [vmem:[#allocation4 + $0x32] ss:$2 sm:$0xff] }
 0x23e   : > { %v3170_v13 = vpop.eup %3169  ;;  %3189 = vrcp.f32 %v1600_v16 }
 0x23f   : > { %v3172_v27 = vpop.eup %3171  ;;  %3191 = vrcp.f32 %v1601_v39  ;;  %v1652_v39 = vmul.f32 12.0, %v3162_v55  ;;  %v4374_v8 = vadd.f32 %v2529_v56, %v2498_v30 }
 0x240   : > { %v3174_v59 = vpop.eup %3173  ;;  %3193 = vrcp.f32 %v1602_v4  ;;  %v1690_v4 = vmul.f32 1.442695, %v1648_v17  ;;  %v1696_v17 = vmul.f32 1.442695, %v1651_v26  ;;  %v1702_v26 = vmul.f32 1.442695, %v1654_v20 }
 0x241   : > { %v3176_v47 = vpop.eup %3175  ;;  %1894 = vrot.lane.b32.xlu0 %v3174_v59, %s3290_s11  ;;  %v1770_v29 = vmul.f32 %v3174_v59, %v779_v5  ;;  %2096 = vst.msk [vmem:[#allocation4 + $0x49] sm:$0xff] %vm1162_vm1, %v3174_v59  ;;  %3195 = vrcp.f32 %v1604_v12  ;;  %v1653_v59 = vmul.f32 12.0, %v3164_v3  ;;  %v2428_v12 = vld [vmem:[#allocation4 + $0x18] ss:$2 sm:$0xff]  ;;  %v1657_v3 = vmul.f32 12.0, %v3172_v27 }
 0x242   : > { %v3178_v16 = vpop.eup %3177  ;;  %1900 = vrot.lane.b32.xlu1 %v3176_v47, %s3290_s11  ;;  %3197 = vrcp.f32 %v1605_v57  ;;  %v1773_v48 = vmul.f32 %v3176_v47, %v782_v11  ;;  %2099 = vst.msk [vmem:[#allocation4 + $0x69] sm:$0xff] %vm1162_vm1, %v3176_v47  ;;  %v4370_v11 = vadd.f32 %v2158_v62, %v2124_v45  ;;  %v2462_v47 = vld [vmem:[#allocation4 + $0x19] ss:$2 sm:$0xff]  ;;  %v1655_v57 = vmul.f32 12.0, %v3168_v2 }
 0x243   : > { %v3180_v5 = vpop.eup %3179  ;;  %1826 = vst.msk [vmem:[#allocation2 + $0x49] sm:$0xff] %vm1798_vm2, %v1770_v29  ;;  %3199 = vpow2.f32 %v1682_v43  ;;  %v1656_v43 = vmul.f32 12.0, %v3170_v13  ;;  %v1698_v54 = vmul.f32 1.442695, %v1652_v39  ;;  %v1700_v19 = vmul.f32 1.442695, %v1653_v59 }
 0x244   : > { %v3182_v18 = vpop.eup %3181  ;;  %1829 = vst.msk [vmem:[#allocation2 + $0x69] sm:$0xff] %vm1798_vm2, %v1773_v48  ;;  %3201 = vpow2.f32 %v1688_v23  ;;  %v2128_v48 = vld [vmem:[#allocation2 + $0x30] ss:$2 sm:$0xff]  ;;  %v2162_v23 = vld [vmem:[#allocation2 + $0x31] ss:$2 sm:$0xff]  ;;  %v2528_v24 = vadd.f32 %v2462_v47, %v2428_v12  ;;  %v4372_v62 = vadd.f32 %v2527_v53, %v2494_v50  ;;  %v1658_v63 = vmul.f32 12.0, %v3178_v16 }
 0x245   : > { %v3184_v55 = vpop.eup %3183  ;;  %3203 = vpow2.f32 %v1686_v60  ;;  %v1659_v2 = vmul.f32 12.0, %v3180_v5  ;;  %v2126_v60 = vld [vmem:[#allocation2 + $0x18] ss:$2 sm:$0xff]  ;;  %v1660_v13 = vmul.f32 12.0, %v3182_v18  ;;  %v1704_v39 = vmul.f32 1.442695, %v1655_v57 }
 0x246   : > { %v3186_v29 = vpop.eup %3185  ;;  %3205 = vpow2.f32 %v1690_v4  ;;  %v1661_v27 = vmul.f32 12.0, %v3184_v55  ;;  %v2160_v4 = vld [vmem:[#allocation2 + $0x19] ss:$2 sm:$0xff]  ;;  %v1706_v59 = vmul.f32 1.442695, %v1656_v43  ;;  %v4376_v5 = vadd.f32 %v2162_v23, %v2128_v48 }
 0x247   : > { %v3188_v0 = vpop.eup %3187  ;;  %3207 = vpow2.f32 %v1692_v10  ;;  %v1708_v10 = vmul.f32 1.442695, %v1657_v3  ;;  %v2496_v50 = vld [vmem:[#allocation4 + $0x1a] ss:$2 sm:$0xff]  ;;  %v1662_v53 = vmul.f32 12.0, %v3186_v29  ;;  %v4378_v57 = vadd.f32 %v2160_v4, %v2126_v60 }
 0x248   : > { %v3190_v45 = vpop.eup %3189  ;;  %3209 = vpow2.f32 %v1694_v35  ;;  %v2432_v16 = vld [vmem:[#allocation4 + $0x48] ss:$2 sm:$0xff]  ;;  %v2466_v20 = vld [vmem:[#allocation4 + $0x49] ss:$2 sm:$0xff]  ;;  %v2545_v35 = vadd.f32 %v2528_v24, %v2496_v50  ;;  %v1710_v47 = vmul.f32 1.442695, %v1658_v63 }
 0x249   : > { %v3192_v9 = vpop.eup %3191  ;;  %3211 = vpow2.f32 %v1696_v17  ;;  %v1712_v55 = vmul.f32 1.442695, %v1659_v2  ;;  %v1663_v43 = vmul.f32 12.0, %v3188_v0  ;;  %v1714_v3 = vmul.f32 1.442695, %v1660_v13 }
 0x24a   : > { %v3194_v34 = vpop.eup %3193  ;;  %3213 = vpow2.f32 %v1698_v54  ;;  %v1716_v56 = vmul.f32 1.442695, %v1661_v27  ;;  %v1664_v29 = vmul.f32 12.0, %v3190_v45  ;;  %v2530_v63 = vadd.f32 %v2466_v20, %v2432_v16 }
 0x24b   : > { %v3196_v12 = vpop.eup %3195  ;;  %3215 = vpow2.f32 %v1700_v19  ;;  %v4852_v19 = vmax.f32 %v3461_v51, 0.0  ;;  %v1665_v23 = vmul.f32 12.0, %v3192_v9  ;;  %v1718_v24 = vmul.f32 1.442695, %v1662_v53  ;;  %v2164_v53 = vld [vmem:[#allocation2 + $0x49] ss:$2 sm:$0xff] }
 0x24c   : > { %v3198_v18 = vpop.eup %3197  ;;  %3217 = vpow2.f32 %v1702_v26  ;;  %v4853_v0 = vmax.f32 %v4832_v38, 0.0  ;;  %v1666_v45 = vmul.f32 12.0, %v3194_v34  ;;  %v1668_v60 = vmul.f32 12.0, %v3196_v12  ;;  %v2500_v34 = vld [vmem:[#allocation4 + $0x4a] ss:$2 sm:$0xff] }
 0x24d   : > { %v3200_v17 = vpop.eup %3199  ;;  %3219 = vpow2.f32 %v1704_v39  ;;  %v4854_v51 = vmax.f32 %v3472_v61, 0.0  ;;  %v1669_v27 = vmul.f32 12.0, %v3198_v18  ;;  %v1720_v39 = vmul.f32 1.442695, %v1663_v43  ;;  %v2130_v12 = vld [vmem:[#allocation2 + $0x48] ss:$2 sm:$0xff] }
 0x24e   : > { %v3202_v54 = vpop.eup %3201  ;;  %1898 = vrot.lane.b32.xlu0 %v3200_v17, %s3290_s11  ;;  %v1772_v30 = vmul.f32 %v3200_v17, %v4852_v19  ;;  %2098 = vst.msk [vmem:[#allocation4 + $0x61] sm:$0xff] %vm1162_vm1, %v3200_v17  ;;  %3221 = vpow2.f32 %v1706_v59  ;;  %v4855_v38 = vmax.f32 %v3468_v58, 0.0  ;;  %v4856_v61 = vmax.f32 %v4831_v42, 0.0 }
 0x24f   : > { %v3204_v48 = vpop.eup %3203  ;;  %1904 = vrot.lane.b32.xlu1 %v3202_v54, %s3290_s11  ;;  %v1775_v2 = vmul.f32 %v3202_v54, %v4853_v0  ;;  %2101 = vst.msk [vmem:[#allocation4 + $0x81] sm:$0xff] %vm1162_vm1, %v3202_v54  ;;  %3223 = vpow2.f32 %v1708_v10  ;;  %v1722_v10 = vmul.f32 1.442695, %v1664_v29  ;;  %v2547_v58 = vadd.f32 %v2530_v63, %v2500_v34  ;;  %v2196_v0 = vld [vmem:[#allocation2 + $0x32] ss:$2 sm:$0xff] }
 0x250   : > { %v3206_v26 = vpop.eup %3205  ;;  %1828 = vst.msk [vmem:[#allocation2 + $0x61] sm:$0xff] %vm1798_vm2, %v1772_v30  ;;  %3225 = vpow2.f32 %v1710_v47  ;;  %v1774_v13 = vmul.f32 %v3204_v48, %v4854_v51  ;;  %v1724_v20 = vmul.f32 1.442695, %v1665_v23  ;;  %v4857_v18 = vmax.f32 %v4834_v22, 0.0  ;;  %v2192_v22 = vld [vmem:[#allocation2 + $0x2] ss:$2 sm:$0xff] }
 0x251   : > { %2100 = vst.msk [vmem:[#allocation4 + $0x79] sm:$0xff] %vm1162_vm1, %v3204_v48  ;;  %v3208_v9 = vpop.eup %3207  ;;  %3227 = vpow2.f32 %v1712_v55  ;;  %v1776_v4 = vmul.f32 %v3206_v26, %v4855_v38  ;;  %2102 = vst.msk [vmem:[#allocation4 + $0x91] sm:$0xff] %vm1162_vm1, %v3206_v26  ;;  %v2561_v42 = vadd.f32 %v2545_v35, %v4372_v62  ;;  %v1726_v17 = vmul.f32 1.442695, %v1666_v45 }
 0x252   : > { %1831 = vst.msk [vmem:[#allocation2 + $0x81] sm:$0xff] %vm1798_vm2, %v1775_v2  ;;  %v4396_v59 = vpop.eup %3209  ;;  %1902 = vrot.lane.b32.xlu0 %v3204_v48, %s3290_s11  ;;  %3229 = vpow2.f32 %v1714_v3  ;;  %v1777_v50 = vmul.f32 %v3208_v9, %v4856_v61  ;;  %1830 = vst.msk [vmem:[#allocation2 + $0x79] sm:$0xff] %vm1798_vm2, %v1774_v13  ;;  %v1730_v43 = vmul.f32 1.442695, %v1668_v60  ;;  %v4858_v3 = vmax.f32 %v4836_v7, 0.0 }
 0x253   : > { %2103 = vst.msk [vmem:[#allocation4 + $0x99] sm:$0xff] %vm1162_vm1, %v3208_v9  ;;  %v3212_v16 = vpop.eup %3211  ;;  %3231 = vpow2.f32 %v1716_v56  ;;  %1908 = vrot.lane.b32.xlu1 %v3208_v9, %s3290_s11  ;;  %v1778_v47 = vmul.f32 %v4396_v59, %v4857_v18  ;;  %2104 = vst.msk [vmem:[#allocation4 + $0xa9] sm:$0xff] %vm1162_vm1, %v4396_v59  ;;  %v1732_v29 = vmul.f32 1.442695, %v1669_v27  ;;  %v4859_v19 = vmax.f32 %v4833_v32, 0.0 }
 0x254   : > { %1832 = vst.msk [vmem:[#allocation2 + $0x91] sm:$0xff] %vm1798_vm2, %v1776_v4  ;;  %v4411_v55 = vpop.eup %3213  ;;  %3233 = vpow2.f32 %v1718_v24  ;;  %v1779_v56 = vmul.f32 %v3212_v16, %v4858_v3  ;;  %1833 = vst.msk [vmem:[#allocation2 + $0x99] sm:$0xff] %vm1798_vm2, %v1777_v50  ;;  %v2228_v35 = vadd.f32 %v2164_v53, %v2130_v12  ;;  %v4860_v48 = vmax.f32 %v4835_v37, 0.0  ;;  %v2198_v37 = vld [vmem:[#allocation2 + $0x4a] ss:$2 sm:$0xff] }
 0x255   : > { %2105 = vst.msk [vmem:[#allocation4 + $0xb1] sm:$0xff] %vm1162_vm1, %v3212_v16  ;;  %v3216_v54 = vpop.eup %3215  ;;  %3235 = vpow2.f32 %v1720_v39  ;;  %v1780_v62 = vmul.f32 %v4411_v55, %v4859_v19  ;;  %2106 = vst.msk [vmem:[#allocation4 + $0xc1] sm:$0xff] %vm1162_vm1, %v4411_v55  ;;  %v2434_v7 = vld [vmem:[#allocation4 + $0x60] ss:$2 sm:$0xff]  ;;  %v2468_v30 = vld [vmem:[#allocation4 + $0x61] ss:$2 sm:$0xff]  ;;  %v2562_v24 = vadd.f32 %v2547_v58, %v4374_v8  ;;  %v2242_v51 = vadd.f32 %v4370_v11, %v2192_v22 }
 0x256   : > { %1834 = vst.msk [vmem:[#allocation2 + $0xa9] sm:$0xff] %vm1798_vm2, %v1778_v47  ;;  %v4423_v63 = vpop.eup %3217  ;;  %3237 = vpow2.f32 %v1722_v10  ;;  %v1781_v23 = vmul.f32 %v3216_v54, %v4860_v48  ;;  %1906 = vrot.lane.b32.xlu0 %v3206_v26, %s3290_s11  ;;  %1835 = vst.msk [vmem:[#allocation2 + $0xb1] sm:$0xff] %vm1798_vm2, %v1779_v56  ;;  %v2531_v32 = vadd.f32 %v2468_v30, %v2434_v7  ;;  %v4861_v45 = vmax.f32 %v4838_v1, 0.0  ;;  %v2502_v26 = vld [vmem:[#allocation4 + $0x62] ss:$2 sm:$0xff] }
 0x257   : > { %2107 = vst.msk [vmem:[#allocation4 + $0xc9] sm:$0xff] %vm1162_vm1, %v3216_v54  ;;  %v4431_v2 = vpop.eup %3219  ;;  %3239 = vpow2.f32 %v1724_v20  ;;  %2108 = vst.msk [vmem:[#allocation4 + $0xd9] sm:$0xff] %vm1162_vm1, %v4423_v63  ;;  %1912 = vrot.lane.b32.xlu1 %v3212_v16, %s3290_s11  ;;  %v2569_v13 = vadd.f32 %v2561_v42, %v4374_v8  ;;  %v2194_v9 = vld [vmem:[#allocation2 + $0x1a] ss:$2 sm:$0xff]  ;;  %v4862_v1 = vmax.f32 %v4840_v52, 0.0  ;;  %v4453_v11 = vadd.f32 %v4376_v5, %v2196_v0 }
 0x258   : > { %v1782_v60 = vmul.f32 %v4423_v63, %v4861_v45  ;;  %1836 = vst.msk [vmem:[#allocation2 + $0xc1] sm:$0xff] %vm1798_vm2, %v1780_v62  ;;  %v4442_v27 = vpop.eup %3221  ;;  %3241 = vpow2.f32 %v1726_v17  ;;  %1837 = vst.msk [vmem:[#allocation2 + $0xc9] sm:$0xff] %vm1798_vm2, %v1781_v23  ;;  %v2132_v38 = vld [vmem:[#allocation2 + $0x60] ss:$2 sm:$0xff]  ;;  %v4450_v4 = vadd.f32 %v2531_v32, %v2502_v26  ;;  %v2470_v34 = vld [vmem:[#allocation4 + $0x79] ss:$2 sm:$0xff]  ;;  %v2245_v12 = vadd.f32 %v2228_v35, %v2198_v37 }
 0x259   : > { %v1783_v39 = vmul.f32 %v4431_v2, %v4862_v1  ;;  %2109 = vst.msk [vmem:[#allocation4 + $0xe1] sm:$0xff] %vm1162_vm1, %v4431_v2  ;;  %v2436_v8 = vld [vmem:[#allocation4 + $0x78] ss:$2 sm:$0xff]  ;;  %v4455_v10 = vpop.eup %3223  ;;  %3243 = vpow2.f32 %v1730_v43  ;;  %v4863_v52 = vmax.f32 %v4837_v14, 0.0  ;;  %2110 = vst.msk [vmem:[#allocation4 + $0xf1] sm:$0xff] %vm1162_vm1, %v4442_v27  ;;  %v2243_v53 = vadd.f32 %v4378_v57, %v2194_v9 }
 0x25a   : > { %1838 = vst.msk [vmem:[#allocation2 + $0xd9] sm:$0xff] %vm1798_vm2, %v1782_v60  ;;  %v2166_v50 = vld [vmem:[#allocation2 + $0x61] ss:$2 sm:$0xff]  ;;  %v2438_v5 = vld [vmem:[#allocation4 + $0x90] ss:$2 sm:$0xff]  ;;  %v4464_v16 = vpop.eup %3225  ;;  %3245 = vpow2.f32 %v1732_v29  ;;  %v4864_v20 = vmax.f32 %v4839_v44, 0.0  ;;  %1910 = vrot.lane.b32.xlu0 %v4396_v59, %s3290_s11  ;;  %v2570_v18 = vadd.f32 %v2562_v24, %v4450_v4  ;;  %v2532_v47 = vadd.f32 %v2470_v34, %v2436_v8 }
 0x25b   : > { %v1784_v61 = vmul.f32 %v4442_v27, %v4863_v52  ;;  %v2472_v58 = vld [vmem:[#allocation4 + $0x91] ss:$2 sm:$0xff]  ;;  %2111 = vst.msk [vmem:[#allocation4 + $0xf9] sm:$0xff] %vm1162_vm1, %v4455_v10  ;;  %v2506_v57 = vld [vmem:[#allocation4 + $0x92] ss:$2 sm:$0xff]  ;;  %v4475_v42 = vpop.eup %3227  ;;  %v4865_v17 = vmax.f32 %v4842_v31, 0.0  ;;  %1916 = vrot.lane.b32.xlu1 %v3216_v54, %s3290_s11  ;;  %3247 = vrcp.f32 %v2569_v13  ;;  %v2229_v19 = vadd.f32 %v2166_v50, %v2132_v38 }
 0x25c   : > { %v1785_v14 = vmul.f32 %v4455_v10, %v4864_v20  ;;  %1839 = vst.msk [vmem:[#allocation2 + $0xe1] sm:$0xff] %vm1798_vm2, %v1783_v39  ;;  %v2136_v43 = vld [vmem:[#allocation2 + $0x90] ss:$2 sm:$0xff]  ;;  %v2533_v59 = vadd.f32 %v2472_v58, %v2438_v5  ;;  %v2168_v56 = vld [vmem:[#allocation2 + $0x79] ss:$2 sm:$0xff]  ;;  %v4484_v22 = vpop.eup %3229  ;;  %v4866_v29 = vmax.f32 %v4844_v36, 0.0  ;;  %3249 = vrcp.f32 %v2570_v18 }
 0x25d   : > { %v1786_v44 = vmul.f32 %v4464_v16, %v4865_v17  ;;  %2112 = vst.msk [vmem:[#allocation4 + $0x109] sm:$0xff] %vm1162_vm1, %v4464_v16  ;;  %v2134_v3 = vld [vmem:[#allocation2 + $0x78] ss:$2 sm:$0xff]  ;;  %2113 = vst.msk [vmem:[#allocation4 + $0x111] sm:$0xff] %vm1162_vm1, %v4475_v42  ;;  %v2170_v62 = vld [vmem:[#allocation2 + $0x91] ss:$2 sm:$0xff]  ;;  %v4492_v7 = vpop.eup %3231  ;;  %v2259_v36 = vadd.f32 %v2243_v53, %v2242_v51 }
 0x25e   : > { %1840 = vst.msk [vmem:[#allocation2 + $0xf1] sm:$0xff] %vm1798_vm2, %v1784_v61  ;;  %v1787_v31 = vmul.f32 %v4475_v42, %v4866_v29  ;;  %1841 = vst.msk [vmem:[#allocation2 + $0xf9] sm:$0xff] %vm1798_vm2, %v1785_v14  ;;  %v2440_v54 = vld [vmem:[#allocation4 + $0xa8] ss:$2 sm:$0xff]  ;;  %v2474_v35 = vld [vmem:[#allocation4 + $0xa9] ss:$2 sm:$0xff]  ;;  %v2550_v0 = vadd.f32 %v2533_v59, %v2506_v57  ;;  %v4500_v60 = vpop.eup %3233  ;;  %1914 = vrot.lane.b32.xlu0 %v4411_v55, %s3290_s11  ;;  %v2230_v1 = vadd.f32 %v2168_v56, %v2134_v3 }
 0x25f   : > { %v4867_v30 = vmax.f32 %v4841_v6, 0.0  ;;  %2114 = vst.msk [vmem:[#allocation4 + $0x121] sm:$0xff] %vm1162_vm1, %v4484_v22  ;;  %v2138_v23 = vld [vmem:[#allocation2 + $0xa8] ss:$2 sm:$0xff]  ;;  %v2172_v32 = vld [vmem:[#allocation2 + $0xa9] ss:$2 sm:$0xff]  ;;  %v2534_v24 = vadd.f32 %v2474_v35, %v2440_v54  ;;  %v2260_v6 = vadd.f32 %v2245_v12, %v4453_v11  ;;  %v4511_v38 = vpop.eup %3235  ;;  %1920 = vrot.lane.b32.xlu1 %v4431_v2, %s3290_s11  ;;  %v2231_v34 = vadd.f32 %v2170_v62, %v2136_v43 }
 0x260   : > { %1842 = vst.msk [vmem:[#allocation2 + $0x109] sm:$0xff] %vm1798_vm2, %v1786_v44  ;;  %v2504_v45 = vld [vmem:[#allocation4 + $0x7a] ss:$2 sm:$0xff]  ;;  %v4868_v37 = vmax.f32 %v4843_v25, 0.0  ;;  %1843 = vst.msk [vmem:[#allocation2 + $0x111] sm:$0xff] %vm1798_vm2, %v1787_v31  ;;  %v4869_v25 = vmax.f32 %v4846_v49, 0.0  ;;  %v4521_v50 = vpop.eup %3237  ;;  %v2232_v2 = vadd.f32 %v2172_v32, %v2138_v23 }
 0x261   : > { %v1788_v48 = vmul.f32 %v4484_v22, %v4867_v30  ;;  %2115 = vst.msk [vmem:[#allocation4 + $0x129] sm:$0xff] %vm1162_vm1, %v4492_v7  ;;  %v2442_v51 = vld [vmem:[#allocation4 + $0xc0] ss:$2 sm:$0xff]  ;;  %v2476_v13 = vld [vmem:[#allocation4 + $0xc1] ss:$2 sm:$0xff]  ;;  %v2549_v39 = vadd.f32 %v2532_v47, %v2504_v45  ;;  %2116 = vst.msk [vmem:[#allocation4 + $0x139] sm:$0xff] %vm1162_vm1, %v4500_v60  ;;  %v4532_v18 = vpop.eup %3239  ;;  %v2267_v47 = vadd.f32 %v2259_v36, %v4453_v11 }
 0x262   : > { %v1789_v26 = vmul.f32 %v4492_v7, %v4868_v37  ;;  %v2508_v9 = vld [vmem:[#allocation4 + $0xaa] ss:$2 sm:$0xff]  ;;  %v1790_v8 = vmul.f32 %v4500_v60, %v4869_v25  ;;  %v2535_v52 = vadd.f32 %v2476_v13, %v2442_v51  ;;  %v4870_v12 = vmax.f32 %v4848_v40, 0.0  ;;  %2117 = vst.msk [vmem:[#allocation4 + $0x141] sm:$0xff] %vm1162_vm1, %v4511_v38  ;;  %v2202_v20 = vld [vmem:[#allocation2 + $0x7a] ss:$2 sm:$0xff]  ;;  %v4543_v3 = vpop.eup %3241  ;;  %1918 = vrot.lane.b32.xlu0 %v4423_v63, %s3290_s11 }
 0x263   : > { %1844 = vst.msk [vmem:[#allocation2 + $0x121] sm:$0xff] %vm1798_vm2, %v1788_v48  ;;  %v2200_v55 = vld [vmem:[#allocation2 + $0x62] ss:$2 sm:$0xff]  ;;  %v2551_v61 = vadd.f32 %v2534_v24, %v2508_v9  ;;  %v2563_v14 = vadd.f32 %v2549_v39, %v4450_v4  ;;  %v4871_v57 = vmax.f32 %v4845_v46, 0.0  ;;  %v2174_v17 = vld [vmem:[#allocation2 + $0xc1] ss:$2 sm:$0xff]  ;;  %v2247_v31 = vadd.f32 %v2230_v1, %v2202_v20  ;;  %v4555_v62 = vpop.eup %3243  ;;  %1924 = vrot.lane.b32.xlu1 %v4455_v10, %s3290_s11 }
 0x264   : > { %v1791_v49 = vmul.f32 %v4511_v38, %v4870_v12  ;;  %1845 = vst.msk [vmem:[#allocation2 + $0x129] sm:$0xff] %vm1798_vm2, %v1789_v26  ;;  %v4529_v53 = vadd.f32 %v2229_v19, %v2200_v55  ;;  %v2140_v5 = vld [vmem:[#allocation2 + $0xc0] ss:$2 sm:$0xff]  ;;  %1846 = vst.msk [vmem:[#allocation2 + $0x139] sm:$0xff] %vm1798_vm2, %v1790_v8  ;;  %v2446_v59 = vld [vmem:[#allocation4 + $0xf0] ss:$2 sm:$0xff]  ;;  %v4568_v32 = vpop.eup %3245 }
 0x265   : > { %v2510_v58 = vld [vmem:[#allocation4 + $0xc2] ss:$2 sm:$0xff]  ;;  %v1792_v40 = vmul.f32 %v4521_v50, %v4871_v57  ;;  %2118 = vst.msk [vmem:[#allocation4 + $0x151] sm:$0xff] %vm1162_vm1, %v4521_v50  ;;  %v2564_v43 = vadd.f32 %v2551_v61, %v2550_v0  ;;  %v2480_v4 = vld [vmem:[#allocation4 + $0xf1] ss:$2 sm:$0xff]  ;;  %v4872_v46 = vmax.f32 %v4847_v21, 0.0  ;;  %v2571_v19 = vadd.f32 %v2563_v14, %v2550_v0 }
 0x266   : > { %v4541_v44 = vadd.f32 %v2535_v52, %v2510_v58  ;;  %2119 = vst.msk [vmem:[#allocation4 + $0x159] sm:$0xff] %vm1162_vm1, %v4532_v18  ;;  %v2268_v11 = vadd.f32 %v2260_v6, %v4529_v53  ;;  %v2204_v29 = vld [vmem:[#allocation2 + $0x92] ss:$2 sm:$0xff]  ;;  %v4873_v21 = vmax.f32 %v4850_v33, 0.0  ;;  %2120 = vst.msk [vmem:[#allocation4 + $0x169] sm:$0xff] %vm1162_vm1, %v4543_v3  ;;  %v2537_v48 = vadd.f32 %v2480_v4, %v2446_v59  ;;  %v4576_v6 = vpop.eup %3247 }
 0x267   : > { %v1793_v56 = vmul.f32 %v4532_v18, %v4872_v46  ;;  %1847 = vst.msk [vmem:[#allocation2 + $0x141] sm:$0xff] %vm1798_vm2, %v1791_v49  ;;  %1848 = vst.msk [vmem:[#allocation2 + $0x151] sm:$0xff] %vm1798_vm2, %v1792_v40  ;;  %v2206_v63 = vld [vmem:[#allocation2 + $0xaa] ss:$2 sm:$0xff]  ;;  %v4565_v35 = vadd.f32 %v2231_v34, %v2204_v29  ;;  %v2478_v23 = vld [vmem:[#allocation4 + $0xd9] ss:$2 sm:$0xff]  ;;  %v2233_v10 = vadd.f32 %v2174_v17, %v2140_v5  ;;  %3251 = vrcp.f32 %v2571_v19  ;;  %v4584_v55 = vpop.eup %3249 }
 0x268   : > { %v1794_v54 = vmul.f32 %v4543_v3, %v4873_v21  ;;  %v2572_v30 = vadd.f32 %v2564_v43, %v4541_v44  ;;  %v2444_v36 = vld [vmem:[#allocation4 + $0xd8] ss:$2 sm:$0xff]  ;;  %v4874_v33 = vmax.f32 %v4849_v28, 0.0  ;;  %2122 = vst.msk [vmem:[#allocation4 + $0x181] sm:$0xff] %vm1162_vm1, %v4555_v62  ;;  %v2249_v0 = vadd.f32 %v2232_v2, %v2206_v63  ;;  %v2448_v45 = vld [vmem:[#allocation4 + $0x108] ss:$2 sm:$0xff]  ;;  %1922 = vrot.lane.b32.xlu0 %v4442_v27, %s3290_s11 }
 0x269   : > { %1849 = vst.msk [vmem:[#allocation2 + $0x159] sm:$0xff] %vm1798_vm2, %v1793_v56  ;;  %v2482_v37 = vld [vmem:[#allocation4 + $0x109] ss:$2 sm:$0xff]  ;;  %v2514_v26 = vld [vmem:[#allocation4 + $0xf2] ss:$2 sm:$0xff]  ;;  %v4875_v51 = vmax.f32 %v4851_v15, 0.0  ;;  %v2585_v15 = vmul.f32 %v4576_v6, %v2267_v47  ;;  %1928 = vrot.lane.b32.xlu1 %v4475_v42, %s3290_s11  ;;  %v2586_v49 = vmul.f32 %v4584_v55, %v2268_v11  ;;  %v2536_v57 = vadd.f32 %v2478_v23, %v2444_v36 }
 0x26a   : > { %v1796_v24 = vmul.f32 %v4555_v62, %v4874_v33  ;;  %2123 = vst.msk [vmem:[#allocation4 + $0x189] sm:$0xff] %vm1162_vm1, %v4568_v32  ;;  %v2208_v28 = vld [vmem:[#allocation2 + $0xc2] ss:$2 sm:$0xff]  ;;  %3253 = vrcp.f32 %v2572_v30  ;;  %v2538_v1 = vadd.f32 %v2482_v37, %v2448_v45  ;;  %v2554_v39 = vadd.f32 %v2537_v48, %v2514_v26  ;;  %v2176_v8 = vld [vmem:[#allocation2 + $0xd9] ss:$2 sm:$0xff] }
 0x26b   : > { %v1797_v13 = vmul.f32 %v4568_v32, %v4875_v51  ;;  %1850 = vst.msk [vmem:[#allocation2 + $0x169] sm:$0xff] %vm1798_vm2, %v1794_v54  ;;  %v2144_v9 = vld [vmem:[#allocation2 + $0xf0] ss:$2 sm:$0xff]  ;;  %v2450_v34 = vld [vmem:[#allocation4 + $0x120] ss:$2 sm:$0xff]  ;;  %v2593_v27 = vpack.c.bf16 %v2585_v15, %v2585_v15  ;;  %v4601_v40 = vadd.f32 %v2233_v10, %v2208_v28  ;;  %v2262_v47 = vadd.f32 %v2249_v0, %v4565_v35 }
 0x26c   : > { %v2142_v25 = vld [vmem:[#allocation2 + $0xd8] ss:$2 sm:$0xff]  ;;  %1852 = vst.msk [vmem:[#allocation2 + $0x181] sm:$0xff] %vm1798_vm2, %v1796_v24  ;;  %v2484_v52 = vld [vmem:[#allocation4 + $0x121] ss:$2 sm:$0xff]  ;;  %v2261_v42 = vadd.f32 %v2247_v31, %v4529_v53  ;;  %v2594_v4 = vpack.c.bf16 %v2586_v49, %v2586_v49  ;;  %1926 = vrot.lane.b32.xlu0 %v4464_v16, %s3290_s11 }
 0x26d   : > { %v2516_v61 = vld [vmem:[#allocation4 + $0x10a] ss:$2 sm:$0xff]  ;;  %v2512_v12 = vld [vmem:[#allocation4 + $0xda] ss:$2 sm:$0xff]  ;;  %1853 = vst.msk [vmem:[#allocation2 + $0x189] sm:$0xff] %vm1798_vm2, %v1797_v13  ;;  %v2539_v20 = vadd.f32 %v2484_v52, %v2450_v34  ;;  %v2234_v63 = vadd.f32 %v2176_v8, %v2142_v25  ;;  %1932 = vrot.lane.b32.xlu1 %v4492_v7, %s3290_s11  ;;  %v2270_v7 = vadd.f32 %v2262_v47, %v4601_v40 }
 0x26e   : > { %v2146_v5 = vld [vmem:[#allocation2 + $0x108] ss:$2 sm:$0xff]  ;;  %v2178_v2 = vld [vmem:[#allocation2 + $0xf1] ss:$2 sm:$0xff]  ;;  %v2555_v14 = vadd.f32 %v2538_v1, %v2516_v61  ;;  %v2452_v43 = vld [vmem:[#allocation4 + $0x138] ss:$2 sm:$0xff]  ;;  %v2553_v11 = vadd.f32 %v2536_v57, %v2512_v12  ;;  %v2269_v45 = vadd.f32 %v2261_v42, %v4565_v35 }
 0x26f   : > { %v2180_v58 = vld [vmem:[#allocation2 + $0x109] ss:$2 sm:$0xff]  ;;  %v2518_v17 = vld [vmem:[#allocation4 + $0x122] ss:$2 sm:$0xff]  ;;  %v2486_v59 = vld [vmem:[#allocation4 + $0x139] ss:$2 sm:$0xff]  ;;  %v2235_v21 = vadd.f32 %v2178_v2, %v2144_v9 }
 0x270   : > { %v2556_v46 = vadd.f32 %v2539_v20, %v2518_v17  ;;  %v2566_v56 = vadd.f32 %v2555_v14, %v2554_v39  ;;  %v2454_v29 = vld [vmem:[#allocation4 + $0x150] ss:$2 sm:$0xff]  ;;  %v2488_v19 = vld [vmem:[#allocation4 + $0x151] ss:$2 sm:$0xff]  ;;  %v2236_v54 = vadd.f32 %v2180_v58, %v2146_v5  ;;  %2602 = vst.msk [vmem:[%s4599_s15] sm:$0xf] %vm2601_vm5, %v2593_v27  ;;  %v2565_v24 = vadd.f32 %v2553_v11, %v4541_v44 }
 0x271   : > { %v2456_v30 = vld [vmem:[#allocation4 + $0x168] ss:$2 sm:$0xff]  ;;  %v2490_v48 = vld [vmem:[#allocation4 + $0x169] ss:$2 sm:$0xff]  ;;  %v2541_v53 = vadd.f32 %v2488_v19, %v2454_v29  ;;  %v2540_v0 = vadd.f32 %v2486_v59, %v2452_v43  ;;  %2603 = vst.msk [vmem:[%s4599_s15 + $0x4] sm:$0xf] %vm2601_vm5, %v2594_v4  ;;  %v4616_v15 = vpop.eup %3251  ;;  %1930 = vrot.lane.b32.xlu0 %v4484_v22, %s3290_s11  ;;  %1936 = vrot.lane.b32.xlu1 %v4511_v38, %s3290_s11 }
 0x272   : > { %v2148_v31 = vld [vmem:[#allocation2 + $0x120] ss:$2 sm:$0xff]  ;;  %v2574_v33 = vadd.f32 %v2566_v56, %v2556_v46  ;;  %v2542_v16 = vadd.f32 %v2490_v48, %v2456_v30  ;;  %v2182_v37 = vld [vmem:[#allocation2 + $0x121] ss:$2 sm:$0xff]  ;;  %v2573_v9 = vadd.f32 %v2565_v24, %v2554_v39  ;;  %v2152_v1 = vld [vmem:[#allocation2 + $0x150] ss:$2 sm:$0xff]  ;;  %v2587_v39 = vmul.f32 %v4616_v15, %v2269_v45 }
 0x273   : > { %v2212_v36 = vld [vmem:[#allocation2 + $0xf2] ss:$2 sm:$0xff]  ;;  %v2492_v8 = vld [vmem:[#allocation4 + $0x181] ss:$2 sm:$0xff]  ;;  %v2186_v61 = vld [vmem:[#allocation2 + $0x151] ss:$2 sm:$0xff]  ;;  %v2237_v27 = vadd.f32 %v2182_v37, %v2148_v31 }
 0x274   : > { %v2214_v23 = vld [vmem:[#allocation2 + $0x10a] ss:$2 sm:$0xff]  ;;  %v2210_v26 = vld [vmem:[#allocation2 + $0xda] ss:$2 sm:$0xff]  ;;  %3255 = vrcp.f32 %v2574_v33  ;;  %v4620_v34 = vadd.f32 %v2235_v21, %v2212_v36  ;;  %v2188_v12 = vld [vmem:[#allocation2 + $0x169] ss:$2 sm:$0xff]  ;;  %v4622_v2 = vpop.eup %3253  ;;  %v2595_v17 = vpack.c.bf16 %v2587_v39, %v2587_v39  ;;  %v2239_v43 = vadd.f32 %v2186_v61, %v2152_v1 }
 0x275   : > { %v2522_v10 = vld [vmem:[#allocation4 + $0x152] ss:$2 sm:$0xff]  ;;  %v2253_v35 = vadd.f32 %v2236_v54, %v2214_v23  ;;  %v2251_v58 = vadd.f32 %v2234_v63, %v2210_v26  ;;  %3257 = vrcp.f32 %v2573_v9  ;;  %v2526_v20 = vld [vmem:[#allocation4 + $0x182] ss:$2 sm:$0xff]  ;;  %v2184_v22 = vld [vmem:[#allocation2 + $0x139] ss:$2 sm:$0xff]  ;;  %v2588_v57 = vmul.f32 %v4622_v2, %v2270_v7  ;;  %1934 = vrot.lane.b32.xlu0 %v4500_v60, %s3290_s11  ;;  %1940 = vrot.lane.b32.xlu1 %v4532_v18, %s3290_s11 }
 0x276   : > { %v2524_v51 = vld [vmem:[#allocation4 + $0x16a] ss:$2 sm:$0xff]  ;;  %v2558_v13 = vadd.f32 %v2541_v53, %v2522_v10  ;;  %v2520_v28 = vld [vmem:[#allocation4 + $0x13a] ss:$2 sm:$0xff]  ;;  %2604 = vst.msk [vmem:[%s4599_s15 + $0x8] sm:$0xf] %vm2601_vm5, %v2595_v17 }
 0x277   : > { %v2458_v25 = vld [vmem:[#allocation4 + $0x180] ss:$2 sm:$0xff]  ;;  %v2559_v44 = vadd.f32 %v2542_v16, %v2524_v51  ;;  %v2557_v5 = vadd.f32 %v2540_v0, %v2520_v28  ;;  %v2596_v38 = vpack.c.bf16 %v2588_v57, %v2588_v57  ;;  %v2264_v56 = vadd.f32 %v2253_v35, %v4620_v34  ;;  %v2190_v48 = vld [vmem:[#allocation2 + $0x181] ss:$2 sm:$0xff] }
 0x278   : > { %v2154_v52 = vld [vmem:[#allocation2 + $0x168] ss:$2 sm:$0xff]  ;;  %v2543_v49 = vadd.f32 %v2492_v8, %v2458_v25  ;;  %v2150_v14 = vld [vmem:[#allocation2 + $0x138] ss:$2 sm:$0xff]  ;;  %v4876_v24 = vmov 0.0  }
 0x279   : > { %v2568_v42 = vadd.f32 %v2559_v44, %v2558_v13  ;;  %v2240_v59 = vadd.f32 %v2188_v12, %v2154_v52  ;;  %v2567_v4 = vadd.f32 %v2557_v5, %v2556_v46  ;;  %v2238_v29 = vadd.f32 %v2184_v22, %v2150_v14  ;;  %v2216_v19 = vld [vmem:[#allocation2 + $0x122] ss:$2 sm:$0xff]  ;;  %v2220_v21 = vld [vmem:[#allocation2 + $0x152] ss:$2 sm:$0xff]  ;;  %2605 = vst.msk [vmem:[%s4599_s15 + $0xc] sm:$0xf] %vm2601_vm5, %v2596_v38 }
 0x27a   : > { %v2560_v47 = vadd.f32 %v2543_v49, %v2526_v20  ;;  %v2254_v63 = vadd.f32 %v2237_v27, %v2216_v19  ;;  %v2263_v46 = vadd.f32 %v2251_v58, %v4601_v40  ;;  %v2156_v30 = vld [vmem:[#allocation2 + $0x180] ss:$2 sm:$0xff]  ;;  %v2256_v53 = vadd.f32 %v2239_v43, %v2220_v21  ;;  %1938 = vrot.lane.b32.xlu0 %v4521_v50, %s3290_s11  ;;  %v3268_v27 = vld [vmem:[%s3364_s20 + $0x18] sm:$0xff]  }
 0x27b   : > { %v2575_v54 = vadd.f32 %v2567_v4, %v2558_v13  ;;  %v2222_v60 = vld [vmem:[#allocation2 + $0x16a] ss:$2 sm:$0xff]  ;;  %v2218_v36 = vld [vmem:[#allocation2 + $0x13a] ss:$2 sm:$0xff]  ;;  %1944 = vrot.lane.b32.xlu1 %v4177_v41, %s3290_s11  ;;  %v2241_v40 = vadd.f32 %v2190_v48, %v2156_v30  ;;  %2020 = vst.msk [vmem:[#allocation3 + $0x30] sm:$0x1] %vm2017_vm6, %v4876_v24  ;;  %v1740_v4 = vunpack.c.l.bf16 %v3268_v27 }
 0x27c   : > { %v2576_v11 = vadd.f32 %v2568_v42, %v2560_v47  ;;  %v2257_v31 = vadd.f32 %v2240_v59, %v2222_v60  ;;  %v2272_v18 = vadd.f32 %v2264_v56, %v2254_v63  ;;  %v2255_v23 = vadd.f32 %v2238_v29, %v2218_v36  ;;  %2021 = vst.msk [vmem:[#allocation3 + $0x48] sm:$0x1] %vm2017_vm6, %v4876_v24  ;;  %v2224_v37 = vld [vmem:[#allocation2 + $0x182] ss:$2 sm:$0xff] }
 0x27d   : > { %2022 = vst.msk [vmem:[#allocation3 + $0x60] sm:$0x1] %vm2017_vm6, %v4876_v24  ;;  %2018 = vst.msk [vmem:[#allocation3] sm:$0x1] %vm2017_vm6, %v4876_v24  ;;  %v2271_v50 = vadd.f32 %v2263_v46, %v4620_v34  ;;  %v2258_v51 = vadd.f32 %v2241_v40, %v2224_v37  ;;  %v3265_v44 = vld [vmem:[%s3364_s20 + $0x8] sm:$0xff]   ;;  %v1741_v47 = vunpack.c.h.bf16 %v3268_v27  ;;  %v3269_v38 = vld [vmem:[%s3364_s20 + $0x20] sm:$0xff]  }
 0x27e   : > { %3259 = vrcp.f32 %v2576_v11  ;;  %v3256_v33 = vpop.eup %3255  ;;  %2019 = vst.msk [vmem:[#allocation3 + $0x18] sm:$0x1] %vm2017_vm6, %v4876_v24  ;;  %2023 = vst.msk [vmem:[#allocation3 + $0x78] sm:$0x1] %vm2017_vm6, %v4876_v24  ;;  %v2266_v16 = vadd.f32 %v2257_v31, %v2256_v53  ;;  %1942 = vrot.lane.b32.xlu0 %v4543_v3, %s3290_s11  ;;  %v2265_v26 = vadd.f32 %v2255_v23, %v2254_v63  ;;  %v1743_v56 = vunpack.c.h.bf16 %v3269_v38  ;;  %v3270_v63 = vld [vmem:[%s3364_s20 + $0x28] sm:$0xff]   ;;  %v3271_v36 = vld [vmem:[%s3364_s20 + $0x30] sm:$0xff]  }
 0x27f   : > { %3261 = vrcp.f32 %v2575_v54  ;;  %2024 = vst.msk [vmem:[#allocation3 + $0x90] sm:$0x1] %vm2017_vm6, %v4876_v24  ;;  %2025 = vst.msk [vmem:[#allocation3 + $0xa8] sm:$0x1] %vm2017_vm6, %v4876_v24  ;;  %v2590_v41 = vmul.f32 %v3256_v33, %v2272_v18  ;;  %v3258_v10 = vpop.eup %3257  ;;  %1948 = vrot.lane.b32.xlu1 %v4568_v32, %s3290_s11  ;;  %v1742_v21 = vunpack.c.l.bf16 %v3269_v38  ;;  %v1745_v46 = vunpack.c.h.bf16 %v3270_v63 }
 0x280   : > { %2026 = vst.msk [vmem:[#allocation3 + $0xc0] sm:$0x1] %vm2017_vm6, %v4876_v24  ;;  %2027 = vst.msk [vmem:[#allocation3 + $0xd8] sm:$0x1] %vm2017_vm6, %v4876_v24  ;;  %v2589_v45 = vmul.f32 %v3258_v10, %v2271_v50  ;;  %v2274_v28 = vadd.f32 %v2266_v16, %v2258_v51  ;;  %v2273_v3 = vadd.f32 %v2265_v26, %v2256_v53  ;;  %v1744_v53 = vunpack.c.l.bf16 %v3270_v63  ;;  %v3272_v50 = vld [vmem:[%s3364_s20 + $0x38] sm:$0xff]   ;;  %v3273_v51 = vld [vmem:[%s3364_s20 + $0x40] sm:$0xff]  }
 0x281   : > { %2028 = vst.msk [vmem:[#allocation3 + $0xf0] sm:$0x1] %vm2017_vm6, %v4876_v24  ;;  %2029 = vst.msk [vmem:[#allocation3 + $0x108] sm:$0x1] %vm2017_vm6, %v4876_v24  ;;  %v2598_v0 = vpack.c.bf16 %v2590_v41, %v2590_v41  ;;  %v1747_v18 = vunpack.c.h.bf16 %v3271_v36  ;;  %v1748_v37 = vunpack.c.l.bf16 %v3272_v50 }
 0x282   : > { %2030 = vst.msk [vmem:[#allocation3 + $0x120] sm:$0x1] %vm2017_vm6, %v4876_v24  ;;  %2031 = vst.msk [vmem:[#allocation3 + $0x138] sm:$0x1] %vm2017_vm6, %v4876_v24  ;;  %v2597_v13 = vpack.c.bf16 %v2589_v45, %v2589_v45  ;;  %1946 = vrot.lane.b32.xlu0 %v4555_v62, %s3290_s11  ;;  %v1736_v62 = vunpack.c.l.bf16 %v3265_v44 }
 0x283   : > { %2032 = vst.msk [vmem:[#allocation3 + $0x150] sm:$0x1] %vm2017_vm6, %v4876_v24  ;;  %2033 = vst.msk [vmem:[#allocation3 + $0x168] sm:$0x1] %vm2017_vm6, %v4876_v24  ;;  %2620 = vrot.lane.b32.xlu1 %v4584_v55, %s3290_s11 }
 0x284   : > { %2034 = vst.msk [vmem:[#allocation3 + $0x180] sm:$0x1] %vm2017_vm6, %v4876_v24  ;;  %v1746_v24 = vunpack.c.l.bf16 %v3271_v36 }
 0x285   : > { %2607 = vst.msk [vmem:[%s4599_s15 + $0x14] sm:$0xf] %vm2601_vm5, %v2598_v0  ;;  %2606 = vst.msk [vmem:[%s4599_s15 + $0x10] sm:$0xf] %vm2601_vm5, %v2597_v13  ;;  %v1751_v13 = vunpack.c.h.bf16 %v3273_v51 }
 0x286   : > { %2618 = vrot.lane.b32.xlu0 %v4576_v6, %s3290_s11  ;;  %v1891_v55 = vpop.permute.xlu1 %1890  ;;  %v3266_v6 = vld [vmem:[%s3364_s20] sm:$0xff]  }
 0x287   : > { %2624 = vrot.lane.b32.xlu1 %v4622_v2, %s3290_s11  ;;  %v1984_v34 = vmul.f32 %v1891_v55, %v1736_v62  ;;  %v1734_v35 = vunpack.c.l.bf16 %v3266_v6  ;;  %v1735_v5 = vunpack.c.h.bf16 %v3266_v6  ;;  %v3267_v2 = vld [vmem:[%s3364_s20 + $0x10] sm:$0xff]  }
 0x288   : > { %v3260_v7 = vpop.eup %3259  ;;  %v1739_v39 = vunpack.c.h.bf16 %v3267_v2  ;;  %v1738_v57 = vunpack.c.l.bf16 %v3267_v2  ;;  %v3275_v6 = vld [vmem:[%s3364_s20 + $0x50] sm:$0xff]  }
 0x289   : > { %v3262_v9 = vpop.eup %3261  ;;  %v2592_v32 = vmul.f32 %v3260_v7, %v2274_v28  ;;  %2039 = vst.msk [vmem:[#allocation3 + $0x31] sm:$0xff] %vm487_vm0, %v1984_v34 }
 0x28a   : > { %v2591_v1 = vmul.f32 %v3262_v9, %v2273_v3  ;;  %2622 = vrot.lane.b32.xlu0 %v4616_v15, %s3290_s11  ;;  %v1737_v15 = vunpack.c.h.bf16 %v3265_v44 }
 0x28b   : > { %v2600_v25 = vpack.c.bf16 %v2592_v32, %v2592_v32  ;;  %2628 = vrot.lane.b32.xlu1 %v3256_v33, %s3290_s11 }
 0x28c   : > { %v2599_v8 = vpack.c.bf16 %v2591_v1, %v2591_v1  ;;  %v3274_v1 = vld [vmem:[%s3364_s20 + $0x48] sm:$0xff]  }
 0x28d   : > { %2609 = vst.msk [vmem:[%s4599_s15 + $0x1c] sm:$0xf] %vm2601_vm5, %v2600_v25  ;;  %v1887_v52 = vpop.permute.xlu0 %1886  ;;  %v1753_v25 = vunpack.c.h.bf16 %v3274_v1  ;;  %v1752_v55 = vunpack.c.l.bf16 %v3274_v1 }
 0x28e   : > { %2608 = vst.msk [vmem:[%s4599_s15 + $0x18] sm:$0xf] %vm2601_vm5, %v2599_v8  ;;  %2626 = vrot.lane.b32.xlu0 %v3258_v10, %s3290_s11  ;;  %v1982_v61 = vmul.f32 %v1887_v52, %v1734_v35  ;;  %v1749_v10 = vunpack.c.h.bf16 %v3272_v50  ;;  %v1755_v35 = vunpack.c.h.bf16 %v3275_v6  ;;  %v2343_v50 = vld [vmem:[#allocation3 + $0x2] ss:$2 sm:$0xff] }
 0x28f   : > { %2632 = vrot.lane.b32.xlu1 %v3260_v7, %s3290_s11 }
 0x290   : > { %2037 = vst.msk [vmem:[#allocation3 + $0x19] sm:$0xff] %vm487_vm0, %v1982_v61 }
 0x292   : > { %2630 = vrot.lane.b32.xlu0 %v3262_v9, %s3290_s11  ;;  %v1750_v9 = vunpack.c.l.bf16 %v3273_v51 }
 0x294   : > { %v1893_v12 = vpop.permute.xlu1 %1892 }
 0x295   : > { %v1985_v49 = vmul.f32 %v1893_v12, %v1737_v15  ;;  %v1754_v12 = vunpack.c.l.bf16 %v3275_v6 }
 0x297   : > { %2040 = vst.msk [vmem:[#allocation3 + $0x39] sm:$0xff] %vm487_vm0, %v1985_v49 }
 0x29d   : > { %v1889_v58 = vpop.permute.xlu0 %1888 }
 0x29e   : > { %v1983_v20 = vmul.f32 %v1889_v58, %v1735_v5  ;;  %v1897_v14 = vpop.permute.xlu1 %1896  ;;  %v3276_v5 = vld [vmem:[%s3364_s20 + $0x58] sm:$0xff]  }
 0x29f   : > { %v1987_v22 = vmul.f32 %v1897_v14, %v1739_v39  ;;  %v1757_v2 = vunpack.c.h.bf16 %v3276_v5  ;;  %v1756_v14 = vunpack.c.l.bf16 %v3276_v5 }
 0x2a0   : > { %2038 = vst.msk [vmem:[#allocation3 + $0x21] sm:$0xff] %vm487_vm0, %v1983_v20 }
 0x2a1   : > { %2042 = vst.msk [vmem:[#allocation3 + $0x51] sm:$0xff] %vm487_vm0, %v1987_v22 }
 0x2a7   : > { %v2277_v63 = vld [vmem:[#allocation3 + $0x18] ss:$2 sm:$0xff] }
 0x2b3   : > { %v1895_v42 = vpop.permute.xlu0 %1894 }
 0x2b4   : > { %v1986_v17 = vmul.f32 %v1895_v42, %v1738_v57  ;;  %v1901_v43 = vpop.permute.xlu1 %1900  ;;  %v3277_v57 = vld [vmem:[%s3364_s20 + $0x60] sm:$0xff]  }
 0x2b5   : > { %v1989_v59 = vmul.f32 %v1901_v43, %v1741_v47  ;;  %v1759_v27 = vunpack.c.h.bf16 %v3277_v57  ;;  %v1758_v43 = vunpack.c.l.bf16 %v3277_v57 }
 0x2b6   : > { %2041 = vst.msk [vmem:[#allocation3 + $0x49] sm:$0xff] %vm487_vm0, %v1986_v17 }
 0x2b7   : > { %2044 = vst.msk [vmem:[#allocation3 + $0x69] sm:$0xff] %vm487_vm0, %v1989_v59 }
 0x2bd   : > { %v2349_v51 = vld [vmem:[#allocation3 + $0x4a] ss:$2 sm:$0xff] }
 0x2c0   : > { %v1899_v11 = vpop.permute.xlu0 %1898 }
 0x2c1   : > { %v1988_v29 = vmul.f32 %v1899_v11, %v1740_v4  ;;  %v1905_v19 = vpop.permute.xlu1 %1904  ;;  %v3278_v4 = vld [vmem:[%s3364_s20 + $0x68] sm:$0xff]   ;;  %v2315_v11 = vld [vmem:[#allocation3 + $0x49] ss:$2 sm:$0xff] }
 0x2c2   : > { %v1991_v54 = vmul.f32 %v1905_v19, %v1743_v56  ;;  %v1761_v38 = vunpack.c.h.bf16 %v3278_v4  ;;  %v2281_v56 = vld [vmem:[#allocation3 + $0x48] ss:$2 sm:$0xff]  ;;  %v2309_v19 = vld [vmem:[#allocation3 + $0x1] ss:$2 sm:$0xff]  ;;  %v1760_v36 = vunpack.c.l.bf16 %v3278_v4 }
 0x2c3   : > { %2043 = vst.msk [vmem:[#allocation3 + $0x61] sm:$0xff] %vm487_vm0, %v1988_v29  ;;  %v2275_v29 = vld [vmem:[#allocation3] ss:$2 sm:$0xff] }
 0x2c4   : > { %2046 = vst.msk [vmem:[#allocation3 + $0x81] sm:$0xff] %vm487_vm0, %v1991_v54  ;;  %v1903_v30 = vpop.permute.xlu0 %1902  ;;  %v2313_v54 = vld [vmem:[#allocation3 + $0x31] ss:$2 sm:$0xff] }
 0x2c5   : > { %v1990_v48 = vmul.f32 %v1903_v30, %v1742_v21  ;;  %v1909_v60 = vpop.permute.xlu1 %1908  ;;  %v2279_v21 = vld [vmem:[#allocation3 + $0x30] ss:$2 sm:$0xff] }
 0x2c6   : > { %v1993_v31 = vmul.f32 %v1909_v60, %v1745_v46  ;;  %v2311_v60 = vld [vmem:[#allocation3 + $0x19] ss:$2 sm:$0xff] }
 0x2c7   : > { %2045 = vst.msk [vmem:[#allocation3 + $0x79] sm:$0xff] %vm487_vm0, %v1990_v48 }
 0x2c8   : > { %2048 = vst.msk [vmem:[#allocation3 + $0x99] sm:$0xff] %vm487_vm0, %v1993_v31  ;;  %v1907_v23 = vpop.permute.xlu0 %1906 }
 0x2c9   : > { %v1992_v33 = vmul.f32 %v1907_v23, %v1744_v53  ;;  %v1913_v40 = vpop.permute.xlu1 %1912 }
 0x2ca   : > { %v1995_v41 = vmul.f32 %v1913_v40, %v1747_v18  ;;  %v2283_v30 = vld [vmem:[#allocation3 + $0x60] ss:$2 sm:$0xff]  ;;  %v2317_v48 = vld [vmem:[#allocation3 + $0x61] ss:$2 sm:$0xff]  ;;  %v2379_v18 = vadd.f32 %v2315_v11, %v2281_v56 }
 0x2cb   : > { %2047 = vst.msk [vmem:[#allocation3 + $0x91] sm:$0xff] %vm487_vm0, %v1992_v33  ;;  %v3279_v33 = vld [vmem:[%s3364_s20 + $0x70] sm:$0xff]  }
 0x2cc   : > { %2050 = vst.msk [vmem:[#allocation3 + $0xb1] sm:$0xff] %vm487_vm0, %v1995_v41  ;;  %v1911_v16 = vpop.permute.xlu0 %1910  ;;  %v1763_v40 = vunpack.c.h.bf16 %v3279_v33  ;;  %v2380_v41 = vadd.f32 %v2317_v48, %v2283_v30 }
 0x2cd   : > { %v1994_v0 = vmul.f32 %v1911_v16, %v1746_v24  ;;  %v1917_v45 = vpop.permute.xlu1 %1916  ;;  %v2378_v24 = vadd.f32 %v2313_v54, %v2279_v21  ;;  %v2377_v16 = vadd.f32 %v2311_v60, %v2277_v63 }
 0x2ce   : > { %v1997_v26 = vmul.f32 %v1917_v45, %v1749_v10  ;;  %v2376_v10 = vadd.f32 %v2309_v19, %v2275_v29 }
 0x2cf   : > { %2049 = vst.msk [vmem:[#allocation3 + $0xa9] sm:$0xff] %vm487_vm0, %v1994_v0 }
 0x2d0   : > { %2052 = vst.msk [vmem:[#allocation3 + $0xc9] sm:$0xff] %vm487_vm0, %v1997_v26  ;;  %v1915_v28 = vpop.permute.xlu0 %1914  ;;  %v2347_v26 = vld [vmem:[#allocation3 + $0x32] ss:$2 sm:$0xff] }
 0x2d1   : > { %v1996_v7 = vmul.f32 %v1915_v28, %v1748_v37  ;;  %v1921_v3 = vpop.permute.xlu1 %1920 }
 0x2d2   : > { %v1999_v32 = vmul.f32 %v1921_v3, %v1751_v13  ;;  %v2345_v13 = vld [vmem:[#allocation3 + $0x1a] ss:$2 sm:$0xff] }
 0x2d3   : > { %2051 = vst.msk [vmem:[#allocation3 + $0xc1] sm:$0xff] %vm487_vm0, %v1996_v7  ;;  %v2287_v28 = vld [vmem:[#allocation3 + $0x90] ss:$2 sm:$0xff] }
 0x2d4   : > { %2054 = vst.msk [vmem:[#allocation3 + $0xe1] sm:$0xff] %vm487_vm0, %v1999_v32  ;;  %v1919_v8 = vpop.permute.xlu0 %1918  ;;  %v2396_v32 = vadd.f32 %v2379_v18, %v2349_v51  ;;  %v2355_v63 = vld [vmem:[#allocation3 + $0x92] ss:$2 sm:$0xff] }
 0x2d5   : > { %v1998_v44 = vmul.f32 %v1919_v8, %v1750_v9  ;;  %v1925_v62 = vpop.permute.xlu1 %1924  ;;  %v1762_v9 = vunpack.c.l.bf16 %v3279_v33 }
 0x2d6   : > { %v2001_v34 = vmul.f32 %v1925_v62, %v1753_v25  ;;  %v2289_v0 = vld [vmem:[#allocation3 + $0xa8] ss:$2 sm:$0xff]  ;;  %v2323_v45 = vld [vmem:[#allocation3 + $0xa9] ss:$2 sm:$0xff] }
 0x2d7   : > { %2053 = vst.msk [vmem:[#allocation3 + $0xd9] sm:$0xff] %vm487_vm0, %v1998_v44  ;;  %v2321_v25 = vld [vmem:[#allocation3 + $0x91] ss:$2 sm:$0xff]  ;;  %v3280_v62 = vld [vmem:[%s3364_s20 + $0x78] sm:$0xff]   ;;  %v2383_v6 = vadd.f32 %v2323_v45, %v2289_v0 }
 0x2d8   : > { %2056 = vst.msk [vmem:[#allocation3 + $0xf9] sm:$0xff] %vm487_vm0, %v2001_v34  ;;  %v2351_v34 = vld [vmem:[#allocation3 + $0x62] ss:$2 sm:$0xff] }
 0x2da   : > { %v1923_v52 = vpop.permute.xlu0 %1922  ;;  %v2291_v1 = vld [vmem:[#allocation3 + $0xc0] ss:$2 sm:$0xff]  ;;  %v2325_v8 = vld [vmem:[#allocation3 + $0xc1] ss:$2 sm:$0xff] }
 0x2db   : > { %v2000_v61 = vmul.f32 %v1923_v52, %v1752_v55  ;;  %v1929_v15 = vpop.permute.xlu1 %1928  ;;  %v1765_v55 = vunpack.c.h.bf16 %v3280_v62  ;;  %v2319_v52 = vld [vmem:[#allocation3 + $0x79] ss:$2 sm:$0xff] }
 0x2dc   : > { %v2003_v49 = vmul.f32 %v1929_v15, %v1755_v35  ;;  %v2285_v35 = vld [vmem:[#allocation3 + $0x78] ss:$2 sm:$0xff]  ;;  %v2397_v15 = vadd.f32 %v2380_v41, %v2351_v34 }
 0x2dd   : > { %2055 = vst.msk [vmem:[#allocation3 + $0xf1] sm:$0xff] %vm487_vm0, %v2000_v61  ;;  %v2395_v61 = vadd.f32 %v2378_v24, %v2347_v26 }
 0x2de   : > { %2058 = vst.msk [vmem:[#allocation3 + $0x111] sm:$0xff] %vm487_vm0, %v2003_v49  ;;  %v1927_v39 = vpop.permute.xlu0 %1926  ;;  %v2394_v49 = vadd.f32 %v2377_v16, %v2345_v13  ;;  %v2293_v29 = vld [vmem:[#allocation3 + $0xd8] ss:$2 sm:$0xff]  ;;  %v2327_v19 = vld [vmem:[#allocation3 + $0xd9] ss:$2 sm:$0xff] }
 0x2df   : > { %v2002_v58 = vmul.f32 %v1927_v39, %v1754_v12  ;;  %v1933_v20 = vpop.permute.xlu1 %1932  ;;  %v2393_v12 = vadd.f32 %v2376_v10, %v2343_v50  ;;  %v2385_v24 = vadd.f32 %v2327_v19, %v2293_v29 }
 0x2e0   : > { %v2005_v22 = vmul.f32 %v1933_v20, %v1757_v2  ;;  %v2382_v20 = vadd.f32 %v2321_v25, %v2287_v28 }
 0x2e1   : > { %2057 = vst.msk [vmem:[#allocation3 + $0x109] sm:$0xff] %vm487_vm0, %v2002_v58  ;;  %v2357_v58 = vld [vmem:[#allocation3 + $0xaa] ss:$2 sm:$0xff]  ;;  %v2410_v54 = vadd.f32 %v2394_v49, %v2393_v12 }
 0x2e2   : > { %2060 = vst.msk [vmem:[#allocation3 + $0x129] sm:$0xff] %vm487_vm0, %v2005_v22  ;;  %v2400_v56 = vadd.f32 %v2383_v6, %v2357_v58  ;;  %v2399_v48 = vadd.f32 %v2382_v20, %v2355_v63 }
 0x2e3   : > { %v1931_v47 = vpop.permute.xlu0 %1930  ;;  %v1937_v17 = vpop.permute.xlu1 %1936  ;;  %v2418_v45 = vadd.f32 %v2410_v54, %v2395_v61 }
 0x2e4   : > { %v2004_v42 = vmul.f32 %v1931_v47, %v1756_v14  ;;  %v2007_v59 = vmul.f32 %v1937_v17, %v1759_v27  ;;  %v2384_v14 = vadd.f32 %v2325_v8, %v2291_v1  ;;  %v2295_v22 = vld [vmem:[#allocation3 + $0xf0] ss:$2 sm:$0xff]  ;;  %v1764_v47 = vunpack.c.l.bf16 %v3280_v62 }
 0x2e5   : > { %v2381_v17 = vadd.f32 %v2319_v52, %v2285_v35  ;;  %v2413_v50 = vadd.f32 %v2400_v56, %v2399_v48 }
 0x2e6   : > { %2059 = vst.msk [vmem:[#allocation3 + $0x121] sm:$0xff] %vm487_vm0, %v2004_v42  ;;  %2062 = vst.msk [vmem:[#allocation3 + $0x141] sm:$0xff] %vm487_vm0, %v2007_v59  ;;  %v2411_v42 = vadd.f32 %v2396_v32, %v2395_v61  ;;  %v2329_v59 = vld [vmem:[#allocation3 + $0xf1] ss:$2 sm:$0xff] }
 0x2e7   : > { %v1935_v46 = vpop.permute.xlu0 %1934  ;;  %v1941_v31 = vpop.permute.xlu1 %1940 }
 0x2e8   : > { %v2006_v53 = vmul.f32 %v1935_v46, %v1758_v43  ;;  %v2009_v23 = vmul.f32 %v1941_v31, %v1761_v38  ;;  %v2297_v5 = vld [vmem:[#allocation3 + $0x108] ss:$2 sm:$0xff]  ;;  %v2331_v2 = vld [vmem:[#allocation3 + $0x109] ss:$2 sm:$0xff]  ;;  %v2419_v21 = vadd.f32 %v2411_v42, %v2397_v15  ;;  %v2386_v31 = vadd.f32 %v2329_v59, %v2295_v22 }
 0x2e9   : > { %v2387_v11 = vadd.f32 %v2331_v2, %v2297_v5  ;;  %v2359_v46 = vld [vmem:[#allocation3 + $0xc2] ss:$2 sm:$0xff] }
 0x2ea   : > { %2061 = vst.msk [vmem:[#allocation3 + $0x139] sm:$0xff] %vm487_vm0, %v2006_v53  ;;  %2064 = vst.msk [vmem:[#allocation3 + $0x159] sm:$0xff] %vm487_vm0, %v2009_v23  ;;  %v2401_v60 = vadd.f32 %v2384_v14, %v2359_v46  ;;  %v2353_v53 = vld [vmem:[#allocation3 + $0x7a] ss:$2 sm:$0xff] }
 0x2eb   : > { %v2398_v33 = vadd.f32 %v2381_v17, %v2353_v53 }
 0x2ec   : > { %v1939_v37 = vpop.permute.xlu0 %1938  ;;  %v2421_v28 = vadd.f32 %v2413_v50, %v2401_v60 }
 0x2ed   : > { %v2008_v7 = vmul.f32 %v1939_v37, %v1760_v36  ;;  %v1945_v3 = vpop.permute.xlu1 %1944  ;;  %v2299_v43 = vld [vmem:[#allocation3 + $0x120] ss:$2 sm:$0xff]  ;;  %v2333_v4 = vld [vmem:[#allocation3 + $0x121] ss:$2 sm:$0xff] }
 0x2ee   : > { %v2011_v44 = vmul.f32 %v1945_v3, %v1763_v40  ;;  %v2388_v36 = vadd.f32 %v2333_v4, %v2299_v43  ;;  %v2365_v40 = vld [vmem:[#allocation3 + $0x10a] ss:$2 sm:$0xff] }
 0x2ef   : > { %2063 = vst.msk [vmem:[#allocation3 + $0x151] sm:$0xff] %vm487_vm0, %v2008_v7  ;;  %v2404_v10 = vadd.f32 %v2387_v11, %v2365_v40  ;;  %v2363_v37 = vld [vmem:[#allocation3 + $0xf2] ss:$2 sm:$0xff]  ;;  %v2367_v26 = vld [vmem:[#allocation3 + $0x122] ss:$2 sm:$0xff] }
 0x2f0   : > { %2066 = vst.msk [vmem:[#allocation3 + $0x171] sm:$0xff] %vm487_vm0, %v2011_v44  ;;  %v1943_v39 = vpop.permute.xlu0 %1942  ;;  %v2403_v7 = vadd.f32 %v2386_v31, %v2363_v37  ;;  %v2405_v3 = vadd.f32 %v2388_v36, %v2367_v26  ;;  %v2412_v44 = vadd.f32 %v2398_v33, %v2397_v15 }
 0x2f1   : > { %v2010_v57 = vmul.f32 %v1943_v39, %v1762_v9  ;;  %v1949_v27 = vpop.permute.xlu1 %1948  ;;  %v2301_v16 = vld [vmem:[#allocation3 + $0x138] ss:$2 sm:$0xff]  ;;  %v2335_v0 = vld [vmem:[#allocation3 + $0x139] ss:$2 sm:$0xff] }
 0x2f2   : > { %v2013_v38 = vmul.f32 %v1949_v27, %v1765_v55  ;;  %v2361_v9 = vld [vmem:[#allocation3 + $0xda] ss:$2 sm:$0xff]  ;;  %v2389_v55 = vadd.f32 %v2335_v0, %v2301_v16  ;;  %v2415_v6 = vadd.f32 %v2404_v10, %v2403_v7  ;;  %v2420_v12 = vadd.f32 %v2412_v44, %v2399_v48 }
 0x2f3   : > { %2065 = vst.msk [vmem:[#allocation3 + $0x169] sm:$0xff] %vm487_vm0, %v2010_v57  ;;  %v2402_v62 = vadd.f32 %v2385_v24, %v2361_v9  ;;  %v2369_v14 = vld [vmem:[#allocation3 + $0x13a] ss:$2 sm:$0xff] }
 0x2f4   : > { %2068 = vst.msk [vmem:[#allocation3 + $0x189] sm:$0xff] %vm487_vm0, %v2013_v38  ;;  %v1947_v30 = vpop.permute.xlu0 %1946  ;;  %v2423_v58 = vadd.f32 %v2415_v6, %v2405_v3 }
 0x2f5   : > { %v2012_v18 = vmul.f32 %v1947_v30, %v1764_v47  ;;  %v2621_v23 = vpop.permute.xlu1 %2620  ;;  %v2414_v57 = vadd.f32 %v2402_v62, %v2401_v60  ;;  %v2406_v47 = vadd.f32 %v2389_v55, %v2369_v14 }
 0x2f6   : > { %v2643_v41 = vmul.f32 %v2621_v23, %v2419_v21  ;;  %v2303_v32 = vld [vmem:[#allocation3 + $0x150] ss:$2 sm:$0xff]  ;;  %v2337_v1 = vld [vmem:[#allocation3 + $0x151] ss:$2 sm:$0xff] }
 0x2f7   : > { %2067 = vst.msk [vmem:[#allocation3 + $0x181] sm:$0xff] %vm487_vm0, %v2012_v18  ;;  %v2390_v49 = vadd.f32 %v2337_v1, %v2303_v32  ;;  %v2371_v59 = vld [vmem:[#allocation3 + $0x152] ss:$2 sm:$0xff]  ;;  %v2422_v38 = vadd.f32 %v2414_v57, %v2403_v7  ;;  %v2416_v30 = vadd.f32 %v2406_v47, %v2405_v3 }
 0x2f8   : > { %v2651_v51 = vpack.c.bf16 %v2643_v41, %v2643_v41  ;;  %v2619_v13 = vpop.permute.xlu0 %2618 }
 0x2f9   : > { %v2642_v25 = vmul.f32 %v2619_v13, %v2418_v45  ;;  %v2625_v8 = vpop.permute.xlu1 %2624  ;;  %v2407_v11 = vadd.f32 %v2390_v49, %v2371_v59 }
 0x2fa   : > { %2660 = vst.msk [vmem:[%s4756_s17 + $0x4] sm:$0xf] %vm2658_vm7, %v2651_v51  ;;  %v2645_v34 = vmul.f32 %v2625_v8, %v2421_v28  ;;  %v2305_v35 = vld [vmem:[#allocation3 + $0x168] ss:$2 sm:$0xff]  ;;  %v2339_v52 = vld [vmem:[#allocation3 + $0x169] ss:$2 sm:$0xff] }
 0x2fb   : > { %v2650_v61 = vpack.c.bf16 %v2642_v25, %v2642_v25  ;;  %v2391_v5 = vadd.f32 %v2339_v52, %v2305_v35  ;;  %v2373_v20 = vld [vmem:[#allocation3 + $0x16a] ss:$2 sm:$0xff]  ;;  %v2424_v31 = vadd.f32 %v2416_v30, %v2407_v11 }
 0x2fc   : > { %v2653_v2 = vpack.c.bf16 %v2645_v34, %v2645_v34  ;;  %v2623_v39 = vpop.permute.xlu0 %2622 }
 0x2fd   : > { %2659 = vst.msk [vmem:[%s4756_s17] sm:$0xf] %vm2658_vm7, %v2650_v61  ;;  %v2644_v15 = vmul.f32 %v2623_v39, %v2420_v12  ;;  %v2629_v22 = vpop.permute.xlu1 %2628  ;;  %v2408_v27 = vadd.f32 %v2391_v5, %v2373_v20 }
 0x2fe   : > { %2662 = vst.msk [vmem:[%s4756_s17 + $0xc] sm:$0xf] %vm2658_vm7, %v2653_v2  ;;  %v2647_v42 = vmul.f32 %v2629_v22, %v2423_v58  ;;  %v2307_v17 = vld [vmem:[#allocation3 + $0x180] ss:$2 sm:$0xff]  ;;  %v2341_v43 = vld [vmem:[#allocation3 + $0x181] ss:$2 sm:$0xff] }
 0x2ff   : > { %v2652_v4 = vpack.c.bf16 %v2644_v15, %v2644_v15  ;;  %v2392_v56 = vadd.f32 %v2341_v43, %v2307_v17  ;;  %v2375_v21 = vld [vmem:[#allocation3 + $0x182] ss:$2 sm:$0xff]  ;;  %v2417_v46 = vadd.f32 %v2408_v27, %v2407_v11 }
 0x300   : > { %v2655_v29 = vpack.c.bf16 %v2647_v42, %v2647_v42  ;;  %v2627_v19 = vpop.permute.xlu0 %2626 }
 0x301   : > { %2661 = vst.msk [vmem:[%s4756_s17 + $0x8] sm:$0xf] %vm2658_vm7, %v2652_v4  ;;  %v2646_v54 = vmul.f32 %v2627_v19, %v2422_v38  ;;  %v2409_v63 = vadd.f32 %v2392_v56, %v2375_v21  ;;  %v2633_v48 = vpop.permute.xlu1 %2632 }
 0x302   : > { %2664 = vst.msk [vmem:[%s4756_s17 + $0x14] sm:$0xf] %vm2658_vm7, %v2655_v29 }
 0x303   : > { %v2654_v60 = vpack.c.bf16 %v2646_v54, %v2646_v54  ;;  %v2425_v53 = vadd.f32 %v2417_v46, %v2409_v63 }
 0x304   : > { %v2631_v36 = vpop.permute.xlu0 %2630 }
 0x305   : > { %2663 = vst.msk [vmem:[%s4756_s17 + $0x10] sm:$0xf] %vm2658_vm7, %v2654_v60  ;;  %v2649_v18 = vmul.f32 %v2633_v48, %v2425_v53  ;;  %v2648_v23 = vmul.f32 %v2631_v36, %v2424_v31 }
 0x307   : > { %v2657_v33 = vpack.c.bf16 %v2649_v18, %v2649_v18  ;;  %v2656_v40 = vpack.c.bf16 %v2648_v23, %v2648_v23 }
 0x309   : > { %2666 = vst.msk [vmem:[%s4756_s17 + $0x1c] sm:$0xf] %vm2658_vm7, %v2657_v33  ;;  %2665 = vst.msk [vmem:[%s4756_s17 + $0x18] sm:$0xf] %vm2658_vm7, %v2656_v40 }
 0x30a PF: > { %s20_s30 = sadd.s32 1, %s3287_s30  }
 0x30b   : > { %p17_p4 = scmp.ge.s32.totalorder %s20_s30, 4  }
 0x30d   :  { %19 = sbr.rel (!%p17_p4) target bundleno = 1 (0x1), region = 250 }

// kernel: bottleneck_forward.9
= control target key start
LH: loop header
LB: loop body
LE: loop exit
PB: predicated region body
PF: predicated region fallthrough
CT: control target
= control target key end

     0   :  { %s744_s0 = inlined_call_operand.vmem [shape: bf16[128,128], index: 0, kind: input, shape index: {}]   ;;  %s745_s1 = inlined_call_operand.vmem [shape: bf16[128,128], index: 1, kind: input, shape index: {}]   ;;  %s746_s2 = inlined_call_operand.vmem [shape: f32[1,128], index: 2, kind: input, shape index: {}]   ;;  %s747_s3 = inlined_call_operand.vmem [shape: f32[1,128], index: 3, kind: input, shape index: {}]   ;;  %s748_s4 = inlined_call_operand.vmem [shape: bf16[128,128], index: 4, kind: input, shape index: {}]   ;;  %s749_s5 = inlined_call_operand.hbm [shape: f32[128,128], index: 5, kind: output, shape index: {}]  }
   0x1   :  { %v513_v0 = vld [vmem:[%s745_s1] sm:$0xff]   ;;  %v514_v1 = vld [vmem:[%s745_s1 + $0x8] sm:$0xff]   ;;  %v515_v2 = vld [vmem:[%s745_s1 + $0x10] sm:$0xff]  }
   0x2   :  { %462 = vmatprep.subr.bf16.mxu0 %v513_v0  ;;  %494 = vmatprep.subr.bf16.mxu1 %v513_v0  ;;  %v516_v3 = vld [vmem:[%s745_s1 + $0x18] sm:$0xff]   ;;  %v521_v4 = vld [vmem:[%s744_s0] sm:$0xff]   ;;  %v518_v7 = vld [vmem:[%s745_s1 + $0x28] sm:$0xff]  }
   0x3   :  { %463 = vmatpush3.bf16.msra.mxu0 %v513_v0  ;;  %502 = vmatpush3.bf16.msra.mxu1 %v513_v0  ;;  %v522_v5 = vld [vmem:[%s744_s0 + $0x20] sm:$0xff]  }
   0x4   :  { %464 = vmatprep.subr.bf16.mxu0 %v514_v1  ;;  %495 = vmatprep.subr.bf16.mxu1 %v514_v1  ;;  %v517_v6 = vld [vmem:[%s745_s1 + $0x20] sm:$0xff]  }
   0x5   :  { %478 = vmatprep.mubr.bf16.mxu0 %v521_v4  ;;  %486 = vmatprep.mubr.bf16.mxu1 %v522_v5 }
   0x7   :  { %465 = vmatpush3.bf16.msra.mxu0 %v514_v1  ;;  %503 = vmatpush3.bf16.msra.mxu1 %v514_v1 }
   0x8   :  { %466 = vmatprep.subr.bf16.mxu0 %v515_v2  ;;  %496 = vmatprep.subr.bf16.mxu1 %v515_v2 }
   0xb   :  { %467 = vmatpush3.bf16.msra.mxu0 %v515_v2  ;;  %504 = vmatpush3.bf16.msra.mxu1 %v515_v2 }
   0xc   :  { %468 = vmatprep.subr.bf16.mxu0 %v516_v3  ;;  %497 = vmatprep.subr.bf16.mxu1 %v516_v3 }
   0xf   :  { %469 = vmatpush3.bf16.msra.mxu0 %v516_v3  ;;  %505 = vmatpush3.bf16.msra.mxu1 %v516_v3 }
  0x10   :  { %470 = vmatprep.subr.bf16.mxu0 %v517_v6  ;;  %498 = vmatprep.subr.bf16.mxu1 %v517_v6 }
  0x11   :  { %10 = vsyncpa [#allocation3], 0  ;;  %v519_v8 = vld [vmem:[%s745_s1 + $0x30] sm:$0xff]   ;;  %v520_v9 = vld [vmem:[%s745_s1 + $0x38] sm:$0xff]  }
  0x12   :  { %v523_v10 = vld [vmem:[%s744_s0 + $0x8] sm:$0xff]   ;;  %v525_v12 = vld [vmem:[%s744_s0 + $0x10] sm:$0xff]   ;;  %v527_v14 = vld [vmem:[%s744_s0 + $0x18] sm:$0xff]  }
  0x13   :  { %471 = vmatpush3.bf16.msra.mxu0 %v517_v6  ;;  %506 = vmatpush3.bf16.msra.mxu1 %v517_v6  ;;  %v524_v11 = vld [vmem:[%s744_s0 + $0x28] sm:$0xff]   ;;  %v526_v13 = vld [vmem:[%s744_s0 + $0x30] sm:$0xff]   ;;  %v528_v15 = vld [vmem:[%s744_s0 + $0x38] sm:$0xff]  }
  0x14   :  { %472 = vmatprep.subr.bf16.mxu0 %v518_v7  ;;  %499 = vmatprep.subr.bf16.mxu1 %v518_v7  ;;  %v439_v16 = vld [vmem:[%s748_s4 + $0x8] sm:$0xff]   ;;  %v408_v18 = vld [vmem:[%s748_s4] sm:$0xff]   ;;  %v649_v20 = vld [vmem:[%s748_s4 + $0x18] sm:$0xff]  }
  0x15   :  { %v443_v17 = vld [vmem:[%s748_s4 + $0x28] sm:$0xff]   ;;  %v442_v19 = vld [vmem:[%s748_s4 + $0x20] sm:$0xff]   ;;  %v654_v21 = vld [vmem:[%s748_s4 + $0x38] sm:$0xff]   ;;  %v413_v25 = vunpack.c.l.bf16 %v439_v16  ;;  %v409_v27 = vunpack.c.l.bf16 %v408_v18  ;;  %v414_v29 = vunpack.c.h.bf16 %v439_v16  ;;  %v410_v31 = vunpack.c.h.bf16 %v408_v18 }
  0x16   :  { %v659_v22 = vld [vmem:[%s748_s4 + $0x10] sm:$0xff]   ;;  %v669_v24 = vld [vmem:[%s746_s2] ss:$0 sm:$0xff]  ;;  %v429_v26 = vunpack.c.l.bf16 %v443_v17  ;;  %v425_v28 = vunpack.c.l.bf16 %v442_v19  ;;  %v430_v30 = vunpack.c.h.bf16 %v443_v17  ;;  %v426_v32 = vunpack.c.h.bf16 %v442_v19  ;;  %s553_s2 = smov [#allocation2]  }
  0x17   :  { %473 = vmatpush3.bf16.msra.mxu0 %v518_v7  ;;  %507 = vmatpush3.bf16.msra.mxu1 %v518_v7  ;;  %v664_v23 = vld [vmem:[%s748_s4 + $0x30] sm:$0xff]   ;;  %v674_v34 = vld [vmem:[%s747_s3] ss:$0 sm:$0xff]  ;;  %v421_v36 = vunpack.c.l.bf16 %v649_v20  ;;  %v437_v37 = vunpack.c.l.bf16 %v654_v21  ;;  %v417_v38 = vunpack.c.l.bf16 %v659_v22  ;;  %v422_v44 = vunpack.c.h.bf16 %v649_v20  ;;  %s378_s3 = sshll.u32 %s553_s2, 4  ;;  %s379_s3 = int_to_ptr.vmem [resolvable:$true] %s378_s3 }
  0x18   :  { %474 = vmatprep.subr.bf16.mxu0 %v519_v8  ;;  %500 = vmatprep.subr.bf16.mxu1 %v519_v8  ;;  %v433_v39 = vunpack.c.l.bf16 %v664_v23  ;;  %v438_v45 = vunpack.c.h.bf16 %v654_v21  ;;  %v418_v50 = vunpack.c.h.bf16 %v659_v22  ;;  %v434_v51 = vunpack.c.h.bf16 %v664_v23  ;;  %s529_s4 = scalar_lea.vmem %s379_s3, 2048  ;;  %p534_p1 = scmp.lt.s32.totalorder %s379_s3, %s379_s3 }
  0x19   :  { %p530_p0 = scmp.ne.s32.totalorder %s379_s3, %s529_s4  ;;  %p535_p2 = scmp.lt.s32.totalorder %s529_s4, %s529_s4 }
  0x1b   :  { %475 = vmatpush3.bf16.msra.mxu0 %v519_v8  ;;  %508 = vmatpush3.bf16.msra.mxu1 %v519_v8  ;;  %p536_p3 = por %p535_p2, %p534_p1 }
  0x1c   :  { %476 = vmatprep.subr.bf16.mxu0 %v520_v9  ;;  %501 = vmatprep.subr.bf16.mxu1 %v520_v9 }
  0x1d   :  { %p537_p4 = pnand %p536_p3, %p530_p0 }
  0x1f   :  { %477 = vmatpush3.bf16.msra.mxu0 %v520_v9  ;;  %509 = vmatpush3.bf16.msra.mxu1 %v520_v9 }
  0x22   :  { %479 = vmatmul.mubr.bf16.vlgmr.msra.gmra.mrb[0].mxu0 %v523_v10  ;;  %487 = vmatmul.mubr.bf16.vlgmr.msra.gmra.mrb[0].mxu1 %v524_v11 }
  0x23   :  { %482 = vmatprep.mubr.bf16.mxu0 %v525_v12  ;;  %490 = vmatprep.mubr.bf16.mxu1 %v526_v13 }
  0x2a   :  { %483 = vmatmul.mubr.bf16.gmra.mrb[4].mxu0 %v527_v14  ;;  %491 = vmatmul.mubr.bf16.gmra.mrb[4].mxu1 %v528_v15 }
  0xf5   :  { %v480_v33 = vpop.f32.mrb[0].mxu0  ;;  %v488_v35 = vpop.f32.mrb[0].mxu1 }
  0xf6   :  { %v256_v40 = vmul.f32 %v480_v33, %v669_v24  ;;  %v264_v41 = vmul.f32 %v488_v35, %v669_v24  ;;  %v184_v42 = vpop.f32.mrb[1].mxu0  ;;  %v216_v43 = vpop.f32.mrb[1].mxu1 }
  0xf7   :  { %v254_v46 = vmul.f32 %v669_v24, %v184_v42  ;;  %v262_v47 = vmul.f32 %v669_v24, %v216_v43  ;;  %v481_v48 = vpop.f32.mrb[2].mxu0  ;;  %v489_v49 = vpop.f32.mrb[2].mxu1 }
  0xf8   :  { %v279_v52 = vadd.f32 %v674_v34, %v256_v40  ;;  %v287_v53 = vadd.f32 %v674_v34, %v264_v41  ;;  %v257_v54 = vmul.f32 %v481_v48, %v669_v24  ;;  %v265_v55 = vmul.f32 %v489_v49, %v669_v24  ;;  %v187_v56 = vpop.f32.mrb[3].mxu0  ;;  %v219_v57 = vpop.f32.mrb[3].mxu1 }
  0xf9   :  { %v277_v58 = vadd.f32 %v674_v34, %v254_v46  ;;  %v285_v59 = vadd.f32 %v674_v34, %v262_v47  ;;  %v255_v60 = vmul.f32 %v669_v24, %v187_v56  ;;  %v263_v61 = vmul.f32 %v669_v24, %v219_v57 }
  0xfa   :  { %v327_v62 = vadd.f32 %v413_v25, %v279_v52  ;;  %v335_v63 = vadd.f32 %v429_v26, %v287_v53  ;;  %v280_v0 = vadd.f32 %v674_v34, %v257_v54  ;;  %v288_v1 = vadd.f32 %v674_v34, %v265_v55 }
  0xfb   :  { %v325_v2 = vadd.f32 %v409_v27, %v277_v58  ;;  %v333_v3 = vadd.f32 %v425_v28, %v285_v59  ;;  %v278_v4 = vadd.f32 %v674_v34, %v255_v60  ;;  %v286_v5 = vadd.f32 %v674_v34, %v263_v61 }
  0xfc   :  { %v343_v6 = vmax.f32 %v327_v62, 0.0  ;;  %v351_v7 = vmax.f32 %v335_v63, 0.0  ;;  %v328_v8 = vadd.f32 %v414_v29, %v280_v0  ;;  %v336_v9 = vadd.f32 %v430_v30, %v288_v1 }
  0xfd   :  { %v341_v10 = vmax.f32 %v325_v2, 0.0  ;;  %v349_v11 = vmax.f32 %v333_v3, 0.0  ;;  %v326_v12 = vadd.f32 %v410_v31, %v278_v4  ;;  %v334_v13 = vadd.f32 %v426_v32, %v286_v5  ;;  %v484_v14 = vpop.f32.mrb[4].mxu0  ;;  %v492_v15 = vpop.f32.mrb[4].mxu1 }
  0xfe   :  { %359 = vst [vmem:[#allocation2 + $0x10] sm:$0xff] %v343_v6  ;;  %367 = vst [vmem:[#allocation2 + $0x50] sm:$0xff] %v351_v7  ;;  %v344_v16 = vmax.f32 %v328_v8, 0.0  ;;  %v352_v17 = vmax.f32 %v336_v9, 0.0  ;;  %v260_v18 = vmul.f32 %v484_v14, %v669_v24  ;;  %v268_v19 = vmul.f32 %v492_v15, %v669_v24  ;;  %v200_v25 = vpop.f32.mrb[5].mxu0  ;;  %v232_v26 = vpop.f32.mrb[5].mxu1 }
  0xff   :  { %357 = vst [vmem:[#allocation2] sm:$0xff] %v341_v10  ;;  %365 = vst [vmem:[#allocation2 + $0x40] sm:$0xff] %v349_v11  ;;  %v342_v27 = vmax.f32 %v326_v12, 0.0  ;;  %v350_v28 = vmax.f32 %v334_v13, 0.0  ;;  %v258_v29 = vmul.f32 %v669_v24, %v200_v25  ;;  %v266_v30 = vmul.f32 %v669_v24, %v232_v26  ;;  %v485_v31 = vpop.f32.mrb[6].mxu0  ;;  %v493_v32 = vpop.f32.mrb[6].mxu1 }
 0x100   :  { %360 = vst [vmem:[#allocation2 + $0x18] sm:$0xff] %v344_v16  ;;  %368 = vst [vmem:[#allocation2 + $0x58] sm:$0xff] %v352_v17  ;;  %v283_v33 = vadd.f32 %v674_v34, %v260_v18  ;;  %v291_v35 = vadd.f32 %v674_v34, %v268_v19  ;;  %v261_v40 = vmul.f32 %v485_v31, %v669_v24  ;;  %v203_v42 = vpop.f32.mrb[7].mxu0  ;;  %v235_v43 = vpop.f32.mrb[7].mxu1 }
 0x101   :  { %v269_v41 = vmul.f32 %v493_v32, %v669_v24  ;;  %358 = vst [vmem:[#allocation2 + $0x8] sm:$0xff] %v342_v27  ;;  %366 = vst [vmem:[#allocation2 + $0x48] sm:$0xff] %v350_v28  ;;  %v281_v46 = vadd.f32 %v674_v34, %v258_v29  ;;  %v289_v47 = vadd.f32 %v674_v34, %v266_v30 }
 0x102   :  { %v259_v48 = vmul.f32 %v669_v24, %v203_v42  ;;  %v267_v49 = vmul.f32 %v669_v24, %v235_v43  ;;  %v331_v52 = vadd.f32 %v421_v36, %v283_v33  ;;  %v339_v53 = vadd.f32 %v437_v37, %v291_v35 }
 0x103   :  { %v284_v54 = vadd.f32 %v674_v34, %v261_v40  ;;  %v292_v55 = vadd.f32 %v674_v34, %v269_v41  ;;  %v329_v56 = vadd.f32 %v417_v38, %v281_v46  ;;  %v337_v57 = vadd.f32 %v433_v39, %v289_v47 }
 0x104   :  { %v282_v58 = vadd.f32 %v674_v34, %v259_v48  ;;  %v290_v24 = vadd.f32 %v674_v34, %v267_v49  ;;  %v347_v36 = vmax.f32 %v331_v52, 0.0  ;;  %v355_v59 = vmax.f32 %v339_v53, 0.0 }
 0x105   :  { %v332_v37 = vadd.f32 %v422_v44, %v284_v54  ;;  %v340_v60 = vadd.f32 %v438_v45, %v292_v55  ;;  %v345_v61 = vmax.f32 %v329_v56, 0.0  ;;  %v353_v62 = vmax.f32 %v337_v57, 0.0 }
 0x106   :  { %v330_v38 = vadd.f32 %v418_v50, %v282_v58  ;;  %v338_v39 = vadd.f32 %v434_v51, %v290_v24  ;;  %363 = vst [vmem:[#allocation2 + $0x30] sm:$0xff] %v347_v36  ;;  %371 = vst [vmem:[#allocation2 + $0x70] sm:$0xff] %v355_v59 }
 0x107   :  { %v348_v34 = vmax.f32 %v332_v37, 0.0  ;;  %v356_v63 = vmax.f32 %v340_v60, 0.0  ;;  %361 = vst [vmem:[#allocation2 + $0x20] sm:$0xff] %v345_v61  ;;  %369 = vst [vmem:[#allocation2 + $0x60] sm:$0xff] %v353_v62 }
 0x108   :  { %v346_v20 = vmax.f32 %v330_v38, 0.0  ;;  %v354_v44 = vmax.f32 %v338_v39, 0.0 }
 0x109   :  { %364 = vst [vmem:[#allocation2 + $0x38] sm:$0xff] %v348_v34  ;;  %372 = vst [vmem:[#allocation2 + $0x78] sm:$0xff] %v356_v63 }
 0x10a   :  { %362 = vst [vmem:[#allocation2 + $0x28] sm:$0xff] %v346_v20  ;;  %370 = vst [vmem:[#allocation2 + $0x68] sm:$0xff] %v354_v44 }
 0x10b   :  { %540 = shalt.err (!%p537_p4)
}
 0x10c   :  { %s541_s1 = scalar_lea.hbm %s749_s5, 2048 }
 0x10d   :  { %p542_p5 = scmp.ne.s32.totalorder %s749_s5, %s541_s1  ;;  %p545_p6 = scmp.lt.u32.totalorder %s541_s1, %s749_s5 }
 0x10f   :  { %p547_p7 = pnand %p545_p6, %p542_p5 }
 0x111   :  { %550 = shalt.err (!%p547_p7)
}
 0x112   :  { %s554_s24 = smov 128   ;;  %s555_s25 = smov 8  }
 0x113   :  { %384 = dma.vmem_to_hbm [thread:$0]  %s379_s3, 2048, %s749_s5, [#allocation3], %s554_s24, %s554_s24, %s555_s25  }
 0x114   :  { %551 = dma.done.wait [#allocation3], 2048  }
 0x115   :  { %552 = vsyncadd [#allocation3], 4294965248 }
 0x116   :  { %388 = vsyncpa [#allocation3], 1 }

// kernel: bottleneck_forward.5
= control target key start
LH: loop header
LB: loop body
LE: loop exit
PB: predicated region body
PF: predicated region fallthrough
CT: control target
= control target key end

     0   :  { %s7734_s24 = smov 0   ;;  %s10263_s0 = inlined_call_operand.vmem [shape: bf16[2,256,16], index: 0, kind: input, shape index: {}]   ;;  %s10264_s1 = inlined_call_operand.vmem [shape: bf16[16,128], index: 1, kind: input, shape index: {}]   ;;  %s10265_s2 = inlined_call_operand.vmem [shape: f32[1,128], index: 2, kind: input, shape index: {}]   ;;  %s10266_s3 = inlined_call_operand.vmem [shape: f32[1,128], index: 3, kind: input, shape index: {}]   ;;  %s10267_s4 = inlined_call_operand.vmem [shape: bf16[1152,128], index: 4, kind: input, shape index: {}]   ;;  %s10268_s5 = inlined_call_operand.vmem [shape: f32[1,128], index: 5, kind: input, shape index: {}]   ;;  %s10269_s6 = inlined_call_operand.vmem [shape: f32[1,128], index: 6, kind: input, shape index: {}]   ;;  %s10270_s7 = inlined_call_operand.vmem [shape: bf16[2,256,128], index: 7, kind: output, shape index: {}]  }
   0x1 LB: > { %s6411_s25 = sadd.s32 4294967295, %s7691_s24   ;;  %p6415_p0 = scmp.ge.s32.totalorder %s7691_s24, 1  ;;  %s7691_s24 = sphi %s7734_s24, %s17_s24  }
   0x2   : > { %p237_p1 = scmp.lt.s32.totalorder %s7691_s24, 3 }
   0x4   : > { %p238_p2 = pnand %p6415_p0, %p237_p1 }
   0x6   : > { %241 = sbr.rel (%p238_p2) target bundleno = 1233 (0x4d1), region = 48 }
   0xd   : > { %v7544_v0 = vld [vmem:[%s10264_s1] sm:$0xff]   ;;  %p269_p3 = scmp.lt.s32.totalorder %s6411_s25, 1  ;;  %vm400_vm0 = vcmask 130048   ;;  %vm902_vm1 = vcmask 1040384   ;;  %vm903_vm2 = vsmask.f32 256 }
   0xe   : > { %7437 = vmatprep.subr.bf16.mxu0 %v7544_v0  ;;  %v911_v17 = vld [vmem:[#allocation2 + $0x18] sm:$0x1]  ;;  %vm959_vm3 = vsmask.f32 7938  ;;  %vm7788_vm4 = vmand %vm902_vm1, %vm903_vm2  ;;  %v10296_v18 = vmov 0  ;;  %v10299_v22 = vmov 0 }
   0xf   : > { %s10414_s25 = smov (!%p269_p3, %s6411_s25), 1  ;;  %7438 = vmatpush3.bf16.msra.mxu0 %v7544_v0  ;;  %v10297_v18 = vsel %vm7788_vm4, 4294967295, %v10296_v18  ;;  %v908_v19 = vld [vmem:[#allocation2 + $0xc] sm:$0x1]  ;;  %v967_v20 = vld [vmem:[#allocation2 + $0x20] sm:$0x1]  ;;  %vm7795_vm5 = vmand %vm902_vm1, %vm959_vm3 }
  0x10   : > { %s6787_s28 = sshll.u32 %s10414_s25, 7  ;;  %10298 = vst [vmem:[#allocation4_spill] sm:$0xff] %v10297_v18  ;;  %v912_v21 = vsel %vm7788_vm4, 0, %v911_v17  ;;  %v10300_v22 = vsel %vm7795_vm5, 4294967295, %v10299_v22  ;;  %v909_v23 = vsel %vm7788_vm4, 0, %v908_v19  ;;  %v968_v24 = vsel %vm7795_vm5, 0, %v967_v20 }
  0x11   : > { %s7753_s8 = scalar_lea.vmem %s10263_s0, %s6787_s28  ;;  %10301 = vst [vmem:[#allocation5_spill] sm:$0xff] %v10300_v22  ;;  %913 = vst [vmem:[#allocation2 + $0x18] sm:$0x1] %v912_v21  ;;  %v964_v25 = vld [vmem:[#allocation2 + $0x14] sm:$0x1]  ;;  %vm2303_vm9 = vcmask 1042432   ;;  %s10242_s23 = scalar_lea.vmem %s10270_s7, %s6787_s28 }
  0x12   : > { %v7545_v1 = vld [vmem:[%s7753_s8] sm:$0xff]   ;;  %v7546_v2 = vld [vmem:[%s7753_s8 + $0x8] sm:$0xff]   ;;  %v7547_v3 = vld [vmem:[%s7753_s8 + $0x10] sm:$0xff]   ;;  %910 = vst [vmem:[#allocation2 + $0xc] sm:$0x1] %v909_v23  ;;  %v965_v26 = vsel %vm7795_vm5, 0, %v964_v25 }
  0x13   : > { %7439 = vmatprep.mubr.msk.bf16.mxu0 %vm400_vm0, %v7545_v1  ;;  %v7548_v4 = vld [vmem:[%s7753_s8 + $0x18] sm:$0xff]   ;;  %v7549_v5 = vld [vmem:[%s7753_s8 + $0x20] sm:$0xff]   ;;  %v7550_v6 = vld [vmem:[%s7753_s8 + $0x28] sm:$0xff]   ;;  %969 = vst [vmem:[#allocation2 + $0x20] sm:$0x1] %v968_v24  ;;  %vm2304_vm10 = vcmask 1046532  }
  0x14   : > { %7440 = vmatmul.mubr.msk.bf16.vlgmr.msra.gmra.mrb[0].mxu0 %vm400_vm0, %v7546_v2  ;;  %v7551_v7 = vld [vmem:[%s7753_s8 + $0x30] sm:$0xff]   ;;  %v7552_v8 = vld [vmem:[%s7753_s8 + $0x38] sm:$0xff]   ;;  %v7553_v9 = vld [vmem:[%s7753_s8 + $0x40] sm:$0xff]   ;;  %966 = vst [vmem:[#allocation2 + $0x14] sm:$0x1] %v965_v26  ;;  %vm1434_vm14 = vcmask 1043456  }
  0x15   : > { %7443 = vmatprep.mubr.msk.bf16.mxu0 %vm400_vm0, %v7547_v3  ;;  %v7554_v10 = vld [vmem:[%s7753_s8 + $0x48] sm:$0xff]   ;;  %v7555_v11 = vld [vmem:[%s7753_s8 + $0x50] sm:$0xff]   ;;  %v7556_v12 = vld [vmem:[%s7753_s8 + $0x58] sm:$0xff]   ;;  %vm1740_vm6 = vsmask.f32 3328 }
  0x16   : > { %v7557_v13 = vld [vmem:[%s7753_s8 + $0x60] sm:$0xff]   ;;  %v7558_v14 = vld [vmem:[%s7753_s8 + $0x68] sm:$0xff]   ;;  %v7559_v15 = vld [vmem:[%s7753_s8 + $0x70] sm:$0xff]   ;;  %vm1741_vm7 = vsmask.f32 7440 }
  0x17   : > { %v7560_v16 = vld [vmem:[%s7753_s8 + $0x78] sm:$0xff]   ;;  %v917_v27 = vld [vmem:[#allocation2 + $0x30] sm:$0x1]  ;;  %v914_v29 = vld [vmem:[#allocation2 + $0x24] sm:$0x1] }
  0x18   : > { %v918_v28 = vsel %vm7788_vm4, 0, %v917_v27  ;;  %v973_v30 = vld [vmem:[#allocation2 + $0x38] sm:$0x1]  ;;  %v915_v31 = vsel %vm7788_vm4, 0, %v914_v29  ;;  %v970_v33 = vld [vmem:[#allocation2 + $0x2c] sm:$0x1]  ;;  %vm8169_vm8 = vmor %vm1740_vm6, %vm1741_vm7 }
  0x19   : > { %919 = vst [vmem:[#allocation2 + $0x30] sm:$0x1] %v918_v28  ;;  %v974_v32 = vsel %vm7795_vm5, 0, %v973_v30  ;;  %916 = vst [vmem:[#allocation2 + $0x24] sm:$0x1] %v915_v31  ;;  %v971_v34 = vsel %vm7795_vm5, 0, %v970_v33 }
  0x1a   : > { %975 = vst [vmem:[#allocation2 + $0x38] sm:$0x1] %v974_v32  ;;  %972 = vst [vmem:[#allocation2 + $0x2c] sm:$0x1] %v971_v34  ;;  %v923_v35 = vld [vmem:[#allocation2 + $0x48] sm:$0x1] }
  0x1b   : > { %v924_v36 = vsel %vm7788_vm4, 0, %v923_v35  ;;  %v920_v37 = vld [vmem:[#allocation2 + $0x3c] sm:$0x1]  ;;  %v979_v38 = vld [vmem:[#allocation2 + $0x50] sm:$0x1]  ;;  %vm8194_vm11 = vmor %vm2303_vm9, %vm2304_vm10 }
  0x1c   : > { %7444 = vmatmul.mubr.msk.bf16.gmra.mrb[4].mxu0 %vm400_vm0, %v7548_v4  ;;  %925 = vst [vmem:[#allocation2 + $0x48] sm:$0x1] %v924_v36  ;;  %v921_v39 = vsel %vm7788_vm4, 0, %v920_v37  ;;  %v980_v40 = vsel %vm7795_vm5, 0, %v979_v38  ;;  %v976_v41 = vld [vmem:[#allocation2 + $0x44] sm:$0x1]  ;;  %vm8362_vm15 = vmand %vm1434_vm14, %vm959_vm3 }
  0x1d   : > { %7447 = vmatprep.mubr.msk.bf16.mxu0 %vm400_vm0, %v7549_v5  ;;  %922 = vst [vmem:[#allocation2 + $0x3c] sm:$0x1] %v921_v39  ;;  %981 = vst [vmem:[#allocation2 + $0x50] sm:$0x1] %v980_v40  ;;  %v977_v42 = vsel %vm7795_vm5, 0, %v976_v41 }
  0x1e   : > { %978 = vst [vmem:[#allocation2 + $0x44] sm:$0x1] %v977_v42  ;;  %v929_v43 = vld [vmem:[#allocation2 + $0x60] sm:$0x1]  ;;  %v926_v45 = vld [vmem:[#allocation2 + $0x54] sm:$0x1] }
  0x1f   : > { %v930_v44 = vsel %vm7788_vm4, 0, %v929_v43  ;;  %v985_v46 = vld [vmem:[#allocation2 + $0x68] sm:$0x1]  ;;  %v927_v47 = vsel %vm7788_vm4, 0, %v926_v45  ;;  %v982_v49 = vld [vmem:[#allocation2 + $0x5c] sm:$0x1] }
  0x20   : > { %931 = vst [vmem:[#allocation2 + $0x60] sm:$0x1] %v930_v44  ;;  %v986_v48 = vsel %vm7795_vm5, 0, %v985_v46  ;;  %928 = vst [vmem:[#allocation2 + $0x54] sm:$0x1] %v927_v47  ;;  %v983_v50 = vsel %vm7795_vm5, 0, %v982_v49 }
  0x21   : > { %987 = vst [vmem:[#allocation2 + $0x68] sm:$0x1] %v986_v48  ;;  %984 = vst [vmem:[#allocation2 + $0x5c] sm:$0x1] %v983_v50  ;;  %v935_v51 = vld [vmem:[#allocation2 + $0x78] sm:$0x1] }
  0x22   : > { %v936_v52 = vsel %vm7788_vm4, 0, %v935_v51  ;;  %v932_v53 = vld [vmem:[#allocation2 + $0x6c] sm:$0x1]  ;;  %v991_v54 = vld [vmem:[#allocation2 + $0x80] sm:$0x1] }
  0x23   : > { %937 = vst [vmem:[#allocation2 + $0x78] sm:$0x1] %v936_v52  ;;  %v933_v55 = vsel %vm7788_vm4, 0, %v932_v53  ;;  %v992_v56 = vsel %vm7795_vm5, 0, %v991_v54  ;;  %v988_v57 = vld [vmem:[#allocation2 + $0x74] sm:$0x1] }
  0x24   : > { %7448 = vmatmul.mubr.msk.bf16.gmra.mrb[8].mxu0 %vm400_vm0, %v7550_v6  ;;  %934 = vst [vmem:[#allocation2 + $0x6c] sm:$0x1] %v933_v55  ;;  %993 = vst [vmem:[#allocation2 + $0x80] sm:$0x1] %v992_v56  ;;  %v989_v58 = vsel %vm7795_vm5, 0, %v988_v57 }
  0x25   : > { %7451 = vmatprep.mubr.msk.bf16.mxu0 %vm400_vm0, %v7551_v7  ;;  %990 = vst [vmem:[#allocation2 + $0x74] sm:$0x1] %v989_v58  ;;  %v941_v59 = vld [vmem:[#allocation2 + $0x90] sm:$0x1]  ;;  %v938_v61 = vld [vmem:[#allocation2 + $0x84] sm:$0x1] }
  0x26   : > { %v942_v60 = vsel %vm7788_vm4, 0, %v941_v59  ;;  %v997_v62 = vld [vmem:[#allocation2 + $0x98] sm:$0x1]  ;;  %v939_v63 = vsel %vm7788_vm4, 0, %v938_v61  ;;  %v994_v1 = vld [vmem:[#allocation2 + $0x8c] sm:$0x1] }
  0x27   : > { %943 = vst [vmem:[#allocation2 + $0x90] sm:$0x1] %v942_v60  ;;  %v998_v0 = vsel %vm7795_vm5, 0, %v997_v62  ;;  %940 = vst [vmem:[#allocation2 + $0x84] sm:$0x1] %v939_v63  ;;  %v995_v2 = vsel %vm7795_vm5, 0, %v994_v1 }
  0x28   : > { %999 = vst [vmem:[#allocation2 + $0x98] sm:$0x1] %v998_v0  ;;  %996 = vst [vmem:[#allocation2 + $0x8c] sm:$0x1] %v995_v2  ;;  %v947_v3 = vld [vmem:[#allocation2 + $0xa8] sm:$0x1] }
  0x29   : > { %v948_v4 = vsel %vm7788_vm4, 0, %v947_v3  ;;  %v944_v5 = vld [vmem:[#allocation2 + $0x9c] sm:$0x1]  ;;  %v1003_v6 = vld [vmem:[#allocation2 + $0xb0] sm:$0x1] }
  0x2a   : > { %949 = vst [vmem:[#allocation2 + $0xa8] sm:$0x1] %v948_v4  ;;  %v945_v7 = vsel %vm7788_vm4, 0, %v944_v5  ;;  %vm1111_vm12 = vsmask.f32 4368 }
  0x2b   : > { %946 = vst [vmem:[#allocation2 + $0x9c] sm:$0x1] %v945_v7  ;;  %vm8268_vm13 = vmor %vm903_vm2, %vm1111_vm12 }
  0x2c   : > { %7452 = vmatmul.mubr.msk.bf16.gmra.mrb[12].mxu0 %vm400_vm0, %v7552_v8  ;;  %v1004_v8 = vsel %vm7795_vm5, 0, %v1003_v6 }
  0x2d   : > { %7455 = vmatprep.mubr.msk.bf16.mxu0 %vm400_vm0, %v7553_v9  ;;  %1005 = vst [vmem:[#allocation2 + $0xb0] sm:$0x1] %v1004_v8  ;;  %v1000_v9 = vld [vmem:[#allocation2 + $0xa4] sm:$0x1] }
  0x34   : > { %7456 = vmatmul.mubr.msk.bf16.gmra.mrb[16].mxu0 %vm400_vm0, %v7554_v10  ;;  %v1001_v10 = vsel %vm7795_vm5, 0, %v1000_v9 }
  0x35   : > { %7459 = vmatprep.mubr.msk.bf16.mxu0 %vm400_vm0, %v7555_v11  ;;  %1002 = vst [vmem:[#allocation2 + $0xa4] sm:$0x1] %v1001_v10  ;;  %v953_v11 = vld [vmem:[#allocation2 + $0xc0] sm:$0x1] }
  0x3c   : > { %7460 = vmatmul.mubr.msk.bf16.gmra.mrb[20].mxu0 %vm400_vm0, %v7556_v12  ;;  %v954_v12 = vsel %vm7788_vm4, 0, %v953_v11 }
  0x3d   : > { %7463 = vmatprep.mubr.msk.bf16.mxu0 %vm400_vm0, %v7557_v13  ;;  %955 = vst [vmem:[#allocation2 + $0xc0] sm:$0x1] %v954_v12  ;;  %v950_v13 = vld [vmem:[#allocation2 + $0xb4] sm:$0x1] }
  0x44   : > { %7464 = vmatmul.mubr.msk.bf16.gmra.mrb[24].mxu0 %vm400_vm0, %v7558_v14  ;;  %v1009_v14 = vld [vmem:[#allocation2 + $0xc8] sm:$0x1] }
  0x45   : > { %7467 = vmatprep.mubr.msk.bf16.mxu0 %vm400_vm0, %v7559_v15  ;;  %v951_v15 = vsel %vm7788_vm4, 0, %v950_v13 }
  0x46   : > { %952 = vst [vmem:[#allocation2 + $0xb4] sm:$0x1] %v951_v15  ;;  %v7561_v15 = vld [vmem:[%s10267_s4 + $0xc0] sm:$0xff]  }
  0x47   : > { %7077 = vmatprep.subr.bf16.mxu0 %v7561_v15 }
  0x4c   : > { %7468 = vmatmul.mubr.msk.bf16.gmra.mrb[28].mxu0 %vm400_vm0, %v7560_v16  ;;  %v1010_v16 = vsel %vm7795_vm5, 0, %v1009_v14 }
  0x4d   : > { %1011 = vst [vmem:[#allocation2 + $0xc8] sm:$0x1] %v1010_v16 }
  0xe7   : > { %v7859_v17 = vpop.f32.mrb[0].mxu0 }
  0xe8   : > { %v7861_v19 = vpop.f32.mrb[1].mxu0 }
  0xe9   : > { %v7863_v20 = vpop.f32.mrb[2].mxu0 }
  0xea   : > { %v7865_v21 = vpop.f32.mrb[3].mxu0 }
  0xeb   : > { %v612_v23 = vadd.f32 %v7865_v21, %v7861_v19 }
  0xed   : > { %v613_v24 = vadd.f32 %v7859_v17, %v612_v23 }
  0xef   : > { %v7870_v25 = vpop.f32.mrb[4].mxu0  ;;  %v614_v26 = vadd.f32 %v7863_v20, %v613_v24  ;;  %v1006_v24 = vld [vmem:[#allocation2 + $0xbc] sm:$0x1] }
  0xf0   : > { %v7873_v27 = vpop.f32.mrb[5].mxu0 }
  0xf1   : > { %v615_v28 = vadd.f32 %v614_v26, %v7873_v27  ;;  %v7876_v29 = vpop.f32.mrb[6].mxu0 }
  0xf2   : > { %v7878_v30 = vpop.f32.mrb[7].mxu0 }
  0xf3   : > { %v616_v31 = vadd.f32 %v615_v28, %v7878_v30  ;;  %v1007_v28 = vsel %vm7795_vm5, 0, %v1006_v24 }
  0xf4   : > { %1008 = vst [vmem:[#allocation2 + $0xbc] sm:$0x1] %v1007_v28 }
  0xf5   : > { %v617_v32 = vadd.f32 %v7870_v25, %v616_v31 }
  0xf7   : > { %v7882_v33 = vpop.f32.mrb[8].mxu0  ;;  %v618_v34 = vadd.f32 %v7876_v29, %v617_v32 }
  0xf8   : > { %v7885_v35 = vpop.f32.mrb[9].mxu0 }
  0xf9   : > { %v619_v36 = vadd.f32 %v618_v34, %v7885_v35  ;;  %v7888_v37 = vpop.f32.mrb[10].mxu0  ;;  %v7562_v34 = vld [vmem:[%s10267_s4 + $0x80] sm:$0xff]  }
  0xfa   : > { %v7890_v38 = vpop.f32.mrb[11].mxu0  ;;  %7078 = vmatpush3.bf16.msra.mxu0 %v7562_v34 }
  0xfb   : > { %v620_v39 = vadd.f32 %v619_v36, %v7890_v38 }
  0xfd   : > { %v621_v40 = vadd.f32 %v7882_v33, %v620_v39 }
  0xff   : > { %v7894_v41 = vpop.f32.mrb[12].mxu0  ;;  %v622_v42 = vadd.f32 %v7888_v37, %v621_v40 }
 0x100   : > { %v7897_v43 = vpop.f32.mrb[13].mxu0 }
 0x101   : > { %v623_v44 = vadd.f32 %v622_v42, %v7897_v43  ;;  %v7900_v45 = vpop.f32.mrb[14].mxu0 }
 0x102   : > { %v7902_v46 = vpop.f32.mrb[15].mxu0 }
 0x103   : > { %v624_v47 = vadd.f32 %v623_v44, %v7902_v46  ;;  %v7563_v44 = vld [vmem:[%s10267_s4 + $0xc8] sm:$0xff]  }
 0x104   : > { %7079 = vmatprep.subr.bf16.mxu0 %v7563_v44 }
 0x105   : > { %v625_v48 = vadd.f32 %v7894_v41, %v624_v47 }
 0x107   : > { %v7906_v49 = vpop.f32.mrb[16].mxu0  ;;  %v626_v50 = vadd.f32 %v7900_v45, %v625_v48 }
 0x108   : > { %v7909_v51 = vpop.f32.mrb[17].mxu0 }
 0x109   : > { %v627_v52 = vadd.f32 %v626_v50, %v7909_v51  ;;  %v7912_v53 = vpop.f32.mrb[18].mxu0 }
 0x10a   : > { %v550_v54 = vpop.f32.mrb[19].mxu0 }
 0x10b   : > { %v628_v55 = vadd.f32 %v627_v52, %v550_v54 }
 0x10d   : > { %v629_v56 = vadd.f32 %v7906_v49, %v628_v55 }
 0x10f   : > { %v7915_v57 = vpop.f32.mrb[20].mxu0  ;;  %v630_v58 = vadd.f32 %v7912_v53, %v629_v56 }
 0x110   : > { %v563_v59 = vpop.f32.mrb[21].mxu0 }
 0x111   : > { %v631_v60 = vadd.f32 %v630_v58, %v563_v59  ;;  %v7462_v61 = vpop.f32.mrb[22].mxu0 }
 0x112   : > { %v566_v62 = vpop.f32.mrb[23].mxu0 }
 0x113   : > { %v632_v63 = vadd.f32 %v631_v60, %v566_v62 }
 0x115   : > { %v633_v0 = vadd.f32 %v7915_v57, %v632_v63 }
 0x117   : > { %v7465_v1 = vpop.f32.mrb[24].mxu0  ;;  %v634_v2 = vadd.f32 %v7462_v61, %v633_v0 }
 0x118   : > { %v579_v3 = vpop.f32.mrb[25].mxu0 }
 0x119   : > { %v635_v4 = vadd.f32 %v634_v2, %v579_v3  ;;  %v7466_v5 = vpop.f32.mrb[26].mxu0 }
 0x11a   : > { %v582_v6 = vpop.f32.mrb[27].mxu0 }
 0x11b   : > { %v636_v7 = vadd.f32 %v635_v4, %v582_v6 }
 0x11d   : > { %v637_v8 = vadd.f32 %v7465_v1, %v636_v7 }
 0x11f   : > { %v7469_v9 = vpop.f32.mrb[28].mxu0  ;;  %v638_v10 = vadd.f32 %v7466_v5, %v637_v8 }
 0x120   : > { %v595_v11 = vpop.f32.mrb[29].mxu0 }
 0x121   : > { %v639_v12 = vadd.f32 %v638_v10, %v595_v11  ;;  %v7470_v13 = vpop.f32.mrb[30].mxu0 }
 0x122   : > { %v598_v14 = vpop.f32.mrb[31].mxu0 }
 0x123   : > { %v640_v16 = vadd.f32 %v639_v12, %v598_v14 }
 0x125   : > { %v641_v23 = vadd.f32 %v7469_v9, %v640_v16  ;;  %v7566_v16 = vld [vmem:[%s10267_s4 + $0x90] sm:$0xff]  }
 0x127   : > { %v642_v26 = vadd.f32 %v7470_v13, %v641_v23 }
 0x129   : > { %v643_v31 = vrot.slane %v642_v26, 4 }
 0x12b   : > { %v644_v32 = vadd.f32 %v643_v31, %v642_v26 }
 0x12d   : > { %v645_v36 = vrot.slane %v644_v32, 2 }
 0x12f   : > { %v646_v39 = vadd.f32 %v645_v36, %v644_v32 }
 0x131   : > { %v647_v40 = vrot.slane %v646_v39, 1 }
 0x133   : > { %v648_v42 = vadd.f32 %v647_v40, %v646_v39  ;;  %v7567_v39 = vld [vmem:[%s10267_s4 + $0xd8] sm:$0xff]  }
 0x135   : > { %v650_v47 = vmul.f32 0.00390625, %v648_v42 }
 0x137   : > { %v7931_v48 = vsub.f32 %v7861_v19, %v650_v47  ;;  %v7934_v50 = vsub.f32 %v7865_v21, %v650_v47  ;;  %v7937_v52 = vsub.f32 %v7859_v17, %v650_v47  ;;  %v7940_v55 = vsub.f32 %v7863_v20, %v650_v47 }
 0x138   : > { %v7943_v56 = vsub.f32 %v7873_v27, %v650_v47  ;;  %v7946_v58 = vsub.f32 %v7878_v30, %v650_v47  ;;  %v7949_v60 = vsub.f32 %v7870_v25, %v650_v47  ;;  %v7952_v19 = vsub.f32 %v7876_v29, %v650_v47 }
 0x139   : > { %v7955_v21 = vsub.f32 %v7885_v35, %v650_v47  ;;  %v7958_v17 = vsub.f32 %v7890_v38, %v650_v47  ;;  %v7961_v20 = vsub.f32 %v7882_v33, %v650_v47  ;;  %v7964_v27 = vsub.f32 %v7888_v37, %v650_v47 }
 0x13a   : > { %v7967_v30 = vsub.f32 %v7897_v43, %v650_v47  ;;  %v7970_v25 = vsub.f32 %v7902_v46, %v650_v47  ;;  %v7973_v29 = vsub.f32 %v7894_v41, %v650_v47  ;;  %v7976_v35 = vsub.f32 %v7900_v45, %v650_v47  ;;  %v7564_v46 = vld [vmem:[%s10267_s4 + $0x88] sm:$0xff]  }
 0x13b   : > { %v7979_v38 = vsub.f32 %v7909_v51, %v650_v47  ;;  %v7981_v33 = vsub.f32 %v550_v54, %v650_v47  ;;  %v7984_v37 = vsub.f32 %v7906_v49, %v650_v47  ;;  %v7987_v43 = vsub.f32 %v7912_v53, %v650_v47  ;;  %7080 = vmatpush3.bf16.msra.mxu0 %v7564_v46 }
 0x13c   : > { %v7992_v41 = vsub.f32 %v563_v59, %v650_v47  ;;  %v7994_v63 = vsub.f32 %v566_v62, %v650_v47  ;;  %v7997_v45 = vsub.f32 %v7915_v57, %v650_v47  ;;  %v7999_v51 = vsub.f32 %v7462_v61, %v650_v47 }
 0x13d   : > { %v8001_v54 = vsub.f32 %v579_v3, %v650_v47  ;;  %v8003_v49 = vsub.f32 %v582_v6, %v650_v47  ;;  %v8005_v0 = vsub.f32 %v7465_v1, %v650_v47  ;;  %v8007_v53 = vsub.f32 %v7466_v5, %v650_v47  ;;  %v7565_v1 = vld [vmem:[%s10267_s4 + $0xd0] sm:$0xff]  }
 0x13e   : > { %v8009_v2 = vsub.f32 %v595_v11, %v650_v47  ;;  %v8011_v59 = vsub.f32 %v598_v14, %v650_v47  ;;  %v8013_v62 = vsub.f32 %v7469_v9, %v650_v47  ;;  %v8015_v4 = vsub.f32 %v7470_v13, %v650_v47  ;;  %7081 = vmatprep.subr.bf16.mxu0 %v7565_v1 }
 0x13f   : > { %v683_v57 = vmul.f32 %v7931_v48, %v7931_v48  ;;  %v684_v61 = vmul.f32 %v7934_v50, %v7934_v50  ;;  %v685_v3 = vmul.f32 %v7937_v52, %v7937_v52  ;;  %v686_v6 = vmul.f32 %v7940_v55, %v7940_v55  ;;  %7082 = vmatpush3.bf16.msra.mxu0 %v7566_v16  ;;  %v7574_v16 = vld [vmem:[%s10267_s4 + $0x8] sm:$0xff]  }
 0x140   : > { %v687_v8 = vmul.f32 %v7943_v56, %v7943_v56  ;;  %v688_v10 = vmul.f32 %v7946_v58, %v7946_v58  ;;  %v689_v12 = vmul.f32 %v7949_v60, %v7949_v60  ;;  %v690_v14 = vmul.f32 %v7952_v19, %v7952_v19  ;;  %7083 = vmatprep.subr.bf16.mxu0 %v7567_v39 }
 0x141   : > { %v715_v5 = vadd.f32 %v684_v61, %v683_v57  ;;  %v691_v23 = vmul.f32 %v7955_v21, %v7955_v21  ;;  %v692_v26 = vmul.f32 %v7958_v17, %v7958_v17  ;;  %v693_v31 = vmul.f32 %v7961_v20, %v7961_v20 }
 0x142   : > { %v694_v34 = vmul.f32 %v7964_v27, %v7964_v27  ;;  %v695_v40 = vmul.f32 %v7967_v30, %v7967_v30  ;;  %v696_v44 = vmul.f32 %v7970_v25, %v7970_v25  ;;  %v697_v46 = vmul.f32 %v7973_v29, %v7973_v29 }
 0x143   : > { %v716_v7 = vadd.f32 %v715_v5, %v685_v3  ;;  %v698_v61 = vmul.f32 %v7976_v35, %v7976_v35  ;;  %v699_v3 = vmul.f32 %v7979_v38, %v7979_v38 }
 0x145   : > { %v717_v9 = vadd.f32 %v716_v7, %v686_v6  ;;  %v7570_v6 = vld [vmem:[%s10267_s4 + $0x40] sm:$0xff]   ;;  %v700_v7 = vmul.f32 %v7981_v33, %v7981_v33 }
 0x146   : > { %6965 = vmatprep.subr.bf16.mxu1 %v7570_v6 }
 0x147   : > { %v718_v11 = vadd.f32 %v717_v9, %v687_v8  ;;  %v7572_v9 = vld [vmem:[%s10267_s4] sm:$0xff]  }
 0x148   : > { %6966 = vmatpush3.bf16.msra.mxu1 %v7572_v9  ;;  %v7571_v9 = vld [vmem:[%s10267_s4 + $0xa0] sm:$0xff]  }
 0x149   : > { %v719_v13 = vadd.f32 %v718_v11, %v688_v10  ;;  %v701_v10 = vmul.f32 %v7984_v37, %v7984_v37 }
 0x14b   : > { %v720_v15 = vadd.f32 %v719_v13, %v689_v12  ;;  %v7568_v12 = vld [vmem:[%s10267_s4 + $0x98] sm:$0xff]   ;;  %v7573_v13 = vld [vmem:[%s10267_s4 + $0x48] sm:$0xff]  }
 0x14c   : > { %7084 = vmatpush3.bf16.msra.mxu0 %v7568_v12  ;;  %6967 = vmatprep.subr.bf16.mxu1 %v7573_v13  ;;  %v709_v12 = vmul.f32 %v8005_v0, %v8005_v0 }
 0x14d   : > { %v721_v24 = vadd.f32 %v720_v15, %v690_v14  ;;  %v702_v14 = vmul.f32 %v7987_v43, %v7987_v43  ;;  %6968 = vmatpush3.bf16.msra.mxu1 %v7574_v16  ;;  %v710_v16 = vmul.f32 %v8007_v53, %v8007_v53 }
 0x14f   : > { %v722_v28 = vadd.f32 %v721_v24, %v691_v23  ;;  %v7693_v23 = vmov 0   ;;  %v703_v24 = vmul.f32 %v7992_v41, %v7992_v41 }
 0x150   : > { %895 = vst [vmem:[#allocation2] sm:$0xf] %v7693_v23  ;;  %896 = vst [vmem:[#allocation2 + $0x4] sm:$0xf] %v7693_v23 }
 0x151   : > { %v723_v32 = vadd.f32 %v722_v28, %v692_v26  ;;  %897 = vst [vmem:[#allocation2 + $0x8] sm:$0xf] %v7693_v23  ;;  %899 = vst [vmem:[#allocation2 + $0xcc] sm:$0xf] %v7693_v23  ;;  %v7576_v28 = vld [vmem:[%s10267_s4 + $0x50] sm:$0xff]  }
 0x152   : > { %900 = vst [vmem:[#allocation2 + $0xd0] sm:$0xf] %v7693_v23  ;;  %901 = vst [vmem:[#allocation2 + $0xd4] sm:$0xf] %v7693_v23  ;;  %6969 = vmatprep.subr.bf16.mxu1 %v7576_v28 }
 0x153   : > { %v724_v36 = vadd.f32 %v723_v32, %v693_v31  ;;  %v704_v31 = vmul.f32 %v7994_v63, %v7994_v63 }
 0x155   : > { %v725_v42 = vadd.f32 %v724_v36, %v694_v34  ;;  %v7578_v34 = vld [vmem:[%s10267_s4 + $0x10] sm:$0xff]   ;;  %v705_v36 = vmul.f32 %v7997_v45, %v7997_v45 }
 0x156   : > { %6970 = vmatpush3.bf16.msra.mxu1 %v7578_v34 }
 0x157   : > { %v726_v47 = vadd.f32 %v725_v42, %v695_v40  ;;  %v7579_v40 = vld [vmem:[%s10267_s4 + $0x58] sm:$0xff]   ;;  %v905_v42 = vld [vmem:[#allocation2] sm:$0x1] }
 0x158   : > { %6971 = vmatprep.subr.bf16.mxu1 %v7579_v40  ;;  %v961_v6 = vld [vmem:[#allocation2 + $0x8] sm:$0x1] }
 0x159   : > { %v727_v57 = vadd.f32 %v726_v47, %v696_v44  ;;  %v706_v44 = vmul.f32 %v7999_v51, %v7999_v51 }
 0x15b   : > { %v728_v1 = vadd.f32 %v727_v57, %v697_v46  ;;  %v7580_v46 = vld [vmem:[%s10267_s4 + $0x18] sm:$0xff]   ;;  %v906_v57 = vsel %vm7788_vm4, 0, %v905_v42 }
 0x15c   : > { %907 = vst [vmem:[#allocation2] sm:$0x1] %v906_v57  ;;  %6972 = vmatpush3.bf16.msra.mxu1 %v7580_v46  ;;  %v7587_v46 = vld [vmem:[%s10267_s4 + $0xf8] sm:$0xff]  }
 0x15d   : > { %v729_v5 = vadd.f32 %v728_v1, %v698_v61  ;;  %v707_v61 = vmul.f32 %v8001_v54, %v8001_v54 }
 0x15f   : > { %v730_v8 = vadd.f32 %v729_v5, %v699_v3  ;;  %v7569_v3 = vld [vmem:[%s10267_s4 + $0xe0] sm:$0xff]  }
 0x160   : > { %v7582_v5 = vld [vmem:[%s10267_s4 + $0x60] sm:$0xff]   ;;  %7085 = vmatprep.subr.bf16.mxu0 %v7569_v3  ;;  %v7588_v3 = vld [vmem:[%s10267_s4 + $0x70] sm:$0xff]  }
 0x161   : > { %v731_v11 = vadd.f32 %v730_v8, %v700_v7  ;;  %v708_v7 = vmul.f32 %v8003_v49, %v8003_v49  ;;  %6973 = vmatprep.subr.bf16.mxu1 %v7582_v5  ;;  %7086 = vmatpush3.bf16.msra.mxu0 %v7571_v9  ;;  %v7590_v5 = vld [vmem:[%s10267_s4 + $0x30] sm:$0xff]  }
 0x163   : > { %v732_v15 = vadd.f32 %v731_v11, %v701_v10  ;;  %v7584_v10 = vld [vmem:[%s10267_s4 + $0x20] sm:$0xff]   ;;  %v962_v11 = vsel %vm7795_vm5, 0, %v961_v6 }
 0x164   : > { %963 = vst [vmem:[#allocation2 + $0x8] sm:$0x1] %v962_v11  ;;  %6974 = vmatpush3.bf16.msra.mxu1 %v7584_v10  ;;  %v1692_v28 = vld [vmem:[#allocation2] sm:$0xf]  ;;  %v713_v11 = vmul.f32 %v8013_v62, %v8013_v62 }
 0x165   : > { %v733_v26 = vadd.f32 %v732_v15, %v702_v14  ;;  %v7575_v14 = vld [vmem:[%s10267_s4 + $0xe8] sm:$0xff]   ;;  %v1747_v34 = vshll.u32 %v1692_v28, 16 }
 0x166   : > { %v7585_v15 = vld [vmem:[%s10267_s4 + $0x68] sm:$0xff]   ;;  %7087 = vmatprep.subr.bf16.mxu0 %v7575_v14 }
 0x167   : > { %v734_v32 = vadd.f32 %v733_v26, %v703_v24  ;;  %v7577_v24 = vld [vmem:[%s10267_s4 + $0xa8] sm:$0xff]   ;;  %6975 = vmatprep.subr.bf16.mxu1 %v7585_v15  ;;  %v1749_v6 = vrot.slane %v1747_v34, 5 }
 0x168   : > { %v7586_v26 = vld [vmem:[%s10267_s4 + $0x28] sm:$0xff]   ;;  %7088 = vmatpush3.bf16.msra.mxu0 %v7577_v24 }
 0x169   : > { %v735_v39 = vadd.f32 %v734_v32, %v704_v31  ;;  %v1693_v31 = vld [vmem:[#allocation2 + $0x4] sm:$0xf]  ;;  %v1744_v32 = vshrl.u32 %v1692_v28, 16  ;;  %6976 = vmatpush3.bf16.msra.mxu1 %v7586_v26  ;;  %v714_v28 = vmul.f32 %v8015_v4, %v8015_v4 }
 0x16a   : > { %v1753_v40 = vshll.u32 %v1693_v31, 16  ;;  %v1757_v42 = vshrl.u32 %v1693_v31, 16  ;;  %6977 = vmatprep.subr.bf16.mxu1 %v7588_v3  ;;  %v7594_v26 = vld [vmem:[%s10267_s4 + $0x1c0] sm:$0xff]  }
 0x16b   : > { %v736_v47 = vadd.f32 %v735_v39, %v705_v36  ;;  %v711_v36 = vmul.f32 %v8009_v2, %v8009_v2  ;;  %v1746_v57 = vrot.slane %v1744_v32, 4  ;;  %v7599_v3 = vld [vmem:[%s10267_s4 + $0x100] sm:$0xff]  }
 0x16c   : > { %v1755_v9 = vrot.slane %v1753_v40, 5  ;;  %v1759_v10 = vrot.slane %v1757_v42, 4 }
 0x16d   : > { %v737_v1 = vadd.f32 %v736_v47, %v706_v44  ;;  %v7581_v44 = vld [vmem:[%s10267_s4 + $0xf0] sm:$0xff]   ;;  %v1750_v14 = vor.u32 %v1749_v6, %v1746_v57  ;;  %6978 = vmatpush3.bf16.msra.mxu1 %v7590_v5 }
 0x16e   : > { %v7583_v47 = vld [vmem:[%s10267_s4 + $0xb0] sm:$0xff]   ;;  %7089 = vmatprep.subr.bf16.mxu0 %v7581_v44  ;;  %v1760_v24 = vor.u32 %v1759_v10, %v1755_v9 }
 0x16f   : > { %v738_v8 = vadd.f32 %v737_v1, %v707_v61  ;;  %v712_v61 = vmul.f32 %v8011_v59, %v8011_v59  ;;  %7090 = vmatpush3.bf16.msra.mxu0 %v7583_v47  ;;  %v1751_v32 = vrot.slane %v1750_v14, 4  ;;  %v7595_v47 = vld [vmem:[#allocation2] sm:$0xff]   ;;  %v7606_v14 = vld [vmem:[%s10267_s4 + $0x148] sm:$0xff]  }
 0x170   : > { %7091 = vmatprep.subr.bf16.mxu0 %v7587_v46 }
 0x171   : > { %v739_v13 = vadd.f32 %v738_v8, %v708_v7  ;;  %v7591_v7 = vld [vmem:[%s10267_s4 + $0x78] sm:$0xff]   ;;  %v1694_v8 = vld [vmem:[#allocation2 + $0x8] sm:$0x1]  ;;  %v1756_v42 = vsel %vm8169_vm8, %v1751_v32, %v1755_v9  ;;  %v2208_v9 = vld [vmem:[#allocation2 + $0x4] sm:$0xf] }
 0x172   : > { %v1763_v15 = vshll.u32 %v1694_v8, 16  ;;  %6979 = vmatprep.subr.bf16.mxu1 %v7591_v7 }
 0x173   : > { %v740_v23 = vadd.f32 %v739_v13, %v709_v12  ;;  %v7589_v13 = vld [vmem:[%s10267_s4 + $0xb8] sm:$0xff]  }
 0x174   : > { %v1765_v34 = vrot.slane %v1763_v15, 5  ;;  %7092 = vmatpush3.bf16.msra.mxu0 %v7589_v13  ;;  %v2209_v13 = vld [vmem:[#allocation2 + $0x8] sm:$0x1] }
 0x175   : > { %v741_v39 = vadd.f32 %v740_v23, %v710_v16  ;;  %v7592_v16 = vld [vmem:[%s10267_s4 + $0x38] sm:$0xff]   ;;  %v10302_v23 = vmov 0  ;;  %7301 = vmatprep.subr.bf16.mxu0 %v7594_v26  ;;  %v7607_v15 = vld [vmem:[%s10267_s4 + $0x108] sm:$0xff]   ;;  %v2311_v26 = vrot.slane %v2209_v13, 5 }
 0x176   : > { %v10303_v23 = vsel %vm8169_vm8, 4294967295, %v10302_v23  ;;  %6980 = vmatpush3.bf16.msra.mxu1 %v7592_v16 }
 0x177   : > { %v742_v1 = vadd.f32 %v741_v39, %v711_v36  ;;  %10304 = vst [vmem:[#allocation6_spill] sm:$0xff] %v10303_v23  ;;  %v7598_v36 = vld [vmem:[%s10267_s4 + $0x140] sm:$0xff]   ;;  %v1761_v39 = vrot.slane %v1760_v24, 4 }
 0x178   : > { %7189 = vmatprep.subr.bf16.mxu1 %v7598_v36  ;;  %v8209_v36 = vld [vmem:[%s10265_s2] ss:$0 sm:$0xff] }
 0x179   : > { %v743_v12 = vadd.f32 %v742_v1, %v712_v61  ;;  %v1766_v44 = vsel %vm8169_vm8, %v1761_v39, %v1765_v34  ;;  %v7638_v39 = vld [vmem:[%s10267_s4 + $0x168] sm:$0xff]  }
 0x17a   : > { %v6503_v57 = vcombine.low %v1756_v42, %v1766_v44 }
 0x17b   : > { %v744_v31 = vadd.f32 %v743_v12, %v713_v11  ;;  %v2308_v11 = vrot.slane %v2208_v9, 5  ;;  %v2207_v12 = vld [vmem:[#allocation2] sm:$0xe] }
 0x17c   : > { %5139 = vmatprep.mubr.bf16.mxu1 %v6503_v57  ;;  %v6519_v16 = vrot.slane %v2207_v12, 9 }
 0x17d   : > { %v745_v40 = vadd.f32 %v744_v31, %v714_v28  ;;  %5140 = vmatmul.mubr.bf16.vlgmr.msra.gmra.mrb[0].mxu1 %v7595_v47  ;;  %v2310_v24 = vrot.slane %v2308_v11, 4  ;;  %v10305_v28 = vmov 0 }
 0x17e   : > { %7190 = vmatpush3.bf16.msra.mxu1 %v7599_v3  ;;  %v10306_v28 = vsel %vm8194_vm11, 4294967295, %v10305_v28  ;;  %v8200_v31 = vsel %vm8194_vm11, %v6519_v16, %v2308_v11 }
 0x17f   : > { %v746_v46 = vrot.slane %v745_v40, 4  ;;  %7191 = vmatprep.subr.bf16.mxu1 %v7606_v14  ;;  %10307 = vst [vmem:[#allocation7_spill] sm:$0xff] %v10306_v28  ;;  %10308 = vst [vmem:[#allocation8_spill] sm:$0xff] %v8200_v31  ;;  %v8204_v32 = vsel %vm8194_vm11, %v2310_v24, %v2311_v26 }
 0x180   : > { %10309 = vst [vmem:[#allocation9_spill] sm:$0xff] %v8204_v32 }
 0x181   : > { %v747_v61 = vadd.f32 %v746_v46, %v745_v40  ;;  %v8220_v46 = vld [vmem:[%s10266_s3] ss:$0 sm:$0xff] }
 0x182   : > { %7192 = vmatpush3.bf16.msra.mxu1 %v7607_v15 }
 0x183   : > { %v748_v1 = vrot.slane %v747_v61, 2 }
 0x185   : > { %v749_v5 = vadd.f32 %v748_v1, %v747_v61 }
 0x187   : > { %v750_v6 = vrot.slane %v749_v5, 1 }
 0x189   : > { %v751_v7 = vadd.f32 %v750_v6, %v749_v5 }
 0x18b   : > { %v752_v8 = vmul.f32 0.00390625, %v751_v7 }
 0x18d   : > { %v753_v10 = vadd.f32 1e-05, %v752_v8 }
 0x18f   : > { %7681 = vrsqrt.f32 %v753_v10 }
 0x199   : > { %v7682_v34 = vpop.eup %7681 }
 0x19a   : > { %v783_v40 = vmul.f32 %v7682_v34, %v8009_v2  ;;  %v784_v42 = vmul.f32 %v7682_v34, %v8011_v59  ;;  %v755_v44 = vmul.f32 %v7682_v34, %v7931_v48  ;;  %v756_v47 = vmul.f32 %v7682_v34, %v7934_v50 }
 0x19b   : > { %v757_v57 = vmul.f32 %v7682_v34, %v7937_v52  ;;  %v758_v61 = vmul.f32 %v7682_v34, %v7940_v55  ;;  %v759_v1 = vmul.f32 %v7682_v34, %v7943_v56  ;;  %v760_v3 = vmul.f32 %v7682_v34, %v7946_v58  ;;  %v7614_v56 = vld [vmem:[%s10267_s4 + $0x150] sm:$0xff]  }
 0x19c   : > { %v821_v2 = vmul.f32 %v8209_v36, %v783_v40  ;;  %v822_v48 = vmul.f32 %v8209_v36, %v784_v42  ;;  %v761_v50 = vmul.f32 %v7682_v34, %v7949_v60  ;;  %v762_v59 = vmul.f32 %v7682_v34, %v7952_v19  ;;  %7193 = vmatprep.subr.bf16.mxu1 %v7614_v56 }
 0x19d   : > { %v763_v5 = vmul.f32 %v7682_v34, %v7955_v21  ;;  %v764_v6 = vmul.f32 %v7682_v34, %v7958_v17  ;;  %v765_v52 = vmul.f32 %v7682_v34, %v7961_v20  ;;  %v766_v55 = vmul.f32 %v7682_v34, %v7964_v27 }
 0x19e   : > { %v859_v58 = vadd.f32 %v8220_v46, %v821_v2  ;;  %v860_v7 = vadd.f32 %v8220_v46, %v822_v48  ;;  %v767_v60 = vmul.f32 %v7682_v34, %v7967_v30  ;;  %v768_v19 = vmul.f32 %v7682_v34, %v7970_v25 }
 0x19f   : > { %v769_v21 = vmul.f32 %v7682_v34, %v7973_v29  ;;  %v770_v17 = vmul.f32 %v7682_v34, %v7976_v35  ;;  %v771_v20 = vmul.f32 %v7682_v34, %v7979_v38  ;;  %v772_v27 = vmul.f32 %v7682_v34, %v7981_v33  ;;  %v7615_v35 = vld [vmem:[%s10267_s4 + $0x110] sm:$0xff]  }
 0x1a0   : > { %v891_v8 = vmax.f32 %v859_v58, 0.0  ;;  %v892_v9 = vmax.f32 %v860_v7, 0.0  ;;  %v773_v10 = vmul.f32 %v7682_v34, %v7984_v37  ;;  %v774_v11 = vmul.f32 %v7682_v34, %v7987_v43  ;;  %7194 = vmatpush3.bf16.msra.mxu1 %v7615_v35 }
 0x1a1   : > { %v775_v12 = vmul.f32 %v7682_v34, %v7992_v41  ;;  %v776_v30 = vmul.f32 %v7682_v34, %v7994_v63  ;;  %v777_v25 = vmul.f32 %v7682_v34, %v7997_v45  ;;  %v778_v29 = vmul.f32 %v7682_v34, %v7999_v51 }
 0x1a2   : > { %v6817_v38 = vpack.c.bf16 %v891_v8, %v891_v8  ;;  %v6818_v33 = vpack.c.bf16 %v892_v9, %v892_v9  ;;  %v779_v13 = vmul.f32 %v7682_v34, %v8001_v54  ;;  %v780_v37 = vmul.f32 %v7682_v34, %v8003_v49 }
 0x1a3   : > { %v781_v43 = vmul.f32 %v7682_v34, %v8005_v0  ;;  %v782_v41 = vmul.f32 %v7682_v34, %v8007_v53  ;;  %v785_v63 = vmul.f32 %v7682_v34, %v8013_v62  ;;  %v786_v45 = vmul.f32 %v7682_v34, %v8015_v4  ;;  %v1538_v34 = vld [vmem:[#allocation2 + $0xbc] sm:$0x1] }
 0x1a4   : > { %v1352_v51 = vshrl.u32 %v6817_v38, 16  ;;  %v1360_v14 = vshrl.u32 %v6818_v33, 16  ;;  %v1363_v15 = vshll.u32 %v6818_v33, 16  ;;  %v1355_v16 = vshll.u32 %v6817_v38, 16 }
 0x1a5   : > { %v793_v24 = vmul.f32 %v8209_v36, %v755_v44  ;;  %v794_v26 = vmul.f32 %v8209_v36, %v756_v47  ;;  %v795_v54 = vmul.f32 %v8209_v36, %v757_v57  ;;  %v796_v49 = vmul.f32 %v8209_v36, %v758_v61 }
 0x1a6   : > { %v1354_v0 = vrot.slane %v1352_v51, 7  ;;  %v1362_v40 = vrot.slane %v1360_v14, 7  ;;  %v797_v53 = vmul.f32 %v8209_v36, %v759_v1  ;;  %v798_v62 = vmul.f32 %v8209_v36, %v760_v3 }
 0x1a7   : > { %v10310_v4 = vmov 0  ;;  %v799_v42 = vmul.f32 %v8209_v36, %v761_v50  ;;  %v800_v44 = vmul.f32 %v8209_v36, %v762_v59  ;;  %v801_v47 = vmul.f32 %v8209_v36, %v763_v5 }
 0x1a8   : > { %v10311_v4 = vsel %vm8268_vm13, 4294967295, %v10310_v4  ;;  %v802_v57 = vmul.f32 %v8209_v36, %v764_v6  ;;  %v1358_v61 = vrot.slane %v1354_v0, 4  ;;  %v1365_v1 = vor.u32 %v1363_v15, %v1362_v40 }
 0x1a9   : > { %10312 = vst [vmem:[#allocation10_spill] sm:$0xff] %v10311_v4  ;;  %v1367_v2 = vrot.slane %v1362_v40, 4  ;;  %v803_v3 = vmul.f32 %v8209_v36, %v765_v52  ;;  %v804_v48 = vmul.f32 %v8209_v36, %v766_v55  ;;  %v805_v56 = vmul.f32 %v8209_v36, %v767_v60  ;;  %v1534_v40 = vld [vmem:[#allocation2 + $0xb4] sm:$0xf] }
 0x1aa   : > { %v806_v58 = vmul.f32 %v8209_v36, %v768_v19  ;;  %v807_v50 = vmul.f32 %v8209_v36, %v769_v21  ;;  %v1366_v59 = vsel %vm8268_vm13, %v1358_v61, %v1365_v1  ;;  %v808_v6 = vmul.f32 %v8209_v36, %v770_v17 }
 0x1ab   : > { %v1539_v5 = vsel %vm7788_vm4, %v1367_v2, %v1538_v34  ;;  %v809_v7 = vmul.f32 %v8209_v36, %v771_v20  ;;  %1537 = vst [vmem:[#allocation2 + $0xb8] sm:$0xf] %v1366_v59  ;;  %v810_v52 = vmul.f32 %v8209_v36, %v772_v27  ;;  %v811_v55 = vmul.f32 %v8209_v36, %v773_v10 }
 0x1ac   : > { %1540 = vst [vmem:[#allocation2 + $0xbc] sm:$0x1] %v1539_v5  ;;  %v812_v60 = vmul.f32 %v8209_v36, %v774_v11  ;;  %v813_v19 = vmul.f32 %v8209_v36, %v775_v12  ;;  %v814_v21 = vmul.f32 %v8209_v36, %v776_v30  ;;  %v815_v8 = vmul.f32 %v8209_v36, %v777_v25  ;;  %v7622_v11 = vld [vmem:[%s10267_s4 + $0x158] sm:$0xff]  }
 0x1ad   : > { %v816_v9 = vmul.f32 %v8209_v36, %v778_v29  ;;  %v817_v17 = vmul.f32 %v8209_v36, %v779_v13  ;;  %v818_v20 = vmul.f32 %v8209_v36, %v780_v37  ;;  %v819_v35 = vmul.f32 %v8209_v36, %v781_v43  ;;  %7195 = vmatprep.subr.bf16.mxu1 %v7622_v11 }
 0x1ae   : > { %v820_v27 = vmul.f32 %v8209_v36, %v782_v41  ;;  %v823_v10 = vmul.f32 %v8209_v36, %v785_v63  ;;  %v824_v12 = vmul.f32 %v8209_v36, %v786_v45  ;;  %v1357_v30 = vor.u32 %v1355_v16, %v1354_v0  ;;  %v7623_v16 = vld [vmem:[%s10267_s4 + $0x118] sm:$0xff]  }
 0x1af   : > { %v8304_v25 = vadd.f32 %v8220_v46, %v793_v24  ;;  %v8307_v29 = vadd.f32 %v8220_v46, %v794_v26  ;;  %v8310_v38 = vadd.f32 %v8220_v46, %v795_v54  ;;  %v8313_v33 = vadd.f32 %v8220_v46, %v796_v49  ;;  %7196 = vmatpush3.bf16.msra.mxu1 %v7623_v16 }
 0x1b0   : > { %v8316_v13 = vadd.f32 %v8220_v46, %v797_v53  ;;  %v8319_v37 = vadd.f32 %v8220_v46, %v798_v62  ;;  %v8322_v36 = vadd.f32 %v8220_v46, %v799_v42  ;;  %v8325_v43 = vadd.f32 %v8220_v46, %v800_v44 }
 0x1b1   : > { %v8328_v41 = vadd.f32 %v8220_v46, %v801_v47  ;;  %v8331_v63 = vadd.f32 %v8220_v46, %v802_v57  ;;  %v8334_v45 = vadd.f32 %v8220_v46, %v803_v3  ;;  %v8337_v51 = vadd.f32 %v8220_v46, %v804_v48 }
 0x1b2   : > { %v8340_v14 = vadd.f32 %v8220_v46, %v805_v56  ;;  %v8343_v15 = vadd.f32 %v8220_v46, %v806_v58  ;;  %v8349_v24 = vadd.f32 %v8220_v46, %v807_v50  ;;  %v8352_v26 = vadd.f32 %v8220_v46, %v808_v6 }
 0x1b3   : > { %v8355_v54 = vadd.f32 %v8220_v46, %v809_v7  ;;  %v8358_v49 = vadd.f32 %v8220_v46, %v810_v52  ;;  %v10313_v0 = vmov 0  ;;  %v8367_v53 = vadd.f32 %v8220_v46, %v811_v55 }
 0x1b4   : > { %v10314_v0 = vsel %vm8362_vm15, 4294967295, %v10313_v0  ;;  %v8370_v62 = vadd.f32 %v8220_v46, %v812_v60  ;;  %v8373_v34 = vadd.f32 %v8220_v46, %v813_v19  ;;  %v8376_v42 = vadd.f32 %v8220_v46, %v814_v21 }
 0x1b5   : > { %10315 = vst [vmem:[#allocation11_spill] sm:$0xff] %v10314_v0  ;;  %v8379_v44 = vadd.f32 %v8220_v46, %v815_v8  ;;  %v8382_v47 = vadd.f32 %v8220_v46, %v816_v9  ;;  %v8385_v57 = vadd.f32 %v8220_v46, %v817_v17  ;;  %v8388_v61 = vadd.f32 %v8220_v46, %v818_v20 }
 0x1b6   : > { %v8391_v1 = vadd.f32 %v8220_v46, %v819_v35  ;;  %v8394_v2 = vadd.f32 %v8220_v46, %v820_v27  ;;  %v8397_v3 = vadd.f32 %v8220_v46, %v823_v10  ;;  %v8400_v48 = vadd.f32 %v8220_v46, %v824_v12 }
 0x1b7   : > { %v1535_v56 = vsel %vm8362_vm15, %v1357_v30, %v1534_v40  ;;  %v863_v58 = vmax.f32 %v8304_v25, 0.0  ;;  %v864_v50 = vmax.f32 %v8307_v29, 0.0  ;;  %v865_v59 = vmax.f32 %v8310_v38, 0.0 }
 0x1b8   : > { %v866_v5 = vmax.f32 %v8313_v33, 0.0  ;;  %v867_v6 = vmax.f32 %v8316_v13, 0.0  ;;  %v868_v7 = vmax.f32 %v8319_v37, 0.0  ;;  %v869_v52 = vmax.f32 %v8322_v36, 0.0  ;;  %1536 = vst [vmem:[#allocation2 + $0xb4] sm:$0xf] %v1535_v56 }
 0x1b9   : > { %v870_v46 = vmax.f32 %v8325_v43, 0.0  ;;  %v871_v55 = vmax.f32 %v8328_v41, 0.0  ;;  %v872_v60 = vmax.f32 %v8331_v63, 0.0  ;;  %v873_v19 = vmax.f32 %v8334_v45, 0.0  ;;  %v7630_v63 = vld [vmem:[%s10267_s4 + $0x160] sm:$0xff]  }
 0x1ba   : > { %v874_v21 = vmax.f32 %v8337_v51, 0.0  ;;  %v875_v8 = vmax.f32 %v8340_v14, 0.0  ;;  %v876_v9 = vmax.f32 %v8343_v15, 0.0  ;;  %v877_v17 = vmax.f32 %v8349_v24, 0.0  ;;  %7197 = vmatprep.subr.bf16.mxu1 %v7630_v63 }
 0x1bb   : > { %v878_v20 = vmax.f32 %v8352_v26, 0.0  ;;  %v879_v35 = vmax.f32 %v8355_v54, 0.0  ;;  %v880_v27 = vmax.f32 %v8358_v49, 0.0  ;;  %v881_v10 = vmax.f32 %v8367_v53, 0.0 }
 0x1bc   : > { %v882_v11 = vmax.f32 %v8370_v62, 0.0  ;;  %v883_v12 = vmax.f32 %v8373_v34, 0.0  ;;  %v884_v30 = vmax.f32 %v8376_v42, 0.0  ;;  %v885_v25 = vmax.f32 %v8379_v44, 0.0 }
 0x1bd   : > { %v886_v29 = vmax.f32 %v8382_v47, 0.0  ;;  %v887_v38 = vmax.f32 %v8385_v57, 0.0  ;;  %v888_v33 = vmax.f32 %v8388_v61, 0.0  ;;  %v889_v13 = vmax.f32 %v8391_v1, 0.0  ;;  %v7631_v57 = vld [vmem:[%s10267_s4 + $0x120] sm:$0xff]  }
 0x1be   : > { %v890_v37 = vmax.f32 %v8394_v2, 0.0  ;;  %v893_v36 = vmax.f32 %v8397_v3, 0.0  ;;  %v894_v43 = vmax.f32 %v8400_v48, 0.0  ;;  %v8434_v41 = vpack.c.bf16 %v863_v58, %v863_v58  ;;  %7198 = vmatpush3.bf16.msra.mxu1 %v7631_v57 }
 0x1bf   : > { %v8439_v45 = vpack.c.bf16 %v864_v50, %v864_v50  ;;  %v8441_v51 = vpack.c.bf16 %v865_v59, %v865_v59  ;;  %v8443_v14 = vpack.c.bf16 %v866_v5, %v866_v5  ;;  %v8445_v15 = vpack.c.bf16 %v867_v6, %v867_v6  ;;  %7199 = vmatprep.subr.bf16.mxu1 %v7638_v39  ;;  %v7639_v39 = vld [vmem:[%s10267_s4 + $0x128] sm:$0xff]  }
 0x1c0   : > { %v8447_v16 = vpack.c.bf16 %v868_v7, %v868_v7  ;;  %v8449_v24 = vpack.c.bf16 %v869_v52, %v869_v52  ;;  %v8451_v26 = vpack.c.bf16 %v870_v46, %v870_v46  ;;  %v8453_v54 = vpack.c.bf16 %v871_v55, %v871_v55 }
 0x1c1   : > { %v8455_v49 = vpack.c.bf16 %v872_v60, %v872_v60  ;;  %v8457_v40 = vpack.c.bf16 %v873_v19, %v873_v19  ;;  %v8459_v53 = vpack.c.bf16 %v874_v21, %v874_v21  ;;  %v8461_v62 = vpack.c.bf16 %v875_v8, %v875_v8 }
 0x1c2   : > { %v8463_v34 = vpack.c.bf16 %v876_v9, %v876_v9  ;;  %v8465_v42 = vpack.c.bf16 %v877_v17, %v877_v17  ;;  %v8467_v44 = vpack.c.bf16 %v878_v20, %v878_v20  ;;  %v8469_v47 = vpack.c.bf16 %v879_v35, %v879_v35  ;;  %7200 = vmatpush3.bf16.msra.mxu1 %v7639_v39 }
 0x1c3   : > { %v8474_v61 = vpack.c.bf16 %v880_v27, %v880_v27  ;;  %v8476_v1 = vpack.c.bf16 %v881_v10, %v881_v10  ;;  %v8478_v2 = vpack.c.bf16 %v882_v11, %v882_v11  ;;  %v8480_v3 = vpack.c.bf16 %v883_v12, %v883_v12 }
 0x1c4   : > { %v8482_v48 = vpack.c.bf16 %v884_v30, %v884_v30  ;;  %v8484_v56 = vpack.c.bf16 %v885_v25, %v885_v25  ;;  %v8486_v58 = vpack.c.bf16 %v886_v29, %v886_v29  ;;  %v8488_v50 = vpack.c.bf16 %v887_v38, %v887_v38 }
 0x1c5   : > { %v8490_v59 = vpack.c.bf16 %v888_v33, %v888_v33  ;;  %v8492_v5 = vpack.c.bf16 %v889_v13, %v889_v13  ;;  %v8494_v6 = vpack.c.bf16 %v890_v37, %v890_v37  ;;  %v8496_v7 = vpack.c.bf16 %v893_v36, %v893_v36 }
 0x1c6   : > { %10316 = vst [vmem:[#allocation12_spill] sm:$0xff] %v8486_v58  ;;  %10317 = vst [vmem:[#allocation13_spill] sm:$0xff] %v8488_v50  ;;  %v8498_v52 = vpack.c.bf16 %v894_v43, %v894_v43  ;;  %v1122_v60 = vshrl.u32 %v8439_v45, 16  ;;  %v1131_v21 = vshrl.u32 %v8441_v51, 16  ;;  %v1139_v9 = vshrl.u32 %v8443_v14, 16 }
 0x1c7   : > { %10318 = vst [vmem:[#allocation14_spill] sm:$0xff] %v8490_v59  ;;  %10319 = vst [vmem:[#allocation15_spill] sm:$0xff] %v8492_v5  ;;  %v1148_v20 = vshrl.u32 %v8445_v15, 16  ;;  %v1156_v27 = vshrl.u32 %v8447_v16, 16  ;;  %v1165_v11 = vshrl.u32 %v8449_v24, 16  ;;  %v1173_v30 = vshrl.u32 %v8451_v26, 16 }
 0x1c8   : > { %10320 = vst [vmem:[#allocation16_spill] sm:$0xff] %v8494_v6  ;;  %10321 = vst [vmem:[#allocation17_spill] sm:$0xff] %v8496_v7  ;;  %v1182_v29 = vshrl.u32 %v8453_v54, 16  ;;  %v1190_v33 = vshrl.u32 %v8455_v49, 16  ;;  %v1199_v37 = vshrl.u32 %v8457_v40, 16  ;;  %v1207_v43 = vshrl.u32 %v8459_v53, 16 }
 0x1c9   : > { %v1216_v57 = vshrl.u32 %v8461_v62, 16  ;;  %v1224_v25 = vshrl.u32 %v8463_v34, 16  ;;  %v1233_v12 = vshrl.u32 %v8465_v42, 16  ;;  %v1241_v10 = vshrl.u32 %v8467_v44, 16 }
 0x1ca   : > { %v1250_v35 = vshrl.u32 %v8469_v47, 16  ;;  %v1258_v17 = vshrl.u32 %v8474_v61, 16  ;;  %v1267_v8 = vshrl.u32 %v8476_v1, 16  ;;  %v1275_v19 = vshrl.u32 %v8478_v2, 16 }
 0x1cb   : > { %v1284_v55 = vshrl.u32 %v8480_v3, 16  ;;  %v1292_v46 = vshrl.u32 %v8482_v48, 16  ;;  %v1301_v23 = vshrl.u32 %v8484_v56, 16  ;;  %v1309_v28 = vshrl.u32 %v8486_v58, 16 }
 0x1cc   : > { %v1318_v32 = vshrl.u32 %v8488_v50, 16  ;;  %v1326_v31 = vshrl.u32 %v8490_v59, 16  ;;  %v1335_v63 = vshrl.u32 %v8492_v5, 16  ;;  %v1343_v18 = vshrl.u32 %v8494_v6, 16 }
 0x1cd   : > { %v1369_v0 = vshrl.u32 %v8496_v7, 16  ;;  %v1377_v4 = vshrl.u32 %v8498_v52, 16  ;;  %v10322_v58 = vshrl.u32 %v8434_v41, 16  ;;  %v8570_v59 = vrot.slane %v1122_v60, 7 }
 0x1ce   : > { %v8572_v38 = vrot.slane %v1131_v21, 7  ;;  %v8574_v5 = vrot.slane %v1139_v9, 7  ;;  %v8576_v13 = vrot.slane %v1148_v20, 7  ;;  %v8578_v6 = vrot.slane %v1156_v27, 7 }
 0x1cf   : > { %v8568_v22 = vrot.slane %v10322_v58, 7  ;;  %v8580_v36 = vrot.slane %v1165_v11, 7  ;;  %v8582_v7 = vrot.slane %v1173_v30, 7  ;;  %v8584_v39 = vrot.slane %v1182_v29, 7 }
 0x1d0   : > { %v8586_v50 = vrot.slane %v1190_v33, 7  ;;  %v8588_v58 = vrot.slane %v1199_v37, 7  ;;  %v8590_v60 = vrot.slane %v1207_v43, 7  ;;  %v8592_v21 = vrot.slane %v1216_v57, 7 }
 0x1d1   : > { %v8594_v9 = vrot.slane %v1224_v25, 7  ;;  %v8596_v20 = vrot.slane %v1233_v12, 7  ;;  %v8598_v27 = vrot.slane %v1241_v10, 7  ;;  %v8600_v11 = vrot.slane %v1250_v35, 7 }
 0x1d2   : > { %v8602_v30 = vrot.slane %v1258_v17, 7  ;;  %v8604_v29 = vrot.slane %v1267_v8, 7  ;;  %v8606_v33 = vrot.slane %v1275_v19, 7  ;;  %v8608_v37 = vrot.slane %v1284_v55, 7 }
 0x1d3   : > { %v8610_v43 = vrot.slane %v1292_v46, 7  ;;  %v8612_v57 = vrot.slane %v1301_v23, 7  ;;  %v8614_v25 = vrot.slane %v1309_v28, 7  ;;  %v8616_v12 = vrot.slane %v1318_v32, 7 }
 0x1d4   : > { %10323 = vst [vmem:[#allocation18_spill] sm:$0xff] %v8606_v33  ;;  %v8618_v10 = vrot.slane %v1326_v31, 7  ;;  %v8620_v35 = vrot.slane %v1335_v63, 7  ;;  %v8622_v17 = vrot.slane %v1343_v18, 7  ;;  %v8624_v8 = vrot.slane %v1369_v0, 7 }
 0x1d5   : > { %10324 = vst [vmem:[#allocation19_spill] sm:$0xff] %v8610_v43  ;;  %10325 = vst [vmem:[#allocation20_spill] sm:$0xff] %v8614_v25  ;;  %v8626_v19 = vrot.slane %v1377_v4, 7  ;;  %v10329_v46 = vshll.u32 %v8434_v41, 16  ;;  %v10330_v28 = vshll.u32 %v8439_v45, 16  ;;  %v10331_v18 = vshll.u32 %v8441_v51, 16 }
 0x1d6   : > { %10326 = vst [vmem:[#allocation21_spill] sm:$0xff] %v8618_v10  ;;  %10327 = vst [vmem:[#allocation22_spill] sm:$0xff] %v8622_v17  ;;  %v10332_v41 = vshll.u32 %v8443_v14, 16  ;;  %v10333_v45 = vshll.u32 %v8445_v15, 16  ;;  %v7646_v51 = vld [vmem:[%s10267_s4 + $0x170] sm:$0xff]   ;;  %v10334_v32 = vshll.u32 %v8447_v16, 16 }
 0x1d7   : > { %10328 = vst [vmem:[#allocation23_spill] sm:$0xff] %v8626_v19  ;;  %v8631_v55 = vor.u32 %v10329_v46, %v8568_v22  ;;  %v8637_v31 = vor.u32 %v10330_v28, %v8570_v59  ;;  %v8643_v0 = vor.u32 %v10331_v18, %v8572_v38  ;;  %v10337_v16 = vshll.u32 %v8453_v54, 16  ;;  %7201 = vmatprep.subr.bf16.mxu1 %v7646_v51 }
 0x1d8   : > { %v8649_v63 = vor.u32 %v10332_v41, %v8574_v5  ;;  %v8655_v28 = vor.u32 %v10333_v45, %v8576_v13  ;;  %v8664_v4 = vor.u32 %v10334_v32, %v8578_v6  ;;  %v10335_v41 = vshll.u32 %v8449_v24, 16 }
 0x1d9   : > { %v10336_v45 = vshll.u32 %v8451_v26, 16  ;;  %v8680_v32 = vor.u32 %v10337_v16, %v8584_v39  ;;  %v1188_v14 = vrot.slane %v8584_v39, 4  ;;  %v10338_v24 = vshll.u32 %v8455_v49, 16 }
 0x1da   : > { %v8670_v46 = vor.u32 %v10335_v41, %v8580_v36  ;;  %v10339_v26 = vshll.u32 %v8457_v40, 16  ;;  %v1205_v18 = vrot.slane %v8588_v58, 4  ;;  %v10340_v54 = vshll.u32 %v8459_v53, 16 }
 0x1db   : > { %v1178_v23 = vor.u32 %v10336_v45, %v8582_v7  ;;  %v1195_v41 = vor.u32 %v10338_v24, %v8586_v50  ;;  %v10341_v39 = vshll.u32 %v8461_v62, 16  ;;  %v7647_v24 = vld [vmem:[%s10267_s4 + $0x130] sm:$0xff]   ;;  %v1222_v40 = vrot.slane %v8592_v21, 4 }
 0x1dc   : > { %v8690_v45 = vor.u32 %v10339_v26, %v8588_v58  ;;  %v1212_v16 = vor.u32 %v10340_v54, %v8590_v60  ;;  %v10343_v58 = vshll.u32 %v8463_v34, 16  ;;  %v10344_v54 = vshll.u32 %v8465_v42, 16  ;;  %7202 = vmatpush3.bf16.msra.mxu1 %v7647_v24  ;;  %v10356_v24 = vld [vmem:[#allocation12_spill] sm:$0xff] }
 0x1dd   : > { %v8700_v49 = vor.u32 %v10341_v39, %v8592_v21  ;;  %v1239_v62 = vrot.slane %v8596_v20, 4  ;;  %v10345_v39 = vshll.u32 %v8467_v44, 16  ;;  %v10346_v21 = vshll.u32 %v8469_v47, 16 }
 0x1de   : > { %v1229_v26 = vor.u32 %v10343_v58, %v8594_v9  ;;  %v8713_v51 = vor.u32 %v10344_v54, %v8596_v20  ;;  %v1256_v58 = vrot.slane %v8600_v11, 4  ;;  %v10347_v42 = vshll.u32 %v8474_v61, 16  ;;  %v10361_v20 = vld [vmem:[#allocation14_spill] sm:$0xff] }
 0x1df   : > { %10342 = vst [vmem:[#allocation24_spill] sm:$0xff] %v8700_v49  ;;  %v1246_v15 = vor.u32 %v10345_v39, %v8598_v27  ;;  %v8723_v34 = vor.u32 %v10346_v21, %v8600_v11  ;;  %v10348_v44 = vshll.u32 %v8476_v1, 16  ;;  %v1273_v49 = vrot.slane %v8604_v29, 4 }
 0x1e0   : > { %v1263_v54 = vor.u32 %v10347_v42, %v8602_v30  ;;  %v10350_v47 = vshll.u32 %v8478_v2, 16  ;;  %v10351_v11 = vshll.u32 %v8480_v3, 16  ;;  %v1290_v42 = vrot.slane %v8608_v37, 4 }
 0x1e1   : > { %v8733_v39 = vor.u32 %v10348_v44, %v8604_v29  ;;  %v10353_v1 = vshll.u32 %v8482_v48, 16  ;;  %v10354_v29 = vshll.u32 %v8484_v56, 16  ;;  %v10357_v3 = vshll.u32 %v10356_v24, 16 }
 0x1e2   : > { %v1280_v21 = vor.u32 %v10350_v47, %v8606_v33  ;;  %v8743_v61 = vor.u32 %v10351_v11, %v8608_v37  ;;  %v1307_v47 = vrot.slane %v8612_v57, 4  ;;  %v10358_v37 = vld [vmem:[#allocation13_spill] sm:$0xff]  ;;  %v10362_v56 = vshll.u32 %v10361_v20, 16  ;;  %v1454_v33 = vld [vmem:[#allocation2 + $0x2c] sm:$0x1] }
 0x1e3   : > { %10349 = vst [vmem:[#allocation25_spill] sm:$0xff] %v8733_v39  ;;  %v1297_v44 = vor.u32 %v10353_v1, %v8610_v43  ;;  %v8753_v2 = vor.u32 %v10354_v29, %v8612_v57  ;;  %v1314_v11 = vor.u32 %v10357_v3, %v8614_v25  ;;  %v1324_v1 = vrot.slane %v8616_v12, 4  ;;  %v10363_v57 = vld [vmem:[#allocation15_spill] sm:$0xff]  ;;  %v8775_v3 = vld [vmem:[#allocation2 + $0xc] sm:$0xf]  ;;  %v10368_v20 = vld [vmem:[#allocation17_spill] sm:$0xff] }
 0x1e4   : > { %10352 = vst [vmem:[#allocation26_spill] sm:$0xff] %v8743_v61  ;;  %v10359_v61 = vshll.u32 %v10358_v37, 16  ;;  %v1331_v29 = vor.u32 %v10362_v56, %v8618_v10  ;;  %v10364_v43 = vshll.u32 %v10363_v57, 16  ;;  %v1341_v53 = vrot.slane %v8620_v35, 4  ;;  %v1447_v57 = vld [vmem:[#allocation2 + $0x20] sm:$0x1] }
 0x1e5   : > { %10355 = vst [vmem:[#allocation27_spill] sm:$0xff] %v8753_v2  ;;  %v10369_v56 = vshll.u32 %v10368_v20, 16  ;;  %v8787_v2 = vld [vmem:[#allocation2 + $0x18] sm:$0xf]  ;;  %v1375_v10 = vrot.slane %v8624_v8, 4 }
 0x1e6   : > { %v8763_v48 = vor.u32 %v10359_v61, %v8616_v12  ;;  %v8773_v24 = vor.u32 %v10364_v43, %v8620_v35  ;;  %v10366_v61 = vld [vmem:[#allocation16_spill] sm:$0xff]  ;;  %v1440_v43 = vld [vmem:[#allocation2 + $0x14] sm:$0x1]  ;;  %v10371_v35 = vshll.u32 %v8498_v52, 16  ;;  %v10372_v12 = vrot.slane %v8568_v22, 4 }
 0x1e7   : > { %v10367_v37 = vshll.u32 %v10366_v61, 16  ;;  %v8785_v25 = vor.u32 %v10369_v56, %v8624_v8  ;;  %v8803_v39 = vld [vmem:[#allocation2 + $0x3c] sm:$0xf]  ;;  %v10374_v8 = vrot.slane %v8572_v38, 4  ;;  %v8823_v38 = vld [vmem:[#allocation2 + $0x50] sm:$0x1] }
 0x1e8   : > { %10360 = vst [vmem:[#allocation12_spill] sm:$0xff] %v8763_v48  ;;  %10365 = vst [vmem:[#allocation13_spill] sm:$0xff] %v8773_v24  ;;  %v8789_v24 = vld [vmem:[#allocation2 + $0x24] sm:$0xf]  ;;  %v1382_v61 = vor.u32 %v10371_v35, %v8626_v19  ;;  %v1128_v56 = vsel %vm8268_vm13, %v10372_v12, %v8637_v31  ;;  %v10375_v35 = vrot.slane %v8576_v13, 4  ;;  %v10376_v31 = vrot.slane %v8580_v36, 4 }
 0x1e9   : > { %v1348_v48 = vor.u32 %v10367_v37, %v8622_v17  ;;  %10370 = vst [vmem:[#allocation14_spill] sm:$0xff] %v8785_v25  ;;  %v8801_v25 = vld [vmem:[#allocation2 + $0x30] sm:$0xf]  ;;  %v1461_v17 = vld [vmem:[#allocation2 + $0x38] sm:$0x1]  ;;  %v1145_v52 = vsel %vm8268_vm13, %v10374_v8, %v8649_v63  ;;  %v1196_v37 = vsel %vm8268_vm13, %v1188_v14, %v1195_v41  ;;  %v1213_v13 = vsel %vm8268_vm13, %v1205_v18, %v1212_v16 }
 0x1ea   : > { %v1162_v22 = vsel %vm8268_vm13, %v10375_v35, %v8664_v4  ;;  %v1179_v12 = vsel %vm8268_vm13, %v10376_v31, %v1178_v23  ;;  %1439 = vst [vmem:[#allocation2 + $0x10] sm:$0xf] %v1128_v56  ;;  %v8821_v19 = vld [vmem:[#allocation2 + $0x48] sm:$0xf]  ;;  %v1468_v63 = vld [vmem:[#allocation2 + $0x44] sm:$0x1]  ;;  %v1230_v36 = vsel %vm8268_vm13, %v1222_v40, %v1229_v26  ;;  %v1247_v23 = vsel %vm8268_vm13, %v1239_v62, %v1246_v15 }
 0x1eb   : > { %v8825_v8 = vld [vmem:[#allocation2 + $0x54] sm:$0xf]  ;;  %v1264_v4 = vsel %vm8268_vm13, %v1256_v58, %v1263_v54  ;;  %1446 = vst [vmem:[#allocation2 + $0x1c] sm:$0xf] %v1145_v52  ;;  %1453 = vst [vmem:[#allocation2 + $0x28] sm:$0xf] %v1162_v22  ;;  %v1281_v18 = vsel %vm8268_vm13, %v1273_v49, %v1280_v21  ;;  %v1298_v16 = vsel %vm8268_vm13, %v1290_v42, %v1297_v44 }
 0x1ec   : > { %1460 = vst [vmem:[#allocation2 + $0x34] sm:$0xf] %v1179_v12  ;;  %1467 = vst [vmem:[#allocation2 + $0x40] sm:$0xf] %v1196_v37  ;;  %v8835_v14 = vld [vmem:[#allocation2 + $0x60] sm:$0xf]  ;;  %v1315_v15 = vsel %vm8268_vm13, %v1307_v47, %v1314_v11  ;;  %v1332_v40 = vsel %vm8268_vm13, %v1324_v1, %v1331_v29  ;;  %v1349_v21 = vsel %vm8268_vm13, %v1341_v53, %v1348_v48 }
 0x1ed   : > { %v1489_v41 = vld [vmem:[#allocation2 + $0x68] sm:$0x1]  ;;  %v1482_v56 = vld [vmem:[#allocation2 + $0x5c] sm:$0x1]  ;;  %1474 = vst [vmem:[#allocation2 + $0x4c] sm:$0xf] %v1213_v13  ;;  %v1383_v42 = vsel %vm8268_vm13, %v1375_v10, %v1382_v61  ;;  %v1437_v47 = vsel %vm8362_vm15, %v8631_v55, %v8775_v3  ;;  %v1444_v10 = vsel %vm8362_vm15, %v8643_v0, %v8787_v2  ;;  %v1451_v3 = vsel %vm8362_vm15, %v8655_v28, %v8789_v24 }
 0x1ee   : > { %1481 = vst [vmem:[#allocation2 + $0x58] sm:$0xf] %v1230_v36  ;;  %1488 = vst [vmem:[#allocation2 + $0x64] sm:$0xf] %v1247_v23  ;;  %v7654_v26 = vld [vmem:[%s10267_s4 + $0x178] sm:$0xff]   ;;  %v10378_v11 = vrot.slane %v8570_v59, 4 }
 0x1ef   : > { %1495 = vst [vmem:[#allocation2 + $0x70] sm:$0xf] %v1264_v4  ;;  %v8848_v62 = vld [vmem:[#allocation2 + $0x78] sm:$0xf]  ;;  %v1492_v49 = vld [vmem:[#allocation2 + $0x6c] sm:$0xf]  ;;  %7203 = vmatprep.subr.bf16.mxu1 %v7654_v26 }
 0x1f0   : > { %v1503_v58 = vld [vmem:[#allocation2 + $0x80] sm:$0x1]  ;;  %v1496_v54 = vld [vmem:[#allocation2 + $0x74] sm:$0x1]  ;;  %v1441_v29 = vsel %vm7788_vm4, %v10378_v11, %v1440_v43  ;;  %1502 = vst [vmem:[#allocation2 + $0x7c] sm:$0xf] %v1281_v18  ;;  %v1493_v12 = vsel %vm8362_vm15, %v8723_v34, %v1492_v49 }
 0x1f1   : > { %1509 = vst [vmem:[#allocation2 + $0x88] sm:$0xf] %v1298_v16  ;;  %1516 = vst [vmem:[#allocation2 + $0x94] sm:$0xf] %v1315_v15  ;;  %v8862_v37 = vld [vmem:[#allocation2 + $0x90] sm:$0xf] }
 0x1f2   : > { %1523 = vst [vmem:[#allocation2 + $0xa0] sm:$0xf] %v1332_v40  ;;  %v1506_v53 = vld [vmem:[#allocation2 + $0x84] sm:$0xf]  ;;  %v1517_v48 = vld [vmem:[#allocation2 + $0x98] sm:$0x1] }
 0x1f3   : > { %v1510_v20 = vld [vmem:[#allocation2 + $0x8c] sm:$0x1]  ;;  %v10380_v55 = vrot.slane %v8574_v5, 4  ;;  %v10381_v43 = vrot.slane %v8578_v6, 4  ;;  %1438 = vst [vmem:[#allocation2 + $0xc] sm:$0xf] %v1437_v47 }
 0x1f4   : > { %1442 = vst [vmem:[#allocation2 + $0x14] sm:$0x1] %v1441_v29  ;;  %1530 = vst [vmem:[#allocation2 + $0xac] sm:$0xf] %v1349_v21  ;;  %v1527_v0 = vld [vmem:[#allocation2 + $0xa8] sm:$0xf] }
 0x1f5   : > { %v1448_v59 = vsel %vm7788_vm4, %v10380_v55, %v1447_v57  ;;  %v1455_v61 = vsel %vm7788_vm4, %v10381_v43, %v1454_v33  ;;  %1544 = vst [vmem:[#allocation2 + $0xc4] sm:$0xf] %v1383_v42  ;;  %v1520_v5 = vld [vmem:[#allocation2 + $0x9c] sm:$0xf]  ;;  %v1531_v2 = vld [vmem:[#allocation2 + $0xb0] sm:$0x1]  ;;  %v1458_v57 = vsel %vm8362_vm15, %v8670_v46, %v8801_v25  ;;  %v1465_v33 = vsel %vm8362_vm15, %v8680_v32, %v8803_v39 }
 0x1f6   : > { %v10382_v28 = vrot.slane %v8582_v7, 4  ;;  %v10383_v24 = vrot.slane %v8586_v50, 4  ;;  %1445 = vst [vmem:[#allocation2 + $0x18] sm:$0xf] %v1444_v10  ;;  %1449 = vst [vmem:[#allocation2 + $0x20] sm:$0x1] %v1448_v59  ;;  %v1472_v7 = vsel %vm8362_vm15, %v8690_v45, %v8821_v19  ;;  %v1486_v45 = vsel %vm8362_vm15, %v8713_v51, %v8835_v14 }
 0x1f7   : > { %1452 = vst [vmem:[#allocation2 + $0x24] sm:$0xf] %v1451_v3  ;;  %1456 = vst [vmem:[#allocation2 + $0x2c] sm:$0x1] %v1455_v61  ;;  %v1524_v25 = vld [vmem:[#allocation2 + $0xa4] sm:$0x1] }
 0x1f8   : > { %v1462_v6 = vsel %vm7788_vm4, %v10382_v28, %v1461_v17  ;;  %v1469_v52 = vsel %vm7788_vm4, %v10383_v24, %v1468_v63  ;;  %v1541_v46 = vld [vmem:[#allocation2 + $0xc0] sm:$0xf]  ;;  %v10384_v17 = vrot.slane %v8590_v60, 4  ;;  %v10385_v32 = vld [vmem:[#allocation24_spill] sm:$0xff]  ;;  %v10386_v35 = vrot.slane %v8594_v9, 4  ;;  %v10390_v13 = vld [vmem:[#allocation18_spill] sm:$0xff] }
 0x1f9   : > { %v1479_v39 = vsel %vm8362_vm15, %v10385_v32, %v8825_v8  ;;  %1459 = vst [vmem:[#allocation2 + $0x30] sm:$0xf] %v1458_v57  ;;  %1463 = vst [vmem:[#allocation2 + $0x38] sm:$0x1] %v1462_v6  ;;  %v7655_v60 = vld [vmem:[%s10267_s4 + $0x138] sm:$0xff]   ;;  %v10387_v31 = vrot.slane %v8598_v27, 4 }
 0x1fa   : > { %v1476_v50 = vsel %vm7788_vm4, %v10384_v17, %v8823_v38  ;;  %v1483_v22 = vsel %vm7788_vm4, %v10386_v35, %v1482_v56  ;;  %1466 = vst [vmem:[#allocation2 + $0x3c] sm:$0xf] %v1465_v33  ;;  %1470 = vst [vmem:[#allocation2 + $0x44] sm:$0x1] %v1469_v52  ;;  %v1545_v19 = vld [vmem:[#allocation2 + $0xc8] sm:$0x1]  ;;  %7204 = vmatpush3.bf16.msra.mxu1 %v7655_v60 }
 0x1fb   : > { %v1490_v9 = vsel %vm7788_vm4, %v10387_v31, %v1489_v41  ;;  %v10388_v38 = vrot.slane %v8602_v30, 4  ;;  %1473 = vst [vmem:[#allocation2 + $0x48] sm:$0xf] %v1472_v7  ;;  %1477 = vst [vmem:[#allocation2 + $0x50] sm:$0x1] %v1476_v50  ;;  %v10389_v51 = vld [vmem:[#allocation25_spill] sm:$0xff] }
 0x1fc   : > { %1480 = vst [vmem:[#allocation2 + $0x54] sm:$0xf] %v1479_v39  ;;  %1484 = vst [vmem:[#allocation2 + $0x5c] sm:$0x1] %v1483_v22  ;;  %v1696_v8 = vld [vmem:[#allocation2 + $0x10] sm:$0xf]  ;;  %v1500_v27 = vsel %vm8362_vm15, %v10389_v51, %v8848_v62 }
 0x1fd   : > { %v1497_v63 = vsel %vm7788_vm4, %v10388_v38, %v1496_v54  ;;  %v10391_v36 = vrot.slane %v10390_v13, 4  ;;  %v10392_v23 = vld [vmem:[#allocation26_spill] sm:$0xff]  ;;  %v10393_v4 = vld [vmem:[#allocation19_spill] sm:$0xff]  ;;  %1487 = vst [vmem:[#allocation2 + $0x60] sm:$0xf] %v1486_v45  ;;  %v10396_v16 = vld [vmem:[#allocation20_spill] sm:$0xff] }
 0x1fe   : > { %v1507_v30 = vsel %vm8362_vm15, %v10392_v23, %v1506_v53  ;;  %v10394_v14 = vrot.slane %v10393_v4, 4  ;;  %1491 = vst [vmem:[#allocation2 + $0x68] sm:$0x1] %v1490_v9  ;;  %1494 = vst [vmem:[#allocation2 + $0x6c] sm:$0xf] %v1493_v12  ;;  %v10395_v56 = vld [vmem:[#allocation27_spill] sm:$0xff] }
 0x1ff   : > { %v1504_v34 = vsel %vm7788_vm4, %v10391_v36, %v1503_v58  ;;  %1498 = vst [vmem:[#allocation2 + $0x74] sm:$0x1] %v1497_v63  ;;  %v1514_v18 = vsel %vm8362_vm15, %v10395_v56, %v8862_v37  ;;  %v10397_v15 = vrot.slane %v10396_v16, 4  ;;  %v10398_v26 = vld [vmem:[#allocation12_spill] sm:$0xff]  ;;  %v10399_v49 = vld [vmem:[#allocation21_spill] sm:$0xff]  ;;  %v10402_v11 = vld [vmem:[#allocation22_spill] sm:$0xff] }
 0x200   : > { %v1511_v41 = vsel %vm7788_vm4, %v10394_v14, %v1510_v20  ;;  %v1521_v62 = vsel %vm8362_vm15, %v10398_v26, %v1520_v5  ;;  %v10400_v58 = vrot.slane %v10399_v49, 4  ;;  %1501 = vst [vmem:[#allocation2 + $0x78] sm:$0xf] %v1500_v27  ;;  %1505 = vst [vmem:[#allocation2 + $0x80] sm:$0x1] %v1504_v34  ;;  %v7596_v21 = vld [vmem:[%s10267_s4 + $0x180] sm:$0xff]  }
 0x201   : > { %v1518_v40 = vsel %vm7788_vm4, %v10397_v15, %v1517_v48  ;;  %1508 = vst [vmem:[#allocation2 + $0x84] sm:$0xf] %v1507_v30  ;;  %1512 = vst [vmem:[#allocation2 + $0x8c] sm:$0x1] %v1511_v41  ;;  %v10401_v42 = vld [vmem:[#allocation13_spill] sm:$0xff]  ;;  %v10403_v29 = vrot.slane %v10402_v11, 4 }
 0x202   : > { %v1525_v54 = vsel %vm7788_vm4, %v10400_v58, %v1524_v25  ;;  %v1528_v47 = vsel %vm8362_vm15, %v10401_v42, %v1527_v0  ;;  %v10404_v53 = vld [vmem:[#allocation14_spill] sm:$0xff]  ;;  %v10405_v20 = vld [vmem:[#allocation23_spill] sm:$0xff]  ;;  %1515 = vst [vmem:[#allocation2 + $0x90] sm:$0xf] %v1514_v18  ;;  %1519 = vst [vmem:[#allocation2 + $0x98] sm:$0x1] %v1518_v40 }
 0x203   : > { %v1532_v37 = vsel %vm7788_vm4, %v10403_v29, %v1531_v2  ;;  %v1542_v48 = vsel %vm8362_vm15, %v10404_v53, %v1541_v46  ;;  %v10406_v10 = vrot.slane %v10405_v20, 4  ;;  %1522 = vst [vmem:[#allocation2 + $0x9c] sm:$0xf] %v1521_v62  ;;  %1526 = vst [vmem:[#allocation2 + $0xa4] sm:$0x1] %v1525_v54  ;;  %v7602_v3 = vld [vmem:[%s10267_s4 + $0x1c8] sm:$0xff]  }
 0x204   : > { %v2211_v59 = vld [vmem:[#allocation2 + $0x10] sm:$0xf]  ;;  %1529 = vst [vmem:[#allocation2 + $0xa8] sm:$0xf] %v1528_v47  ;;  %1533 = vst [vmem:[#allocation2 + $0xb0] sm:$0x1] %v1532_v37 }
 0x205   : > { %v1546_v55 = vsel %vm7788_vm4, %v10406_v10, %v1545_v19  ;;  %1543 = vst [vmem:[#allocation2 + $0xc0] sm:$0xf] %v1542_v48  ;;  %v7593_v44 = vld [vmem:[#allocation2 + $0xc] sm:$0xff]   ;;  %v1777_v61 = vshll.u32 %v1696_v8, 16  ;;  %v7597_v0 = vld [vmem:[#allocation2 + $0x18] sm:$0xff]   ;;  %v1781_v6 = vshrl.u32 %v1696_v8, 16 }
 0x206   : > { %1547 = vst [vmem:[#allocation2 + $0xc8] sm:$0x1] %v1546_v55  ;;  %v1695_v43 = vld [vmem:[#allocation2 + $0xc] sm:$0xf]  ;;  %v1697_v5 = vld [vmem:[#allocation2 + $0x14] sm:$0x1]  ;;  %5300 = vmatprep.mubr.bf16.mxu0 %v7593_v44 }
 0x207   : > { %v1768_v2 = vshrl.u32 %v1695_v43, 16  ;;  %v1771_v57 = vshll.u32 %v1695_v43, 16  ;;  %v1779_v28 = vrot.slane %v1777_v61, 5  ;;  %v1787_v33 = vshll.u32 %v1697_v5, 16  ;;  %v2210_v24 = vld [vmem:[#allocation2 + $0xc] sm:$0xe] }
 0x208   : > { %v7603_v52 = vld [vmem:[%s10267_s4 + $0x188] sm:$0xff]   ;;  %v10407_v25 = vld [vmem:[#allocation8_spill] sm:$0xff]  ;;  %v10408_v46 = vld [vmem:[#allocation9_spill] sm:$0xff]  ;;  %v2315_v32 = vrot.slane %v2211_v59, 5  ;;  %v1783_v60 = vrot.slane %v1781_v6, 4  ;;  %v6520_v45 = vrot.slane %v2210_v24, 9 }
 0x209   : > { %v10409_v7 = vcombine.low %v10407_v25, %v10408_v46  ;;  %v1770_v17 = vrot.slane %v1768_v2, 4  ;;  %v2212_v50 = vld [vmem:[#allocation2 + $0x14] sm:$0x1]  ;;  %v1699_v39 = vld [vmem:[#allocation2 + $0x1c] sm:$0xf]  ;;  %v1773_v22 = vrot.slane %v1771_v57, 5 }
 0x20a   : > { %v7610_v35 = vld [vmem:[%s10267_s4 + $0x1d0] sm:$0xff]   ;;  %v1789_v19 = vrot.slane %v1787_v33, 5  ;;  %v2317_v31 = vrot.slane %v2315_v32, 4  ;;  %v2318_v9 = vrot.slane %v2212_v50, 5  ;;  %v1698_v12 = vld [vmem:[#allocation2 + $0x18] sm:$0xf]  ;;  %v1784_v8 = vor.u32 %v1783_v60, %v1779_v28 }
 0x20b   : > { %5301 = vmatmul.mubr.bf16.vlgmr.msra.gmra.mrb[32].mxu0 %v10409_v7  ;;  %v8990_v38 = vld [vmem:[#allocation2 + $0x1c] sm:$0xf]  ;;  %v1774_v63 = vor.u32 %v1773_v22, %v1770_v17  ;;  %v1700_v51 = vld [vmem:[#allocation2 + $0x20] sm:$0x1]  ;;  %v1792_v27 = vshrl.u32 %v1698_v12, 16  ;;  %v1795_v13 = vshll.u32 %v1698_v12, 16  ;;  %v2316_v16 = vsel %vm8194_vm11, %v6520_v45, %v2315_v32 }
 0x20c   : > { %7302 = vmatpush3.bf16.msra.mxu0 %v7596_v21  ;;  %5308 = vmatprep.mubr.bf16.mxu0 %v7597_v0  ;;  %v2213_v36 = vld [vmem:[#allocation2 + $0x18] sm:$0xe]  ;;  %v2319_v23 = vsel %vm8194_vm11, %v2317_v31, %v2318_v9  ;;  %v1801_v30 = vshll.u32 %v1699_v39, 16  ;;  %v1805_v4 = vshrl.u32 %v1699_v39, 16  ;;  %v1811_v14 = vshll.u32 %v1700_v51, 16  ;;  %v7611_v26 = vld [vmem:[%s10267_s4 + $0x190] sm:$0xff]  }
 0x20d   : > { %7303 = vmatprep.subr.bf16.mxu0 %v7602_v3  ;;  %v2215_v41 = vld [vmem:[#allocation2 + $0x20] sm:$0x1]  ;;  %v1775_v56 = vrot.slane %v1774_v63, 4  ;;  %v1785_v18 = vrot.slane %v1784_v8, 4  ;;  %v1794_v15 = vrot.slane %v1792_v27, 4  ;;  %v6536_v62 = vcombine.low %v2316_v16, %v2319_v23  ;;  %v7618_v21 = vld [vmem:[%s10267_s4 + $0x1d8] sm:$0xff]  }
 0x20e   : > { %v1702_v40 = vld [vmem:[#allocation2 + $0x28] sm:$0xf]  ;;  %v1797_v49 = vrot.slane %v1795_v13, 5  ;;  %v1803_v58 = vrot.slane %v1801_v30, 5  ;;  %v1807_v54 = vrot.slane %v1805_v4, 4  ;;  %v1813_v37 = vrot.slane %v1811_v14, 5 }
 0x20f   : > { %v1780_v47 = vsel %vm8169_vm8, %v1775_v56, %v1779_v28  ;;  %v1790_v11 = vsel %vm8169_vm8, %v1785_v18, %v1789_v19  ;;  %v7601_v29 = vld [vmem:[#allocation2 + $0x24] sm:$0xff]   ;;  %v2322_v53 = vrot.slane %v8990_v38, 5  ;;  %v7619_v20 = vld [vmem:[%s10267_s4 + $0x198] sm:$0xff]   ;;  %v7600_v55 = vld [vmem:[#allocation2 + $0xc] sm:$0xff]   ;;  %v6521_v44 = vrot.slane %v2213_v36, 9 }
 0x210   : > { %7304 = vmatpush3.bf16.msra.mxu0 %v7603_v52  ;;  %v1701_v48 = vld [vmem:[#allocation2 + $0x24] sm:$0xf]  ;;  %v6504_v10 = vcombine.low %v1780_v47, %v1790_v11  ;;  %v1798_v59 = vor.u32 %v1797_v49, %v1794_v15  ;;  %v1808_v3 = vor.u32 %v1807_v54, %v1803_v58  ;;  %v1703_v43 = vld [vmem:[#allocation2 + $0x2c] sm:$0x1]  ;;  %v2325_v5 = vrot.slane %v2215_v41, 5  ;;  %v7605_v30 = vld [vmem:[#allocation2 + $0x30] sm:$0xff]  }
 0x211   : > { %7305 = vmatprep.subr.bf16.mxu0 %v7610_v35  ;;  %v7626_v61 = vld [vmem:[%s10267_s4 + $0x1e0] sm:$0xff]   ;;  %v2324_v0 = vrot.slane %v2322_v53, 4  ;;  %v1816_v2 = vshrl.u32 %v1701_v48, 16  ;;  %v1819_v57 = vshll.u32 %v1701_v48, 16  ;;  %v9015_v6 = vld [vmem:[#allocation2 + $0x28] sm:$0xf]  ;;  %v2323_v35 = vsel %vm8194_vm11, %v6521_v44, %v2322_v53 }
 0x212   : > { %v9013_v28 = vld [vmem:[#allocation2 + $0x24] sm:$0xe]  ;;  %5147 = vmatprep.mubr.bf16.mxu1 %v6504_v10  ;;  %v1799_v33 = vrot.slane %v1798_v59, 4  ;;  %v1809_v24 = vrot.slane %v1808_v3, 4  ;;  %v1825_v52 = vshll.u32 %v1702_v40, 16  ;;  %v1829_v25 = vshrl.u32 %v1702_v40, 16 }
 0x213   : > { %5309 = vmatmul.mubr.bf16.gmra.mrb[36].mxu0 %v6536_v62  ;;  %5148 = vmatmul.mubr.bf16.gmra.mrb[4].mxu1 %v7600_v55  ;;  %v2326_v46 = vsel %vm8194_vm11, %v2324_v0, %v2325_v5  ;;  %v1818_v7 = vrot.slane %v1816_v2, 4  ;;  %v1821_v17 = vrot.slane %v1819_v57, 5  ;;  %v1835_v50 = vshll.u32 %v1703_v43, 16  ;;  %v1704_v60 = vld [vmem:[#allocation2 + $0x30] sm:$0xf]  ;;  %v7627_v19 = vld [vmem:[%s10267_s4 + $0x1a0] sm:$0xff]  }
 0x214   : > { %5316 = vmatprep.mubr.bf16.mxu0 %v7601_v29  ;;  %7306 = vmatpush3.bf16.msra.mxu0 %v7611_v26  ;;  %v1804_v32 = vsel %vm8169_vm8, %v1799_v33, %v1803_v58  ;;  %v1814_v39 = vsel %vm8169_vm8, %v1809_v24, %v1813_v37  ;;  %v1827_v22 = vrot.slane %v1825_v52, 5  ;;  %v6537_v31 = vcombine.low %v2323_v35, %v2326_v46  ;;  %v2218_v38 = vld [vmem:[#allocation2 + $0x2c] sm:$0x1]  ;;  %v1705_v63 = vld [vmem:[#allocation2 + $0x34] sm:$0xf]  ;;  %v7604_v58 = vld [vmem:[#allocation2 + $0x18] sm:$0xff]  }
 0x215   : > { %7307 = vmatprep.subr.bf16.mxu0 %v7618_v21  ;;  %v6505_v45 = vcombine.low %v1804_v32, %v1814_v39  ;;  %v1822_v9 = vor.u32 %v1821_v17, %v1818_v7  ;;  %v1831_v12 = vrot.slane %v1829_v25, 4  ;;  %v7634_v8 = vld [vmem:[%s10267_s4 + $0x1e8] sm:$0xff]   ;;  %v1837_v51 = vrot.slane %v1835_v50, 5  ;;  %v1706_v36 = vld [vmem:[#allocation2 + $0x38] sm:$0x1]  ;;  %v7642_v48 = vld [vmem:[%s10267_s4 + $0x1f0] sm:$0xff]  }
 0x216   : > { %v6522_v27 = vrot.slane %v9013_v28, 9  ;;  %v2329_v13 = vrot.slane %v9015_v6, 5  ;;  %v1840_v23 = vshrl.u32 %v1704_v60, 16  ;;  %v1843_v41 = vshll.u32 %v1704_v60, 16  ;;  %v2219_v18 = vld [vmem:[#allocation2 + $0x30] sm:$0xe] }
 0x217   : > { %5155 = vmatprep.mubr.bf16.mxu1 %v6505_v45  ;;  %v1823_v4 = vrot.slane %v1822_v9, 4  ;;  %v1832_v14 = vor.u32 %v1831_v12, %v1827_v22  ;;  %v1849_v56 = vshll.u32 %v1705_v63, 16  ;;  %v7635_v16 = vld [vmem:[%s10267_s4 + $0x1a8] sm:$0xff]   ;;  %v2332_v40 = vrot.slane %v2218_v38, 5  ;;  %v2220_v49 = vld [vmem:[#allocation2 + $0x34] sm:$0xf] }
 0x218   : > { %7308 = vmatpush3.bf16.msra.mxu0 %v7619_v20  ;;  %v2331_v15 = vrot.slane %v2329_v13, 4  ;;  %v1842_v26 = vrot.slane %v1840_v23, 4  ;;  %v1853_v62 = vshrl.u32 %v1705_v63, 16  ;;  %v1845_v47 = vrot.slane %v1843_v41, 5  ;;  %v7643_v3 = vld [vmem:[%s10267_s4 + $0x1b0] sm:$0xff]   ;;  %v7650_v57 = vld [vmem:[%s10267_s4 + $0x1f8] sm:$0xff]  }
 0x219   : > { %7309 = vmatprep.subr.bf16.mxu0 %v7626_v61  ;;  %v1828_v54 = vsel %vm8169_vm8, %v1823_v4, %v1827_v22  ;;  %v1833_v21 = vrot.slane %v1832_v14, 4  ;;  %v1851_v11 = vrot.slane %v1849_v56, 5  ;;  %v1859_v53 = vshll.u32 %v1706_v36, 16  ;;  %v1707_v5 = vld [vmem:[#allocation2 + $0x3c] sm:$0xf]  ;;  %v7608_v39 = vld [vmem:[#allocation2 + $0x24] sm:$0xff]  }
 0x21a   : > { %v2333_v29 = vsel %vm8194_vm11, %v2331_v15, %v2332_v40  ;;  %v1855_v37 = vrot.slane %v1853_v62, 4  ;;  %v2330_v10 = vsel %vm8194_vm11, %v6522_v27, %v2329_v13  ;;  %v1846_v55 = vor.u32 %v1845_v47, %v1842_v26  ;;  %v1708_v2 = vld [vmem:[#allocation2 + $0x40] sm:$0xf]  ;;  %v1709_v52 = vld [vmem:[#allocation2 + $0x44] sm:$0x1] }
 0x21b   : > { %5317 = vmatmul.mubr.bf16.gmra.mrb[40].mxu0 %v6537_v31  ;;  %5156 = vmatmul.mubr.bf16.gmra.mrb[8].mxu1 %v7604_v58  ;;  %v1838_v20 = vsel %vm8169_vm8, %v1833_v21, %v1837_v51  ;;  %v2336_v59 = vrot.slane %v2220_v49, 5  ;;  %v6538_v43 = vcombine.low %v2330_v10, %v2333_v29  ;;  %v6523_v0 = vrot.slane %v2219_v18, 9  ;;  %v7609_v28 = vld [vmem:[#allocation2 + $0x3c] sm:$0xff]   ;;  %v2221_v7 = vld [vmem:[#allocation2 + $0x38] sm:$0x1] }
 0x21c   : > { %5324 = vmatprep.mubr.bf16.mxu0 %v7605_v30  ;;  %7310 = vmatpush3.bf16.msra.mxu0 %v7627_v19  ;;  %v6506_v44 = vcombine.low %v1828_v54, %v1838_v20  ;;  %v1856_v61 = vor.u32 %v1855_v37, %v1851_v11  ;;  %v1847_v6 = vrot.slane %v1846_v55, 4  ;;  %v1861_v33 = vrot.slane %v1859_v53, 5  ;;  %v2222_v19 = vld [vmem:[#allocation2 + $0x3c] sm:$0xe]  ;;  %v2223_v45 = vld [vmem:[#allocation2 + $0x40] sm:$0xf] }
 0x21d   : > { %7311 = vmatprep.subr.bf16.mxu0 %v7634_v8  ;;  %v2338_v24 = vrot.slane %v2336_v59, 4  ;;  %v1864_v25 = vshrl.u32 %v1707_v5, 16  ;;  %v1867_v17 = vshll.u32 %v1707_v5, 16  ;;  %v1873_v50 = vshll.u32 %v1708_v2, 16  ;;  %v7651_v31 = vld [vmem:[%s10267_s4 + $0x1b8] sm:$0xff]   ;;  %v7613_v20 = vld [vmem:[#allocation2 + $0x48] sm:$0xff]  }
 0x21e   : > { %5163 = vmatprep.mubr.bf16.mxu1 %v6506_v44  ;;  %v1857_v46 = vrot.slane %v1856_v61, 4  ;;  %v1877_v32 = vshrl.u32 %v1708_v2, 16  ;;  %v1852_v35 = vsel %vm8169_vm8, %v1847_v6, %v1851_v11  ;;  %v1883_v60 = vshll.u32 %v1709_v52, 16  ;;  %v2224_v27 = vld [vmem:[#allocation2 + $0x44] sm:$0x1]  ;;  %v7612_v61 = vld [vmem:[#allocation2 + $0x30] sm:$0xff]  }
 0x21f   : > { %v1866_v22 = vrot.slane %v1864_v25, 4  ;;  %v1869_v12 = vrot.slane %v1867_v17, 5  ;;  %v1875_v38 = vrot.slane %v1873_v50, 5  ;;  %v2337_v63 = vsel %vm8194_vm11, %v6523_v0, %v2336_v59  ;;  %v1710_v4 = vld [vmem:[#allocation2 + $0x48] sm:$0xf] }
 0x220   : > { %7312 = vmatpush3.bf16.msra.mxu0 %v7635_v16  ;;  %v1862_v9 = vsel %vm8169_vm8, %v1857_v46, %v1861_v33  ;;  %v2339_v8 = vrot.slane %v2221_v7, 5  ;;  %v1879_v51 = vrot.slane %v1877_v32, 4  ;;  %v1885_v23 = vrot.slane %v1883_v60, 5  ;;  %v1711_v56 = vld [vmem:[#allocation2 + $0x4c] sm:$0xf] }
 0x221   : > { %7313 = vmatprep.subr.bf16.mxu0 %v7642_v48  ;;  %v6507_v13 = vcombine.low %v1852_v35, %v1862_v9  ;;  %v1870_v36 = vor.u32 %v1869_v12, %v1866_v22  ;;  %v2343_v30 = vrot.slane %v2223_v45, 5  ;;  %v1712_v18 = vld [vmem:[#allocation2 + $0x50] sm:$0x1]  ;;  %v1888_v16 = vshrl.u32 %v1710_v4, 16  ;;  %v9064_v11 = vld [vmem:[#allocation2 + $0x4c] sm:$0xf] }
 0x222   : > { %v2340_v14 = vsel %vm8194_vm11, %v2338_v24, %v2339_v8  ;;  %v1880_v41 = vor.u32 %v1879_v51, %v1875_v38  ;;  %v1891_v15 = vshll.u32 %v1710_v4, 16  ;;  %v6524_v26 = vrot.slane %v2222_v19, 9  ;;  %v2227_v44 = vld [vmem:[#allocation2 + $0x50] sm:$0x1]  ;;  %v1714_v6 = vld [vmem:[#allocation2 + $0x58] sm:$0xf] }
 0x223   : > { %5325 = vmatmul.mubr.bf16.gmra.mrb[44].mxu0 %v6538_v43  ;;  %5164 = vmatmul.mubr.bf16.gmra.mrb[12].mxu1 %v7608_v39  ;;  %v1871_v40 = vrot.slane %v1870_v36, 4  ;;  %v2345_v62 = vrot.slane %v2343_v30, 4  ;;  %v1897_v49 = vshll.u32 %v1711_v56, 16  ;;  %v1890_v54 = vrot.slane %v1888_v16, 4  ;;  %v1715_v52 = vld [vmem:[#allocation2 + $0x5c] sm:$0x1] }
 0x224   : > { %5332 = vmatprep.mubr.bf16.mxu0 %v7609_v28  ;;  %7314 = vmatpush3.bf16.msra.mxu0 %v7643_v3  ;;  %v1881_v58 = vrot.slane %v1880_v41, 4  ;;  %v1893_v21 = vrot.slane %v1891_v15, 5  ;;  %v1901_v47 = vshrl.u32 %v1711_v56, 16  ;;  %v6539_v29 = vcombine.low %v2337_v63, %v2340_v14  ;;  %v1713_v28 = vld [vmem:[#allocation2 + $0x54] sm:$0xf] }
 0x225   : > { %7315 = vmatprep.subr.bf16.mxu0 %v7650_v57  ;;  %5171 = vmatprep.mubr.bf16.mxu1 %v6507_v13  ;;  %v2346_v37 = vrot.slane %v2224_v27, 5  ;;  %v1899_v53 = vrot.slane %v1897_v49, 5  ;;  %v1907_v48 = vshll.u32 %v1712_v18, 16  ;;  %v1876_v10 = vsel %vm8169_vm8, %v1871_v40, %v1875_v38  ;;  %v2225_v17 = vld [vmem:[#allocation2 + $0x48] sm:$0xe]  ;;  %v7616_v13 = vld [vmem:[#allocation2 + $0x3c] sm:$0xff]  }
 0x226   : > { %v1886_v55 = vsel %vm8169_vm8, %v1881_v58, %v1885_v23  ;;  %v1894_v59 = vor.u32 %v1893_v21, %v1890_v54  ;;  %v1903_v3 = vrot.slane %v1901_v47, 4  ;;  %v2350_v43 = vrot.slane %v9064_v11, 5  ;;  %v9077_v45 = vld [vmem:[#allocation2 + $0x58] sm:$0xf]  ;;  %v2230_v27 = vld [vmem:[#allocation2 + $0x5c] sm:$0x1] }
 0x227   : > { %v2344_v0 = vsel %vm8194_vm11, %v6524_v26, %v2343_v30  ;;  %v2347_v5 = vsel %vm8194_vm11, %v2345_v62, %v2346_v37  ;;  %v6508_v33 = vcombine.low %v1876_v10, %v1886_v55  ;;  %v1909_v24 = vrot.slane %v1907_v48, 5  ;;  %v1716_v4 = vld [vmem:[#allocation2 + $0x60] sm:$0xf]  ;;  %v1717_v18 = vld [vmem:[#allocation2 + $0x64] sm:$0xf] }
 0x228   : > { %7316 = vmatpush3.bf16.msra.mxu0 %v7651_v31  ;;  %v1895_v2 = vrot.slane %v1894_v59, 4  ;;  %v1904_v57 = vor.u32 %v1903_v3, %v1899_v53  ;;  %v1912_v25 = vshrl.u32 %v1713_v28, 16  ;;  %v1915_v46 = vshll.u32 %v1713_v28, 16  ;;  %v7617_v31 = vld [vmem:[#allocation2 + $0x54] sm:$0xff]   ;;  %v1718_v16 = vld [vmem:[#allocation2 + $0x68] sm:$0x1] }
 0x229   : > { %v2353_v50 = vrot.slane %v2227_v44, 5  ;;  %v1921_v32 = vshll.u32 %v1714_v6, 16  ;;  %v1925_v39 = vshrl.u32 %v1714_v6, 16  ;;  %v2352_v35 = vrot.slane %v2350_v43, 4  ;;  %v2228_v62 = vld [vmem:[#allocation2 + $0x54] sm:$0xe] }
 0x22a   : > { %v1905_v7 = vrot.slane %v1904_v57, 4  ;;  %v1914_v22 = vrot.slane %v1912_v25, 4  ;;  %v1917_v60 = vrot.slane %v1915_v46, 5  ;;  %v1931_v19 = vshll.u32 %v1715_v52, 16  ;;  %v9089_v37 = vld [vmem:[#allocation2 + $0x64] sm:$0xf] }
 0x22b   : > { %5333 = vmatmul.mubr.bf16.gmra.mrb[48].mxu0 %v6539_v29  ;;  %5172 = vmatmul.mubr.bf16.gmra.mrb[16].mxu1 %v7612_v61  ;;  %v1900_v9 = vsel %vm8169_vm8, %v1895_v2, %v1899_v53  ;;  %v9083_v38 = vrot.slane %v1921_v32, 5  ;;  %v1927_v63 = vrot.slane %v1925_v39, 4  ;;  %v6540_v8 = vcombine.low %v2344_v0, %v2347_v5  ;;  %v7621_v44 = vld [vmem:[#allocation2 + $0x60] sm:$0xff]   ;;  %v1719_v6 = vld [vmem:[#allocation2 + $0x6c] sm:$0xf] }
 0x22c   : > { %5340 = vmatprep.mubr.bf16.mxu0 %v7613_v20  ;;  %5179 = vmatprep.mubr.bf16.mxu1 %v6508_v33  ;;  %v1910_v12 = vsel %vm8169_vm8, %v1905_v7, %v1909_v24  ;;  %v1918_v51 = vor.u32 %v1917_v60, %v1914_v22  ;;  %v6525_v36 = vrot.slane %v2225_v17, 9  ;;  %v2357_v30 = vrot.slane %v9077_v45, 5  ;;  %v2233_v20 = vld [vmem:[#allocation2 + $0x68] sm:$0x1]  ;;  %v2231_v28 = vld [vmem:[#allocation2 + $0x60] sm:$0xe] }
 0x22d   : > { %v1928_v23 = vor.u32 %v1927_v63, %v9083_v38  ;;  %v6509_v14 = vcombine.low %v1900_v9, %v1910_v12  ;;  %v2354_v41 = vsel %vm8194_vm11, %v2352_v35, %v2353_v50  ;;  %v1933_v56 = vrot.slane %v1931_v19, 5  ;;  %v1720_v33 = vld [vmem:[#allocation2 + $0x70] sm:$0xf]  ;;  %v7620_v24 = vld [vmem:[#allocation2 + $0x48] sm:$0xff]   ;;  %v1721_v7 = vld [vmem:[#allocation2 + $0x74] sm:$0x1] }
 0x22e   : > { %v1936_v15 = vshrl.u32 %v1716_v4, 16  ;;  %v1919_v40 = vrot.slane %v1918_v51, 4  ;;  %v2360_v49 = vrot.slane %v2230_v27, 5  ;;  %v1939_v58 = vshll.u32 %v1716_v4, 16  ;;  %v2234_v22 = vld [vmem:[#allocation2 + $0x6c] sm:$0xe] }
 0x22f   : > { %v1929_v26 = vrot.slane %v1928_v23, 4  ;;  %v2359_v54 = vrot.slane %v2357_v30, 4  ;;  %v1945_v47 = vshll.u32 %v1717_v18, 16  ;;  %v1949_v29 = vshrl.u32 %v1717_v18, 16  ;;  %v2236_v9 = vld [vmem:[#allocation2 + $0x74] sm:$0x1] }
 0x230   : > { %v1938_v21 = vrot.slane %v1936_v15, 4  ;;  %v1941_v53 = vrot.slane %v1939_v58, 5  ;;  %v1955_v48 = vshll.u32 %v1718_v16, 16  ;;  %v2351_v10 = vsel %vm8194_vm11, %v6525_v36, %v2350_v43  ;;  %v1723_v15 = vld [vmem:[#allocation2 + $0x7c] sm:$0xf] }
 0x231   : > { %v9095_v55 = vrot.slane %v1945_v47, 5  ;;  %v1951_v59 = vrot.slane %v1949_v29, 4  ;;  %v6541_v3 = vcombine.low %v2351_v10, %v2354_v41  ;;  %v6526_v61 = vrot.slane %v2228_v62, 9  ;;  %v1722_v41 = vld [vmem:[#allocation2 + $0x78] sm:$0xf]  ;;  %v9126_v47 = vld [vmem:[%s10267_s4 + $0x200] sm:$0xff]  }
 0x232   : > { %v1942_v0 = vor.u32 %v1941_v53, %v1938_v21  ;;  %v2364_v5 = vrot.slane %v9089_v37, 5  ;;  %v1924_v2 = vsel %vm8169_vm8, %v1919_v40, %v9083_v38  ;;  %v1934_v57 = vsel %vm8169_vm8, %v1929_v26, %v1933_v56  ;;  %v7625_v56 = vld [vmem:[#allocation2 + $0x6c] sm:$0xff]   ;;  %v7624_v10 = vld [vmem:[#allocation2 + $0x54] sm:$0xff]   ;;  %7471 = vmatprep.subr.bf16.mxu0 %v9126_v47  ;;  %7519 = vmatprep.subr.bf16.mxu1 %v9126_v47 }
 0x233   : > { %5341 = vmatmul.mubr.bf16.gmra.mrb[52].mxu0 %v6540_v8  ;;  %5180 = vmatmul.mubr.bf16.gmra.mrb[20].mxu1 %v7616_v13  ;;  %v2361_v11 = vsel %vm8194_vm11, %v2359_v54, %v2360_v49  ;;  %v1952_v43 = vor.u32 %v1951_v59, %v9095_v55  ;;  %v1957_v25 = vrot.slane %v1955_v48, 5  ;;  %v2367_v46 = vrot.slane %v2233_v20, 5  ;;  %v1724_v54 = vld [vmem:[#allocation2 + $0x80] sm:$0x1]  ;;  %v2238_v20 = vld [vmem:[#allocation2 + $0x7c] sm:$0xf] }
 0x234   : > { %5348 = vmatprep.mubr.bf16.mxu0 %v7617_v31  ;;  %5187 = vmatprep.mubr.bf16.mxu1 %v6509_v14  ;;  %v9106_v52 = vrot.slane %v1942_v0, 4  ;;  %v1960_v17 = vshrl.u32 %v1719_v6, 16  ;;  %v2366_v50 = vrot.slane %v2364_v5, 4  ;;  %v1963_v32 = vshll.u32 %v1719_v6, 16  ;;  %v2235_v31 = vld [vmem:[#allocation2 + $0x70] sm:$0xf] }
 0x235   : > { %v1969_v39 = vshll.u32 %v1720_v33, 16  ;;  %v1973_v35 = vshrl.u32 %v1720_v33, 16  ;;  %v2358_v60 = vsel %vm8194_vm11, %v6526_v61, %v2357_v30  ;;  %v1953_v19 = vrot.slane %v1952_v43, 4 }
 0x236   : > { %v1962_v45 = vrot.slane %v1960_v17, 4  ;;  %v6510_v12 = vcombine.low %v1924_v2, %v1934_v57  ;;  %v6542_v38 = vcombine.low %v2358_v60, %v2361_v11  ;;  %v1965_v63 = vrot.slane %v1963_v32, 5  ;;  %v1727_v32 = vld [vmem:[#allocation2 + $0x8c] sm:$0x1] }
 0x237   : > { %v9110_v8 = vrot.slane %v1969_v39, 5  ;;  %v1948_v51 = vsel %vm8169_vm8, %v9106_v52, %v9095_v55  ;;  %v6527_v27 = vrot.slane %v2231_v28, 9  ;;  %v1975_v13 = vrot.slane %v1973_v35, 4  ;;  %v2239_v28 = vld [vmem:[#allocation2 + $0x80] sm:$0x1] }
 0x238   : > { %v1979_v36 = vshll.u32 %v1721_v7, 16  ;;  %v9118_v23 = vsel %vm8194_vm11, %v2366_v50, %v2367_v46  ;;  %v1966_v30 = vor.u32 %v1965_v63, %v1962_v45  ;;  %v6528_v4 = vrot.slane %v2234_v22, 9  ;;  %v1725_v46 = vld [vmem:[#allocation2 + $0x84] sm:$0xf]  ;;  %v1726_v7 = vld [vmem:[#allocation2 + $0x88] sm:$0xf] }
 0x239   : > { %v2371_v14 = vrot.slane %v2235_v31, 5  ;;  %v1976_v18 = vor.u32 %v1975_v13, %v9110_v8  ;;  %v2374_v16 = vrot.slane %v2236_v9, 5  ;;  %v1984_v40 = vshrl.u32 %v1722_v41, 16  ;;  %v7629_v22 = vld [vmem:[#allocation2 + $0x78] sm:$0xff]   ;;  %v2240_v9 = vld [vmem:[#allocation2 + $0x84] sm:$0xe] }
 0x23a   : > { %v1987_v26 = vshll.u32 %v1722_v41, 16  ;;  %v1958_v62 = vsel %vm8169_vm8, %v1953_v19, %v1957_v25  ;;  %v1967_v49 = vrot.slane %v1966_v30, 4  ;;  %v1993_v21 = vshll.u32 %v1723_v15, 16 }
 0x23b   : > { %5349 = vmatmul.mubr.bf16.gmra.mrb[56].mxu0 %v6541_v3  ;;  %5188 = vmatmul.mubr.bf16.gmra.mrb[24].mxu1 %v7620_v24  ;;  %v2373_v58 = vrot.slane %v2371_v14, 4  ;;  %v1977_v29 = vrot.slane %v1976_v18, 4  ;;  %v1986_v37 = vrot.slane %v1984_v40, 4  ;;  %v1997_v48 = vshrl.u32 %v1723_v15, 16 }
 0x23c   : > { %5356 = vmatprep.mubr.bf16.mxu0 %v7621_v44  ;;  %5195 = vmatprep.mubr.bf16.mxu1 %v6510_v12  ;;  %v1989_v53 = vrot.slane %v1987_v26, 5  ;;  %v2365_v55 = vsel %vm8194_vm11, %v6527_v27, %v2364_v5  ;;  %v9134_v3 = vrot.slane %v1993_v21, 5  ;;  %v2237_v44 = vld [vmem:[#allocation2 + $0x78] sm:$0xe]  ;;  %v1981_v0 = vrot.slane %v1979_v36, 5  ;;  %v7628_v27 = vld [vmem:[#allocation2 + $0x60] sm:$0xff]  }
 0x23d   : > { %v9132_v59 = vsel %vm8194_vm11, %v2373_v58, %v2374_v16  ;;  %v6543_v61 = vcombine.low %v2365_v55, %v9118_v23  ;;  %v1999_v57 = vrot.slane %v1997_v48, 4  ;;  %v6511_v11 = vcombine.low %v1948_v51, %v1958_v62  ;;  %v2241_v51 = vld [vmem:[#allocation2 + $0x88] sm:$0xf]  ;;  %v1728_v62 = vld [vmem:[#allocation2 + $0x90] sm:$0xf] }
 0x23e   : > { %v1990_v2 = vor.u32 %v1989_v53, %v1986_v37  ;;  %v1972_v5 = vsel %vm8169_vm8, %v1967_v49, %v9110_v8  ;;  %v9144_v43 = vsel %vm8194_vm11, %v6528_v4, %v2371_v14  ;;  %v2378_v6 = vrot.slane %v2238_v20, 5  ;;  %v2242_v4 = vld [vmem:[#allocation2 + $0x8c] sm:$0x1]  ;;  %v1729_v21 = vld [vmem:[#allocation2 + $0x94] sm:$0xf] }
 0x23f   : > { %v1982_v33 = vsel %vm8169_vm8, %v1977_v29, %v1981_v0  ;;  %v6544_v24 = vcombine.low %v9144_v43, %v9132_v59  ;;  %v2000_v52 = vor.u32 %v1999_v57, %v9134_v3  ;;  %v2003_v25 = vshll.u32 %v1724_v54, 16  ;;  %v1730_v29 = vld [vmem:[#allocation2 + $0x98] sm:$0x1]  ;;  %v2243_v55 = vld [vmem:[#allocation2 + $0x90] sm:$0xe] }
 0x240   : > { %v6529_v17 = vrot.slane %v2237_v44, 9  ;;  %v2380_v50 = vrot.slane %v2378_v6, 4  ;;  %v2008_v39 = vshrl.u32 %v1725_v46, 16  ;;  %v2011_v35 = vshll.u32 %v1725_v46, 16  ;;  %v9168_v57 = vld [vmem:[#allocation2 + $0xb4] sm:$0xf] }
 0x241   : > { %v1991_v60 = vrot.slane %v1990_v2, 4  ;;  %v2381_v19 = vrot.slane %v2239_v28, 5  ;;  %v2017_v45 = vshll.u32 %v1726_v7, 16  ;;  %v2021_v31 = vshrl.u32 %v1726_v7, 16  ;;  %v2244_v2 = vld [vmem:[#allocation2 + $0x94] sm:$0xf] }
 0x242   : > { %v2001_v12 = vrot.slane %v2000_v52, 4  ;;  %v2013_v63 = vrot.slane %v2011_v35, 5  ;;  %v2027_v8 = vshll.u32 %v1727_v32, 16  ;;  %v6512_v13 = vcombine.low %v1972_v5, %v1982_v33  ;;  %v2245_v33 = vld [vmem:[#allocation2 + $0x98] sm:$0x1] }
 0x243   : > { %5357 = vmatmul.mubr.bf16.gmra.mrb[60].mxu0 %v6542_v38  ;;  %5196 = vmatmul.mubr.bf16.gmra.mrb[28].mxu1 %v7624_v10  ;;  %v2010_v38 = vrot.slane %v2008_v39, 4  ;;  %v9153_v36 = vsel %vm8194_vm11, %v2380_v50, %v2381_v19  ;;  %v2019_v23 = vrot.slane %v2017_v45, 5  ;;  %v2023_v30 = vrot.slane %v2021_v31, 4  ;;  %v7633_v50 = vld [vmem:[#allocation2 + $0x84] sm:$0xff]   ;;  %v2246_v43 = vld [vmem:[#allocation2 + $0x9c] sm:$0xe] }
 0x244   : > { %5364 = vmatprep.mubr.bf16.mxu0 %v7625_v56  ;;  %5203 = vmatprep.mubr.bf16.mxu1 %v6511_v11  ;;  %v2005_v14 = vrot.slane %v2003_v25, 5  ;;  %v9157_v41 = vsel %vm8194_vm11, %v6529_v17, %v2378_v6  ;;  %v2029_v18 = vrot.slane %v2027_v8, 5  ;;  %v1996_v16 = vsel %vm8169_vm8, %v1991_v60, %v9134_v3  ;;  %v7632_v17 = vld [vmem:[#allocation2 + $0x6c] sm:$0xff]   ;;  %v1733_v8 = vld [vmem:[#allocation2 + $0xa4] sm:$0x1] }
 0x245   : > { %v2014_v56 = vor.u32 %v2013_v63, %v2010_v38  ;;  %v2024_v15 = vor.u32 %v2023_v30, %v2019_v23  ;;  %v6530_v40 = vrot.slane %v2240_v9, 9  ;;  %v2385_v26 = vrot.slane %v2241_v51, 5  ;;  %v1731_v9 = vld [vmem:[#allocation2 + $0x9c] sm:$0xf] }
 0x246   : > { %v2006_v49 = vsel %vm8169_vm8, %v2001_v12, %v2005_v14  ;;  %v6545_v58 = vcombine.low %v9157_v41, %v9153_v36  ;;  %v2032_v37 = vshrl.u32 %v1728_v62, 16  ;;  %v2388_v20 = vrot.slane %v2242_v4, 5  ;;  %v1732_v12 = vld [vmem:[#allocation2 + $0xa0] sm:$0xf] }
 0x247   : > { %v2015_v54 = vrot.slane %v2014_v56, 4  ;;  %v2025_v53 = vrot.slane %v2024_v15, 4  ;;  %v2387_v48 = vrot.slane %v2385_v26, 4  ;;  %v2035_v10 = vshll.u32 %v1728_v62, 16 }
 0x248   : > { %v2034_v44 = vrot.slane %v2032_v37, 4  ;;  %v2045_v0 = vshrl.u32 %v1729_v21, 16  ;;  %v2051_v6 = vshll.u32 %v1730_v29, 16  ;;  %v6513_v52 = vcombine.low %v1996_v16, %v2006_v49  ;;  %v2248_v16 = vld [vmem:[#allocation2 + $0xa4] sm:$0x1] }
 0x249   : > { %v2020_v3 = vsel %vm8169_vm8, %v2015_v54, %v2019_v23  ;;  %v2030_v11 = vsel %vm8169_vm8, %v2025_v53, %v2029_v18  ;;  %v9174_v5 = vsel %vm8194_vm11, %v2387_v48, %v2388_v20  ;;  %v2037_v28 = vrot.slane %v2035_v10, 5  ;;  %v2247_v18 = vld [vmem:[#allocation2 + $0xa0] sm:$0xf]  ;;  %v1734_v37 = vld [vmem:[#allocation2 + $0xa8] sm:$0xf] }
 0x24a   : > { %v9178_v25 = vsel %vm8194_vm11, %v6530_v40, %v2385_v26  ;;  %v2047_v7 = vrot.slane %v2045_v0, 4  ;;  %v9180_v32 = vcombine.low %v2020_v3, %v2030_v11  ;;  %v2053_v35 = vrot.slane %v2051_v6, 5  ;;  %v1736_v3 = vld [vmem:[#allocation2 + $0xb0] sm:$0x1]  ;;  %v7636_v6 = vld [vmem:[#allocation2 + $0x78] sm:$0xff]  }
 0x24b   : > { %5365 = vmatmul.mubr.bf16.gmra.mrb[64].mxu0 %v6543_v61  ;;  %5204 = vmatmul.mubr.bf16.gmra.mrb[32].mxu1 %v7628_v27  ;;  %v2041_v61 = vshll.u32 %v1729_v21, 16  ;;  %v2038_v39 = vor.u32 %v2037_v28, %v2034_v44  ;;  %v6546_v60 = vcombine.low %v9178_v25, %v9174_v5  ;;  %v6531_v45 = vrot.slane %v2243_v55, 9  ;;  %v1735_v55 = vld [vmem:[#allocation2 + $0xac] sm:$0xf]  ;;  %v7637_v44 = vld [vmem:[#allocation2 + $0x90] sm:$0xff]  }
 0x24c   : > { %5372 = vmatprep.mubr.bf16.mxu0 %v7629_v22  ;;  %5211 = vmatprep.mubr.bf16.mxu1 %v6512_v13  ;;  %v2392_v22 = vrot.slane %v2244_v2, 5  ;;  %v2395_v31 = vrot.slane %v2245_v33, 5  ;;  %v2056_v51 = vshrl.u32 %v1731_v9, 16  ;;  %v2104_v27 = vshrl.u32 %v9168_v57, 16  ;;  %v2249_v28 = vld [vmem:[#allocation2 + $0xa8] sm:$0xe] }
 0x24d   : > { %v2043_v46 = vrot.slane %v2041_v61, 5  ;;  %v2039_v38 = vrot.slane %v2038_v39, 4  ;;  %v2059_v23 = vshll.u32 %v1731_v9, 16  ;;  %v2065_v30 = vshll.u32 %v1732_v12, 16 }
 0x24e   : > { %v2394_v63 = vrot.slane %v2392_v22, 4  ;;  %v2069_v59 = vshrl.u32 %v1732_v12, 16  ;;  %v2058_v14 = vrot.slane %v2056_v51, 4  ;;  %v2075_v56 = vshll.u32 %v1733_v8, 16 }
 0x24f   : > { %v2048_v19 = vor.u32 %v2047_v7, %v2043_v46  ;;  %v9198_v40 = vsel %vm8194_vm11, %v6531_v45, %v2392_v22  ;;  %v2061_v26 = vrot.slane %v2059_v23, 5  ;;  %v2067_v62 = vrot.slane %v2065_v30, 5  ;;  %v1738_v45 = vld [vmem:[#allocation2 + $0xb8] sm:$0xf]  ;;  %v1739_v30 = vld [vmem:[#allocation2 + $0xbc] sm:$0x1] }
 0x250   : > { %v9192_v4 = vsel %vm8194_vm11, %v2394_v63, %v2395_v31  ;;  %v2071_v54 = vrot.slane %v2069_v59, 4  ;;  %v2077_v21 = vrot.slane %v2075_v56, 5  ;;  %v6532_v29 = vrot.slane %v2246_v43, 9  ;;  %v2252_v59 = vld [vmem:[#allocation2 + $0xb4] sm:$0xe] }
 0x251   : > { %v2049_v13 = vrot.slane %v2048_v19, 4  ;;  %v6547_v49 = vcombine.low %v9198_v40, %v9192_v4  ;;  %v2062_v48 = vor.u32 %v2061_v26, %v2058_v14  ;;  %v2399_v20 = vrot.slane %v2247_v18, 5  ;;  %v2251_v19 = vld [vmem:[#allocation2 + $0xb0] sm:$0x1]  ;;  %v2253_v18 = vld [vmem:[#allocation2 + $0xb8] sm:$0xf] }
 0x252   : > { %v2402_v10 = vrot.slane %v2248_v16, 5  ;;  %v2072_v61 = vor.u32 %v2071_v54, %v2067_v62  ;;  %v2080_v0 = vshrl.u32 %v1734_v37, 16  ;;  %v2083_v2 = vshll.u32 %v1734_v37, 16  ;;  %v7641_v54 = vld [vmem:[#allocation2 + $0x9c] sm:$0xff]   ;;  %v3590_v40 = vld [vmem:[#allocation2 + $0x24] sm:$0xf] }
 0x253   : > { %5373 = vmatmul.mubr.bf16.gmra.mrb[68].mxu0 %v6544_v24  ;;  %5212 = vmatmul.mubr.bf16.gmra.mrb[36].mxu1 %v7632_v17  ;;  %v2044_v24 = vsel %vm8169_vm8, %v2039_v38, %v2043_v46  ;;  %v2054_v15 = vsel %vm8169_vm8, %v2049_v13, %v2053_v35  ;;  %v2089_v11 = vshll.u32 %v1735_v55, 16  ;;  %v2063_v33 = vrot.slane %v2062_v48, 4  ;;  %v2250_v17 = vld [vmem:[#allocation2 + $0xac] sm:$0xf] }
 0x254   : > { %5380 = vmatprep.mubr.bf16.mxu0 %v7633_v50  ;;  %5219 = vmatprep.mubr.bf16.mxu1 %v6513_v52  ;;  %v9202_v53 = vcombine.low %v2044_v24, %v2054_v15  ;;  %v9209_v52 = vsel %vm8194_vm11, %v6532_v29, %v2399_v20  ;;  %v2401_v46 = vrot.slane %v2399_v20, 4  ;;  %v2093_v7 = vshrl.u32 %v1735_v55, 16  ;;  %v3587_v20 = vld [vmem:[#allocation2 + $0x18] sm:$0xf] }
 0x255   : > { %v2073_v50 = vrot.slane %v2072_v61, 4  ;;  %v2082_v39 = vrot.slane %v2080_v0, 4  ;;  %v2085_v35 = vrot.slane %v2083_v2, 5  ;;  %v2091_v22 = vrot.slane %v2089_v11, 5 }
 0x256   : > { %v2068_v36 = vsel %vm8169_vm8, %v2063_v33, %v2067_v62  ;;  %v9215_v41 = vsel %vm8194_vm11, %v2401_v46, %v2402_v10  ;;  %v2099_v31 = vshll.u32 %v1736_v3, 16  ;;  %v6533_v63 = vrot.slane %v2249_v28, 9  ;;  %v2254_v62 = vld [vmem:[#allocation2 + $0xbc] sm:$0x1]  ;;  %v3589_v28 = vld [vmem:[#allocation2 + $0x20] sm:$0x1] }
 0x257   : > { %v2078_v9 = vsel %vm8169_vm8, %v2073_v50, %v2077_v21  ;;  %v6548_v12 = vcombine.low %v9209_v52, %v9215_v41  ;;  %v2086_v38 = vor.u32 %v2085_v35, %v2082_v39  ;;  %v2406_v23 = vrot.slane %v2250_v17, 5  ;;  %v3588_v3 = vld [vmem:[#allocation2 + $0x1c] sm:$0xf]  ;;  %v3154_v50 = vld [vmem:[#allocation2 + $0xc] sm:$0xe] }
 0x258   : > { %v9222_v8 = vcombine.low %v2068_v36, %v2078_v9  ;;  %v2101_v13 = vrot.slane %v2099_v31, 5  ;;  %v2409_v24 = vrot.slane %v2251_v19, 5  ;;  %v2106_v14 = vrot.slane %v2104_v27, 4  ;;  %v9251_v36 = vpop.f32.mrb[0].mxu1 }
 0x259   : > { %v2087_v43 = vrot.slane %v2086_v38, 4  ;;  %v2107_v56 = vshll.u32 %v9168_v57, 16  ;;  %v9229_v15 = vsel %vm8194_vm11, %v6533_v63, %v2406_v23  ;;  %v2113_v26 = vshll.u32 %v1738_v45, 16  ;;  %v3156_v63 = vld [vmem:[#allocation2 + $0x14] sm:$0x1] }
 0x25a   : > { %v2117_v37 = vshrl.u32 %v1738_v45, 16  ;;  %v2123_v48 = vshll.u32 %v1739_v30, 16  ;;  %v6534_v55 = vrot.slane %v2252_v59, 9  ;;  %v2416_v11 = vrot.slane %v2254_v62, 5  ;;  %v3155_v45 = vld [vmem:[#allocation2 + $0x10] sm:$0xf] }
 0x25b   : > { %5381 = vmatmul.mubr.bf16.gmra.mrb[72].mxu0 %v6545_v58  ;;  %v2095_v58 = vrot.slane %v2093_v7, 4  ;;  %5220 = vmatmul.mubr.bf16.gmra.mrb[40].mxu1 %v7636_v6  ;;  %v2092_v21 = vsel %vm8169_vm8, %v2087_v43, %v2091_v22  ;;  %v2109_v29 = vrot.slane %v2107_v56, 5  ;;  %v2115_v10 = vrot.slane %v2113_v26, 5  ;;  %v2642_v59 = vld [vmem:[#allocation2 + $0xc] sm:$0xf] }
 0x25c   : > { %5388 = vmatprep.mubr.bf16.mxu0 %v7637_v44  ;;  %5227 = vmatprep.mubr.bf16.mxu1 %v9180_v32  ;;  %v2408_v32 = vrot.slane %v2406_v23, 4  ;;  %v7640_v44 = vld [vmem:[#allocation2 + $0x84] sm:$0xff]   ;;  %v2119_v5 = vrot.slane %v2117_v37, 4  ;;  %v2125_v25 = vrot.slane %v2123_v48, 5  ;;  %v3636_v6 = vshrl.u32 %v3587_v20, 16  ;;  %v7644_v48 = vld [vmem:[#allocation2 + $0x90] sm:$0xff]  }
 0x25d   : > { %v2096_v51 = vor.u32 %v2095_v58, %v2091_v22  ;;  %v2110_v2 = vor.u32 %v2109_v29, %v2106_v14  ;;  %v3639_v7 = vshll.u32 %v3587_v20, 16  ;;  %v3645_v17 = vshll.u32 %v3588_v3, 16  ;;  %v2644_v37 = vld [vmem:[#allocation2 + $0x14] sm:$0x1] }
 0x25e   : > { %v9240_v27 = vsel %vm8194_vm11, %v2408_v32, %v2409_v24  ;;  %v2120_v46 = vor.u32 %v2119_v5, %v2115_v10  ;;  %v3638_v22 = vrot.slane %v3636_v6, 4  ;;  %v3649_v19 = vshrl.u32 %v3588_v3, 16  ;;  %v7645_v24 = vld [vmem:[#allocation2 + $0xa8] sm:$0xff]   ;;  %v2643_v32 = vld [vmem:[#allocation2 + $0x10] sm:$0xf] }
 0x25f   : > { %v2097_v16 = vrot.slane %v2096_v51, 4  ;;  %v6549_v0 = vcombine.low %v9229_v15, %v9240_v27  ;;  %v2111_v33 = vrot.slane %v2110_v2, 4  ;;  %v3641_v9 = vrot.slane %v3639_v7, 5  ;;  %v9255_v51 = vpop.f32.mrb[1].mxu1  ;;  %v3592_v7 = vld [vmem:[#allocation2 + $0x2c] sm:$0x1] }
 0x260   : > { %v2121_v31 = vrot.slane %v2120_v46, 4  ;;  %v3647_v38 = vrot.slane %v3645_v17, 5  ;;  %v3655_v23 = vshll.u32 %v3589_v28, 16  ;;  %v6583_v30 = vrot.slane %v3154_v50, 9  ;;  %v9261_v43 = vpop.f32.mrb[2].mxu1 }
 0x261   : > { %v2102_v57 = vsel %vm8169_vm8, %v2097_v16, %v2101_v13  ;;  %v2116_v58 = vsel %vm8169_vm8, %v2111_v33, %v2115_v10  ;;  %v3651_v13 = vrot.slane %v3649_v19, 4  ;;  %v3252_v16 = vrot.slane %v3155_v45, 5  ;;  %v9267_v26 = vpop.f32.mrb[3].mxu1  ;;  %v3157_v17 = vld [vmem:[#allocation2 + $0x18] sm:$0xe] }
 0x262   : > { %v9242_v61 = vcombine.low %v2092_v21, %v2102_v57  ;;  %v2126_v14 = vsel %vm8169_vm8, %v2121_v31, %v2125_v25  ;;  %v3657_v21 = vrot.slane %v3655_v23, 5  ;;  %v3255_v29 = vrot.slane %v3156_v63, 5  ;;  %v3158_v45 = vld [vmem:[#allocation2 + $0x1c] sm:$0xf]  ;;  %v7649_v63 = vld [vmem:[#allocation2 + $0xb4] sm:$0xff]  }
 0x263   : > { %5389 = vmatmul.mubr.bf16.gmra.mrb[76].mxu0 %v6546_v60  ;;  %v2413_v60 = vrot.slane %v2253_v18, 5  ;;  %5228 = vmatmul.mubr.bf16.gmra.mrb[44].mxu1 %v7640_v44  ;;  %v3642_v18 = vor.u32 %v3641_v9, %v3638_v22  ;;  %v9272_v62 = vcombine.low %v2116_v58, %v2126_v14  ;;  %v9276_v57 = vsel %vm8194_vm11, %v6583_v30, %v3252_v16  ;;  %v7648_v14 = vld [vmem:[#allocation2 + $0x9c] sm:$0xff]  }
 0x264   : > { %5396 = vmatprep.mubr.bf16.mxu0 %v7641_v54  ;;  %5235 = vmatprep.mubr.bf16.mxu1 %v9202_v53  ;;  %v3652_v54 = vor.u32 %v3651_v13, %v3647_v38  ;;  %v3254_v10 = vrot.slane %v3252_v16, 4  ;;  %v2694_v44 = vshll.u32 %v2642_v59, 16  ;;  %v2700_v2 = vshll.u32 %v2643_v32, 16 }
 0x265   : > { %v9249_v39 = vsel %vm8194_vm11, %v6534_v55, %v2413_v60  ;;  %v2415_v35 = vrot.slane %v2413_v60, 4  ;;  %v3643_v20 = vrot.slane %v3642_v18, 4  ;;  %v2691_v55 = vshrl.u32 %v2642_v59, 16 }
 0x266   : > { %v3653_v3 = vrot.slane %v3652_v54, 4  ;;  %v2704_v4 = vshrl.u32 %v2643_v32, 16  ;;  %v9282_v5 = vsel %vm8194_vm11, %v3254_v10, %v3255_v29  ;;  %v2710_v60 = vshll.u32 %v2644_v37, 16 }
 0x267   : > { %v9259_v53 = vsel %vm8194_vm11, %v2415_v35, %v2416_v11  ;;  %v2693_v25 = vrot.slane %v2691_v55, 4  ;;  %v3591_v11 = vld [vmem:[#allocation2 + $0x28] sm:$0xf]  ;;  %v6599_v6 = vcombine.low %v9276_v57, %v9282_v5  ;;  %v2696_v33 = vrot.slane %v2694_v44, 5 }
 0x268   : > { %v6550_v56 = vcombine.low %v9249_v39, %v9259_v53  ;;  %v3658_v28 = vsel %vm8169_vm8, %v3653_v3, %v3657_v21  ;;  %v2702_v46 = vrot.slane %v2700_v2, 5  ;;  %v2706_v35 = vrot.slane %v2704_v4, 4  ;;  %v2646_v3 = vld [vmem:[#allocation2 + $0x1c] sm:$0xf]  ;;  %v2647_v2 = vld [vmem:[#allocation2 + $0x20] sm:$0x1] }
 0x269   : > { %v2712_v22 = vrot.slane %v2710_v60, 5  ;;  %v3660_v19 = vshrl.u32 %v3590_v40, 16  ;;  %v2697_v58 = vor.u32 %v2696_v33, %v2693_v25  ;;  %v3663_v31 = vshll.u32 %v3590_v40, 16 }
 0x26a   : > { %v3669_v9 = vshll.u32 %v3591_v11, 16  ;;  %v2707_v13 = vor.u32 %v2706_v35, %v2702_v46  ;;  %v3679_v30 = vshll.u32 %v3592_v7, 16  ;;  %v6584_v59 = vrot.slane %v3157_v17, 9  ;;  %v3594_v17 = vld [vmem:[#allocation2 + $0x34] sm:$0xf]  ;;  %v7653_v35 = vld [vmem:[#allocation2 + $0xc0] sm:$0xff]  }
 0x26b   : > { %5397 = vmatmul.mubr.bf16.gmra.mrb[80].mxu0 %v6547_v49  ;;  %5236 = vmatmul.mubr.bf16.gmra.mrb[48].mxu1 %v7644_v48  ;;  %v3648_v49 = vsel %vm8169_vm8, %v3643_v20, %v3647_v38  ;;  %v3159_v38 = vld [vmem:[#allocation2 + $0x20] sm:$0x1]  ;;  %v3662_v23 = vrot.slane %v3660_v19, 4  ;;  %v2698_v18 = vrot.slane %v2697_v58, 4  ;;  %v3665_v16 = vrot.slane %v3663_v31, 5 }
 0x26c   : > { %5404 = vmatprep.mubr.bf16.mxu0 %v7645_v24  ;;  %5243 = vmatprep.mubr.bf16.mxu1 %v9222_v8  ;;  %v9289_v50 = vcombine.low %v3648_v49, %v3658_v28  ;;  %v3673_v8 = vshrl.u32 %v3591_v11, 16  ;;  %v2645_v24 = vld [vmem:[#allocation2 + $0x18] sm:$0xf]  ;;  %v3671_v32 = vrot.slane %v3669_v9, 5  ;;  %v2708_v21 = vrot.slane %v2707_v13, 4 }
 0x26d   : > { %v3681_v29 = vrot.slane %v3679_v30, 5  ;;  %v3259_v37 = vrot.slane %v3158_v45, 5  ;;  %v3262_v48 = vrot.slane %v3159_v38, 5  ;;  %v2703_v20 = vsel %vm8169_vm8, %v2698_v18, %v2702_v46  ;;  %v3593_v11 = vld [vmem:[#allocation2 + $0x30] sm:$0xf] }
 0x26e   : > { %v3675_v54 = vrot.slane %v3673_v8, 4  ;;  %v3666_v10 = vor.u32 %v3665_v16, %v3662_v23  ;;  %v2715_v44 = vshrl.u32 %v2645_v24, 16  ;;  %v2713_v52 = vsel %vm8169_vm8, %v2708_v21, %v2712_v22  ;;  %v3595_v58 = vld [vmem:[#allocation2 + $0x38] sm:$0x1]  ;;  %v3160_v31 = vld [vmem:[#allocation2 + $0x24] sm:$0xe] }
 0x26f   : > { %v9300_v41 = vsel %vm8194_vm11, %v6584_v59, %v3259_v37  ;;  %v2718_v4 = vshll.u32 %v2645_v24, 16  ;;  %v9303_v40 = vcombine.low %v2703_v20, %v2713_v52  ;;  %v2724_v46 = vshll.u32 %v2646_v3, 16  ;;  %v3161_v13 = vld [vmem:[#allocation2 + $0x28] sm:$0xf]  ;;  %v3162_v23 = vld [vmem:[#allocation2 + $0x2c] sm:$0x1] }
 0x270   : > { %v3676_v55 = vor.u32 %v3675_v54, %v3671_v32  ;;  %v3667_v49 = vrot.slane %v3666_v10, 4  ;;  %v2717_v60 = vrot.slane %v2715_v44, 4  ;;  %v2728_v7 = vshrl.u32 %v2646_v3, 16  ;;  %v2648_v30 = vld [vmem:[#allocation2 + $0x24] sm:$0xf]  ;;  %v7652_v16 = vld [vmem:[#allocation2 + $0xa8] sm:$0xff]  }
 0x271   : > { %v2720_v33 = vrot.slane %v2718_v4, 5  ;;  %v2734_v45 = vshll.u32 %v2647_v2, 16  ;;  %v2726_v38 = vrot.slane %v2724_v46, 5  ;;  %v3684_v24 = vshrl.u32 %v3593_v11, 16 }
 0x272   : > { %v3677_v25 = vrot.slane %v3676_v55, 4  ;;  %v3672_v22 = vsel %vm8169_vm8, %v3667_v49, %v3671_v32  ;;  %v3693_v18 = vshll.u32 %v3594_v17, 16  ;;  %v3697_v21 = vshrl.u32 %v3594_v17, 16  ;;  %v2649_v55 = vld [vmem:[#allocation2 + $0x28] sm:$0xf] }
 0x273   : > { %5405 = vmatmul.mubr.bf16.gmra.mrb[84].mxu0 %v6548_v12  ;;  %5244 = vmatmul.mubr.bf16.gmra.mrb[52].mxu1 %v7648_v14  ;;  %v3261_v12 = vrot.slane %v3259_v37, 4  ;;  %v2721_v8 = vor.u32 %v2720_v33, %v2717_v60  ;;  %v2736_v59 = vrot.slane %v2734_v45, 5  ;;  %v3687_v14 = vshll.u32 %v3593_v11, 16 }
 0x274   : > { %5412 = vmatprep.mubr.bf16.mxu0 %v7649_v63  ;;  %5251 = vmatprep.mubr.bf16.mxu1 %v9242_v61  ;;  %v3682_v61 = vsel %vm8169_vm8, %v3677_v25, %v3681_v29  ;;  %v2730_v63 = vrot.slane %v2728_v7, 4  ;;  %v3703_v29 = vshll.u32 %v3595_v58, 16  ;;  %v3686_v37 = vrot.slane %v3684_v24, 4  ;;  %v2650_v25 = vld [vmem:[#allocation2 + $0x2c] sm:$0x1] }
 0x275   : > { %v9307_v28 = vsel %vm8194_vm11, %v3261_v12, %v3262_v48  ;;  %v9315_v9 = vcombine.low %v3672_v22, %v3682_v61  ;;  %v2722_v32 = vrot.slane %v2721_v8, 4  ;;  %v3689_v48 = vrot.slane %v3687_v14, 5  ;;  %v3597_v58 = vld [vmem:[#allocation2 + $0x40] sm:$0xf] }
 0x276   : > { %v6600_v19 = vcombine.low %v9300_v41, %v9307_v28  ;;  %v2731_v54 = vor.u32 %v2730_v63, %v2726_v38  ;;  %v3695_v20 = vrot.slane %v3693_v18, 5  ;;  %v6585_v10 = vrot.slane %v3160_v31, 9 }
 0x277   : > { %v2727_v15 = vsel %vm8169_vm8, %v2722_v32, %v2726_v38  ;;  %v3705_v3 = vrot.slane %v3703_v29, 5  ;;  %v3690_v44 = vor.u32 %v3689_v48, %v3686_v37  ;;  %v3266_v52 = vrot.slane %v3161_v13, 5  ;;  %v3598_v13 = vld [vmem:[#allocation2 + $0x44] sm:$0x1]  ;;  %v3164_v32 = vld [vmem:[#allocation2 + $0x34] sm:$0xf] }
 0x278   : > { %v2732_v27 = vrot.slane %v2731_v54, 4  ;;  %v3269_v12 = vrot.slane %v3162_v23, 5  ;;  %v2739_v2 = vshrl.u32 %v2648_v30, 16  ;;  %v2742_v60 = vshll.u32 %v2648_v30, 16  ;;  %v7656_v23 = vld [vmem:[#allocation2 + $0xb4] sm:$0xff]  }
 0x279   : > { %v2748_v11 = vshll.u32 %v2649_v55, 16  ;;  %v3691_v46 = vrot.slane %v3690_v44, 4  ;;  %v9329_v7 = vsel %vm8194_vm11, %v6585_v10, %v3266_v52  ;;  %v3268_v17 = vrot.slane %v3266_v52, 4  ;;  %v3165_v37 = vld [vmem:[#allocation2 + $0x38] sm:$0x1] }
 0x27a   : > { %v2737_v4 = vsel %vm8169_vm8, %v2732_v27, %v2736_v59  ;;  %v2741_v22 = vrot.slane %v2739_v2, 4  ;;  %v2744_v61 = vrot.slane %v2742_v60, 5  ;;  %v2752_v38 = vshrl.u32 %v2649_v55, 16  ;;  %v3163_v59 = vld [vmem:[#allocation2 + $0x30] sm:$0xe]  ;;  %v9355_v2 = vld [vmem:[%s10267_s4 + $0x208] sm:$0xff]  }
 0x27b   : > { %5413 = vmatmul.mubr.bf16.gmra.mrb[88].mxu0 %v6549_v0  ;;  %5252 = vmatmul.mubr.bf16.gmra.mrb[56].mxu1 %v7652_v16  ;;  %v3699_v0 = vrot.slane %v3697_v21, 4  ;;  %v9325_v33 = vcombine.low %v2727_v15, %v2737_v4  ;;  %v2750_v45 = vrot.slane %v2748_v11, 5  ;;  %v3696_v31 = vsel %vm8169_vm8, %v3691_v46, %v3695_v20  ;;  %v2651_v15 = vld [vmem:[#allocation2 + $0x30] sm:$0xf]  ;;  %v2652_v52 = vld [vmem:[#allocation2 + $0x34] sm:$0xf] }
 0x27c   : > { %5420 = vmatprep.mubr.bf16.mxu0 %v7653_v35  ;;  %5259 = vmatprep.mubr.bf16.mxu1 %v9272_v62  ;;  %v3596_v62 = vld [vmem:[#allocation2 + $0x3c] sm:$0xf]  ;;  %v9338_v8 = vsel %vm8194_vm11, %v3268_v17, %v3269_v12  ;;  %v2758_v63 = vshll.u32 %v2650_v25, 16  ;;  %v2745_v53 = vor.u32 %v2744_v61, %v2741_v22  ;;  %v2754_v14 = vrot.slane %v2752_v38, 4  ;;  %v2653_v11 = vld [vmem:[#allocation2 + $0x38] sm:$0x1] }
 0x27d   : > { %v3700_v49 = vor.u32 %v3699_v0, %v3695_v20  ;;  %v6601_v39 = vcombine.low %v9329_v7, %v9338_v8  ;;  %v3711_v16 = vshll.u32 %v3596_v62, 16  ;;  %v3717_v29 = vshll.u32 %v3597_v58, 16  ;;  %v7658_v12 = vld [vmem:[#allocation2 + $0x18] sm:$0xff]   ;;  %v3599_v17 = vld [vmem:[#allocation2 + $0x48] sm:$0xf] }
 0x27e   : > { %v2760_v18 = vrot.slane %v2758_v63, 5  ;;  %v2746_v54 = vrot.slane %v2745_v53, 4  ;;  %v2755_v48 = vor.u32 %v2754_v14, %v2750_v45  ;;  %v3727_v10 = vshll.u32 %v3598_v13, 16 }
 0x27f   : > { %v3701_v35 = vrot.slane %v3700_v49, 4  ;;  %v3713_v20 = vrot.slane %v3711_v16, 5  ;;  %v6586_v55 = vrot.slane %v3163_v59, 9  ;;  %v3719_v0 = vrot.slane %v3717_v29, 5 }
 0x280   : > { %v2751_v27 = vsel %vm8169_vm8, %v2746_v54, %v2750_v45  ;;  %v3273_v44 = vrot.slane %v3164_v32, 5  ;;  %v2756_v57 = vrot.slane %v2755_v48, 4  ;;  %v3276_v4 = vrot.slane %v3165_v37, 5  ;;  %v3600_v45 = vld [vmem:[#allocation2 + $0x4c] sm:$0xf]  ;;  %v7659_v32 = vld [vmem:[#allocation2 + $0x24] sm:$0xff]  }
 0x281   : > { %v3706_v30 = vsel %vm8169_vm8, %v3701_v35, %v3705_v3  ;;  %v2763_v46 = vshrl.u32 %v2651_v15, 16  ;;  %v2766_v22 = vshll.u32 %v2651_v15, 16  ;;  %v2772_v61 = vshll.u32 %v2652_v52, 16  ;;  %v3167_v37 = vld [vmem:[#allocation2 + $0x40] sm:$0xf]  ;;  %v9395_v48 = vld [vmem:[%s10267_s4 + $0x218] sm:$0xff]  }
 0x282   : > { %v9345_v24 = vcombine.low %v3696_v31, %v3706_v30  ;;  %v9359_v25 = vsel %vm8194_vm11, %v6586_v55, %v3273_v44  ;;  %v3275_v60 = vrot.slane %v3273_v44, 4  ;;  %v2776_v59 = vshrl.u32 %v2652_v52, 16 }
 0x283   : > { %5421 = vmatmul.mubr.bf16.gmra.mrb[92].mxu0 %v6550_v56  ;;  %v3708_v56 = vshrl.u32 %v3596_v62, 16  ;;  %5260 = vmatmul.mubr.bf16.gmra.mrb[60].mxu1 %v7656_v23  ;;  %v2761_v62 = vsel %vm8169_vm8, %v2756_v57, %v2760_v18  ;;  %v2765_v63 = vrot.slane %v2763_v46, 4  ;;  %v2768_v30 = vrot.slane %v2766_v22, 5  ;;  %v3601_v18 = vld [vmem:[#allocation2 + $0x50] sm:$0x1] }
 0x284   : > { %5622 = vmatprep.mubr.bf16.mxu0 %v9289_v50  ;;  %v3721_v50 = vshrl.u32 %v3597_v58, 16  ;;  %5461 = vmatprep.mubr.bf16.mxu1 %v6599_v6  ;;  %v3729_v6 = vrot.slane %v3727_v10, 5  ;;  %v9365_v58 = vcombine.low %v2751_v27, %v2761_v62  ;;  %v9369_v38 = vsel %vm8194_vm11, %v3275_v60, %v3276_v4  ;;  %v2655_v57 = vld [vmem:[#allocation2 + $0x40] sm:$0xf] }
 0x285   : > { %v3710_v21 = vrot.slane %v3708_v56, 4  ;;  %v6602_v23 = vcombine.low %v9359_v25, %v9369_v38  ;;  %v9376_v53 = vrot.slane %v2772_v61, 5  ;;  %v2782_v14 = vshll.u32 %v2653_v11, 16 }
 0x286   : > { %v3723_v3 = vrot.slane %v3721_v50, 4  ;;  %v3732_v16 = vshrl.u32 %v3599_v17, 16  ;;  %v3735_v29 = vshll.u32 %v3599_v17, 16  ;;  %v3741_v50 = vshll.u32 %v3600_v45, 16 }
 0x287   : > { %v3714_v5 = vor.u32 %v3713_v20, %v3710_v21  ;;  %v2769_v21 = vor.u32 %v2768_v30, %v2765_v63  ;;  %v2778_v41 = vrot.slane %v2776_v59, 4  ;;  %v2784_v28 = vrot.slane %v2782_v14, 5  ;;  %v3168_v20 = vld [vmem:[#allocation2 + $0x44] sm:$0x1]  ;;  %v3602_v30 = vld [vmem:[#allocation2 + $0x54] sm:$0xf] }
 0x288   : > { %v3724_v49 = vor.u32 %v3723_v3, %v3719_v0  ;;  %v3737_v55 = vrot.slane %v3735_v29, 5  ;;  %v3743_v15 = vrot.slane %v3741_v50, 5  ;;  %v3751_v27 = vshll.u32 %v3601_v18, 16  ;;  %v2656_v63 = vld [vmem:[#allocation2 + $0x44] sm:$0x1] }
 0x289   : > { %v3715_v35 = vrot.slane %v3714_v5, 4  ;;  %v2770_v10 = vrot.slane %v2769_v21, 4  ;;  %v2779_v3 = vor.u32 %v2778_v41, %v9376_v53  ;;  %v2796_v22 = vshll.u32 %v2655_v57, 16  ;;  %v3603_v14 = vld [vmem:[#allocation2 + $0x58] sm:$0xf] }
 0x28a   : > { %v3725_v31 = vrot.slane %v3724_v49, 4  ;;  %v3753_v4 = vrot.slane %v3751_v27, 5  ;;  %v3283_v49 = vrot.slane %v3168_v20, 5  ;;  %v3604_v18 = vld [vmem:[#allocation2 + $0x5c] sm:$0x1]  ;;  %v2806_v50 = vshll.u32 %v2656_v63, 16 }
 0x28b   : > { %5623 = vmatmul.mubr.bf16.vlgmr.msra.gmra.mrb[96].mxu0 %v7658_v12  ;;  %v3720_v13 = vsel %vm8169_vm8, %v3715_v35, %v3719_v0  ;;  %5462 = vmatmul.mubr.bf16.vlgmr.msra.gmra.mrb[64].mxu1 %v9303_v40  ;;  %v3166_v40 = vld [vmem:[#allocation2 + $0x3c] sm:$0xe]  ;;  %v3280_v12 = vrot.slane %v3167_v37, 5  ;;  %v2775_v5 = vsel %vm8169_vm8, %v2770_v10, %v9376_v53  ;;  %v2780_v60 = vrot.slane %v2779_v3, 4  ;;  %v3170_v41 = vld [vmem:[#allocation2 + $0x4c] sm:$0xf] }
 0x28c   : > { %7472 = vmatpush3.bf16.msra.mxu0 %v9126_v47  ;;  %5630 = vmatprep.mubr.bf16.mxu0 %v9315_v9  ;;  %v9381_v9 = vld [vmem:[%s10267_s4 + $0x210] sm:$0xff]   ;;  %v3730_v56 = vsel %vm8169_vm8, %v3725_v31, %v3729_v6  ;;  %v2654_v0 = vld [vmem:[#allocation2 + $0x3c] sm:$0xf]  ;;  %v6587_v52 = vrot.slane %v3166_v40, 9  ;;  %v2798_v7 = vrot.slane %v2796_v22, 5  ;;  %v3756_v40 = vshrl.u32 %v3602_v30, 16 }
 0x28d   : > { %7473 = vmatprep.subr.bf16.mxu0 %v9355_v2  ;;  %5469 = vmatprep.mubr.bf16.mxu1 %v6600_v19  ;;  %v9390_v54 = vcombine.low %v3720_v13, %v3730_v56  ;;  %v3734_v19 = vrot.slane %v3732_v16, 4  ;;  %v3282_v17 = vrot.slane %v3280_v12, 4  ;;  %v2790_v35 = vshll.u32 %v2654_v0, 16  ;;  %v7661_v16 = vld [vmem:[#allocation2 + $0x30] sm:$0xff]   ;;  %v3605_v63 = vld [vmem:[#allocation2 + $0x60] sm:$0xf] }
 0x28e   : > { %7527 = vmatpush3.bf16.msra.mxu1 %v9126_v47  ;;  %v3745_v47 = vshrl.u32 %v3600_v45, 16  ;;  %v9408_v46 = vsel %vm8194_vm11, %v6587_v52, %v3280_v12  ;;  %v2785_v61 = vsel %vm8169_vm8, %v2780_v60, %v2784_v28  ;;  %v2800_v13 = vshrl.u32 %v2655_v57, 16  ;;  %v3171_v10 = vld [vmem:[#allocation2 + $0x50] sm:$0x1]  ;;  %v2657_v57 = vld [vmem:[#allocation2 + $0x48] sm:$0xf] }
 0x28f   : > { %7520 = vmatprep.subr.bf16.mxu1 %v9355_v2  ;;  %v3738_v6 = vor.u32 %v3737_v55, %v3734_v19  ;;  %v9423_v31 = vsel %vm8194_vm11, %v3282_v17, %v3283_v49  ;;  %v9428_v53 = vcombine.low %v2775_v5, %v2785_v61  ;;  %v2792_v21 = vrot.slane %v2790_v35, 5  ;;  %v2658_v60 = vld [vmem:[#allocation2 + $0x4c] sm:$0xf]  ;;  %v7662_v35 = vld [vmem:[#allocation2 + $0x3c] sm:$0xff]  }
 0x290   : > { %7474 = vmatpush3.bf16.msra.mxu0 %v9355_v2  ;;  %v3747_v44 = vrot.slane %v3745_v47, 4  ;;  %v6603_v56 = vcombine.low %v9408_v46, %v9423_v31  ;;  %v2802_v8 = vrot.slane %v2800_v13, 4  ;;  %v3759_v37 = vshll.u32 %v3602_v30, 16  ;;  %v9475_v13 = vld [vmem:[%s10267_s4 + $0x238] sm:$0xff]  }
 0x291   : > { %7475 = vmatprep.subr.bf16.mxu0 %v9381_v9  ;;  %v3739_v62 = vrot.slane %v3738_v6, 4  ;;  %v3765_v47 = vshll.u32 %v3603_v14, 16  ;;  %v3769_v20 = vshrl.u32 %v3603_v14, 16  ;;  %v2808_v55 = vrot.slane %v2806_v50, 5 }
 0x292   : > { %7528 = vmatpush3.bf16.msra.mxu1 %v9355_v2  ;;  %v3748_v11 = vor.u32 %v3747_v44, %v3743_v15  ;;  %v2787_v2 = vshrl.u32 %v2654_v0, 16  ;;  %v2803_v19 = vor.u32 %v2802_v8, %v2798_v7  ;;  %v3761_v27 = vrot.slane %v3759_v37, 5 }
 0x293   : > { %5631 = vmatmul.mubr.bf16.gmra.mrb[100].mxu0 %v7659_v32  ;;  %7521 = vmatprep.subr.bf16.mxu1 %v9381_v9  ;;  %v3775_v0 = vshll.u32 %v3604_v18, 16  ;;  %v3767_v52 = vrot.slane %v3765_v47, 5  ;;  %v3771_v12 = vrot.slane %v3769_v20, 4  ;;  %v3287_v49 = vrot.slane %v3170_v41, 5 }
 0x294   : > { %5638 = vmatprep.mubr.bf16.mxu0 %v9345_v24  ;;  %7476 = vmatpush3.bf16.msra.mxu0 %v9381_v9  ;;  %v9416_v24 = vld [vmem:[%s10267_s4 + $0x220] sm:$0xff]   ;;  %v3749_v45 = vrot.slane %v3748_v11, 4  ;;  %v2789_v59 = vrot.slane %v2787_v2, 4  ;;  %v2804_v44 = vrot.slane %v2803_v19, 4  ;;  %v2659_v2 = vld [vmem:[#allocation2 + $0x50] sm:$0x1] }
 0x295   : > { %7477 = vmatprep.subr.bf16.mxu0 %v9395_v48  ;;  %5470 = vmatmul.mubr.bf16.gmra.mrb[68].mxu1 %v9325_v33  ;;  %v3744_v33 = vsel %vm8169_vm8, %v3739_v62, %v3743_v15  ;;  %v3758_v15 = vrot.slane %v3756_v40, 4  ;;  %v3777_v6 = vrot.slane %v3775_v0, 5  ;;  %v3772_v17 = vor.u32 %v3771_v12, %v3767_v52 }
 0x296   : > { %5477 = vmatprep.mubr.bf16.mxu1 %v6601_v39  ;;  %7529 = vmatpush3.bf16.msra.mxu1 %v9381_v9  ;;  %v3754_v32 = vsel %vm8169_vm8, %v3749_v45, %v3753_v4  ;;  %v3169_v39 = vld [vmem:[#allocation2 + $0x48] sm:$0xe]  ;;  %v2793_v28 = vor.u32 %v2792_v21, %v2789_v59  ;;  %v2809_v11 = vsel %vm8169_vm8, %v2804_v44, %v2808_v55  ;;  %v3290_v62 = vrot.slane %v3171_v10, 5  ;;  %v3174_v55 = vld [vmem:[#allocation2 + $0x5c] sm:$0x1] }
 0x297   : > { %7522 = vmatprep.subr.bf16.mxu1 %v9395_v48  ;;  %v9439_v29 = vcombine.low %v3744_v33, %v3754_v32  ;;  %v9445_v9 = vld [vmem:[%s10267_s4 + $0x228] sm:$0xff]   ;;  %v3762_v5 = vor.u32 %v3761_v27, %v3758_v15  ;;  %v6588_v4 = vrot.slane %v3169_v39, 9  ;;  %v3289_v45 = vrot.slane %v3287_v49, 4  ;;  %v3606_v33 = vld [vmem:[#allocation2 + $0x64] sm:$0xf] }
 0x298   : > { %7478 = vmatpush3.bf16.msra.mxu0 %v9395_v48  ;;  %v2794_v3 = vrot.slane %v2793_v28, 4  ;;  %v3773_v30 = vrot.slane %v3772_v17, 4  ;;  %v2811_v25 = vshrl.u32 %v2657_v57, 16  ;;  %v2814_v38 = vshll.u32 %v2657_v57, 16  ;;  %v3172_v32 = vld [vmem:[#allocation2 + $0x54] sm:$0xe] }
 0x299   : > { %7479 = vmatprep.subr.bf16.mxu0 %v9416_v24  ;;  %v3763_v61 = vrot.slane %v3762_v5, 4  ;;  %v2824_v14 = vshrl.u32 %v2658_v60, 16  ;;  %v2830_v18 = vshll.u32 %v2659_v2, 16  ;;  %v3173_v28 = vld [vmem:[#allocation2 + $0x58] sm:$0xf]  ;;  %v3780_v47 = vshrl.u32 %v3605_v63, 16 }
 0x29a   : > { %7530 = vmatpush3.bf16.msra.mxu1 %v9395_v48  ;;  %v2799_v48 = vsel %vm8169_vm8, %v2794_v3, %v2798_v7  ;;  %v3778_v21 = vsel %vm8169_vm8, %v3773_v30, %v3777_v6  ;;  %v2813_v8 = vrot.slane %v2811_v25, 4  ;;  %v2816_v39 = vrot.slane %v2814_v38, 5  ;;  %v2660_v44 = vld [vmem:[#allocation2 + $0x54] sm:$0xf]  ;;  %v7664_v17 = vld [vmem:[#allocation2 + $0x48] sm:$0xff]  }
 0x29b   : > { %5639 = vmatmul.mubr.bf16.gmra.mrb[104].mxu0 %v7661_v16  ;;  %7523 = vmatprep.subr.bf16.mxu1 %v9416_v24  ;;  %v9465_v22 = vcombine.low %v2799_v48, %v2809_v11  ;;  %v3768_v59 = vsel %vm8169_vm8, %v3763_v61, %v3767_v52  ;;  %v3607_v16 = vld [vmem:[#allocation2 + $0x68] sm:$0x1]  ;;  %v2826_v37 = vrot.slane %v2824_v14, 4  ;;  %v2832_v41 = vrot.slane %v2830_v18, 5  ;;  %v3608_v2 = vld [vmem:[#allocation2 + $0x6c] sm:$0xf] }
 0x29c   : > { %5646 = vmatprep.mubr.bf16.mxu0 %v9390_v54  ;;  %7480 = vmatpush3.bf16.msra.mxu0 %v9416_v24  ;;  %v9455_v54 = vld [vmem:[%s10267_s4 + $0x230] sm:$0xff]   ;;  %v6636_v50 = vcombine.low %v3768_v59, %v3778_v21  ;;  %v2817_v19 = vor.u32 %v2816_v39, %v2813_v8  ;;  %v3783_v20 = vshll.u32 %v3605_v63, 16  ;;  %v3789_v10 = vshll.u32 %v3606_v33, 16 }
 0x29d   : > { %7481 = vmatprep.subr.bf16.mxu0 %v9445_v9  ;;  %5478 = vmatmul.mubr.bf16.gmra.mrb[72].mxu1 %v9365_v58  ;;  %v9469_v58 = vsel %vm8194_vm11, %v6588_v4, %v3287_v49  ;;  %v3793_v27 = vshrl.u32 %v3606_v33, 16  ;;  %v3799_v0 = vshll.u32 %v3607_v16, 16  ;;  %v6589_v3 = vrot.slane %v3172_v32, 9  ;;  %v3609_v16 = vld [vmem:[#allocation2 + $0x70] sm:$0xf] }
 0x29e   : > { %5485 = vmatprep.mubr.bf16.mxu1 %v6602_v23  ;;  %7531 = vmatpush3.bf16.msra.mxu1 %v9416_v24  ;;  %v2820_v23 = vshll.u32 %v2658_v60, 16  ;;  %v9483_v24 = vsel %vm8194_vm11, %v3289_v45, %v3290_v62  ;;  %v3785_v52 = vrot.slane %v3783_v20, 5  ;;  %v3791_v12 = vrot.slane %v3789_v10, 5  ;;  %v2662_v62 = vld [vmem:[#allocation2 + $0x5c] sm:$0x1] }
 0x29f   : > { %7524 = vmatprep.subr.bf16.mxu1 %v9445_v9  ;;  %v6604_v7 = vcombine.low %v9469_v58, %v9483_v24  ;;  %v3795_v5 = vrot.slane %v3793_v27, 4  ;;  %v3801_v6 = vrot.slane %v3799_v0, 5  ;;  %v3294_v4 = vrot.slane %v3173_v28, 5  ;;  %v3610_v32 = vld [vmem:[#allocation2 + $0x74] sm:$0x1] }
 0x2a0   : > { %7482 = vmatpush3.bf16.msra.mxu0 %v9445_v9  ;;  %v2822_v40 = vrot.slane %v2820_v23, 5  ;;  %v3297_v48 = vrot.slane %v3174_v55, 5  ;;  %v2835_v11 = vshrl.u32 %v2660_v44, 16  ;;  %v2838_v63 = vshll.u32 %v2660_v44, 16  ;;  %v7665_v27 = vld [vmem:[#allocation2 + $0x54] sm:$0xff]  }
 0x2a1   : > { %7483 = vmatprep.subr.bf16.mxu0 %v9455_v54  ;;  %v3796_v31 = vor.u32 %v3795_v5, %v3791_v12  ;;  %v2854_v18 = vshll.u32 %v2662_v62, 16  ;;  %v3807_v28 = vshll.u32 %v3608_v2, 16  ;;  %v3813_v10 = vshll.u32 %v3609_v16, 16 }
 0x2a2   : > { %7532 = vmatpush3.bf16.msra.mxu1 %v9445_v9  ;;  %v2827_v15 = vor.u32 %v2826_v37, %v2822_v40  ;;  %v2818_v9 = vrot.slane %v2817_v19, 4  ;;  %v2837_v45 = vrot.slane %v2835_v11, 4  ;;  %v2840_v14 = vrot.slane %v2838_v63, 5  ;;  %v3175_v37 = vld [vmem:[#allocation2 + $0x60] sm:$0xe] }
 0x2a3   : > { %5647 = vmatmul.mubr.bf16.gmra.mrb[108].mxu0 %v7662_v35  ;;  %7525 = vmatprep.subr.bf16.mxu1 %v9455_v54  ;;  %v3797_v30 = vrot.slane %v3796_v31, 4  ;;  %v3176_v19 = vld [vmem:[#allocation2 + $0x64] sm:$0xf]  ;;  %v3817_v55 = vshrl.u32 %v3609_v16, 16  ;;  %v3823_v44 = vshll.u32 %v3610_v32, 16 }
 0x2a4   : > { %5654 = vmatprep.mubr.bf16.mxu0 %v9439_v29  ;;  %7484 = vmatpush3.bf16.msra.mxu0 %v9455_v54  ;;  %v3782_v29 = vrot.slane %v3780_v47, 4  ;;  %v2828_v57 = vrot.slane %v2827_v15, 4  ;;  %v2823_v49 = vsel %vm8169_vm8, %v2818_v9, %v2822_v40  ;;  %v3804_v40 = vshrl.u32 %v3608_v2, 16  ;;  %v3177_v15 = vld [vmem:[#allocation2 + $0x68] sm:$0x1] }
 0x2a5   : > { %7485 = vmatprep.subr.bf16.mxu0 %v9475_v13  ;;  %5486 = vmatmul.mubr.bf16.gmra.mrb[76].mxu1 %v9428_v53  ;;  %v2661_v53 = vld [vmem:[#allocation2 + $0x58] sm:$0xf]  ;;  %v3802_v21 = vsel %vm8169_vm8, %v3797_v30, %v3801_v6  ;;  %v6590_v9 = vrot.slane %v3175_v37, 9  ;;  %v3825_v24 = vrot.slane %v3823_v44, 5  ;;  %v2664_v6 = vld [vmem:[#allocation2 + $0x64] sm:$0xf] }
 0x2a6   : > { %5493 = vmatprep.mubr.bf16.mxu1 %v6603_v56  ;;  %7533 = vmatpush3.bf16.msra.mxu1 %v9455_v54  ;;  %v3786_v60 = vor.u32 %v3785_v52, %v3782_v29  ;;  %v2833_v46 = vsel %vm8169_vm8, %v2828_v57, %v2832_v41  ;;  %v9508_v56 = vsel %vm8194_vm11, %v6589_v3, %v3294_v4  ;;  %v3296_v54 = vrot.slane %v3294_v4, 4  ;;  %v2663_v57 = vld [vmem:[#allocation2 + $0x60] sm:$0xf]  ;;  %v3178_v32 = vld [vmem:[#allocation2 + $0x6c] sm:$0xe] }
 0x2a7   : > { %7526 = vmatprep.subr.bf16.mxu1 %v9475_v13  ;;  %v9510_v35 = vcombine.low %v2823_v49, %v2833_v46  ;;  %v2844_v38 = vshll.u32 %v2661_v53, 16  ;;  %v2848_v23 = vshrl.u32 %v2661_v53, 16  ;;  %v2856_v41 = vrot.slane %v2854_v18, 5  ;;  %v3180_v37 = vld [vmem:[#allocation2 + $0x74] sm:$0x1] }
 0x2a8   : > { %7486 = vmatpush3.bf16.msra.mxu0 %v9475_v13  ;;  %v3787_v61 = vrot.slane %v3786_v60, 4  ;;  %v9514_v25 = vsel %vm8194_vm11, %v3296_v54, %v3297_v48  ;;  %v3806_v20 = vrot.slane %v3804_v40, 4  ;;  %v3809_v3 = vrot.slane %v3807_v28, 5  ;;  %v3179_v40 = vld [vmem:[#allocation2 + $0x70] sm:$0xf] }
 0x2a9   : > { %v6605_v59 = vcombine.low %v9508_v56, %v9514_v25  ;;  %v2846_v8 = vrot.slane %v2844_v38, 5  ;;  %v2850_v39 = vrot.slane %v2848_v23, 4  ;;  %v3815_v29 = vrot.slane %v3813_v10, 5  ;;  %v3612_v38 = vld [vmem:[#allocation2 + $0x7c] sm:$0xf] }
 0x2aa   : > { %7534 = vmatpush3.bf16.msra.mxu1 %v9475_v13  ;;  %v3792_v33 = vsel %vm8169_vm8, %v3787_v61, %v3791_v12  ;;  %v3819_v52 = vrot.slane %v3817_v55, 4  ;;  %v3301_v12 = vrot.slane %v3176_v19, 5  ;;  %v3810_v58 = vor.u32 %v3809_v3, %v3806_v20  ;;  %v3611_v61 = vld [vmem:[#allocation2 + $0x78] sm:$0xf]  ;;  %v3613_v23 = vld [vmem:[#allocation2 + $0x80] sm:$0x1] }
 0x2ab   : > { %5655 = vmatmul.mubr.bf16.gmra.mrb[112].mxu0 %v7664_v17  ;;  %v6637_v13 = vcombine.low %v3792_v33, %v3802_v21  ;;  %v2851_v47 = vor.u32 %v2850_v39, %v2846_v8  ;;  %v2665_v17 = vld [vmem:[#allocation2 + $0x68] sm:$0x1]  ;;  %v2859_v46 = vshrl.u32 %v2663_v57, 16  ;;  %v2862_v31 = vshll.u32 %v2663_v57, 16 }
 0x2ac   : > { %5662 = vmatprep.mubr.bf16.mxu0 %v6636_v50  ;;  %v2841_v50 = vor.u32 %v2840_v14, %v2837_v45  ;;  %v3820_v49 = vor.u32 %v3819_v52, %v3815_v29  ;;  %v9533_v60 = vsel %vm8194_vm11, %v6590_v9, %v3301_v12  ;;  %v3303_v48 = vrot.slane %v3301_v12, 4  ;;  %v2667_v52 = vld [vmem:[#allocation2 + $0x70] sm:$0xf] }
 0x2ad   : > { %5494 = vmatmul.mubr.bf16.gmra.mrb[80].mxu1 %v9465_v22  ;;  %v2852_v22 = vrot.slane %v2851_v47, 4  ;;  %v3811_v11 = vrot.slane %v3810_v58, 4  ;;  %v2868_v62 = vshll.u32 %v2664_v6, 16  ;;  %v2872_v2 = vshrl.u32 %v2664_v6, 16  ;;  %v2666_v47 = vld [vmem:[#allocation2 + $0x6c] sm:$0xf] }
 0x2ae   : > { %5501 = vmatprep.mubr.bf16.mxu1 %v6604_v7  ;;  %v2842_v0 = vrot.slane %v2841_v50, 4  ;;  %v3304_v7 = vrot.slane %v3177_v15, 5  ;;  %v3821_v56 = vrot.slane %v3820_v49, 4  ;;  %v2861_v30 = vrot.slane %v2859_v46, 4  ;;  %v2668_v58 = vld [vmem:[#allocation2 + $0x74] sm:$0x1] }
 0x2af   : > { %v2857_v4 = vsel %vm8169_vm8, %v2852_v22, %v2856_v41  ;;  %v3816_v45 = vsel %vm8169_vm8, %v3811_v11, %v3815_v29  ;;  %v2864_v25 = vrot.slane %v2862_v31, 5  ;;  %v2870_v14 = vrot.slane %v2868_v62, 5 }
 0x2b0   : > { %v2847_v5 = vsel %vm8169_vm8, %v2842_v0, %v2846_v8  ;;  %v3305_v54 = vsel %vm8194_vm11, %v3303_v48, %v3304_v7  ;;  %v3826_v33 = vsel %vm8169_vm8, %v3821_v56, %v3825_v24  ;;  %v2874_v18 = vrot.slane %v2872_v2, 4  ;;  %v7668_v48 = vld [vmem:[#allocation2 + $0x6c] sm:$0xff]   ;;  %v3615_v56 = vld [vmem:[#allocation2 + $0x88] sm:$0xf] }
 0x2b1   : > { %v6573_v53 = vcombine.low %v2847_v5, %v2857_v4  ;;  %v6606_v63 = vcombine.low %v9533_v60, %v3305_v54  ;;  %v2878_v16 = vshll.u32 %v2665_v17, 16  ;;  %v6638_v21 = vcombine.low %v3816_v45, %v3826_v33  ;;  %v3614_v60 = vld [vmem:[#allocation2 + $0x84] sm:$0xf]  ;;  %v3181_v45 = vld [vmem:[#allocation2 + $0x78] sm:$0xe] }
 0x2b2   : > { %v2865_v8 = vor.u32 %v2864_v25, %v2861_v30  ;;  %v3831_v39 = vshll.u32 %v3611_v61, 16  ;;  %v2875_v50 = vor.u32 %v2874_v18, %v2870_v14  ;;  %v3837_v28 = vshll.u32 %v3612_v38, 16 }
 0x2b3   : > { %5663 = vmatmul.mubr.bf16.gmra.mrb[116].mxu0 %v7665_v27  ;;  %v2880_v41 = vrot.slane %v2878_v16, 5  ;;  %v3841_v19 = vshrl.u32 %v3612_v38, 16  ;;  %v3847_v55 = vshll.u32 %v3613_v23, 16  ;;  %v6591_v3 = vrot.slane %v3178_v32, 9  ;;  %v3182_v16 = vld [vmem:[#allocation2 + $0x7c] sm:$0xf] }
 0x2b4   : > { %5670 = vmatprep.mubr.bf16.mxu0 %v6637_v13  ;;  %v7667_v13 = vld [vmem:[#allocation2 + $0x60] sm:$0xff]   ;;  %v3833_v10 = vrot.slane %v3831_v39, 5  ;;  %v2876_v15 = vrot.slane %v2875_v50, 4  ;;  %v3839_v27 = vrot.slane %v3837_v28, 5  ;;  %v3308_v29 = vrot.slane %v3179_v40, 5 }
 0x2b5   : > { %5502 = vmatmul.mubr.bf16.gmra.mrb[84].mxu1 %v9510_v35  ;;  %v3828_v35 = vshrl.u32 %v3611_v61, 16  ;;  %v3843_v0 = vrot.slane %v3841_v19, 4  ;;  %v3849_v22 = vrot.slane %v3847_v55, 5  ;;  %v3311_v5 = vrot.slane %v3180_v37, 5  ;;  %v3616_v61 = vld [vmem:[#allocation2 + $0x8c] sm:$0x1] }
 0x2b6   : > { %5509 = vmatprep.mubr.bf16.mxu1 %v6605_v59  ;;  %v2866_v59 = vrot.slane %v2865_v8, 4  ;;  %v2881_v12 = vsel %vm8169_vm8, %v2876_v15, %v2880_v41  ;;  %v2883_v24 = vshrl.u32 %v2666_v47, 16  ;;  %v3309_v4 = vsel %vm8194_vm11, %v6591_v3, %v3308_v29  ;;  %v3183_v39 = vld [vmem:[#allocation2 + $0x80] sm:$0x1]  ;;  %v2669_v41 = vld [vmem:[#allocation2 + $0x78] sm:$0xf] }
 0x2b7   : > { %v3830_v20 = vrot.slane %v3828_v35, 4  ;;  %v3844_v57 = vor.u32 %v3843_v0, %v3839_v27  ;;  %v3310_v49 = vrot.slane %v3308_v29, 4  ;;  %v2886_v46 = vshll.u32 %v2666_v47, 16 }
 0x2b8   : > { %v2871_v44 = vsel %vm8169_vm8, %v2866_v59, %v2870_v14  ;;  %v2885_v17 = vrot.slane %v2883_v24, 4  ;;  %v2892_v31 = vshll.u32 %v2667_v52, 16  ;;  %v2896_v62 = vshrl.u32 %v2667_v52, 16 }
 0x2b9   : > { %v3834_v9 = vor.u32 %v3833_v10, %v3830_v20  ;;  %v6574_v7 = vcombine.low %v2871_v44, %v2881_v12  ;;  %v3845_v11 = vrot.slane %v3844_v57, 4  ;;  %v2902_v2 = vshll.u32 %v2668_v58, 16  ;;  %v2670_v44 = vld [vmem:[#allocation2 + $0x7c] sm:$0xf]  ;;  %v2671_v12 = vld [vmem:[#allocation2 + $0x80] sm:$0x1] }
 0x2ba   : > { %v2888_v25 = vrot.slane %v2886_v46, 5  ;;  %v2894_v38 = vrot.slane %v2892_v31, 5  ;;  %v2898_v33 = vrot.slane %v2896_v62, 4  ;;  %v3852_v18 = vshrl.u32 %v3614_v60, 16 }
 0x2bb   : > { %5671 = vmatmul.mubr.bf16.gmra.mrb[120].mxu0 %v7667_v13  ;;  %v3835_v6 = vrot.slane %v3834_v9, 4  ;;  %v3850_v30 = vsel %vm8169_vm8, %v3845_v11, %v3849_v22  ;;  %v2904_v14 = vrot.slane %v2902_v2, 5  ;;  %v3861_v8 = vshll.u32 %v3615_v56, 16 }
 0x2bc   : > { %5678 = vmatprep.mubr.bf16.mxu0 %v6638_v21  ;;  %v2889_v32 = vor.u32 %v2888_v25, %v2885_v17  ;;  %v3855_v21 = vshll.u32 %v3614_v60, 16  ;;  %v3865_v35 = vshrl.u32 %v3615_v56, 16  ;;  %v2899_v40 = vor.u32 %v2898_v33, %v2894_v38  ;;  %v3618_v17 = vld [vmem:[#allocation2 + $0x94] sm:$0xf] }
 0x2bd   : > { %5510 = vmatmul.mubr.bf16.gmra.mrb[88].mxu1 %v6573_v53  ;;  %v3840_v54 = vsel %vm8169_vm8, %v3835_v6, %v3839_v27  ;;  %v3312_v53 = vsel %vm8194_vm11, %v3310_v49, %v3311_v5  ;;  %v3854_v37 = vrot.slane %v3852_v18, 4  ;;  %v3871_v13 = vshll.u32 %v3616_v61, 16  ;;  %v7670_v5 = vld [vmem:[#allocation2 + $0x78] sm:$0xff]  }
 0x2be   : > { %5517 = vmatprep.mubr.bf16.mxu1 %v6606_v63  ;;  %v6607_v63 = vcombine.low %v3309_v4, %v3312_v53  ;;  %v6639_v23 = vcombine.low %v3840_v54, %v3850_v30  ;;  %v6592_v50 = vrot.slane %v3181_v45, 9  ;;  %v2890_v28 = vrot.slane %v2889_v32, 4  ;;  %v3617_v4 = vld [vmem:[#allocation2 + $0x90] sm:$0xf]  ;;  %v3619_v53 = vld [vmem:[#allocation2 + $0x98] sm:$0x1] }
 0x2bf   : > { %v3857_v19 = vrot.slane %v3855_v21, 5  ;;  %v3863_v47 = vrot.slane %v3861_v8, 5  ;;  %v3867_v59 = vrot.slane %v3865_v35, 4  ;;  %v2900_v20 = vrot.slane %v2899_v40, 4  ;;  %v3184_v30 = vld [vmem:[#allocation2 + $0x84] sm:$0xe] }
 0x2c0   : > { %v3873_v10 = vrot.slane %v3871_v13, 5  ;;  %v3315_v55 = vrot.slane %v3182_v16, 5  ;;  %v3318_v15 = vrot.slane %v3183_v39, 5  ;;  %v2895_v27 = vsel %vm8169_vm8, %v2890_v28, %v2894_v38  ;;  %v2672_v8 = vld [vmem:[#allocation2 + $0x84] sm:$0xf] }
 0x2c1   : > { %v3858_v0 = vor.u32 %v3857_v19, %v3854_v37  ;;  %v3868_v3 = vor.u32 %v3867_v59, %v3863_v47  ;;  %v2907_v9 = vshrl.u32 %v2669_v41, 16  ;;  %v2905_v22 = vsel %vm8169_vm8, %v2900_v20, %v2904_v14  ;;  %v3186_v14 = vld [vmem:[#allocation2 + $0x8c] sm:$0x1]  ;;  %v2673_v13 = vld [vmem:[#allocation2 + $0x88] sm:$0xf] }
 0x2c2   : > { %v3316_v29 = vsel %vm8194_vm11, %v6592_v50, %v3315_v55  ;;  %v3317_v52 = vrot.slane %v3315_v55, 4  ;;  %v2910_v57 = vshll.u32 %v2669_v41, 16  ;;  %v6575_v58 = vcombine.low %v2895_v27, %v2905_v22 }
 0x2c3   : > { %5679 = vmatmul.mubr.bf16.gmra.mrb[124].mxu0 %v7668_v48  ;;  %v3859_v24 = vrot.slane %v3858_v0, 4  ;;  %v2909_v6 = vrot.slane %v2907_v9, 4  ;;  %v2916_v48 = vshll.u32 %v2670_v44, 16  ;;  %v2920_v11 = vshrl.u32 %v2670_v44, 16  ;;  %v2674_v0 = vld [vmem:[#allocation2 + $0x8c] sm:$0x1] }
 0x2c4   : > { %5686 = vmatprep.mubr.bf16.mxu0 %v6639_v23  ;;  %v3319_v49 = vsel %vm8194_vm11, %v3317_v52, %v3318_v15  ;;  %v2912_v60 = vrot.slane %v2910_v57, 5  ;;  %v2926_v54 = vshll.u32 %v2671_v12, 16  ;;  %v3876_v38 = vshrl.u32 %v3617_v4, 16  ;;  %v3620_v12 = vld [vmem:[#allocation2 + $0x9c] sm:$0xf] }
 0x2c5   : > { %5518 = vmatmul.mubr.bf16.gmra.mrb[92].mxu1 %v6574_v7  ;;  %v3869_v7 = vrot.slane %v3868_v3, 4  ;;  %v3864_v46 = vsel %vm8169_vm8, %v3859_v24, %v3863_v47  ;;  %v6608_v56 = vcombine.low %v3316_v29, %v3319_v49  ;;  %v2918_v61 = vrot.slane %v2916_v48, 5  ;;  %v7671_v47 = vld [vmem:[#allocation2 + $0x84] sm:$0xff]  }
 0x2c6   : > { %5525 = vmatprep.mubr.bf16.mxu1 %v6607_v63  ;;  %v2913_v2 = vor.u32 %v2912_v60, %v2909_v6  ;;  %v2922_v45 = vrot.slane %v2920_v11, 4  ;;  %v3185_v63 = vld [vmem:[#allocation2 + $0x88] sm:$0xf]  ;;  %v2928_v25 = vrot.slane %v2926_v54, 5  ;;  %v3879_v23 = vshll.u32 %v3617_v4, 16 }
 0x2c7   : > { %v3874_v31 = vsel %vm8169_vm8, %v3869_v7, %v3873_v10  ;;  %v3885_v33 = vshll.u32 %v3618_v17, 16  ;;  %v3889_v32 = vshrl.u32 %v3618_v17, 16  ;;  %v3895_v21 = vshll.u32 %v3619_v53, 16  ;;  %v3621_v60 = vld [vmem:[#allocation2 + $0xa0] sm:$0xf] }
 0x2c8   : > { %v6640_v62 = vcombine.low %v3864_v46, %v3874_v31  ;;  %v2914_v18 = vrot.slane %v2913_v2, 4  ;;  %v2923_v16 = vor.u32 %v2922_v45, %v2918_v61  ;;  %v3878_v35 = vrot.slane %v3876_v38, 4  ;;  %v3622_v46 = vld [vmem:[#allocation2 + $0xa4] sm:$0x1]  ;;  %v3189_v38 = vld [vmem:[#allocation2 + $0x98] sm:$0x1] }
 0x2c9   : > { %v3881_v39 = vrot.slane %v3879_v23, 5  ;;  %v3887_v40 = vrot.slane %v3885_v33, 5  ;;  %v6593_v37 = vrot.slane %v3184_v30, 9  ;;  %v3891_v28 = vrot.slane %v3889_v32, 4  ;;  %v7673_v23 = vld [vmem:[#allocation2 + $0x90] sm:$0xff]  }
 0x2ca   : > { %v2919_v50 = vsel %vm8169_vm8, %v2914_v18, %v2918_v61  ;;  %v2924_v41 = vrot.slane %v2923_v16, 4  ;;  %v3897_v19 = vrot.slane %v3895_v21, 5  ;;  %v3322_v20 = vrot.slane %v3185_v63, 5  ;;  %v3188_v61 = vld [vmem:[#allocation2 + $0x94] sm:$0xf] }
 0x2cb   : > { %5687 = vmatmul.mubr.bf16.gmra.mrb[128].mxu0 %v7670_v5  ;;  %v3882_v59 = vor.u32 %v3881_v39, %v3878_v35  ;;  %v3325_v10 = vrot.slane %v3186_v14, 5  ;;  %v2931_v55 = vshrl.u32 %v2672_v8, 16  ;;  %v3892_v27 = vor.u32 %v3891_v28, %v3887_v40  ;;  %v2675_v39 = vld [vmem:[#allocation2 + $0x90] sm:$0xf] }
 0x2cc   : > { %5694 = vmatprep.mubr.bf16.mxu0 %v6640_v62  ;;  %v2929_v15 = vsel %vm8169_vm8, %v2924_v41, %v2928_v25  ;;  %v2934_v3 = vshll.u32 %v2672_v8, 16  ;;  %v2940_v44 = vshll.u32 %v2673_v13, 16  ;;  %v3323_v29 = vsel %vm8194_vm11, %v6593_v37, %v3322_v20 }
 0x2cd   : > { %5526 = vmatmul.mubr.bf16.gmra.mrb[96].mxu1 %v6575_v58  ;;  %v6576_v9 = vcombine.low %v2919_v50, %v2929_v15  ;;  %v3883_v22 = vrot.slane %v3882_v59, 4  ;;  %v3324_v52 = vrot.slane %v3322_v20, 4  ;;  %v3893_v57 = vrot.slane %v3892_v27, 4  ;;  %v2676_v59 = vld [vmem:[#allocation2 + $0x94] sm:$0xf] }
 0x2ce   : > { %5533 = vmatprep.mubr.bf16.mxu1 %v6608_v56  ;;  %v2933_v5 = vrot.slane %v2931_v55, 4  ;;  %v2936_v58 = vrot.slane %v2934_v3, 5  ;;  %v2942_v24 = vrot.slane %v2940_v44, 5  ;;  %v2944_v4 = vshrl.u32 %v2673_v13, 16  ;;  %v3187_v56 = vld [vmem:[#allocation2 + $0x90] sm:$0xe] }
 0x2cf   : > { %v3888_v7 = vsel %vm8169_vm8, %v3883_v22, %v3887_v40  ;;  %v3326_v6 = vsel %vm8194_vm11, %v3324_v52, %v3325_v10  ;;  %v2950_v49 = vshll.u32 %v2674_v0, 16  ;;  %v3898_v48 = vsel %vm8169_vm8, %v3893_v57, %v3897_v19  ;;  %v2677_v15 = vld [vmem:[#allocation2 + $0x98] sm:$0x1] }
 0x2d0   : > { %v6609_v11 = vcombine.low %v3323_v29, %v3326_v6  ;;  %v2937_v17 = vor.u32 %v2936_v58, %v2933_v5  ;;  %v3900_v31 = vshrl.u32 %v3620_v12, 16  ;;  %v6641_v54 = vcombine.low %v3888_v7, %v3898_v48  ;;  %v3623_v29 = vld [vmem:[#allocation2 + $0xa8] sm:$0xf]  ;;  %v3624_v7 = vld [vmem:[#allocation2 + $0xac] sm:$0xf] }
 0x2d1   : > { %v2946_v53 = vrot.slane %v2944_v4, 4  ;;  %v2952_v62 = vrot.slane %v2950_v49, 5  ;;  %v3903_v2 = vshll.u32 %v3620_v12, 16  ;;  %v3909_v63 = vshll.u32 %v3621_v60, 16 }
 0x2d2   : > { %v2938_v45 = vrot.slane %v2937_v17, 4  ;;  %v3902_v30 = vrot.slane %v3900_v31, 4  ;;  %v3913_v25 = vshrl.u32 %v3621_v60, 16  ;;  %v3919_v18 = vshll.u32 %v3622_v46, 16  ;;  %v7674_v46 = vld [vmem:[#allocation2 + $0x9c] sm:$0xff]  }
 0x2d3   : > { %5695 = vmatmul.mubr.bf16.gmra.mrb[132].mxu0 %v7671_v47  ;;  %v2947_v33 = vor.u32 %v2946_v53, %v2942_v24  ;;  %v3905_v14 = vrot.slane %v3903_v2, 5  ;;  %v6594_v16 = vrot.slane %v3187_v56, 9  ;;  %v3911_v21 = vrot.slane %v3909_v63, 5  ;;  %v3190_v53 = vld [vmem:[#allocation2 + $0x9c] sm:$0xe] }
 0x2d4   : > { %5702 = vmatprep.mubr.bf16.mxu0 %v6641_v54  ;;  %v2943_v32 = vsel %vm8169_vm8, %v2938_v45, %v2942_v24  ;;  %v3915_v8 = vrot.slane %v3913_v25, 4  ;;  %v3329_v35 = vrot.slane %v3188_v61, 5  ;;  %v3921_v13 = vrot.slane %v3919_v18, 5  ;;  %v3625_v54 = vld [vmem:[#allocation2 + $0xb0] sm:$0x1] }
 0x2d5   : > { %5534 = vmatmul.mubr.bf16.gmra.mrb[100].mxu1 %v6576_v9  ;;  %v2948_v40 = vrot.slane %v2947_v33, 4  ;;  %v3906_v37 = vor.u32 %v3905_v14, %v3902_v30  ;;  %v3332_v50 = vrot.slane %v3189_v38, 5  ;;  %v6983_v47 = vadd.f32 %v9255_v51, %v9251_v36  ;;  %v3191_v30 = vld [vmem:[#allocation2 + $0xa0] sm:$0xf]  ;;  %v3192_v33 = vld [vmem:[#allocation2 + $0xa4] sm:$0x1] }
 0x2d6   : > { %5541 = vmatprep.mubr.bf16.mxu1 %v6609_v11  ;;  %v3916_v41 = vor.u32 %v3915_v8, %v3911_v21  ;;  %v3330_v28 = vsel %vm8194_vm11, %v6594_v16, %v3329_v35  ;;  %v3331_v19 = vrot.slane %v3329_v35, 4  ;;  %v6986_v55 = vadd.f32 %v9267_v26, %v9261_v43  ;;  %v2678_v14 = vld [vmem:[#allocation2 + $0x9c] sm:$0xf] }
 0x2d7   : > { %v2953_v20 = vsel %vm8169_vm8, %v2948_v40, %v2952_v62  ;;  %v3907_v10 = vrot.slane %v3906_v37, 4  ;;  %v2955_v27 = vshrl.u32 %v2675_v39, 16  ;;  %v2958_v22 = vshll.u32 %v2675_v39, 16 }
 0x2d8   : > { %v6577_v0 = vcombine.low %v2943_v32, %v2953_v20  ;;  %v3917_v3 = vrot.slane %v3916_v41, 4  ;;  %v3333_v44 = vsel %vm8194_vm11, %v3331_v19, %v3332_v50  ;;  %v2964_v57 = vshll.u32 %v2676_v59, 16 }
 0x2d9   : > { %v3912_v36 = vsel %vm8169_vm8, %v3907_v10, %v3911_v21  ;;  %v6610_v51 = vcombine.low %v3330_v28, %v3333_v44  ;;  %v2957_v12 = vrot.slane %v2955_v27, 4  ;;  %v2960_v58 = vrot.slane %v2958_v22, 5  ;;  %v2680_v22 = vld [vmem:[#allocation2 + $0xa4] sm:$0x1] }
 0x2da   : > { %v3922_v43 = vsel %vm8169_vm8, %v3917_v3, %v3921_v13  ;;  %v2968_v24 = vshrl.u32 %v2676_v59, 16  ;;  %v2966_v49 = vrot.slane %v2964_v57, 5  ;;  %v2974_v60 = vshll.u32 %v2677_v15, 16  ;;  %v2679_v15 = vld [vmem:[#allocation2 + $0xa0] sm:$0xf] }
 0x2db   : > { %5703 = vmatmul.mubr.bf16.gmra.mrb[136].mxu0 %v7673_v23  ;;  %v6642_v6 = vcombine.low %v3912_v36, %v3922_v43  ;;  %v3924_v48 = vshrl.u32 %v3623_v29, 16  ;;  %v2961_v31 = vor.u32 %v2960_v58, %v2957_v12  ;;  %v3927_v61 = vshll.u32 %v3623_v29, 16 }
 0x2dc   : > { %v2970_v56 = vrot.slane %v2968_v24, 4  ;;  %v2976_v62 = vrot.slane %v2974_v60, 5  ;;  %v3933_v45 = vshll.u32 %v3624_v7, 16  ;;  %v3937_v23 = vshrl.u32 %v3624_v7, 16  ;;  %v3626_v7 = vld [vmem:[#allocation2 + $0xb4] sm:$0xf] }
 0x2dd   : > { %5542 = vmatmul.mubr.bf16.gmra.mrb[104].mxu1 %v6577_v0  ;;  %5710 = vmatprep.mubr.bf16.mxu0 %v6642_v6  ;;  %v3926_v2 = vrot.slane %v3924_v48, 4  ;;  %v2962_v25 = vrot.slane %v2961_v31, 4  ;;  %v3929_v18 = vrot.slane %v3927_v61, 5  ;;  %v3943_v32 = vshll.u32 %v3625_v54, 16  ;;  %v7676_v54 = vld [vmem:[#allocation2 + $0xa8] sm:$0xff]  }
 0x2de   : > { %v7093_v9 = vpop.f32.mrb[32].mxu0  ;;  %5549 = vmatprep.mubr.bf16.mxu1 %v6610_v51  ;;  %v2971_v38 = vor.u32 %v2970_v56, %v2966_v49  ;;  %v3935_v16 = vrot.slane %v3933_v45, 5  ;;  %v6595_v21 = vrot.slane %v3190_v53, 9  ;;  %v3939_v39 = vrot.slane %v3937_v23, 4 }
 0x2df   : > { %v7094_v52 = vpop.f32.mrb[33].mxu0  ;;  %v2967_v8 = vsel %vm8169_vm8, %v2962_v25, %v2966_v49  ;;  %v3336_v40 = vrot.slane %v3191_v30, 5  ;;  %v3930_v13 = vor.u32 %v3929_v18, %v3926_v2  ;;  %v3945_v50 = vrot.slane %v3943_v32, 5  ;;  %v3193_v25 = vld [vmem:[#allocation2 + $0xa8] sm:$0xe] }
 0x2e0   : > { %v7095_v26 = vadd.f32 %v7094_v52, %v7093_v9  ;;  %v7096_v5 = vpop.f32.mrb[34].mxu0  ;;  %v2972_v35 = vrot.slane %v2971_v38, 4  ;;  %v3339_v41 = vrot.slane %v3192_v33, 5  ;;  %v2979_v19 = vshrl.u32 %v2678_v14, 16 }
 0x2e1   : > { %v7097_v4 = vpop.f32.mrb[35].mxu0  ;;  %v3940_v59 = vor.u32 %v3939_v39, %v3935_v16  ;;  %v3337_v20 = vsel %vm8194_vm11, %v6595_v21, %v3336_v40  ;;  %v3338_v10 = vrot.slane %v3336_v40, 4  ;;  %v3931_v0 = vrot.slane %v3930_v13, 4  ;;  %v3195_v40 = vld [vmem:[#allocation2 + $0xb0] sm:$0x1] }
 0x2e2   : > { %v9595_v11 = vadd.f32 %v7095_v26, %v6983_v47  ;;  %v7098_v17 = vadd.f32 %v7097_v4, %v7096_v5  ;;  %v2977_v47 = vsel %vm8169_vm8, %v2972_v35, %v2976_v62  ;;  %v2981_v29 = vrot.slane %v2979_v19, 4  ;;  %v3628_v62 = vld [vmem:[#allocation2 + $0xbc] sm:$0x1] }
 0x2e3   : > { %5711 = vmatmul.mubr.bf16.gmra.mrb[140].mxu0 %v7674_v46  ;;  %v6578_v27 = vcombine.low %v2967_v8, %v2977_v47  ;;  %v3941_v36 = vrot.slane %v3940_v59, 4  ;;  %v3340_v51 = vsel %vm8194_vm11, %v3338_v10, %v3339_v41  ;;  %v2982_v57 = vshll.u32 %v2678_v14, 16 }
 0x2e4   : > { %v9597_v63 = vadd.f32 %v7098_v17, %v6986_v55  ;;  %v3936_v43 = vsel %vm8169_vm8, %v3931_v0, %v3935_v16  ;;  %v6611_v26 = vcombine.low %v3337_v20, %v3340_v51  ;;  %v2988_v24 = vshll.u32 %v2679_v15, 16  ;;  %v3627_v17 = vld [vmem:[#allocation2 + $0xb8] sm:$0xf]  ;;  %v3194_v16 = vld [vmem:[#allocation2 + $0xac] sm:$0xf] }
 0x2e5   : > { %5550 = vmatmul.mubr.bf16.gmra.mrb[108].mxu1 %v6578_v27  ;;  %v3946_v6 = vsel %vm8169_vm8, %v3941_v36, %v3945_v50  ;;  %v2984_v49 = vrot.slane %v2982_v57, 5  ;;  %v2992_v60 = vshrl.u32 %v2679_v15, 16  ;;  %v2998_v48 = vshll.u32 %v2680_v22, 16  ;;  %v2681_v22 = vld [vmem:[#allocation2 + $0xa8] sm:$0xf] }
 0x2e6   : > { %v7099_v37 = vpop.f32.mrb[36].mxu0  ;;  %v6987_v3 = vpop.f32.mrb[4].mxu1  ;;  %v6643_v46 = vcombine.low %v3936_v43, %v3946_v6  ;;  %5557 = vmatprep.mubr.bf16.mxu1 %v6611_v26  ;;  %v2990_v53 = vrot.slane %v2988_v24, 5  ;;  %v3948_v30 = vshrl.u32 %v3626_v7, 16  ;;  %v3951_v33 = vshll.u32 %v3626_v7, 16 }
 0x2e7   : > { %v7100_v28 = vpop.f32.mrb[37].mxu0  ;;  %v6988_v52 = vpop.f32.mrb[5].mxu1  ;;  %v2985_v2 = vor.u32 %v2984_v49, %v2981_v29  ;;  %v2994_v61 = vrot.slane %v2992_v60, 4  ;;  %v3000_v45 = vrot.slane %v2998_v48, 5  ;;  %v3957_v14 = vshll.u32 %v3627_v17, 16 }
 0x2e8   : > { %v7102_v55 = vpop.f32.mrb[38].mxu0  ;;  %v7101_v44 = vadd.f32 %v7100_v28, %v7099_v37  ;;  %v6989_v5 = vadd.f32 %v6988_v52, %v6987_v3  ;;  %v6990_v58 = vpop.f32.mrb[6].mxu1  ;;  %5718 = vmatprep.mubr.bf16.mxu0 %v6643_v46  ;;  %v3961_v18 = vshrl.u32 %v3627_v17, 16  ;;  %v3950_v35 = vrot.slane %v3948_v30, 4  ;;  %v3629_v60 = vld [vmem:[#allocation2 + $0xc0] sm:$0xf] }
 0x2e9   : > { %v7103_v9 = vpop.f32.mrb[39].mxu0  ;;  %v6991_v4 = vpop.f32.mrb[7].mxu1  ;;  %v2986_v21 = vrot.slane %v2985_v2, 4  ;;  %v2995_v8 = vor.u32 %v2994_v61, %v2990_v53  ;;  %v3967_v39 = vshll.u32 %v3628_v62, 16  ;;  %v3953_v13 = vrot.slane %v3951_v33, 5  ;;  %v7677_v30 = vld [vmem:[#allocation2 + $0xb4] sm:$0xff]  }
 0x2ea   : > { %v7104_v12 = vadd.f32 %v7103_v9, %v7102_v55  ;;  %v9611_v31 = vadd.f32 %v7101_v44, %v6989_v5  ;;  %v6992_v56 = vadd.f32 %v6991_v4, %v6990_v58  ;;  %v3959_v50 = vrot.slane %v3957_v14, 5  ;;  %v2682_v58 = vld [vmem:[#allocation2 + $0xac] sm:$0xf]  ;;  %v2683_v4 = vld [vmem:[#allocation2 + $0xb0] sm:$0x1] }
 0x2eb   : > { %5719 = vmatmul.mubr.bf16.gmra.mrb[144].mxu0 %v7676_v54  ;;  %v3963_v41 = vrot.slane %v3961_v18, 4  ;;  %v6596_v28 = vrot.slane %v3193_v25, 9  ;;  %v2991_v59 = vsel %vm8169_vm8, %v2986_v21, %v2990_v53  ;;  %v2996_v20 = vrot.slane %v2995_v8, 4  ;;  %v3630_v53 = vld [vmem:[#allocation2 + $0xc4] sm:$0xf] }
 0x2ec   : > { %v9613_v23 = vadd.f32 %v7104_v12, %v6992_v56  ;;  %v3969_v10 = vrot.slane %v3967_v39, 5  ;;  %v3343_v55 = vrot.slane %v3194_v16, 5  ;;  %v3954_v27 = vor.u32 %v3953_v13, %v3950_v35  ;;  %v3631_v62 = vld [vmem:[#allocation2 + $0xc8] sm:$0x1]  ;;  %v3196_v33 = vld [vmem:[#allocation2 + $0xb4] sm:$0xe] }
 0x2ed   : > { %v3964_v0 = vor.u32 %v3963_v41, %v3959_v50  ;;  %v3346_v3 = vrot.slane %v3195_v40, 5  ;;  %v3001_v29 = vsel %vm8169_vm8, %v2996_v20, %v3000_v45  ;;  %v3003_v49 = vshrl.u32 %v2681_v22, 16  ;;  %v3197_v14 = vld [vmem:[#allocation2 + $0xb8] sm:$0xf]  ;;  %v3198_v20 = vld [vmem:[#allocation2 + $0xbc] sm:$0x1] }
 0x2ee   : > { %v7105_v38 = vpop.f32.mrb[40].mxu0  ;;  %v6993_v19 = vpop.f32.mrb[8].mxu1  ;;  %v3344_v36 = vsel %vm8194_vm11, %v6596_v28, %v3343_v55  ;;  %v3345_v51 = vrot.slane %v3343_v55, 4  ;;  %v6579_v57 = vcombine.low %v2991_v59, %v3001_v29  ;;  %v3955_v43 = vrot.slane %v3954_v27, 4 }
 0x2ef   : > { %v7106_v32 = vpop.f32.mrb[41].mxu0  ;;  %v6994_v15 = vpop.f32.mrb[9].mxu1  ;;  %v3965_v26 = vrot.slane %v3964_v0, 4  ;;  %v3006_v54 = vshll.u32 %v2681_v22, 16  ;;  %v3005_v25 = vrot.slane %v3003_v49, 4  ;;  %v3022_v21 = vshll.u32 %v2683_v4, 16 }
 0x2f0   : > { %v7108_v37 = vpop.f32.mrb[42].mxu0  ;;  %v7107_v44 = vadd.f32 %v7106_v32, %v7105_v38  ;;  %v6996_v9 = vpop.f32.mrb[10].mxu1  ;;  %v6995_v52 = vadd.f32 %v6994_v15, %v6993_v19  ;;  %v3347_v24 = vsel %vm8194_vm11, %v3345_v51, %v3346_v3  ;;  %5558 = vmatmul.mubr.bf16.gmra.mrb[112].mxu1 %v6579_v57  ;;  %v3960_v17 = vsel %vm8169_vm8, %v3955_v43, %v3959_v50 }
 0x2f1   : > { %v7109_v47 = vpop.f32.mrb[43].mxu0  ;;  %v6997_v12 = vpop.f32.mrb[11].mxu1  ;;  %v3970_v46 = vsel %vm8169_vm8, %v3965_v26, %v3969_v10  ;;  %v6612_v56 = vcombine.low %v3344_v36, %v3347_v24  ;;  %v3012_v38 = vshll.u32 %v2682_v58, 16  ;;  %v3008_v16 = vrot.slane %v3006_v54, 5  ;;  %v2684_v24 = vld [vmem:[#allocation2 + $0xb4] sm:$0xf] }
 0x2f2   : > { %v7110_v5 = vadd.f32 %v7109_v47, %v7108_v37  ;;  %v9623_v7 = vadd.f32 %v7107_v44, %v6995_v52  ;;  %v6998_v6 = vadd.f32 %v6997_v12, %v6996_v9  ;;  %v6644_v61 = vcombine.low %v3960_v17, %v3970_v46  ;;  %v2685_v46 = vld [vmem:[#allocation2 + $0xb8] sm:$0xf] }
 0x2f3   : > { %5565 = vmatprep.mubr.bf16.mxu1 %v6612_v56  ;;  %v3016_v32 = vshrl.u32 %v2682_v58, 16  ;;  %v3972_v8 = vshrl.u32 %v3629_v60, 16  ;;  %v3014_v40 = vrot.slane %v3012_v38, 5  ;;  %v3975_v37 = vshll.u32 %v3629_v60, 16 }
 0x2f4   : > { %v9629_v45 = vadd.f32 %v7110_v5, %v6998_v6  ;;  %5726 = vmatprep.mubr.bf16.mxu0 %v6644_v61  ;;  %v3981_v13 = vshll.u32 %v3630_v53, 16  ;;  %v3985_v50 = vshrl.u32 %v3630_v53, 16  ;;  %v3009_v28 = vor.u32 %v3008_v16, %v3005_v25  ;;  %v3199_v25 = vld [vmem:[#allocation2 + $0xc0] sm:$0xe] }
 0x2f5   : > { %5727 = vmatmul.mubr.bf16.gmra.mrb[148].mxu0 %v7677_v30  ;;  %v3018_v19 = vrot.slane %v3016_v32, 4  ;;  %v3024_v47 = vrot.slane %v3022_v21, 5  ;;  %v3974_v59 = vrot.slane %v3972_v8, 4  ;;  %v3977_v55 = vrot.slane %v3975_v37, 5  ;;  %v2686_v30 = vld [vmem:[#allocation2 + $0xbc] sm:$0x1] }
 0x2f6   : > { %v7111_v48 = vpop.f32.mrb[44].mxu0  ;;  %v6999_v35 = vpop.f32.mrb[12].mxu1  ;;  %v3983_v15 = vrot.slane %v3981_v13, 5  ;;  %v3987_v27 = vrot.slane %v3985_v50, 4  ;;  %v3991_v0 = vshll.u32 %v3631_v62, 16  ;;  %v3010_v44 = vrot.slane %v3009_v28, 4 }
 0x2f7   : > { %v7112_v2 = vpop.f32.mrb[45].mxu0  ;;  %v7000_v41 = vpop.f32.mrb[13].mxu1  ;;  %v3019_v9 = vor.u32 %v3018_v19, %v3014_v40  ;;  %v6597_v22 = vrot.slane %v3196_v33, 9  ;;  %v3350_v29 = vrot.slane %v3197_v14, 5  ;;  %v3978_v36 = vor.u32 %v3977_v55, %v3974_v59  ;;  %v3200_v32 = vld [vmem:[#allocation2 + $0xc4] sm:$0xf] }
 0x2f8   : > { %v7114_v18 = vpop.f32.mrb[46].mxu0  ;;  %v7002_v10 = vpop.f32.mrb[14].mxu1  ;;  %v3988_v51 = vor.u32 %v3987_v27, %v3983_v15  ;;  %v3993_v52 = vrot.slane %v3991_v0, 5  ;;  %v3353_v12 = vrot.slane %v3198_v20, 5  ;;  %v3015_v43 = vsel %vm8169_vm8, %v3010_v44, %v3014_v40  ;;  %v3201_v21 = vld [vmem:[#allocation2 + $0xc8] sm:$0x1] }
 0x2f9   : > { %v7115_v39 = vpop.f32.mrb[47].mxu0  ;;  %v7003_v3 = vpop.f32.mrb[15].mxu1  ;;  %v3020_v26 = vrot.slane %v3019_v9, 4  ;;  %v3351_v5 = vsel %vm8194_vm11, %v6597_v22, %v3350_v29  ;;  %v3352_v58 = vrot.slane %v3350_v29, 4  ;;  %v3979_v4 = vrot.slane %v3978_v36, 4  ;;  %v7679_v13 = vld [vmem:[#allocation2 + $0xc0] sm:$0xff]  }
 0x2fa   : > { %v3989_v49 = vrot.slane %v3988_v51, 4  ;;  %v7113_v60 = vadd.f32 %v7112_v2, %v7111_v48  ;;  %v7001_v17 = vadd.f32 %v7000_v41, %v6999_v35  ;;  %v7116_v62 = vadd.f32 %v7115_v39, %v7114_v18  ;;  %v956_v59 = vld [vmem:[#allocation2 + $0xcc] sm:$0x1]  ;;  %v1012_v27 = vld [vmem:[#allocation2 + $0xd4] sm:$0x1] }
 0x2fb   : > { %v3025_v54 = vsel %vm8169_vm8, %v3020_v26, %v3024_v47  ;;  %v3354_v53 = vsel %vm8194_vm11, %v3352_v58, %v3353_v12  ;;  %v7004_v61 = vadd.f32 %v7003_v3, %v7002_v10  ;;  %v3984_v16 = vsel %vm8169_vm8, %v3979_v4, %v3983_v15  ;;  %v3633_v12 = vld [vmem:[#allocation2 + $0xd0] sm:$0xf]  ;;  %v2687_v4 = vld [vmem:[#allocation2 + $0xc0] sm:$0xf] }
 0x2fc   : > { %v6580_v14 = vcombine.low %v3015_v43, %v3025_v54  ;;  %v3994_v48 = vsel %vm8169_vm8, %v3989_v49, %v3993_v52  ;;  %v6613_v2 = vcombine.low %v3351_v5, %v3354_v53  ;;  %v9643_v40 = vadd.f32 %v7113_v60, %v7001_v17  ;;  %v2688_v49 = vld [vmem:[#allocation2 + $0xc4] sm:$0xf]  ;;  %v2689_v53 = vld [vmem:[#allocation2 + $0xc8] sm:$0x1] }
 0x2fd   : > { %v6645_v35 = vcombine.low %v3984_v16, %v3994_v48  ;;  %v9645_v18 = vadd.f32 %v7116_v62, %v7004_v61  ;;  %v3027_v39 = vshrl.u32 %v2684_v24, 16  ;;  %v3030_v50 = vshll.u32 %v2684_v24, 16 }
 0x2fe   : > { %v7117_v57 = vpop.f32.mrb[48].mxu0  ;;  %v7005_v38 = vpop.f32.mrb[16].mxu1  ;;  %5566 = vmatmul.mubr.bf16.gmra.mrb[116].mxu1 %v6580_v14  ;;  %v3036_v41 = vshll.u32 %v2685_v46, 16  ;;  %v3040_v28 = vshrl.u32 %v2685_v46, 16  ;;  %v3046_v19 = vshll.u32 %v2686_v30, 16  ;;  %v6598_v10 = vrot.slane %v3199_v25, 9 }
 0x2ff   : > { %v7118_v6 = vpop.f32.mrb[49].mxu0  ;;  %v7006_v8 = vpop.f32.mrb[17].mxu1  ;;  %5734 = vmatprep.mubr.bf16.mxu0 %v6645_v35  ;;  %5573 = vmatprep.mubr.bf16.mxu1 %v6613_v2  ;;  %v3029_v20 = vrot.slane %v3027_v39, 4  ;;  %v3357_v55 = vrot.slane %v3200_v32, 5  ;;  %v3360_v15 = vrot.slane %v3201_v21, 5  ;;  %v3032_v0 = vrot.slane %v3030_v50, 5 }
 0x300   : > { %v7120_v56 = vpop.f32.mrb[50].mxu0  ;;  %v7008_v37 = vpop.f32.mrb[18].mxu1  ;;  %5735 = vmatmul.mubr.bf16.gmra.mrb[152].mxu0 %v7679_v13  ;;  %v3038_v3 = vrot.slane %v3036_v41, 5  ;;  %v3042_v44 = vrot.slane %v3040_v28, 4  ;;  %v3048_v9 = vrot.slane %v3046_v19, 5  ;;  %v7119_v51 = vadd.f32 %v7118_v6, %v7117_v57 }
 0x301   : > { %v7121_v33 = vpop.f32.mrb[51].mxu0  ;;  %v7009_v47 = vpop.f32.mrb[19].mxu1  ;;  %v3358_v29 = vsel %vm8194_vm11, %v6598_v10, %v3357_v55  ;;  %v3359_v36 = vrot.slane %v3357_v55, 4  ;;  %v7007_v52 = vadd.f32 %v7006_v8, %v7005_v38  ;;  %v3033_v26 = vor.u32 %v3032_v0, %v3029_v20 }
 0x302   : > { %v3043_v5 = vor.u32 %v3042_v44, %v3038_v3  ;;  %v7122_v58 = vadd.f32 %v7121_v33, %v7120_v56  ;;  %v7010_v24 = vadd.f32 %v7009_v47, %v7008_v37  ;;  %v957_v54 = vsel %vm7788_vm4, 0, %v956_v59  ;;  %v9665_v33 = vld [vmem:[#allocation2 + $0x1c] sm:$0xf]  ;;  %v4101_v37 = vld [vmem:[#allocation2 + $0x20] sm:$0x1] }
 0x303   : > { %v3361_v17 = vsel %vm8194_vm11, %v3359_v36, %v3360_v15  ;;  %v9655_v46 = vadd.f32 %v7119_v51, %v7007_v52  ;;  %v1013_v6 = vsel %vm7795_vm5, 0, %v1012_v27  ;;  %v3034_v56 = vrot.slane %v3033_v26, 4  ;;  %958 = vst [vmem:[#allocation2 + $0xcc] sm:$0x1] %v957_v54  ;;  %v4105_v47 = vld [vmem:[#allocation2 + $0x30] sm:$0xe] }
 0x304   : > { %v3044_v30 = vrot.slane %v3043_v5, 4  ;;  %v6614_v25 = vcombine.low %v3358_v29, %v3361_v17  ;;  %v9663_v38 = vadd.f32 %v7122_v58, %v7010_v24  ;;  %1014 = vst [vmem:[#allocation2 + $0xd4] sm:$0x1] %v1013_v6  ;;  %v4005_v16 = vshll.u32 %v3633_v12, 16  ;;  %v4099_v29 = vld [vmem:[#allocation2 + $0x18] sm:$0xe] }
 0x305   : > { %v4009_v1 = vshrl.u32 %v3633_v12, 16  ;;  %v3051_v48 = vshrl.u32 %v2687_v4, 16  ;;  %v3054_v2 = vshll.u32 %v2687_v4, 16  ;;  %v3039_v21 = vsel %vm8169_vm8, %v3034_v56, %v3038_v3  ;;  %v4106_v51 = vld [vmem:[#allocation2 + $0x34] sm:$0xf] }
 0x306   : > { %v9647_v22 = vpop.f32.mrb[52].mxu0  ;;  %v7011_v62 = vpop.f32.mrb[20].mxu1  ;;  %v3049_v8 = vsel %vm8169_vm8, %v3044_v30, %v3048_v9  ;;  %v3060_v35 = vshll.u32 %v2688_v49, 16  ;;  %v3064_v39 = vshrl.u32 %v2688_v49, 16  ;;  %v9673_v41 = vrot.slane %v4005_v16, 5 }
 0x307   : > { %v7124_v43 = vpop.f32.mrb[53].mxu0  ;;  %v7012_v14 = vpop.f32.mrb[21].mxu1  ;;  %v6581_v50 = vcombine.low %v3039_v21, %v3049_v8  ;;  %v4011_v28 = vrot.slane %v4009_v1, 4  ;;  %v3053_v19 = vrot.slane %v3051_v48, 4  ;;  %v3056_v59 = vrot.slane %v3054_v2, 5 }
 0x308   : > { %v9651_v60 = vpop.f32.mrb[54].mxu0  ;;  %v9667_v32 = vpop.f32.mrb[22].mxu1  ;;  %v3062_v20 = vrot.slane %v3060_v35, 5  ;;  %v3066_v10 = vrot.slane %v3064_v39, 4  ;;  %v3070_v55 = vshll.u32 %v2689_v53, 16  ;;  %v4197_v0 = vrot.slane %v9665_v33, 5 }
 0x309   : > { %v9661_v61 = vpop.f32.mrb[55].mxu0  ;;  %v7015_v13 = vpop.f32.mrb[23].mxu1  ;;  %5574 = vmatmul.mubr.bf16.gmra.mrb[120].mxu1 %v6581_v50  ;;  %v4012_v27 = vor.u32 %v4011_v28, %v9673_v41  ;;  %v3057_v44 = vor.u32 %v3056_v59, %v3053_v19  ;;  %v4200_v36 = vrot.slane %v4101_v37, 5  ;;  %v4107_v52 = vld [vmem:[#allocation2 + $0x38] sm:$0x1]  ;;  %v6649_v24 = vrot.slane %v4105_v47, 9 }
 0x30a   : > { %5581 = vmatprep.mubr.bf16.mxu1 %v6614_v25  ;;  %v3067_v9 = vor.u32 %v3066_v10, %v3062_v20  ;;  %v3632_v26 = vld [vmem:[#allocation2 + $0xcc] sm:$0xf]  ;;  %v3072_v58 = vrot.slane %v3070_v55, 5  ;;  %v7125_v4 = vadd.f32 %v7124_v43, %v9647_v22  ;;  %v7013_v49 = vadd.f32 %v7012_v14, %v7011_v62  ;;  %v9692_v35 = vld [vmem:[#allocation2 + $0x28] sm:$0xf] }
 0x30b   : > { %v3634_v5 = vld [vmem:[#allocation2 + $0xd4] sm:$0x1]  ;;  %v3996_v17 = vshrl.u32 %v3632_v26, 16  ;;  %v3999_v54 = vshll.u32 %v3632_v26, 16  ;;  %v3058_v6 = vrot.slane %v3057_v44, 4  ;;  %v4013_v53 = vrot.slane %v4012_v27, 4 }
 0x30c   : > { %v4015_v57 = vshll.u32 %v3634_v5, 16  ;;  %v3068_v56 = vrot.slane %v3067_v9, 4  ;;  %v4199_v30 = vrot.slane %v4197_v0, 4  ;;  %v4211_v25 = vrot.slane %v4106_v51, 5  ;;  %v4108_v47 = vld [vmem:[#allocation2 + $0x3c] sm:$0xe] }
 0x30d   : > { %v3998_v1 = vrot.slane %v3996_v17, 4  ;;  %v4001_v48 = vrot.slane %v3999_v54, 5  ;;  %v3063_v21 = vsel %vm8169_vm8, %v3058_v6, %v3062_v20  ;;  %v6647_v62 = vrot.slane %v4099_v29, 9  ;;  %v4109_v59 = vld [vmem:[#allocation2 + $0x40] sm:$0xf] }
 0x30e   : > { %v9675_v15 = vpop.f32.mrb[56].mxu0  ;;  %v9684_v33 = vpop.f32.mrb[24].mxu1  ;;  %v4017_v2 = vrot.slane %v4015_v57, 5  ;;  %v3073_v43 = vsel %vm8169_vm8, %v3068_v56, %v3072_v58  ;;  %v4213_v14 = vrot.slane %v4211_v25, 4  ;;  %v4214_v8 = vrot.slane %v4107_v52, 5 }
 0x30f   : > { %v9679_v3 = vpop.f32.mrb[57].mxu0  ;;  %v7018_v22 = vpop.f32.mrb[25].mxu1  ;;  %v4002_v37 = vor.u32 %v4001_v48, %v3998_v1  ;;  %v6582_v50 = vcombine.low %v3063_v21, %v3073_v43  ;;  %v4201_v28 = vsel %vm8194_vm11, %v4199_v30, %v4200_v36  ;;  %v4212_v19 = vsel %vm8194_vm11, %v6649_v24, %v4211_v25  ;;  %v9707_v29 = vld [vmem:[#allocation2 + $0x24] sm:$0xe]  ;;  %v4104_v36 = vld [vmem:[#allocation2 + $0x2c] sm:$0x1] }
 0x310   : > { %v9681_v12 = vpop.f32.mrb[58].mxu0  ;;  %v7020_v39 = vpop.f32.mrb[26].mxu1  ;;  %v4215_v55 = vsel %vm8194_vm11, %v4213_v14, %v4214_v8  ;;  %v9702_v27 = vadd.f32 %v7125_v4, %v7013_v49  ;;  %v7128_v44 = vadd.f32 %v9661_v61, %v9651_v60  ;;  %v7016_v9 = vadd.f32 %v7015_v13, %v9667_v32  ;;  %v4110_v51 = vld [vmem:[#allocation2 + $0x44] sm:$0x1]  ;;  %v4111_v4 = vld [vmem:[#allocation2 + $0x48] sm:$0xe] }
 0x311   : > { %v9686_v16 = vpop.f32.mrb[59].mxu0  ;;  %v7021_v20 = vpop.f32.mrb[27].mxu1  ;;  %v4003_v26 = vrot.slane %v4002_v37, 4  ;;  %v4018_v5 = vsel %vm8169_vm8, %v4013_v53, %v4017_v2  ;;  %5582 = vmatmul.mubr.bf16.gmra.mrb[124].mxu1 %v6582_v50  ;;  %v6665_v58 = vcombine.low %v4212_v19, %v4215_v55  ;;  %v4204_v24 = vrot.slane %v9692_v35, 5  ;;  %v4112_v17 = vld [vmem:[#allocation2 + $0x4c] sm:$0xf] }
 0x312   : > { %v4198_v60 = vsel %vm8194_vm11, %v6647_v62, %v4197_v0  ;;  %v9718_v61 = vadd.f32 %v7128_v44, %v7016_v9  ;;  %v6650_v32 = vrot.slane %v4108_v47, 9  ;;  %v4218_v13 = vrot.slane %v4109_v59, 5  ;;  %v7680_v53 = vld [vmem:[#allocation2 + $0xcc] sm:$0xff]   ;;  %v4114_v59 = vld [vmem:[#allocation2 + $0x54] sm:$0xe] }
 0x313   : > { %v4008_v6 = vsel %vm8169_vm8, %v4003_v26, %v9673_v41  ;;  %v6663_v56 = vcombine.low %v4198_v60, %v4201_v28  ;;  %7491 = vmatprep.mubr.bf16.mxu1 %v6665_v58  ;;  %v4206_v30 = vrot.slane %v4204_v24, 4  ;;  %v4221_v48 = vrot.slane %v4110_v51, 5  ;;  %v4113_v2 = vld [vmem:[#allocation2 + $0x50] sm:$0x1]  ;;  %v4115_v41 = vld [vmem:[#allocation2 + $0x58] sm:$0xf] }
 0x314   : > { %v6646_v0 = vcombine.low %v4008_v6, %v4018_v5  ;;  %v4220_v1 = vrot.slane %v4218_v13, 4  ;;  %v6651_v21 = vrot.slane %v4111_v4, 9  ;;  %v6648_v62 = vrot.slane %v9707_v29, 9  ;;  %v4116_v55 = vld [vmem:[#allocation2 + $0x5c] sm:$0x1] }
 0x315   : > { %v4207_v14 = vrot.slane %v4104_v36, 5  ;;  %v4225_v8 = vrot.slane %v4112_v17, 5  ;;  %v7131_v42 = vadd.f32 %v9679_v3, %v9675_v15  ;;  %v4219_v50 = vsel %vm8194_vm11, %v6650_v32, %v4218_v13  ;;  %v4118_v44 = vld [vmem:[#allocation2 + $0x64] sm:$0xf]  ;;  %v4117_v36 = vld [vmem:[#allocation2 + $0x60] sm:$0xe] }
 0x316   : > { %v9698_v10 = vpop.f32.mrb[60].mxu0  ;;  %v7023_v54 = vpop.f32.mrb[28].mxu1  ;;  %5742 = vmatprep.mubr.bf16.mxu0 %v6646_v0  ;;  %v4222_v28 = vsel %vm8194_vm11, %v4220_v1, %v4221_v48  ;;  %v7019_v19 = vadd.f32 %v7018_v22, %v9684_v33  ;;  %v7134_v47 = vadd.f32 %v9686_v16, %v9681_v12  ;;  %v4228_v3 = vrot.slane %v4113_v2, 5  ;;  %v4119_v16 = vld [vmem:[#allocation2 + $0x68] sm:$0x1] }
 0x317   : > { %v9709_v52 = vpop.f32.mrb[61].mxu0  ;;  %v7024_v25 = vpop.f32.mrb[29].mxu1  ;;  %5743 = vmatmul.mubr.bf16.gmra.mrb[156].mxu0 %v7680_v53  ;;  %v6666_v9 = vcombine.low %v4219_v50, %v4222_v28  ;;  %v4227_v15 = vrot.slane %v4225_v8, 4  ;;  %v7022_v29 = vadd.f32 %v7021_v20, %v7020_v39  ;;  %v4208_v26 = vsel %vm8194_vm11, %v4206_v30, %v4207_v14  ;;  %v9747_v60 = vld [vmem:[#allocation2 + $0x70] sm:$0xf] }
 0x318   : > { %v9714_v49 = vpop.f32.mrb[62].mxu0  ;;  %v7026_v43 = vpop.f32.mrb[30].mxu1  ;;  %7487 = vmatprep.mubr.bf16.mxu0 %v6663_v56  ;;  %v4226_v33 = vsel %vm8194_vm11, %v6651_v21, %v4225_v8  ;;  %v9741_v22 = vadd.f32 %v7131_v42, %v7019_v19  ;;  %v4232_v12 = vrot.slane %v4115_v41, 5  ;;  %v6652_v39 = vrot.slane %v4114_v59, 9  ;;  %v4124_v50 = vld [vmem:[#allocation2 + $0x7c] sm:$0xf] }
 0x319   : > { %v9720_v57 = vpop.f32.mrb[63].mxu0  ;;  %v7027_v37 = vpop.f32.mrb[31].mxu1  ;;  %7492 = vmatmul.mubr.bf16.vlgmr.msra.gmra.mrb[128].mxu1 %v6666_v9  ;;  %v4229_v58 = vsel %vm8194_vm11, %v4227_v15, %v4228_v3  ;;  %v9745_v4 = vadd.f32 %v7134_v47, %v7022_v29  ;;  %v4239_v20 = vrot.slane %v4118_v44, 5  ;;  %v4235_v6 = vrot.slane %v4116_v55, 5  ;;  %v4123_v44 = vld [vmem:[#allocation2 + $0x78] sm:$0xe] }
 0x31a   : > { %v6667_v13 = vcombine.low %v4226_v33, %v4229_v58  ;;  %v4234_v17 = vrot.slane %v4232_v12, 4  ;;  %v6653_v53 = vrot.slane %v4117_v36, 9  ;;  %v4242_v1 = vrot.slane %v4119_v16, 5  ;;  %v4125_v9 = vld [vmem:[#allocation2 + $0x80] sm:$0x1] }
 0x31b   : > { %v4241_v0 = vrot.slane %v4239_v20, 4  ;;  %v7137_v48 = vadd.f32 %v9709_v52, %v9698_v10  ;;  %v7025_v2 = vadd.f32 %v7024_v25, %v7023_v54  ;;  %v4205_v14 = vsel %vm8194_vm11, %v6648_v62, %v4204_v24 }
 0x31c   : > { %7495 = vmatprep.mubr.bf16.mxu1 %v6667_v13  ;;  %v4236_v8 = vsel %vm8194_vm11, %v4234_v17, %v4235_v6  ;;  %v7140_v42 = vadd.f32 %v9720_v57, %v9714_v49  ;;  %v7028_v41 = vadd.f32 %v7027_v37, %v7026_v43  ;;  %v6664_v19 = vcombine.low %v4205_v14, %v4208_v26  ;;  %v4120_v49 = vld [vmem:[#allocation2 + $0x6c] sm:$0xe]  ;;  %v4122_v37 = vld [vmem:[#allocation2 + $0x74] sm:$0x1] }
 0x31d   : > { %v4243_v10 = vsel %vm8194_vm11, %v4241_v0, %v4242_v1  ;;  %v9761_v52 = vadd.f32 %v7137_v48, %v7025_v2  ;;  %v4246_v35 = vrot.slane %v9747_v60, 5  ;;  %v4233_v24 = vsel %vm8194_vm11, %v6652_v39, %v4232_v12  ;;  %v4127_v12 = vld [vmem:[#allocation2 + $0x88] sm:$0xf]  ;;  %v4130_v13 = vld [vmem:[#allocation2 + $0x94] sm:$0xf] }
 0x31e   : > { %v7141_v51 = vpop.f32.mrb[64].mxu0  ;;  %v7029_v56 = vpop.f32.mrb[32].mxu1  ;;  %v4240_v25 = vsel %vm8194_vm11, %v6653_v53, %v4239_v20  ;;  %v9768_v62 = vadd.f32 %v7140_v42, %v7028_v41  ;;  %v6668_v57 = vcombine.low %v4233_v24, %v4236_v8  ;;  %v4253_v59 = vrot.slane %v4124_v50, 5 }
 0x31f   : > { %v7142_v5 = vpop.f32.mrb[65].mxu0  ;;  %v7030_v21 = vpop.f32.mrb[33].mxu1  ;;  %7488 = vmatmul.mubr.bf16.vlgmr.msra.gmra.mrb[160].mxu0 %v6664_v19  ;;  %v6669_v43 = vcombine.low %v4240_v25, %v4243_v10  ;;  %v4248_v47 = vrot.slane %v4246_v35, 4  ;;  %v6654_v58 = vrot.slane %v4120_v49, 9  ;;  %v4249_v39 = vrot.slane %v4122_v37, 5 }
 0x320   : > { %v7144_v32 = vpop.f32.mrb[66].mxu0  ;;  %v7032_v28 = vpop.f32.mrb[34].mxu1  ;;  %v7143_v15 = vadd.f32 %v7142_v5, %v7141_v51  ;;  %v7031_v3 = vadd.f32 %v7030_v21, %v7029_v56  ;;  %v4255_v33 = vrot.slane %v4253_v59, 4  ;;  %v6655_v53 = vrot.slane %v4123_v44, 9  ;;  %v4128_v19 = vld [vmem:[#allocation2 + $0x8c] sm:$0x1] }
 0x321   : > { %v7145_v30 = vpop.f32.mrb[67].mxu0  ;;  %v7033_v54 = vpop.f32.mrb[35].mxu1  ;;  %7496 = vmatmul.mubr.bf16.gmra.mrb[132].mxu1 %v6668_v57  ;;  %v4256_v51 = vrot.slane %v4125_v9, 5  ;;  %v4260_v56 = vrot.slane %v4127_v12, 5  ;;  %v4267_v1 = vrot.slane %v4130_v13, 5  ;;  %v4247_v14 = vsel %vm8194_vm11, %v6654_v58, %v4246_v35 }
 0x322   : > { %v7146_v29 = vadd.f32 %v7145_v30, %v7144_v32  ;;  %v7034_v36 = vadd.f32 %v7033_v54, %v7032_v28  ;;  %7499 = vmatprep.mubr.bf16.mxu1 %v6669_v43  ;;  %v9770_v20 = vadd.f32 %v7143_v15, %v7031_v3  ;;  %v4250_v32 = vsel %vm8194_vm11, %v4248_v47, %v4249_v39  ;;  %v4126_v28 = vld [vmem:[#allocation2 + $0x84] sm:$0xe]  ;;  %v4129_v49 = vld [vmem:[#allocation2 + $0x90] sm:$0xe]  ;;  %v4131_v57 = vld [vmem:[#allocation2 + $0x98] sm:$0x1] }
 0x323   : > { %v4257_v0 = vsel %vm8194_vm11, %v4255_v33, %v4256_v51  ;;  %v6670_v41 = vcombine.low %v4247_v14, %v4250_v32  ;;  %v4254_v50 = vsel %vm8194_vm11, %v6655_v53, %v4253_v59  ;;  %v4262_v25 = vrot.slane %v4260_v56, 4  ;;  %v4133_v47 = vld [vmem:[#allocation2 + $0xa0] sm:$0xf]  ;;  %v4136_v59 = vld [vmem:[#allocation2 + $0xac] sm:$0xf] }
 0x324   : > { %v9772_v60 = vadd.f32 %v7146_v29, %v7034_v36  ;;  %v6671_v24 = vcombine.low %v4254_v50, %v4257_v0  ;;  %v4269_v35 = vrot.slane %v4267_v1, 4  ;;  %v6656_v44 = vrot.slane %v4126_v28, 9 }
 0x325   : > { %v4263_v9 = vrot.slane %v4128_v19, 5  ;;  %v6657_v36 = vrot.slane %v4129_v49, 9  ;;  %v4274_v58 = vrot.slane %v4133_v47, 5 }
 0x326   : > { %v7147_v55 = vpop.f32.mrb[68].mxu0  ;;  %v7035_v17 = vpop.f32.mrb[36].mxu1  ;;  %v4261_v51 = vsel %vm8194_vm11, %v6656_v44, %v4260_v56  ;;  %v4139_v56 = vld [vmem:[#allocation2 + $0xb8] sm:$0xf] }
 0x327   : > { %v7148_v26 = vpop.f32.mrb[69].mxu0  ;;  %v7036_v5 = vpop.f32.mrb[37].mxu1  ;;  %v4268_v0 = vsel %vm8194_vm11, %v6657_v36, %v4267_v1 }
 0x328   : > { %v7150_v16 = vpop.f32.mrb[70].mxu0  ;;  %v7038_v30 = vpop.f32.mrb[38].mxu1  ;;  %v7149_v48 = vadd.f32 %v7148_v26, %v7147_v55  ;;  %v7037_v2 = vadd.f32 %v7036_v5, %v7035_v17  ;;  %v4270_v26 = vrot.slane %v4131_v57, 5  ;;  %v4142_v57 = vld [vmem:[#allocation2 + $0xc4] sm:$0xf] }
 0x329   : > { %v7151_v6 = vpop.f32.mrb[71].mxu0  ;;  %v7039_v21 = vpop.f32.mrb[39].mxu1  ;;  %7500 = vmatmul.mubr.bf16.gmra.mrb[136].mxu1 %v6670_v41  ;;  %v4137_v41 = vld [vmem:[#allocation2 + $0xb0] sm:$0x1]  ;;  %v4295_v36 = vrot.slane %v4142_v57, 5 }
 0x32a   : > { %v7152_v8 = vadd.f32 %v7151_v6, %v7150_v16  ;;  %v7040_v42 = vadd.f32 %v7039_v21, %v7038_v30  ;;  %v9782_v10 = vadd.f32 %v7149_v48, %v7037_v2  ;;  %7503 = vmatprep.mubr.bf16.mxu1 %v6671_v24  ;;  %v4264_v16 = vsel %vm8194_vm11, %v4262_v25, %v4263_v9  ;;  %v4132_v48 = vld [vmem:[#allocation2 + $0x9c] sm:$0xe]  ;;  %v4134_v2 = vld [vmem:[#allocation2 + $0xa4] sm:$0x1] }
 0x32b   : > { %v4271_v17 = vsel %vm8194_vm11, %v4269_v35, %v4270_v26  ;;  %v4281_v6 = vrot.slane %v4136_v59, 5  ;;  %v6672_v30 = vcombine.low %v4261_v51, %v4264_v16  ;;  %v6658_v25 = vrot.slane %v4132_v48, 9  ;;  %v4145_v51 = vld [vmem:[#allocation2 + $0xd0] sm:$0xf]  ;;  %v4141_v48 = vld [vmem:[#allocation2 + $0xc0] sm:$0xe] }
 0x32c   : > { %v9784_v43 = vadd.f32 %v7152_v8, %v7040_v42  ;;  %v6673_v14 = vcombine.low %v4268_v0, %v4271_v17  ;;  %v4276_v8 = vrot.slane %v4274_v58, 4  ;;  %v4135_v42 = vld [vmem:[#allocation2 + $0xa8] sm:$0xe]  ;;  %v4277_v49 = vrot.slane %v4134_v2, 5  ;;  %v4143_v2 = vld [vmem:[#allocation2 + $0xc8] sm:$0x1] }
 0x32d   : > { %v4283_v19 = vrot.slane %v4281_v6, 4  ;;  %v6659_v35 = vrot.slane %v4135_v42, 9  ;;  %v4284_v47 = vrot.slane %v4137_v41, 5  ;;  %v4288_v59 = vrot.slane %v4139_v56, 5 }
 0x32e   : > { %v7153_v54 = vpop.f32.mrb[72].mxu0  ;;  %v7041_v15 = vpop.f32.mrb[40].mxu1  ;;  %v4278_v9 = vsel %vm8194_vm11, %v4276_v8, %v4277_v49  ;;  %v4297_v8 = vrot.slane %v4295_v36, 4  ;;  %v4302_v56 = vrot.slane %v4145_v51, 5  ;;  %v4146_v49 = vld [vmem:[#allocation2 + $0xd4] sm:$0x1] }
 0x32f   : > { %v7154_v37 = vpop.f32.mrb[73].mxu0  ;;  %v7042_v33 = vpop.f32.mrb[41].mxu1  ;;  %v4282_v17 = vsel %vm8194_vm11, %v6659_v35, %v4281_v6  ;;  %v4290_v0 = vrot.slane %v4288_v59, 4 }
 0x330   : > { %v7156_v55 = vpop.f32.mrb[74].mxu0  ;;  %v7155_v3 = vadd.f32 %v7154_v37, %v7153_v54  ;;  %v7043_v39 = vadd.f32 %v7042_v33, %v7041_v15  ;;  %v7044_v13 = vpop.f32.mrb[42].mxu1  ;;  %v4275_v33 = vsel %vm8194_vm11, %v6658_v25, %v4274_v58  ;;  %v4298_v25 = vrot.slane %v4143_v2, 5 }
 0x331   : > { %v7157_v29 = vpop.f32.mrb[75].mxu0  ;;  %v7045_v53 = vpop.f32.mrb[43].mxu1  ;;  %7504 = vmatmul.mubr.bf16.gmra.mrb[140].mxu1 %v6672_v30 }
 0x332   : > { %v7158_v12 = vadd.f32 %v7157_v29, %v7156_v55  ;;  %v9792_v5 = vadd.f32 %v7155_v3, %v7043_v39  ;;  %v7046_v32 = vadd.f32 %v7045_v53, %v7044_v13  ;;  %7507 = vmatprep.mubr.bf16.mxu1 %v6673_v14  ;;  %v4285_v29 = vsel %vm8194_vm11, %v4283_v19, %v4284_v47  ;;  %v4140_v53 = vld [vmem:[#allocation2 + $0xbc] sm:$0x1]  ;;  %v4144_v19 = vld [vmem:[#allocation2 + $0xcc] sm:$0xe] }
 0x333   : > { %v6674_v13 = vcombine.low %v4275_v33, %v4278_v9  ;;  %v6675_v30 = vcombine.low %v4282_v17, %v4285_v29  ;;  %v6662_v9 = vrot.slane %v4144_v19, 9  ;;  %v4305_v29 = vrot.slane %v4146_v49, 5 }
 0x334   : > { %v9796_v50 = vadd.f32 %v7158_v12, %v7046_v32  ;;  %v4138_v12 = vld [vmem:[#allocation2 + $0xb4] sm:$0xe] }
 0x335   : > { %v6660_v58 = vrot.slane %v4138_v12, 9 }
 0x336   : > { %v7159_v21 = vpop.f32.mrb[76].mxu0  ;;  %v7047_v1 = vpop.f32.mrb[44].mxu1 }
 0x337   : > { %v7160_v28 = vpop.f32.mrb[77].mxu0  ;;  %v7048_v55 = vpop.f32.mrb[45].mxu1 }
 0x338   : > { %v7161_v54 = vadd.f32 %v7160_v28, %v7159_v21  ;;  %v7162_v24 = vpop.f32.mrb[78].mxu0  ;;  %v7049_v15 = vadd.f32 %v7048_v55, %v7047_v1  ;;  %v7050_v3 = vpop.f32.mrb[46].mxu1  ;;  %v4291_v28 = vrot.slane %v4140_v53, 5  ;;  %v4289_v55 = vsel %vm8194_vm11, %v6660_v58, %v4288_v59 }
 0x339   : > { %v7163_v37 = vpop.f32.mrb[79].mxu0  ;;  %v7051_v26 = vpop.f32.mrb[47].mxu1  ;;  %7508 = vmatmul.mubr.bf16.gmra.mrb[144].mxu1 %v6674_v13 }
 0x33a   : > { %v7164_v44 = vadd.f32 %v7163_v37, %v7162_v24  ;;  %v9804_v16 = vadd.f32 %v7161_v54, %v7049_v15  ;;  %v7052_v39 = vadd.f32 %v7051_v26, %v7050_v3  ;;  %7511 = vmatprep.mubr.bf16.mxu1 %v6675_v30  ;;  %v6661_v24 = vrot.slane %v4141_v48, 9 }
 0x33b   : > { %v4292_v37 = vsel %vm8194_vm11, %v4290_v0, %v4291_v28  ;;  %v4304_v3 = vrot.slane %v4302_v56, 4  ;;  %v4303_v30 = vsel %vm8194_vm11, %v6662_v9, %v4302_v56 }
 0x33c   : > { %v9808_v21 = vadd.f32 %v7164_v44, %v7052_v39  ;;  %v4299_v44 = vsel %vm8194_vm11, %v4297_v8, %v4298_v25  ;;  %v6676_v12 = vcombine.low %v4289_v55, %v4292_v37  ;;  %v4296_v39 = vsel %vm8194_vm11, %v6661_v24, %v4295_v36 }
 0x33d   : > { %v6677_v17 = vcombine.low %v4296_v39, %v4299_v44  ;;  %v4306_v0 = vsel %vm8194_vm11, %v4304_v3, %v4305_v29 }
 0x33e   : > { %v7165_v32 = vpop.f32.mrb[80].mxu0  ;;  %v7053_v6 = vpop.f32.mrb[48].mxu1 }
 0x33f   : > { %v7166_v14 = vpop.f32.mrb[81].mxu0  ;;  %v7054_v57 = vpop.f32.mrb[49].mxu1 }
 0x340   : > { %v7167_v42 = vadd.f32 %v7166_v14, %v7165_v32  ;;  %v7168_v41 = vpop.f32.mrb[82].mxu0  ;;  %v7055_v35 = vadd.f32 %v7054_v57, %v7053_v6  ;;  %v7056_v47 = vpop.f32.mrb[50].mxu1 }
 0x341   : > { %v7169_v54 = vpop.f32.mrb[83].mxu0  ;;  %v7057_v15 = vpop.f32.mrb[51].mxu1  ;;  %7512 = vmatmul.mubr.bf16.gmra.mrb[148].mxu1 %v6676_v12 }
 0x342   : > { %v7170_v1 = vadd.f32 %v7169_v54, %v7168_v41  ;;  %v9816_v26 = vadd.f32 %v7167_v42, %v7055_v35  ;;  %v7058_v33 = vadd.f32 %v7057_v15, %v7056_v47  ;;  %7515 = vmatprep.mubr.bf16.mxu1 %v6677_v17  ;;  %v6678_v42 = vcombine.low %v4303_v30, %v4306_v0 }
 0x344   : > { %v9820_v53 = vadd.f32 %v7170_v1, %v7058_v33 }
 0x346   : > { %v7171_v13 = vpop.f32.mrb[84].mxu0  ;;  %v7059_v48 = vpop.f32.mrb[52].mxu1 }
 0x347   : > { %v7172_v51 = vpop.f32.mrb[85].mxu0  ;;  %v7060_v14 = vpop.f32.mrb[53].mxu1 }
 0x348   : > { %v7173_v59 = vadd.f32 %v7172_v51, %v7171_v13  ;;  %v7174_v32 = vpop.f32.mrb[86].mxu0  ;;  %v7061_v36 = vadd.f32 %v7060_v14, %v7059_v48  ;;  %v7062_v8 = vpop.f32.mrb[54].mxu1 }
 0x349   : > { %v7175_v2 = vpop.f32.mrb[87].mxu0  ;;  %v7063_v41 = vpop.f32.mrb[55].mxu1  ;;  %7516 = vmatmul.mubr.bf16.gmra.mrb[152].mxu1 %v6678_v42 }
 0x34a   : > { %v7176_v58 = vadd.f32 %v7175_v2, %v7174_v32  ;;  %v9826_v28 = vadd.f32 %v7173_v59, %v7061_v36  ;;  %v7064_v19 = vadd.f32 %v7063_v41, %v7062_v8 }
 0x34c   : > { %v9828_v54 = vadd.f32 %v7176_v58, %v7064_v19 }
 0x34e   : > { %v7177_v6 = vpop.f32.mrb[88].mxu0  ;;  %v7065_v34 = vpop.f32.mrb[56].mxu1 }
 0x34f   : > { %v7178_v24 = vpop.f32.mrb[89].mxu0  ;;  %v7066_v57 = vpop.f32.mrb[57].mxu1 }
 0x350   : > { %v7179_v56 = vadd.f32 %v7178_v24, %v7177_v6  ;;  %v7180_v25 = vpop.f32.mrb[90].mxu0  ;;  %v7067_v37 = vadd.f32 %v7066_v57, %v7065_v34  ;;  %v7068_v35 = vpop.f32.mrb[58].mxu1 }
 0x351   : > { %v7181_v49 = vpop.f32.mrb[91].mxu0  ;;  %v7069_v47 = vpop.f32.mrb[59].mxu1 }
 0x352   : > { %v7182_v1 = vadd.f32 %v7181_v49, %v7180_v25  ;;  %v9830_v55 = vadd.f32 %v7179_v56, %v7067_v37  ;;  %v7070_v44 = vadd.f32 %v7069_v47, %v7068_v35 }
 0x354   : > { %v9832_v15 = vadd.f32 %v7182_v1, %v7070_v44 }
 0x356   : > { %v7183_v9 = vpop.f32.mrb[92].mxu0  ;;  %v7071_v12 = vpop.f32.mrb[60].mxu1 }
 0x357   : > { %v7184_v3 = vpop.f32.mrb[93].mxu0  ;;  %v7072_v13 = vpop.f32.mrb[61].mxu1 }
 0x358   : > { %v7185_v29 = vadd.f32 %v7184_v3, %v7183_v9  ;;  %v7186_v33 = vpop.f32.mrb[94].mxu0  ;;  %v7073_v51 = vadd.f32 %v7072_v13, %v7071_v12  ;;  %v7074_v59 = vpop.f32.mrb[62].mxu1 }
 0x359   : > { %v7187_v39 = vpop.f32.mrb[95].mxu0  ;;  %v7075_v32 = vpop.f32.mrb[63].mxu1 }
 0x35a   : > { %v7188_v17 = vadd.f32 %v7187_v39, %v7186_v33  ;;  %v9834_v30 = vadd.f32 %v7185_v29, %v7073_v51  ;;  %v7076_v0 = vadd.f32 %v7075_v32, %v7074_v59 }
 0x35c   : > { %v9836_v2 = vadd.f32 %v7188_v17, %v7076_v0 }
 0x35e   : > { %v7317_v48 = vpop.f32.mrb[96].mxu0  ;;  %v7205_v8 = vpop.f32.mrb[64].mxu1 }
 0x35f   : > { %v7318_v14 = vpop.f32.mrb[97].mxu0  ;;  %v7206_v41 = vpop.f32.mrb[65].mxu1 }
 0x360   : > { %v7319_v58 = vadd.f32 %v7318_v14, %v7317_v48  ;;  %v7320_v36 = vpop.f32.mrb[98].mxu0  ;;  %v7207_v6 = vadd.f32 %v7206_v41, %v7205_v8  ;;  %v7208_v24 = vpop.f32.mrb[66].mxu1 }
 0x361   : > { %v7321_v42 = vpop.f32.mrb[99].mxu0  ;;  %v7209_v56 = vpop.f32.mrb[67].mxu1 }
 0x362   : > { %v7322_v19 = vadd.f32 %v7321_v42, %v7320_v36  ;;  %v5464_v25 = vadd.f32 %v7207_v6, %v9595_v11  ;;  %v7210_v34 = vadd.f32 %v7209_v56, %v7208_v24 }
 0x364   : > { %v5467_v57 = vadd.f32 %v7210_v34, %v9597_v63 }
 0x366   : > { %v7323_v49 = vpop.f32.mrb[100].mxu0 }
 0x367   : > { %v7324_v1 = vpop.f32.mrb[101].mxu0 }
 0x368   : > { %v7325_v37 = vadd.f32 %v7324_v1, %v7323_v49  ;;  %v7326_v35 = vpop.f32.mrb[102].mxu0  ;;  %v7211_v47 = vpop.f32.mrb[68].mxu1 }
 0x369   : > { %v7327_v44 = vpop.f32.mrb[103].mxu0  ;;  %v7212_v9 = vpop.f32.mrb[69].mxu1 }
 0x36a   : > { %v7328_v3 = vadd.f32 %v7327_v44, %v7326_v35  ;;  %v7213_v29 = vadd.f32 %v7212_v9, %v7211_v47  ;;  %v7214_v33 = vpop.f32.mrb[70].mxu1  ;;  %v9846_v9 = vadd.f32 %v7319_v58, %v5464_v25 }
 0x36b   : > { %v7215_v12 = vpop.f32.mrb[71].mxu1 }
 0x36c   : > { %v5472_v39 = vadd.f32 %v7213_v29, %v9611_v31  ;;  %v7216_v13 = vadd.f32 %v7215_v12, %v7214_v33 }
 0x36e   : > { %v7329_v17 = vpop.f32.mrb[104].mxu0  ;;  %v5475_v11 = vadd.f32 %v7216_v13, %v9613_v23  ;;  %v9843_v24 = vadd.f32 %v7325_v37, %v5472_v39  ;;  %v9852_v37 = vadd.f32 %v7322_v19, %v5467_v57 }
 0x36f   : > { %v7330_v51 = vpop.f32.mrb[105].mxu0 }
 0x370   : > { %v7331_v59 = vadd.f32 %v7330_v51, %v7329_v17  ;;  %v7332_v32 = vpop.f32.mrb[106].mxu0  ;;  %v7217_v63 = vpop.f32.mrb[72].mxu1  ;;  %v9848_v12 = vadd.f32 %v7328_v3, %v5475_v11 }
 0x371   : > { %v7333_v0 = vpop.f32.mrb[107].mxu0  ;;  %v7218_v48 = vpop.f32.mrb[73].mxu1 }
 0x372   : > { %v7334_v14 = vadd.f32 %v7333_v0, %v7332_v32  ;;  %v7219_v36 = vadd.f32 %v7218_v48, %v7217_v63  ;;  %v7220_v8 = vpop.f32.mrb[74].mxu1 }
 0x373   : > { %v7221_v42 = vpop.f32.mrb[75].mxu1 }
 0x374   : > { %v5480_v41 = vadd.f32 %v7219_v36, %v9623_v7  ;;  %v7222_v6 = vadd.f32 %v7221_v42, %v7220_v8 }
 0x376   : > { %v7335_v31 = vpop.f32.mrb[108].mxu0  ;;  %v5483_v56 = vadd.f32 %v7222_v6, %v9629_v45  ;;  %v9850_v13 = vadd.f32 %v7331_v59, %v5480_v41 }
 0x377   : > { %v7336_v34 = vpop.f32.mrb[109].mxu0 }
 0x378   : > { %v7337_v23 = vadd.f32 %v7336_v34, %v7335_v31  ;;  %v7338_v49 = vpop.f32.mrb[110].mxu0  ;;  %v7223_v1 = vpop.f32.mrb[76].mxu1  ;;  %v9860_v11 = vadd.f32 %v7334_v14, %v5483_v56 }
 0x379   : > { %v7339_v35 = vpop.f32.mrb[111].mxu0  ;;  %v7224_v47 = vpop.f32.mrb[77].mxu1 }
 0x37a   : > { %v7340_v44 = vadd.f32 %v7339_v35, %v7338_v49  ;;  %v7225_v29 = vadd.f32 %v7224_v47, %v7223_v1  ;;  %v7226_v33 = vpop.f32.mrb[78].mxu1 }
 0x37b   : > { %v7227_v7 = vpop.f32.mrb[79].mxu1 }
 0x37c   : > { %v5488_v45 = vadd.f32 %v7225_v29, %v9643_v40  ;;  %v7228_v39 = vadd.f32 %v7227_v7, %v7226_v33 }
 0x37e   : > { %v7341_v17 = vpop.f32.mrb[112].mxu0  ;;  %v5491_v51 = vadd.f32 %v7228_v39, %v9645_v18  ;;  %v9856_v63 = vadd.f32 %v7337_v23, %v5488_v45 }
 0x37f   : > { %v7342_v32 = vpop.f32.mrb[113].mxu0 }
 0x380   : > { %v7343_v58 = vadd.f32 %v7342_v32, %v7341_v17  ;;  %v7344_v25 = vpop.f32.mrb[114].mxu0  ;;  %v7229_v0 = vpop.f32.mrb[80].mxu1  ;;  %v9858_v3 = vadd.f32 %v7340_v44, %v5491_v51 }
 0x381   : > { %v7345_v48 = vpop.f32.mrb[115].mxu0  ;;  %v7230_v59 = vpop.f32.mrb[81].mxu1 }
 0x382   : > { %v7346_v19 = vadd.f32 %v7345_v48, %v7344_v25  ;;  %v7231_v57 = vadd.f32 %v7230_v59, %v7229_v0  ;;  %v7232_v36 = vpop.f32.mrb[82].mxu1 }
 0x383   : > { %v7233_v40 = vpop.f32.mrb[83].mxu1 }
 0x384   : > { %v5496_v8 = vadd.f32 %v7231_v57, %v9655_v46  ;;  %v7234_v42 = vadd.f32 %v7233_v40, %v7232_v36 }
 0x386   : > { %v7347_v18 = vpop.f32.mrb[116].mxu0  ;;  %v5499_v41 = vadd.f32 %v7234_v42, %v9663_v38  ;;  %v9864_v1 = vadd.f32 %v7343_v58, %v5496_v8 }
 0x387   : > { %v7348_v6 = vpop.f32.mrb[117].mxu0 }
 0x388   : > { %v7349_v31 = vadd.f32 %v7348_v6, %v7347_v18  ;;  %v7350_v34 = vpop.f32.mrb[118].mxu0  ;;  %v7235_v23 = vpop.f32.mrb[84].mxu1  ;;  %v9867_v46 = vadd.f32 %v7346_v19, %v5499_v41 }
 0x389   : > { %v7351_v49 = vpop.f32.mrb[119].mxu0  ;;  %v7236_v14 = vpop.f32.mrb[85].mxu1 }
 0x38a   : > { %v7352_v56 = vadd.f32 %v7351_v49, %v7350_v34  ;;  %v7237_v35 = vadd.f32 %v7236_v14, %v7235_v23  ;;  %v7238_v47 = vpop.f32.mrb[86].mxu1 }
 0x38b   : > { %v7239_v44 = vpop.f32.mrb[87].mxu1 }
 0x38c   : > { %v5504_v29 = vadd.f32 %v7237_v35, %v9702_v27  ;;  %v7240_v33 = vadd.f32 %v7239_v44, %v7238_v47 }
 0x38e   : > { %v7353_v7 = vpop.f32.mrb[120].mxu0  ;;  %v5507_v38 = vadd.f32 %v7240_v33, %v9718_v61  ;;  %v9870_v39 = vadd.f32 %v7349_v31, %v5504_v29 }
 0x38f   : > { %v7354_v45 = vpop.f32.mrb[121].mxu0 }
 0x390   : > { %v7355_v17 = vadd.f32 %v7354_v45, %v7353_v7  ;;  %v7356_v51 = vpop.f32.mrb[122].mxu0  ;;  %v7241_v32 = vpop.f32.mrb[88].mxu1  ;;  %v9872_v25 = vadd.f32 %v7352_v56, %v5507_v38 }
 0x391   : > { %v7357_v58 = vpop.f32.mrb[123].mxu0  ;;  %v7242_v0 = vpop.f32.mrb[89].mxu1 }
 0x392   : > { %v7358_v48 = vadd.f32 %v7357_v58, %v7356_v51  ;;  %v7243_v59 = vadd.f32 %v7242_v0, %v7241_v32  ;;  %v7244_v57 = vpop.f32.mrb[90].mxu1 }
 0x393   : > { %v7245_v27 = vpop.f32.mrb[91].mxu1 }
 0x394   : > { %v5512_v19 = vadd.f32 %v7243_v59, %v9741_v22  ;;  %v7246_v36 = vadd.f32 %v7245_v27, %v7244_v57 }
 0x396   : > { %v7359_v40 = vpop.f32.mrb[124].mxu0  ;;  %v5515_v61 = vadd.f32 %v7246_v36, %v9745_v4  ;;  %v9876_v42 = vadd.f32 %v7355_v17, %v5512_v19 }
 0x397   : > { %v7360_v8 = vpop.f32.mrb[125].mxu0 }
 0x398   : > { %v7361_v18 = vadd.f32 %v7360_v8, %v7359_v40  ;;  %v7362_v41 = vpop.f32.mrb[126].mxu0  ;;  %v7247_v6 = vpop.f32.mrb[92].mxu1  ;;  %v9878_v34 = vadd.f32 %v7358_v48, %v5515_v61 }
 0x399   : > { %v7363_v31 = vpop.f32.mrb[127].mxu0  ;;  %v7248_v23 = vpop.f32.mrb[93].mxu1 }
 0x39a   : > { %v7364_v49 = vadd.f32 %v7363_v31, %v7362_v41  ;;  %v7249_v14 = vadd.f32 %v7248_v23, %v7247_v6  ;;  %v7250_v56 = vpop.f32.mrb[94].mxu1 }
 0x39b   : > { %v7251_v35 = vpop.f32.mrb[95].mxu1 }
 0x39c   : > { %v5520_v22 = vadd.f32 %v7249_v14, %v9761_v52  ;;  %v7252_v47 = vadd.f32 %v7251_v35, %v7250_v56 }
 0x39e   : > { %v7365_v44 = vpop.f32.mrb[128].mxu0  ;;  %v5523_v4 = vadd.f32 %v7252_v47, %v9768_v62  ;;  %v9882_v33 = vadd.f32 %v7361_v18, %v5520_v22 }
 0x39f   : > { %v7366_v29 = vpop.f32.mrb[129].mxu0 }
 0x3a0   : > { %v7367_v7 = vadd.f32 %v7366_v29, %v7365_v44  ;;  %v7368_v38 = vpop.f32.mrb[130].mxu0  ;;  %v7253_v45 = vpop.f32.mrb[96].mxu1  ;;  %v9884_v51 = vadd.f32 %v7364_v49, %v5523_v4 }
 0x3a1   : > { %v7369_v17 = vpop.f32.mrb[131].mxu0  ;;  %v7254_v32 = vpop.f32.mrb[97].mxu1 }
 0x3a2   : > { %v7370_v58 = vadd.f32 %v7369_v17, %v7368_v38  ;;  %v7255_v0 = vadd.f32 %v7254_v32, %v7253_v45  ;;  %v7256_v48 = vpop.f32.mrb[98].mxu1 }
 0x3a3   : > { %v7257_v59 = vpop.f32.mrb[99].mxu1 }
 0x3a4   : > { %v5528_v52 = vadd.f32 %v7255_v0, %v9770_v20  ;;  %v7258_v57 = vadd.f32 %v7257_v59, %v7256_v48 }
 0x3a6   : > { %v7371_v27 = vpop.f32.mrb[132].mxu0  ;;  %v5531_v62 = vadd.f32 %v7258_v57, %v9772_v60  ;;  %v9888_v36 = vadd.f32 %v7367_v7, %v5528_v52 }
 0x3a7   : > { %v7372_v19 = vpop.f32.mrb[133].mxu0 }
 0x3a8   : > { %v7373_v40 = vadd.f32 %v7372_v19, %v7371_v27  ;;  %v7374_v61 = vpop.f32.mrb[134].mxu0  ;;  %v7259_v8 = vpop.f32.mrb[100].mxu1  ;;  %v9890_v41 = vadd.f32 %v7370_v58, %v5531_v62 }
 0x3a9   : > { %v7375_v18 = vpop.f32.mrb[135].mxu0  ;;  %v7260_v6 = vpop.f32.mrb[101].mxu1 }
 0x3aa   : > { %v7376_v31 = vadd.f32 %v7375_v18, %v7374_v61  ;;  %v7261_v23 = vadd.f32 %v7260_v6, %v7259_v8  ;;  %v7262_v49 = vpop.f32.mrb[102].mxu1 }
 0x3ab   : > { %v7263_v14 = vpop.f32.mrb[103].mxu1 }
 0x3ac   : > { %v5536_v20 = vadd.f32 %v7261_v23, %v9782_v10  ;;  %v7264_v56 = vadd.f32 %v7263_v14, %v7262_v49 }
 0x3ae   : > { %v7377_v35 = vpop.f32.mrb[136].mxu0  ;;  %v5539_v60 = vadd.f32 %v7264_v56, %v9784_v43  ;;  %v9894_v47 = vadd.f32 %v7373_v40, %v5536_v20 }
 0x3af   : > { %v7378_v22 = vpop.f32.mrb[137].mxu0 }
 0x3b0   : > { %v7379_v44 = vadd.f32 %v7378_v22, %v7377_v35  ;;  %v7380_v4 = vpop.f32.mrb[138].mxu0  ;;  %v9896_v7 = vadd.f32 %v7376_v31, %v5539_v60  ;;  %v7265_v45 = vpop.f32.mrb[104].mxu1 }
 0x3b1   : > { %v7381_v29 = vpop.f32.mrb[139].mxu0  ;;  %v7266_v17 = vpop.f32.mrb[105].mxu1 }
 0x3b2   : > { %v7382_v38 = vadd.f32 %v7381_v29, %v7380_v4  ;;  %v7267_v32 = vadd.f32 %v7266_v17, %v7265_v45  ;;  %v7268_v58 = vpop.f32.mrb[106].mxu1 }
 0x3b3   : > { %v7269_v0 = vpop.f32.mrb[107].mxu1 }
 0x3b4   : > { %v5544_v10 = vadd.f32 %v7267_v32, %v9792_v5  ;;  %v7270_v48 = vadd.f32 %v7269_v0, %v7268_v58 }
 0x3b6   : > { %v7383_v59 = vpop.f32.mrb[140].mxu0  ;;  %v5547_v43 = vadd.f32 %v7270_v48, %v9796_v50  ;;  %v9900_v62 = vadd.f32 %v7379_v44, %v5544_v10 }
 0x3b7   : > { %v7384_v52 = vpop.f32.mrb[141].mxu0 }
 0x3b8   : > { %v7385_v57 = vadd.f32 %v7384_v52, %v7383_v59  ;;  %v7386_v27 = vpop.f32.mrb[142].mxu0  ;;  %v9902_v61 = vadd.f32 %v7382_v38, %v5547_v43  ;;  %v7271_v8 = vpop.f32.mrb[108].mxu1 }
 0x3b9   : > { %v7387_v19 = vpop.f32.mrb[143].mxu0  ;;  %v7272_v18 = vpop.f32.mrb[109].mxu1 }
 0x3ba   : > { %v7388_v40 = vadd.f32 %v7387_v19, %v7386_v27  ;;  %v7273_v6 = vadd.f32 %v7272_v18, %v7271_v8  ;;  %v7274_v31 = vpop.f32.mrb[110].mxu1 }
 0x3bb   : > { %v7275_v23 = vpop.f32.mrb[111].mxu1 }
 0x3bc   : > { %v5552_v5 = vadd.f32 %v7273_v6, %v9804_v16  ;;  %v7276_v49 = vadd.f32 %v7275_v23, %v7274_v31 }
 0x3be   : > { %v7389_v14 = vpop.f32.mrb[144].mxu0  ;;  %v5555_v20 = vadd.f32 %v7276_v49, %v9808_v21  ;;  %v9906_v56 = vadd.f32 %v7385_v57, %v5552_v5 }
 0x3bf   : > { %v7390_v50 = vpop.f32.mrb[145].mxu0 }
 0x3c0   : > { %v7391_v35 = vadd.f32 %v7390_v50, %v7389_v14  ;;  %v7392_v60 = vpop.f32.mrb[146].mxu0  ;;  %v9908_v44 = vadd.f32 %v7388_v40, %v5555_v20 }
 0x3c1   : > { %v7393_v22 = vpop.f32.mrb[147].mxu0 }
 0x3c2   : > { %v7394_v4 = vadd.f32 %v7393_v22, %v7392_v60 }
 0x3c3   : > { %v7277_v29 = vpop.f32.mrb[112].mxu1 }
 0x3c4   : > { %v7278_v38 = vpop.f32.mrb[113].mxu1 }
 0x3c5   : > { %v7279_v45 = vadd.f32 %v7278_v38, %v7277_v29  ;;  %v7280_v17 = vpop.f32.mrb[114].mxu1 }
 0x3c6   : > { %v7281_v32 = vpop.f32.mrb[115].mxu1 }
 0x3c7   : > { %v5560_v16 = vadd.f32 %v7279_v45, %v9816_v26  ;;  %v7282_v58 = vadd.f32 %v7281_v32, %v7280_v17 }
 0x3c8   : > { %v7395_v0 = vpop.f32.mrb[148].mxu0 }
 0x3c9   : > { %v7396_v10 = vpop.f32.mrb[149].mxu0  ;;  %v5563_v21 = vadd.f32 %v7282_v58, %v9820_v53  ;;  %v9912_v52 = vadd.f32 %v7391_v35, %v5560_v16 }
 0x3ca   : > { %v7397_v48 = vadd.f32 %v7396_v10, %v7395_v0  ;;  %v7398_v59 = vpop.f32.mrb[150].mxu0 }
 0x3cb   : > { %v7399_v43 = vpop.f32.mrb[151].mxu0  ;;  %v9914_v27 = vadd.f32 %v7394_v4, %v5563_v21 }
 0x3cc   : > { %v7400_v57 = vadd.f32 %v7399_v43, %v7398_v59 }
 0x3d1   : > { %v7283_v19 = vpop.f32.mrb[116].mxu1 }
 0x3d2   : > { %v7284_v40 = vpop.f32.mrb[117].mxu1 }
 0x3d3   : > { %v7285_v8 = vadd.f32 %v7284_v40, %v7283_v19  ;;  %v7286_v18 = vpop.f32.mrb[118].mxu1  ;;  %v7401_v6 = vpop.f32.mrb[152].mxu0 }
 0x3d4   : > { %v7287_v31 = vpop.f32.mrb[119].mxu1  ;;  %v7402_v26 = vpop.f32.mrb[153].mxu0 }
 0x3d5   : > { %v5568_v23 = vadd.f32 %v7285_v8, %v9826_v28  ;;  %v7288_v5 = vadd.f32 %v7287_v31, %v7286_v18  ;;  %v7403_v49 = vadd.f32 %v7402_v26, %v7401_v6  ;;  %v7404_v53 = vpop.f32.mrb[154].mxu0 }
 0x3d6   : > { %v7405_v14 = vpop.f32.mrb[155].mxu0 }
 0x3d7   : > { %v5571_v20 = vadd.f32 %v7288_v5, %v9828_v54  ;;  %v7406_v50 = vadd.f32 %v7405_v14, %v7404_v53  ;;  %v9918_v35 = vadd.f32 %v7397_v48, %v5568_v23 }
 0x3d9   : > { %v9920_v60 = vadd.f32 %v7400_v57, %v5571_v20 }
 0x3dc   : > { %v7289_v22 = vpop.f32.mrb[120].mxu1 }
 0x3dd   : > { %v7290_v4 = vpop.f32.mrb[121].mxu1 }
 0x3de   : > { %v7291_v29 = vadd.f32 %v7290_v4, %v7289_v22  ;;  %v7292_v38 = vpop.f32.mrb[122].mxu1 }
 0x3df   : > { %v7293_v45 = vpop.f32.mrb[123].mxu1 }
 0x3e0   : > { %v5576_v17 = vadd.f32 %v7291_v29, %v9830_v55  ;;  %v7294_v32 = vadd.f32 %v7293_v45, %v7292_v38 }
 0x3e2   : > { %v5579_v28 = vadd.f32 %v7294_v32, %v9832_v15  ;;  %v9924_v16 = vadd.f32 %v7403_v49, %v5576_v17 }
 0x3e4   : > { %v9926_v58 = vadd.f32 %v7406_v50, %v5579_v28  ;;  %v7295_v54 = vpop.f32.mrb[124].mxu1 }
 0x3e5   : > { %v7296_v0 = vpop.f32.mrb[125].mxu1 }
 0x3e6   : > { %v7297_v10 = vadd.f32 %v7296_v0, %v7295_v54  ;;  %v7298_v21 = vpop.f32.mrb[126].mxu1 }
 0x3e7   : > { %v7299_v48 = vpop.f32.mrb[127].mxu1 }
 0x3e8   : > { %v5584_v59 = vadd.f32 %v7297_v10, %v9834_v30  ;;  %v7300_v43 = vadd.f32 %v7299_v48, %v7298_v21 }
 0x3ea   : > { %v7407_v57 = vpop.f32.mrb[156].mxu0  ;;  %v5587_v19 = vadd.f32 %v7300_v43, %v9836_v2 }
 0x3eb   : > { %v7408_v40 = vpop.f32.mrb[157].mxu0 }
 0x3ec   : > { %v7409_v55 = vadd.f32 %v7408_v40, %v7407_v57  ;;  %v7410_v8 = vpop.f32.mrb[158].mxu0  ;;  %v7493_v18 = vpop.f32.mrb[128].mxu1 }
 0x3ed   : > { %v7411_v15 = vpop.f32.mrb[159].mxu0  ;;  %v9931_v6 = vadd.f32 %v7493_v18, %v9856_v63  ;;  %v5801_v31 = vpop.f32.mrb[129].mxu1 }
 0x3ee   : > { %v7412_v26 = vadd.f32 %v7411_v15, %v7410_v8  ;;  %v9934_v23 = vadd.f32 %v5801_v31, %v9850_v13  ;;  %v7494_v5 = vpop.f32.mrb[130].mxu1  ;;  %v9936_v49 = vadd.f32 %v7409_v55, %v5584_v59 }
 0x3ef   : > { %v9939_v30 = vadd.f32 %v7494_v5, %v9858_v3  ;;  %v5804_v2 = vpop.f32.mrb[131].mxu1 }
 0x3f0   : > { %v9942_v53 = vadd.f32 %v5804_v2, %v9860_v11  ;;  %v9944_v14 = vadd.f32 %v7412_v26, %v5587_v19 }
 0x3f2   : > { %v7489_v20 = vpop.f32.mrb[160].mxu0 }
 0x3f3   : > { %v9947_v63 = vadd.f32 %v7489_v20, %v9843_v24  ;;  %v5785_v50 = vpop.f32.mrb[161].mxu0 }
 0x3f4   : > { %v9950_v13 = vadd.f32 %v5785_v50, %v9846_v9  ;;  %v7490_v22 = vpop.f32.mrb[162].mxu0  ;;  %v7497_v4 = vpop.f32.mrb[132].mxu1 }
 0x3f5   : > { %v9953_v29 = vadd.f32 %v7490_v22, %v9848_v12  ;;  %v5788_v3 = vpop.f32.mrb[163].mxu0  ;;  %v9956_v38 = vadd.f32 %v7497_v4, %v9870_v39  ;;  %v5817_v11 = vpop.f32.mrb[133].mxu1 }
 0x3f6   : > { %v9959_v45 = vadd.f32 %v5788_v3, %v9852_v37  ;;  %v9962_v24 = vadd.f32 %v5817_v11, %v9864_v1  ;;  %v7498_v17 = vpop.f32.mrb[134].mxu1 }
 0x3f7   : > { %v9965_v9 = vadd.f32 %v7498_v17, %v9872_v25  ;;  %v5820_v32 = vpop.f32.mrb[135].mxu1 }
 0x3f8   : > { %v5914_v12 = vadd.f32 %v9959_v45, %v9950_v13  ;;  %v9970_v28 = vadd.f32 %v5820_v32, %v9867_v46 }
 0x3fa   : > { %v5915_v39 = vadd.f32 %v5914_v12, %v9947_v63 }
 0x3fc   : > { %v5916_v54 = vadd.f32 %v5915_v39, %v9953_v29  ;;  %v7501_v37 = vpop.f32.mrb[136].mxu1 }
 0x3fd   : > { %v9975_v0 = vadd.f32 %v7501_v37, %v9882_v33  ;;  %v5833_v1 = vpop.f32.mrb[137].mxu1 }
 0x3fe   : > { %v5917_v10 = vadd.f32 %v5916_v54, %v9934_v23  ;;  %v9979_v25 = vadd.f32 %v5833_v1, %v9876_v42  ;;  %v7502_v21 = vpop.f32.mrb[138].mxu1 }
 0x3ff   : > { %v9982_v48 = vadd.f32 %v7502_v21, %v9884_v51  ;;  %v5836_v46 = vpop.f32.mrb[139].mxu1 }
 0x400   : > { %v5918_v59 = vadd.f32 %v5917_v10, %v9942_v53  ;;  %v9986_v43 = vadd.f32 %v5836_v46, %v9878_v34 }
 0x402   : > { %v5919_v57 = vadd.f32 %v5918_v59, %v9931_v6 }
 0x404   : > { %v5920_v33 = vadd.f32 %v5919_v57, %v9939_v30  ;;  %v7505_v19 = vpop.f32.mrb[140].mxu1 }
 0x405   : > { %v9991_v40 = vadd.f32 %v7505_v19, %v9894_v47  ;;  %v5849_v42 = vpop.f32.mrb[141].mxu1 }
 0x406   : > { %v5921_v55 = vadd.f32 %v5920_v33, %v9962_v24  ;;  %v9995_v51 = vadd.f32 %v5849_v42, %v9888_v36  ;;  %v7506_v8 = vpop.f32.mrb[142].mxu1 }
 0x407   : > { %v9998_v18 = vadd.f32 %v7506_v8, %v9896_v7  ;;  %v5852_v34 = vpop.f32.mrb[143].mxu1 }
 0x408   : > { %v5922_v15 = vadd.f32 %v5921_v55, %v9970_v28  ;;  %v10002_v31 = vadd.f32 %v5852_v34, %v9890_v41 }
 0x40a   : > { %v5923_v26 = vadd.f32 %v5922_v15, %v9956_v38 }
 0x40c   : > { %v5924_v47 = vadd.f32 %v5923_v26, %v9965_v9  ;;  %v7509_v5 = vpop.f32.mrb[144].mxu1 }
 0x40d   : > { %v10007_v2 = vadd.f32 %v7509_v5, %v9906_v56  ;;  %v5865_v36 = vpop.f32.mrb[145].mxu1 }
 0x40e   : > { %v5925_v20 = vadd.f32 %v5924_v47, %v9979_v25  ;;  %v5866_v7 = vadd.f32 %v5865_v36, %v9900_v62  ;;  %v7510_v50 = vpop.f32.mrb[146].mxu1 }
 0x40f   : > { %v5877_v22 = vadd.f32 %v7510_v50, %v9908_v44  ;;  %v5868_v4 = vpop.f32.mrb[147].mxu1 }
 0x410   : > { %v5926_v41 = vadd.f32 %v5925_v20, %v9986_v43  ;;  %v5869_v3 = vadd.f32 %v5868_v4, %v9902_v61 }
 0x412   : > { %v5927_v11 = vadd.f32 %v5926_v41, %v9975_v0 }
 0x414   : > { %v5928_v17 = vadd.f32 %v5927_v11, %v9982_v48  ;;  %v7513_v32 = vpop.f32.mrb[148].mxu1 }
 0x415   : > { %v5890_v56 = vadd.f32 %v7513_v32, %v9918_v35  ;;  %v5881_v12 = vpop.f32.mrb[149].mxu1 }
 0x416   : > { %v5929_v39 = vadd.f32 %v5928_v17, %v9995_v51  ;;  %v5882_v62 = vadd.f32 %v5881_v12, %v9912_v52  ;;  %v7514_v54 = vpop.f32.mrb[150].mxu1 }
 0x417   : > { %v5893_v44 = vadd.f32 %v7514_v54, %v9920_v60  ;;  %v5884_v37 = vpop.f32.mrb[151].mxu1 }
 0x418   : > { %v5930_v1 = vadd.f32 %v5929_v39, %v10002_v31  ;;  %v5885_v61 = vadd.f32 %v5884_v37, %v9914_v27 }
 0x41a   : > { %v5931_v10 = vadd.f32 %v5930_v1, %v9991_v40 }
 0x41c   : > { %v5932_v21 = vadd.f32 %v5931_v10, %v9998_v18  ;;  %v7517_v46 = vpop.f32.mrb[152].mxu1 }
 0x41d   : > { %v5906_v35 = vadd.f32 %v7517_v46, %v9936_v49  ;;  %v5897_v59 = vpop.f32.mrb[153].mxu1 }
 0x41e   : > { %v5933_v57 = vadd.f32 %v5932_v21, %v5866_v7  ;;  %v5898_v33 = vadd.f32 %v5897_v59, %v9924_v16  ;;  %v7518_v52 = vpop.f32.mrb[154].mxu1 }
 0x41f   : > { %v5909_v19 = vadd.f32 %v7518_v52, %v9944_v14  ;;  %v5900_v60 = vpop.f32.mrb[155].mxu1 }
 0x420   : > { %v5934_v42 = vadd.f32 %v5933_v57, %v5869_v3  ;;  %v5901_v55 = vadd.f32 %v5900_v60, %v9926_v58 }
 0x422   : > { %v5935_v27 = vadd.f32 %v5934_v42, %v10007_v2 }
 0x424   : > { %v5936_v8 = vadd.f32 %v5935_v27, %v5877_v22 }
 0x426   : > { %v5937_v34 = vadd.f32 %v5936_v8, %v5882_v62 }
 0x428   : > { %v5938_v15 = vadd.f32 %v5937_v34, %v5885_v61 }
 0x42a   : > { %v5939_v26 = vadd.f32 %v5938_v15, %v5890_v56 }
 0x42c   : > { %v5940_v47 = vadd.f32 %v5939_v26, %v5893_v44 }
 0x42e   : > { %v5941_v5 = vadd.f32 %v5940_v47, %v5898_v33 }
 0x430   : > { %v5942_v49 = vadd.f32 %v5941_v5, %v5901_v55 }
 0x432   : > { %v5943_v36 = vadd.f32 %v5942_v49, %v5906_v35 }
 0x434   : > { %v5944_v20 = vadd.f32 %v5943_v36, %v5909_v19 }
 0x436   : > { %v5945_v50 = vrot.slane %v5944_v20, 4 }
 0x438   : > { %v5946_v16 = vadd.f32 %v5945_v50, %v5944_v20 }
 0x43a   : > { %v5947_v4 = vrot.slane %v5946_v16, 2 }
 0x43c   : > { %v5948_v41 = vadd.f32 %v5947_v4, %v5946_v16 }
 0x43e   : > { %v5949_v14 = vrot.slane %v5948_v41, 1 }
 0x440   : > { %v5950_v11 = vadd.f32 %v5949_v14, %v5948_v41 }
 0x442   : > { %v5951_v17 = vmul.f32 0.00390625, %v5950_v11 }
 0x444   : > { %v10030_v58 = vsub.f32 %v9962_v24, %v5951_v17  ;;  %v10033_v32 = vsub.f32 %v9970_v28, %v5951_v17  ;;  %v10036_v12 = vsub.f32 %v9956_v38, %v5951_v17  ;;  %v10039_v39 = vsub.f32 %v9965_v9, %v5951_v17 }
 0x445   : > { %v10042_v54 = vsub.f32 %v9979_v25, %v5951_v17  ;;  %v10045_v37 = vsub.f32 %v9986_v43, %v5951_v17  ;;  %v10048_v1 = vsub.f32 %v9975_v0, %v5951_v17  ;;  %v10051_v24 = vsub.f32 %v9982_v48, %v5951_v17 }
 0x446   : > { %v10054_v28 = vsub.f32 %v9995_v51, %v5951_v17  ;;  %v10057_v38 = vsub.f32 %v10002_v31, %v5951_v17  ;;  %v10060_v9 = vsub.f32 %v9991_v40, %v5951_v17  ;;  %v10063_v25 = vsub.f32 %v9998_v18, %v5951_v17 }
 0x447   : > { %v10065_v43 = vsub.f32 %v5866_v7, %v5951_v17  ;;  %v10067_v10 = vsub.f32 %v5869_v3, %v5951_v17  ;;  %v10070_v0 = vsub.f32 %v10007_v2, %v5951_v17  ;;  %v10072_v48 = vsub.f32 %v5877_v22, %v5951_v17 }
 0x448   : > { %v10074_v51 = vsub.f32 %v5882_v62, %v5951_v17  ;;  %v10076_v21 = vsub.f32 %v5885_v61, %v5951_v17  ;;  %v10078_v31 = vsub.f32 %v5890_v56, %v5951_v17  ;;  %v10080_v40 = vsub.f32 %v5893_v44, %v5951_v17 }
 0x449   : > { %v10082_v46 = vsub.f32 %v5898_v33, %v5951_v17  ;;  %v10084_v18 = vsub.f32 %v5901_v55, %v5951_v17  ;;  %v10086_v7 = vsub.f32 %v5906_v35, %v5951_v17  ;;  %v10088_v3 = vsub.f32 %v5909_v19, %v5951_v17 }
 0x44a   : > { %v10091_v2 = vsub.f32 %v9950_v13, %v5951_v17  ;;  %v10094_v22 = vsub.f32 %v9959_v45, %v5951_v17  ;;  %v10097_v62 = vsub.f32 %v9947_v63, %v5951_v17  ;;  %v10104_v61 = vsub.f32 %v9953_v29, %v5951_v17 }
 0x44b   : > { %v10107_v35 = vsub.f32 %v9934_v23, %v5951_v17  ;;  %v10112_v59 = vsub.f32 %v9942_v53, %v5951_v17  ;;  %v10117_v33 = vsub.f32 %v9931_v6, %v5951_v17  ;;  %v10122_v23 = vsub.f32 %v9939_v30, %v5951_v17 }
 0x44c   : > { %v5984_v56 = vmul.f32 %v10091_v2, %v10091_v2  ;;  %v5985_v44 = vmul.f32 %v10094_v22, %v10094_v22  ;;  %v5986_v13 = vmul.f32 %v10097_v62, %v10097_v62  ;;  %v5987_v63 = vmul.f32 %v10104_v61, %v10104_v61 }
 0x44d   : > { %v5988_v29 = vmul.f32 %v10107_v35, %v10107_v35  ;;  %v5989_v19 = vmul.f32 %v10112_v59, %v10112_v59  ;;  %v5990_v53 = vmul.f32 %v10117_v33, %v10117_v33  ;;  %v5991_v55 = vmul.f32 %v10122_v23, %v10122_v23 }
 0x44e   : > { %v6016_v45 = vadd.f32 %v5985_v44, %v5984_v56  ;;  %v5992_v27 = vmul.f32 %v10030_v58, %v10030_v58  ;;  %v5993_v30 = vmul.f32 %v10033_v32, %v10033_v32  ;;  %v5994_v15 = vmul.f32 %v10036_v12, %v10036_v12 }
 0x44f   : > { %v5995_v47 = vmul.f32 %v10039_v39, %v10039_v39  ;;  %v5996_v49 = vmul.f32 %v10042_v54, %v10042_v54  ;;  %v5997_v20 = vmul.f32 %v10045_v37, %v10045_v37  ;;  %v5998_v16 = vmul.f32 %v10048_v1, %v10048_v1 }
 0x450   : > { %v6017_v57 = vadd.f32 %v6016_v45, %v5986_v13  ;;  %v5999_v41 = vmul.f32 %v10051_v24, %v10051_v24  ;;  %v6000_v11 = vmul.f32 %v10054_v28, %v10054_v28  ;;  %v6001_v56 = vmul.f32 %v10057_v38, %v10057_v38 }
 0x451   : > { %v6002_v13 = vmul.f32 %v10060_v9, %v10060_v9 }
 0x452   : > { %v6018_v52 = vadd.f32 %v6017_v57, %v5987_v63  ;;  %v6003_v63 = vmul.f32 %v10063_v25, %v10063_v25 }
 0x454   : > { %v6019_v60 = vadd.f32 %v6018_v52, %v5988_v29  ;;  %v6004_v29 = vmul.f32 %v10065_v43, %v10065_v43 }
 0x456   : > { %v6020_v42 = vadd.f32 %v6019_v60, %v5989_v19  ;;  %v6005_v19 = vmul.f32 %v10067_v10, %v10067_v10 }
 0x458   : > { %v6021_v6 = vadd.f32 %v6020_v42, %v5990_v53  ;;  %v6006_v53 = vmul.f32 %v10070_v0, %v10070_v0 }
 0x45a   : > { %v6022_v8 = vadd.f32 %v6021_v6, %v5991_v55  ;;  %v6007_v55 = vmul.f32 %v10072_v48, %v10072_v48 }
 0x45c   : > { %v6023_v34 = vadd.f32 %v6022_v8, %v5992_v27  ;;  %v6008_v27 = vmul.f32 %v10074_v51, %v10074_v51 }
 0x45e   : > { %v6024_v26 = vadd.f32 %v6023_v34, %v5993_v30  ;;  %v6009_v30 = vmul.f32 %v10076_v21, %v10076_v21 }
 0x460   : > { %v6025_v5 = vadd.f32 %v6024_v26, %v5994_v15  ;;  %v6010_v15 = vmul.f32 %v10078_v31, %v10078_v31 }
 0x462   : > { %v6026_v36 = vadd.f32 %v6025_v5, %v5995_v47  ;;  %v6011_v47 = vmul.f32 %v10080_v40, %v10080_v40 }
 0x464   : > { %v6027_v50 = vadd.f32 %v6026_v36, %v5996_v49  ;;  %v6012_v49 = vmul.f32 %v10082_v46, %v10082_v46 }
 0x466   : > { %v6028_v4 = vadd.f32 %v6027_v50, %v5997_v20  ;;  %v6013_v20 = vmul.f32 %v10084_v18, %v10084_v18 }
 0x468   : > { %v6029_v14 = vadd.f32 %v6028_v4, %v5998_v16  ;;  %v6014_v16 = vmul.f32 %v10086_v7, %v10086_v7 }
 0x46a   : > { %v6030_v17 = vadd.f32 %v6029_v14, %v5999_v41  ;;  %v6015_v41 = vmul.f32 %v10088_v3, %v10088_v3 }
 0x46c   : > { %v6031_v44 = vadd.f32 %v6030_v17, %v6000_v11 }
 0x46e   : > { %v6032_v45 = vadd.f32 %v6031_v44, %v6001_v56 }
 0x470   : > { %v6033_v57 = vadd.f32 %v6032_v45, %v6002_v13 }
 0x472   : > { %v6034_v52 = vadd.f32 %v6033_v57, %v6003_v63 }
 0x474   : > { %v6035_v60 = vadd.f32 %v6034_v52, %v6004_v29 }
 0x476   : > { %v6036_v42 = vadd.f32 %v6035_v60, %v6005_v19 }
 0x478   : > { %v6037_v6 = vadd.f32 %v6036_v42, %v6006_v53 }
 0x47a   : > { %v6038_v8 = vadd.f32 %v6037_v6, %v6007_v55 }
 0x47c   : > { %v6039_v34 = vadd.f32 %v6038_v8, %v6008_v27 }
 0x47e   : > { %v6040_v26 = vadd.f32 %v6039_v34, %v6009_v30 }
 0x480   : > { %v6041_v5 = vadd.f32 %v6040_v26, %v6010_v15 }
 0x482   : > { %v6042_v36 = vadd.f32 %v6041_v5, %v6011_v47 }
 0x484   : > { %v6043_v50 = vadd.f32 %v6042_v36, %v6012_v49 }
 0x486   : > { %v6044_v4 = vadd.f32 %v6043_v50, %v6013_v20 }
 0x488   : > { %v6045_v14 = vadd.f32 %v6044_v4, %v6014_v16 }
 0x48a   : > { %v6046_v11 = vadd.f32 %v6045_v14, %v6015_v41  ;;  %v6752_v14 = vld [vmem:[%s10269_s6] ss:$0 sm:$0xff] }
 0x48c   : > { %v6047_v17 = vrot.slane %v6046_v11, 4 }
 0x48e   : > { %v6048_v56 = vadd.f32 %v6047_v17, %v6046_v11 }
 0x490   : > { %v6049_v44 = vrot.slane %v6048_v56, 2 }
 0x492   : > { %v6050_v13 = vadd.f32 %v6049_v44, %v6048_v56 }
 0x494   : > { %v6051_v45 = vrot.slane %v6050_v13, 1 }
 0x496   : > { %v6052_v63 = vadd.f32 %v6051_v45, %v6050_v13 }
 0x498   : > { %v6053_v57 = vmul.f32 0.00390625, %v6052_v63 }
 0x49a   : > { %v6054_v29 = vadd.f32 1e-05, %v6053_v57 }
 0x49c   : > { %7683 = vrsqrt.f32 %v6054_v29 }
 0x4a6   : > { %v7684_v52 = vpop.eup %7683 }
 0x4a7   : > { %v6056_v19 = vmul.f32 %v7684_v52, %v10091_v2  ;;  %v6057_v60 = vmul.f32 %v7684_v52, %v10094_v22  ;;  %v6058_v53 = vmul.f32 %v7684_v52, %v10097_v62  ;;  %v6059_v42 = vmul.f32 %v7684_v52, %v10104_v61 }
 0x4a8   : > { %v6060_v55 = vmul.f32 %v7684_v52, %v10107_v35  ;;  %v6061_v6 = vmul.f32 %v7684_v52, %v10112_v59  ;;  %v6062_v27 = vmul.f32 %v7684_v52, %v10117_v33  ;;  %v6063_v8 = vmul.f32 %v7684_v52, %v10122_v23 }
 0x4a9   : > { %v6064_v30 = vmul.f32 %v7684_v52, %v10030_v58  ;;  %v6065_v34 = vmul.f32 %v7684_v52, %v10033_v32  ;;  %v6066_v2 = vmul.f32 %v7684_v52, %v10036_v12  ;;  %v6067_v22 = vmul.f32 %v7684_v52, %v10039_v39  ;;  %v6751_v12 = vld [vmem:[%s10268_s5] ss:$0 sm:$0xff] }
 0x4aa   : > { %v6068_v62 = vmul.f32 %v7684_v52, %v10042_v54  ;;  %v6069_v61 = vmul.f32 %v7684_v52, %v10045_v37  ;;  %v6070_v35 = vmul.f32 %v7684_v52, %v10048_v1  ;;  %v6071_v59 = vmul.f32 %v7684_v52, %v10051_v24 }
 0x4ab   : > { %v6072_v33 = vmul.f32 %v7684_v52, %v10054_v28  ;;  %v6073_v23 = vmul.f32 %v7684_v52, %v10057_v38  ;;  %v6074_v58 = vmul.f32 %v7684_v52, %v10060_v9  ;;  %v6075_v32 = vmul.f32 %v7684_v52, %v10063_v25 }
 0x4ac   : > { %v6076_v39 = vmul.f32 %v7684_v52, %v10065_v43  ;;  %v6077_v54 = vmul.f32 %v7684_v52, %v10067_v10  ;;  %v6078_v37 = vmul.f32 %v7684_v52, %v10070_v0  ;;  %v6079_v1 = vmul.f32 %v7684_v52, %v10072_v48 }
 0x4ad   : > { %v6080_v24 = vmul.f32 %v7684_v52, %v10074_v51  ;;  %v6081_v28 = vmul.f32 %v7684_v52, %v10076_v21  ;;  %v6082_v38 = vmul.f32 %v7684_v52, %v10078_v31  ;;  %v6083_v9 = vmul.f32 %v7684_v52, %v10080_v40 }
 0x4ae   : > { %v6084_v25 = vmul.f32 %v7684_v52, %v10082_v46  ;;  %v6085_v15 = vmul.f32 %v7684_v52, %v10084_v18  ;;  %v6086_v43 = vmul.f32 %v7684_v52, %v10086_v7  ;;  %v6087_v10 = vmul.f32 %v7684_v52, %v10088_v3 }
 0x4af   : > { %v6094_v26 = vmul.f32 %v6751_v12, %v6056_v19  ;;  %v6095_v0 = vmul.f32 %v6751_v12, %v6057_v60  ;;  %v6096_v47 = vmul.f32 %v6751_v12, %v6058_v53  ;;  %v6097_v48 = vmul.f32 %v6751_v12, %v6059_v42 }
 0x4b0   : > { %v6098_v5 = vmul.f32 %v6751_v12, %v6060_v55  ;;  %v6099_v51 = vmul.f32 %v6751_v12, %v6061_v6  ;;  %v6100_v49 = vmul.f32 %v6751_v12, %v6062_v27  ;;  %v6101_v21 = vmul.f32 %v6751_v12, %v6063_v8 }
 0x4b1   : > { %v6102_v36 = vmul.f32 %v6751_v12, %v6064_v30  ;;  %v6103_v31 = vmul.f32 %v6751_v12, %v6065_v34  ;;  %v6104_v20 = vmul.f32 %v6751_v12, %v6066_v2  ;;  %v6105_v40 = vmul.f32 %v6751_v12, %v6067_v22 }
 0x4b2   : > { %v6106_v50 = vmul.f32 %v6751_v12, %v6068_v62  ;;  %v6107_v46 = vmul.f32 %v6751_v12, %v6069_v61  ;;  %v6108_v16 = vmul.f32 %v6751_v12, %v6070_v35  ;;  %v6109_v18 = vmul.f32 %v6751_v12, %v6071_v59 }
 0x4b3   : > { %v6110_v4 = vmul.f32 %v6751_v12, %v6072_v33  ;;  %v6111_v7 = vmul.f32 %v6751_v12, %v6073_v23  ;;  %v6112_v41 = vmul.f32 %v6751_v12, %v6074_v58  ;;  %v6113_v3 = vmul.f32 %v6751_v12, %v6075_v32 }
 0x4b4   : > { %v6114_v11 = vmul.f32 %v6751_v12, %v6076_v39  ;;  %v6115_v17 = vmul.f32 %v6751_v12, %v6077_v54  ;;  %v6116_v56 = vmul.f32 %v6751_v12, %v6078_v37  ;;  %v6117_v44 = vmul.f32 %v6751_v12, %v6079_v1 }
 0x4b5   : > { %v6118_v13 = vmul.f32 %v6751_v12, %v6080_v24  ;;  %v6119_v45 = vmul.f32 %v6751_v12, %v6081_v28  ;;  %v6120_v63 = vmul.f32 %v6751_v12, %v6082_v38  ;;  %v6121_v57 = vmul.f32 %v6751_v12, %v6083_v9 }
 0x4b6   : > { %v6122_v29 = vmul.f32 %v6751_v12, %v6084_v25  ;;  %v6123_v52 = vmul.f32 %v6751_v12, %v6085_v15  ;;  %v6124_v19 = vmul.f32 %v6751_v12, %v6086_v43  ;;  %v6125_v60 = vmul.f32 %v6751_v12, %v6087_v10 }
 0x4b7   : > { %v10216_v53 = vadd.f32 %v6752_v14, %v6094_v26  ;;  %v10218_v42 = vadd.f32 %v6752_v14, %v6095_v0  ;;  %v10220_v55 = vadd.f32 %v6752_v14, %v6096_v47  ;;  %v10222_v6 = vadd.f32 %v6752_v14, %v6097_v48 }
 0x4b8   : > { %v10224_v27 = vadd.f32 %v6752_v14, %v6098_v5  ;;  %v10226_v8 = vadd.f32 %v6752_v14, %v6099_v51  ;;  %v10228_v30 = vadd.f32 %v6752_v14, %v6100_v49  ;;  %v6139_v34 = vadd.f32 %v6752_v14, %v6101_v21 }
 0x4b9   : > { %v6140_v2 = vadd.f32 %v6752_v14, %v6102_v36  ;;  %v6141_v22 = vadd.f32 %v6752_v14, %v6103_v31  ;;  %v6142_v62 = vadd.f32 %v6752_v14, %v6104_v20  ;;  %v6143_v61 = vadd.f32 %v6752_v14, %v6105_v40 }
 0x4ba   : > { %v6144_v35 = vadd.f32 %v6752_v14, %v6106_v50  ;;  %v6145_v59 = vadd.f32 %v6752_v14, %v6107_v46  ;;  %v6146_v33 = vadd.f32 %v6752_v14, %v6108_v16  ;;  %v6147_v23 = vadd.f32 %v6752_v14, %v6109_v18 }
 0x4bb   : > { %v6148_v58 = vadd.f32 %v6752_v14, %v6110_v4  ;;  %v6149_v32 = vadd.f32 %v6752_v14, %v6111_v7  ;;  %v6150_v12 = vadd.f32 %v6752_v14, %v6112_v41  ;;  %v6151_v39 = vadd.f32 %v6752_v14, %v6113_v3 }
 0x4bc   : > { %v6152_v54 = vadd.f32 %v6752_v14, %v6114_v11  ;;  %v6153_v37 = vadd.f32 %v6752_v14, %v6115_v17  ;;  %v6154_v1 = vadd.f32 %v6752_v14, %v6116_v56  ;;  %v6155_v24 = vadd.f32 %v6752_v14, %v6117_v44 }
 0x4bd   : > { %v6156_v28 = vadd.f32 %v6752_v14, %v6118_v13  ;;  %v6157_v38 = vadd.f32 %v6752_v14, %v6119_v45  ;;  %v6158_v9 = vadd.f32 %v6752_v14, %v6120_v63  ;;  %v6159_v25 = vadd.f32 %v6752_v14, %v6121_v57 }
 0x4be   : > { %v6160_v15 = vadd.f32 %v6752_v14, %v6122_v29  ;;  %v6161_v43 = vadd.f32 %v6752_v14, %v6123_v52  ;;  %v6162_v10 = vadd.f32 %v6752_v14, %v6124_v19  ;;  %v6163_v26 = vadd.f32 %v6752_v14, %v6125_v60 }
 0x4bf   : > { %v6164_v0 = vmax.f32 %v10216_v53, 0.0  ;;  %v6165_v47 = vmax.f32 %v10218_v42, 0.0  ;;  %v6166_v48 = vmax.f32 %v10220_v55, 0.0  ;;  %v6167_v5 = vmax.f32 %v10222_v6, 0.0 }
 0x4c0   : > { %v6168_v51 = vmax.f32 %v10224_v27, 0.0  ;;  %v6169_v49 = vmax.f32 %v10226_v8, 0.0  ;;  %v6170_v21 = vmax.f32 %v10228_v30, 0.0  ;;  %v6171_v36 = vmax.f32 %v6139_v34, 0.0 }
 0x4c1   : > { %v6172_v31 = vmax.f32 %v6140_v2, 0.0  ;;  %v6173_v20 = vmax.f32 %v6141_v22, 0.0  ;;  %v6174_v40 = vmax.f32 %v6142_v62, 0.0  ;;  %v6175_v50 = vmax.f32 %v6143_v61, 0.0 }
 0x4c2   : > { %v6176_v46 = vmax.f32 %v6144_v35, 0.0  ;;  %v6177_v16 = vmax.f32 %v6145_v59, 0.0  ;;  %v6178_v18 = vmax.f32 %v6146_v33, 0.0  ;;  %v6179_v4 = vmax.f32 %v6147_v23, 0.0 }
 0x4c3   : > { %v6180_v7 = vmax.f32 %v6148_v58, 0.0  ;;  %v6181_v41 = vmax.f32 %v6149_v32, 0.0  ;;  %v6182_v3 = vmax.f32 %v6150_v12, 0.0  ;;  %v6183_v14 = vmax.f32 %v6151_v39, 0.0 }
 0x4c4   : > { %v6184_v11 = vmax.f32 %v6152_v54, 0.0  ;;  %v6185_v17 = vmax.f32 %v6153_v37, 0.0  ;;  %v6186_v56 = vmax.f32 %v6154_v1, 0.0  ;;  %v6187_v44 = vmax.f32 %v6155_v24, 0.0 }
 0x4c5   : > { %v6188_v13 = vmax.f32 %v6156_v28, 0.0  ;;  %v6189_v45 = vmax.f32 %v6157_v38, 0.0  ;;  %v6190_v63 = vmax.f32 %v6158_v9, 0.0  ;;  %v6191_v57 = vmax.f32 %v6159_v25, 0.0 }
 0x4c6   : > { %v6192_v29 = vmax.f32 %v6160_v15, 0.0  ;;  %v6193_v52 = vmax.f32 %v6161_v43, 0.0  ;;  %v6194_v19 = vmax.f32 %v6162_v10, 0.0  ;;  %v6195_v60 = vmax.f32 %v6163_v26, 0.0 }
 0x4c7   : > { %v6856_v53 = vpack.c.bf16 %v6165_v47, %v6164_v0  ;;  %v6861_v42 = vpack.c.bf16 %v6167_v5, %v6166_v48  ;;  %v6866_v55 = vpack.c.bf16 %v6169_v49, %v6168_v51  ;;  %v6871_v6 = vpack.c.bf16 %v6171_v36, %v6170_v21 }
 0x4c8   : > { %v6876_v27 = vpack.c.bf16 %v6173_v20, %v6172_v31  ;;  %v6881_v8 = vpack.c.bf16 %v6175_v50, %v6174_v40  ;;  %v6886_v30 = vpack.c.bf16 %v6177_v16, %v6176_v46  ;;  %v6891_v34 = vpack.c.bf16 %v6179_v4, %v6178_v18 }
 0x4c9   : > { %6857 = vst [vmem:[%s10242_s23] sm:$0xff] %v6856_v53   ;;  %6933 = vst [vmem:[%s10242_s23 + $0x8] sm:$0xff] %v6861_v42   ;;  %v6896_v2 = vpack.c.bf16 %v6181_v41, %v6180_v7  ;;  %v6901_v22 = vpack.c.bf16 %v6183_v14, %v6182_v3  ;;  %v6906_v62 = vpack.c.bf16 %v6185_v17, %v6184_v11 }
 0x4ca   : > { %6934 = vst [vmem:[%s10242_s23 + $0x10] sm:$0xff] %v6866_v55   ;;  %6935 = vst [vmem:[%s10242_s23 + $0x18] sm:$0xff] %v6871_v6   ;;  %v6911_v61 = vpack.c.bf16 %v6187_v44, %v6186_v56  ;;  %v6916_v35 = vpack.c.bf16 %v6189_v45, %v6188_v13  ;;  %v6921_v59 = vpack.c.bf16 %v6191_v57, %v6190_v63 }
 0x4cb   : > { %6936 = vst [vmem:[%s10242_s23 + $0x20] sm:$0xff] %v6876_v27   ;;  %6937 = vst [vmem:[%s10242_s23 + $0x28] sm:$0xff] %v6881_v8   ;;  %v6926_v33 = vpack.c.bf16 %v6193_v52, %v6192_v29  ;;  %v6931_v23 = vpack.c.bf16 %v6195_v60, %v6194_v19 }
 0x4cc   : > { %6938 = vst [vmem:[%s10242_s23 + $0x30] sm:$0xff] %v6886_v30   ;;  %6939 = vst [vmem:[%s10242_s23 + $0x38] sm:$0xff] %v6891_v34  }
 0x4cd   : > { %6940 = vst [vmem:[%s10242_s23 + $0x40] sm:$0xff] %v6896_v2   ;;  %6941 = vst [vmem:[%s10242_s23 + $0x48] sm:$0xff] %v6901_v22  }
 0x4ce   : > { %6942 = vst [vmem:[%s10242_s23 + $0x50] sm:$0xff] %v6906_v62   ;;  %6943 = vst [vmem:[%s10242_s23 + $0x58] sm:$0xff] %v6911_v61  }
 0x4cf   : > { %6944 = vst [vmem:[%s10242_s23 + $0x60] sm:$0xff] %v6916_v35   ;;  %6945 = vst [vmem:[%s10242_s23 + $0x68] sm:$0xff] %v6921_v59  }
 0x4d0   : > { %6946 = vst [vmem:[%s10242_s23 + $0x70] sm:$0xff] %v6926_v33   ;;  %6947 = vst [vmem:[%s10242_s23 + $0x78] sm:$0xff] %v6931_v23  }
 0x4d1 PF: > { %s17_s24 = sadd.s32 1, %s7691_s24  }
 0x4d2   : > { %p14_p4 = scmp.ge.s32.totalorder %s17_s24, 4  }
 0x4d4   :  { %16 = sbr.rel (!%p14_p4) target bundleno = 1 (0x1), region = 81 }

</bundles_post_ra>
